<compile_context>
chip_gen: v5e
topology: v5e:2x2
jax: 0.10.0
libtpu: 0.0.40
codegen_flags: <defaults>
</compile_context>

<pallas_src>
import jax
import jax.numpy as jnp
from jax.experimental import pallas as pl
from jax.experimental.pallas import tpu as pltpu


def _upsample_body_kernel(x2_ref, x1u_ref, w1a_ref, w1b_ref, b1_ref,
                          w2_ref, b2_ref, out_ref,
                          pad_a, pad_b, pad_h):
    # x2_ref : (1, H, W, C2)   skip-connection features (full res), NHWC
    # x1u_ref: (1, H, W, C1)   bilinearly-upsampled x1, NHWC
    # w1a_ref: (9, C2, Cout)   conv1 taps for the x2 channel group
    # w1b_ref: (9, C1, Cout)   conv1 taps for the x1u channel group
    # b1_ref : (1, Cout)
    # w2_ref : (9, Cout, Cout) conv2 taps
    # b2_ref : (1, Cout)
    # out_ref: (1, H*W, Cout)
    # pad_a/pad_b/pad_h: zero-bordered VMEM scratches (H+2, W+2, C*)
    _, H, W, _ = x2_ref.shape

    def zero_border(ref):
        Hp, Wp, C = ref.shape
        ref[0:1, :, :] = jnp.zeros((1, Wp, C), jnp.float32)
        ref[Hp - 1:Hp, :, :] = jnp.zeros((1, Wp, C), jnp.float32)
        ref[:, 0:1, :] = jnp.zeros((Hp, 1, C), jnp.float32)
        ref[:, Wp - 1:Wp, :] = jnp.zeros((Hp, 1, C), jnp.float32)

    # Only the 1-wide halo needs zeroing; interiors are fully overwritten below.
    zero_border(pad_a)
    zero_border(pad_b)
    zero_border(pad_h)

    # Implicit concat([x2, up(x1)], channel): the two groups stay in separate
    # padded buffers, conv1's weight is split to match.
    pad_a[1:H + 1, 1:W + 1, :] = x2_ref[0]
    pad_b[1:H + 1, 1:W + 1, :] = x1u_ref[0]

    def conv3x3_bias_relu(groups, b_ref):
        acc = None
        for t in range(9):                       # static unroll: 9 taps
            dy, dx = divmod(t, 3)
            for ref, w_ref in groups:
                C = ref.shape[2]
                win = ref[dy:dy + H, dx:dx + W, :].reshape(H * W, C)
                contrib = jnp.dot(win, w_ref[t],
                                  preferred_element_type=jnp.float32)
                acc = contrib if acc is None else acc + contrib
        return jnp.maximum(acc + b_ref[...], 0.0)          # bias + ReLU

    y1 = conv3x3_bias_relu([(pad_a, w1a_ref), (pad_b, w1b_ref)], b1_ref)
    Cout = y1.shape[-1]
    pad_h[1:H + 1, 1:W + 1, :] = y1.reshape(H, W, Cout)
    y2 = conv3x3_bias_relu([(pad_h, w2_ref)], b2_ref)
    out_ref[0] = y2.astype(out_ref.dtype)


def _bilinear_matrix(n_in, n_out):
    """1-D interpolation matrix for bilinear resize with align_corners=True."""
    if n_in == 1:
        return jnp.ones((n_out, 1), jnp.float32)
    src = jnp.arange(n_out) * (n_in - 1) / (n_out - 1)
    lo = jnp.clip(jnp.floor(src), 0, n_in - 2).astype(jnp.int32)
    frac = (src - lo).astype(jnp.float32)
    rows = jnp.arange(n_out)
    m = jnp.zeros((n_out, n_in), jnp.float32)
    m = m.at[rows, lo].add(1.0 - frac)
    m = m.at[rows, lo + 1].add(frac)
    return m


def upsample_pallas(x1, x2, w1, b1, w2, b2):
    """x1: (B,C1,H1,W1); x2: (B,C2,2*H1,2*W1); w1: (Cout, C1+C2, 3,3); w2: (Cout,Cout,3,3)."""
    B, C1, H1, W1 = x1.shape
    B2, C2, H2, W2 = x2.shape
    assert B2 == B and H2 == 2 * H1 and W2 == 2 * W1, (x1.shape, x2.shape)
    n_feat = C1 + C2
    out_feat = w1.shape[0]
    assert w1.shape[1] == n_feat and w2.shape[0] == w2.shape[1] == out_feat

    # --- bilinear 2x upsample of x1 (align_corners=True), exact, wrapper glue.
    a_h = _bilinear_matrix(H1, H2)                                     # (H2, H1)
    a_w = _bilinear_matrix(W1, W2)                                     # (W2, W1)
    x1u = jnp.einsum('gh,bchw->bcgw', a_h, x1.astype(jnp.float32),
                     precision=jax.lax.Precision.HIGHEST)
    x1u = jnp.einsum('vw,bcgw->bcgv', a_w, x1u,
                     precision=jax.lax.Precision.HIGHEST)              # (B,C1,H2,W2)

    # --- NCHW -> NHWC (channels on lanes).
    x2n = jnp.transpose(x2, (0, 2, 3, 1)).astype(jnp.float32)          # (B,H2,W2,C2)
    x1n = jnp.transpose(x1u, (0, 2, 3, 1))                             # (B,H2,W2,C1)

    # --- conv weights in tap-matmul form (9, Cin, Cout); conv1 split at concat boundary.
    w1a_t = jnp.transpose(w1[:, :C2], (2, 3, 1, 0)).reshape(9, C2, out_feat).astype(jnp.float32)
    w1b_t = jnp.transpose(w1[:, C2:], (2, 3, 1, 0)).reshape(9, C1, out_feat).astype(jnp.float32)
    w2_t = jnp.transpose(w2, (2, 3, 1, 0)).reshape(9, out_feat, out_feat).astype(jnp.float32)
    b1_r = b1.reshape(1, out_feat).astype(jnp.float32)
    b2_r = b2.reshape(1, out_feat).astype(jnp.float32)

    out_flat = pl.pallas_call(
        _upsample_body_kernel,
        out_shape=jax.ShapeDtypeStruct((B, H2 * W2, out_feat), jnp.float32),
        grid_spec=pltpu.PrefetchScalarGridSpec(
            num_scalar_prefetch=0,
            grid=(B,),
            in_specs=[
                pl.BlockSpec((1, H2, W2, C2), lambda b: (b, 0, 0, 0)),
                pl.BlockSpec((1, H2, W2, C1), lambda b: (b, 0, 0, 0)),
                pl.BlockSpec((9, C2, out_feat), lambda b: (0, 0, 0)),
                pl.BlockSpec((9, C1, out_feat), lambda b: (0, 0, 0)),
                pl.BlockSpec((1, out_feat), lambda b: (0, 0)),
                pl.BlockSpec((9, out_feat, out_feat), lambda b: (0, 0, 0)),
                pl.BlockSpec((1, out_feat), lambda b: (0, 0)),
            ],
            out_specs=pl.BlockSpec((1, H2 * W2, out_feat), lambda b: (b, 0, 0)),
            scratch_shapes=[
                pltpu.VMEM((H2 + 2, W2 + 2, C2), jnp.float32),
                pltpu.VMEM((H2 + 2, W2 + 2, C1), jnp.float32),
                pltpu.VMEM((H2 + 2, W2 + 2, out_feat), jnp.float32),
            ],
        ),
        compiler_params=pltpu.CompilerParams(
            dimension_semantics=("parallel",),
            vmem_limit_bytes=32 * 1024 * 1024,
        ),
    )(x2n, x1n, w1a_t, w1b_t, b1_r, w2_t, b2_r)

    out_nhwc = out_flat.reshape(B, H2, W2, out_feat)
    return jnp.transpose(out_nhwc, (0, 3, 1, 2))                       # NCHW


def upsample_ref(x1, x2, w1, b1, w2, b2):
    """Pure-JAX reference matching the PyTorch forward exactly."""
    B, C1, H1, W1 = x1.shape
    H2, W2 = 2 * H1, 2 * W1
    # bilinear, align_corners=True (gather + lerp form, independent of the wrapper path)
    ys = jnp.arange(H2) * (H1 - 1) / (H2 - 1)
    xs = jnp.arange(W2) * (W1 - 1) / (W2 - 1)
    y0 = jnp.clip(jnp.floor(ys), 0, H1 - 2).astype(jnp.int32)
    x0 = jnp.clip(jnp.floor(xs), 0, W1 - 2).astype(jnp.int32)
    fy = (ys - y0).astype(jnp.float32)
    fx = (xs - x0).astype(jnp.float32)
    v = (x1[:, :, y0, :] * (1.0 - fy)[None, None, :, None]
         + x1[:, :, y0 + 1, :] * fy[None, None, :, None])
    up = (v[:, :, :, x0] * (1.0 - fx)[None, None, None, :]
          + v[:, :, :, x0 + 1] * fx[None, None, None, :])
    xin = jnp.concatenate([x2, up], axis=1)
    y = jax.lax.conv_general_dilated(
        xin, w1, (1, 1), ((1, 1), (1, 1)),
        dimension_numbers=("NCHW", "OIHW", "NCHW"),
        precision=jax.lax.Precision.HIGHEST) + b1.reshape(1, -1, 1, 1)
    y = jnp.maximum(y, 0.0)
    y = jax.lax.conv_general_dilated(
        y, w2, (1, 1), ((1, 1), (1, 1)),
        dimension_numbers=("NCHW", "OIHW", "NCHW"),
        precision=jax.lax.Precision.HIGHEST) + b2.reshape(1, -1, 1, 1)
    return jnp.maximum(y, 0.0)


if __name__ == "__main__":
    key = jax.random.PRNGKey(0)
    k1, k2, kw1, kb1, kw2, kb2 = jax.random.split(key, 6)

    B = 2
    C1, C2 = 8, 8                 # x1 (low-res) channels, x2 (skip) channels
    n_feat = C1 + C2              # conv1 input channels after the concat
    out_feat = 32
    H1 = W1 = 8                   # x1 spatial; x2 / output spatial = 16x16
    H2, W2 = 2 * H1, 2 * W1

    x1 = jax.random.normal(k1, (B, C1, H1, W1), dtype=jnp.float32)
    x2 = jax.random.normal(k2, (B, C2, H2, W2), dtype=jnp.float32)
    w1 = jax.random.normal(kw1, (out_feat, n_feat, 3, 3), dtype=jnp.float32) * 0.1
    b1 = jax.random.normal(kb1, (out_feat,), dtype=jnp.float32) * 0.1
    w2 = jax.random.normal(kw2, (out_feat, out_feat, 3, 3), dtype=jnp.float32) * 0.1
    b2 = jax.random.normal(kb2, (out_feat,), dtype=jnp.float32) * 0.1

    out = jax.block_until_ready(upsample_pallas(x1, x2, w1, b1, w2, b2))
    ref = jax.block_until_ready(upsample_ref(x1, x2, w1, b1, w2, b2))

    assert out.shape == (B, out_feat, H2, W2), out.shape
    max_err = float(jnp.max(jnp.abs(out - ref)))
    assert jnp.allclose(out, ref, atol=5e-4, rtol=5e-4), max_err
    print("KERNEL_OK")
</pallas_src>

<mosaic_0001>
module attributes {stable_mosaic.version = 11 : i64} {
  func.func @_upsample_body_kernel(%arg0: i32, %arg1: memref<1x16x16x8xf32, #tpu.memory_space<vmem>>, %arg2: memref<1x16x16x8xf32, #tpu.memory_space<vmem>>, %arg3: memref<9x8x32xf32, #tpu.memory_space<vmem>>, %arg4: memref<9x8x32xf32, #tpu.memory_space<vmem>>, %arg5: memref<1x32xf32, #tpu.memory_space<vmem>>, %arg6: memref<9x32x32xf32, #tpu.memory_space<vmem>>, %arg7: memref<1x32xf32, #tpu.memory_space<vmem>>, %arg8: memref<1x256x32xf32, #tpu.memory_space<vmem>>, %arg9: memref<18x18x8xf32, #tpu.memory_space<vmem>>, %arg10: memref<18x18x8xf32, #tpu.memory_space<vmem>>, %arg11: memref<18x18x32xf32, #tpu.memory_space<vmem>>) attributes {dimension_semantics = [#tpu.dimension_semantics<parallel>], iteration_bounds = array<i64: 2>, scalar_prefetch = 0 : i64, scratch_operands = 3 : i64, tpu.core_type = #tpu.core_type<tc>, window_params = [{transform_indices = @transform_0, window_bounds = array<i64: 1, 16, 16, 8>}, {transform_indices = @transform_1, window_bounds = array<i64: 1, 16, 16, 8>}, {pipeline_mode = #tpu.pipeline_mode<synchronous>, transform_indices = @transform_2, window_bounds = array<i64: 9, 8, 32>}, {pipeline_mode = #tpu.pipeline_mode<synchronous>, transform_indices = @transform_3, window_bounds = array<i64: 9, 8, 32>}, {pipeline_mode = #tpu.pipeline_mode<synchronous>, transform_indices = @transform_4, window_bounds = array<i64: 1, 32>}, {pipeline_mode = #tpu.pipeline_mode<synchronous>, transform_indices = @transform_5, window_bounds = array<i64: 9, 32, 32>}, {pipeline_mode = #tpu.pipeline_mode<synchronous>, transform_indices = @transform_6, window_bounds = array<i64: 1, 32>}, {transform_indices = @transform_7, window_bounds = array<i64: 1, 256, 32>}]} {
    %cst = arith.constant 0.000000e+00 : f32
    %0 = vector.broadcast %cst : f32 to vector<1x18x8xf32>
    %c0 = arith.constant 0 : index
    %c0_0 = arith.constant 0 : index
    %c0_1 = arith.constant 0 : index
    %1 = vector.load %arg9[%c0, %c0_0, %c0_1] : memref<18x18x8xf32, #tpu.memory_space<vmem>>, vector<1x18x8xf32>
    tpu.vector_store %arg9[%c0, %c0_0, %c0_1], %0 {strides = array<i32>} : memref<18x18x8xf32, #tpu.memory_space<vmem>>, vector<1x18x8xf32>,
    %cst_2 = arith.constant 0.000000e+00 : f32
    %2 = vector.broadcast %cst_2 : f32 to vector<1x18x8xf32>
    %c17 = arith.constant 17 : index
    %c0_3 = arith.constant 0 : index
    %c0_4 = arith.constant 0 : index
    %3 = vector.load %arg9[%c17, %c0_3, %c0_4] : memref<18x18x8xf32, #tpu.memory_space<vmem>>, vector<1x18x8xf32>
    tpu.vector_store %arg9[%c17, %c0_3, %c0_4], %2 {strides = array<i32>} : memref<18x18x8xf32, #tpu.memory_space<vmem>>, vector<1x18x8xf32>,
    %cst_5 = arith.constant 0.000000e+00 : f32
    %4 = vector.broadcast %cst_5 : f32 to vector<18x1x8xf32>
    %c0_6 = arith.constant 0 : index
    %c0_7 = arith.constant 0 : index
    %c0_8 = arith.constant 0 : index
    %5 = vector.load %arg9[%c0_6, %c0_7, %c0_8] : memref<18x18x8xf32, #tpu.memory_space<vmem>>, vector<18x1x8xf32>
    tpu.vector_store %arg9[%c0_6, %c0_7, %c0_8], %4 {strides = array<i32>} : memref<18x18x8xf32, #tpu.memory_space<vmem>>, vector<18x1x8xf32>,
    %cst_9 = arith.constant 0.000000e+00 : f32
    %6 = vector.broadcast %cst_9 : f32 to vector<18x1x8xf32>
    %c0_10 = arith.constant 0 : index
    %c17_11 = arith.constant 17 : index
    %c0_12 = arith.constant 0 : index
    %7 = vector.load %arg9[%c0_10, %c17_11, %c0_12] : memref<18x18x8xf32, #tpu.memory_space<vmem>>, vector<18x1x8xf32>
    tpu.vector_store %arg9[%c0_10, %c17_11, %c0_12], %6 {strides = array<i32>} : memref<18x18x8xf32, #tpu.memory_space<vmem>>, vector<18x1x8xf32>,
    %cst_13 = arith.constant 0.000000e+00 : f32
    %8 = vector.broadcast %cst_13 : f32 to vector<1x18x8xf32>
    %c0_14 = arith.constant 0 : index
    %c0_15 = arith.constant 0 : index
    %c0_16 = arith.constant 0 : index
    %9 = vector.load %arg10[%c0_14, %c0_15, %c0_16] : memref<18x18x8xf32, #tpu.memory_space<vmem>>, vector<1x18x8xf32>
    tpu.vector_store %arg10[%c0_14, %c0_15, %c0_16], %8 {strides = array<i32>} : memref<18x18x8xf32, #tpu.memory_space<vmem>>, vector<1x18x8xf32>,
    %cst_17 = arith.constant 0.000000e+00 : f32
    %10 = vector.broadcast %cst_17 : f32 to vector<1x18x8xf32>
    %c17_18 = arith.constant 17 : index
    %c0_19 = arith.constant 0 : index
    %c0_20 = arith.constant 0 : index
    %11 = vector.load %arg10[%c17_18, %c0_19, %c0_20] : memref<18x18x8xf32, #tpu.memory_space<vmem>>, vector<1x18x8xf32>
    tpu.vector_store %arg10[%c17_18, %c0_19, %c0_20], %10 {strides = array<i32>} : memref<18x18x8xf32, #tpu.memory_space<vmem>>, vector<1x18x8xf32>,
    %cst_21 = arith.constant 0.000000e+00 : f32
    %12 = vector.broadcast %cst_21 : f32 to vector<18x1x8xf32>
    %c0_22 = arith.constant 0 : index
    %c0_23 = arith.constant 0 : index
    %c0_24 = arith.constant 0 : index
    %13 = vector.load %arg10[%c0_22, %c0_23, %c0_24] : memref<18x18x8xf32, #tpu.memory_space<vmem>>, vector<18x1x8xf32>
    tpu.vector_store %arg10[%c0_22, %c0_23, %c0_24], %12 {strides = array<i32>} : memref<18x18x8xf32, #tpu.memory_space<vmem>>, vector<18x1x8xf32>,
    %cst_25 = arith.constant 0.000000e+00 : f32
    %14 = vector.broadcast %cst_25 : f32 to vector<18x1x8xf32>
    %c0_26 = arith.constant 0 : index
    %c17_27 = arith.constant 17 : index
    %c0_28 = arith.constant 0 : index
    %15 = vector.load %arg10[%c0_26, %c17_27, %c0_28] : memref<18x18x8xf32, #tpu.memory_space<vmem>>, vector<18x1x8xf32>
    tpu.vector_store %arg10[%c0_26, %c17_27, %c0_28], %14 {strides = array<i32>} : memref<18x18x8xf32, #tpu.memory_space<vmem>>, vector<18x1x8xf32>,
    %cst_29 = arith.constant 0.000000e+00 : f32
    %16 = vector.broadcast %cst_29 : f32 to vector<1x18x32xf32>
    %c0_30 = arith.constant 0 : index
    %c0_31 = arith.constant 0 : index
    %c0_32 = arith.constant 0 : index
    %17 = vector.load %arg11[%c0_30, %c0_31, %c0_32] : memref<18x18x32xf32, #tpu.memory_space<vmem>>, vector<1x18x32xf32>
    tpu.vector_store %arg11[%c0_30, %c0_31, %c0_32], %16 {strides = array<i32>} : memref<18x18x32xf32, #tpu.memory_space<vmem>>, vector<1x18x32xf32>,
    %cst_33 = arith.constant 0.000000e+00 : f32
    %18 = vector.broadcast %cst_33 : f32 to vector<1x18x32xf32>
    %c17_34 = arith.constant 17 : index
    %c0_35 = arith.constant 0 : index
    %c0_36 = arith.constant 0 : index
    %19 = vector.load %arg11[%c17_34, %c0_35, %c0_36] : memref<18x18x32xf32, #tpu.memory_space<vmem>>, vector<1x18x32xf32>
    tpu.vector_store %arg11[%c17_34, %c0_35, %c0_36], %18 {strides = array<i32>} : memref<18x18x32xf32, #tpu.memory_space<vmem>>, vector<1x18x32xf32>,
    %cst_37 = arith.constant 0.000000e+00 : f32
    %20 = vector.broadcast %cst_37 : f32 to vector<18x1x32xf32>
    %c0_38 = arith.constant 0 : index
    %c0_39 = arith.constant 0 : index
    %c0_40 = arith.constant 0 : index
    %21 = vector.load %arg11[%c0_38, %c0_39, %c0_40] : memref<18x18x32xf32, #tpu.memory_space<vmem>>, vector<18x1x32xf32>
    tpu.vector_store %arg11[%c0_38, %c0_39, %c0_40], %20 {strides = array<i32>} : memref<18x18x32xf32, #tpu.memory_space<vmem>>, vector<18x1x32xf32>,
    %cst_41 = arith.constant 0.000000e+00 : f32
    %22 = vector.broadcast %cst_41 : f32 to vector<18x1x32xf32>
    %c0_42 = arith.constant 0 : index
    %c17_43 = arith.constant 17 : index
    %c0_44 = arith.constant 0 : index
    %23 = vector.load %arg11[%c0_42, %c17_43, %c0_44] : memref<18x18x32xf32, #tpu.memory_space<vmem>>, vector<18x1x32xf32>
    tpu.vector_store %arg11[%c0_42, %c17_43, %c0_44], %22 {strides = array<i32>} : memref<18x18x32xf32, #tpu.memory_space<vmem>>, vector<18x1x32xf32>,
    %c0_45 = arith.constant 0 : index
    %c0_46 = arith.constant 0 : index
    %c0_47 = arith.constant 0 : index
    %c0_48 = arith.constant 0 : index
    %24 = vector.load %arg1[%c0_45, %c0_46, %c0_47, %c0_48] : memref<1x16x16x8xf32, #tpu.memory_space<vmem>>, vector<1x16x16x8xf32>
    %25 = vector.shape_cast %24 : vector<1x16x16x8xf32> to vector<16x16x8xf32>
    %c1 = arith.constant 1 : index
    %c1_49 = arith.constant 1 : index
    %c0_50 = arith.constant 0 : index
    %26 = vector.load %arg9[%c1, %c1_49, %c0_50] : memref<18x18x8xf32, #tpu.memory_space<vmem>>, vector<16x16x8xf32>
    tpu.vector_store %arg9[%c1, %c1_49, %c0_50], %25 {strides = array<i32>} : memref<18x18x8xf32, #tpu.memory_space<vmem>>, vector<16x16x8xf32>,
    %c0_51 = arith.constant 0 : index
    %c0_52 = arith.constant 0 : index
    %c0_53 = arith.constant 0 : index
    %c0_54 = arith.constant 0 : index
    %27 = vector.load %arg2[%c0_51, %c0_52, %c0_53, %c0_54] : memref<1x16x16x8xf32, #tpu.memory_space<vmem>>, vector<1x16x16x8xf32>
    %28 = vector.shape_cast %27 : vector<1x16x16x8xf32> to vector<16x16x8xf32>
    %c1_55 = arith.constant 1 : index
    %c1_56 = arith.constant 1 : index
    %c0_57 = arith.constant 0 : index
    %29 = vector.load %arg10[%c1_55, %c1_56, %c0_57] : memref<18x18x8xf32, #tpu.memory_space<vmem>>, vector<16x16x8xf32>
    tpu.vector_store %arg10[%c1_55, %c1_56, %c0_57], %28 {strides = array<i32>} : memref<18x18x8xf32, #tpu.memory_space<vmem>>, vector<16x16x8xf32>,
    %c0_58 = arith.constant 0 : index
    %c0_59 = arith.constant 0 : index
    %c0_60 = arith.constant 0 : index
    %30 = vector.load %arg9[%c0_58, %c0_59, %c0_60] : memref<18x18x8xf32, #tpu.memory_space<vmem>>, vector<16x16x8xf32>
    %31 = vector.shape_cast %30 : vector<16x16x8xf32> to vector<256x8xf32>
    %c0_61 = arith.constant 0 : index
    %c0_62 = arith.constant 0 : index
    %c0_63 = arith.constant 0 : index
    %32 = vector.load %arg3[%c0_61, %c0_62, %c0_63] : memref<9x8x32xf32, #tpu.memory_space<vmem>>, vector<1x8x32xf32>
    %33 = vector.shape_cast %32 : vector<1x8x32xf32> to vector<8x32xf32>
    %cst_64 = arith.constant dense<0.000000e+00> : vector<256x32xf32>
    %34 = tpu.matmul %31, %33, %cst_64 {dimension_numbers = #tpu.dot_dimension_numbers<[1], [0], [0], [1], [0, 0, 1, 1], [], []>} : vector<256x8xf32>, vector<8x32xf32>, vector<256x32xf32> -> vector<256x32xf32>
    %c0_65 = arith.constant 0 : index
    %c0_66 = arith.constant 0 : index
    %c0_67 = arith.constant 0 : index
    %35 = vector.load %arg10[%c0_65, %c0_66, %c0_67] : memref<18x18x8xf32, #tpu.memory_space<vmem>>, vector<16x16x8xf32>
    %36 = vector.shape_cast %35 : vector<16x16x8xf32> to vector<256x8xf32>
    %c0_68 = arith.constant 0 : index
    %c0_69 = arith.constant 0 : index
    %c0_70 = arith.constant 0 : index
    %37 = vector.load %arg4[%c0_68, %c0_69, %c0_70] : memref<9x8x32xf32, #tpu.memory_space<vmem>>, vector<1x8x32xf32>
    %38 = vector.shape_cast %37 : vector<1x8x32xf32> to vector<8x32xf32>
    %cst_71 = arith.constant dense<0.000000e+00> : vector<256x32xf32>
    %39 = tpu.matmul %36, %38, %cst_71 {dimension_numbers = #tpu.dot_dimension_numbers<[1], [0], [0], [1], [0, 0, 1, 1], [], []>} : vector<256x8xf32>, vector<8x32xf32>, vector<256x32xf32> -> vector<256x32xf32>
    %40 = arith.addf %34, %39 : vector<256x32xf32>
    %c0_72 = arith.constant 0 : index
    %c1_73 = arith.constant 1 : index
    %c0_74 = arith.constant 0 : index
    %41 = vector.load %arg9[%c0_72, %c1_73, %c0_74] : memref<18x18x8xf32, #tpu.memory_space<vmem>>, vector<16x16x8xf32>
    %42 = vector.shape_cast %41 : vector<16x16x8xf32> to vector<256x8xf32>
    %c1_75 = arith.constant 1 : index
    %c0_76 = arith.constant 0 : index
    %c0_77 = arith.constant 0 : index
    %43 = vector.load %arg3[%c1_75, %c0_76, %c0_77] : memref<9x8x32xf32, #tpu.memory_space<vmem>>, vector<1x8x32xf32>
    %44 = vector.shape_cast %43 : vector<1x8x32xf32> to vector<8x32xf32>
    %cst_78 = arith.constant dense<0.000000e+00> : vector<256x32xf32>
    %45 = tpu.matmul %42, %44, %cst_78 {dimension_numbers = #tpu.dot_dimension_numbers<[1], [0], [0], [1], [0, 0, 1, 1], [], []>} : vector<256x8xf32>, vector<8x32xf32>, vector<256x32xf32> -> vector<256x32xf32>
    %46 = arith.addf %40, %45 : vector<256x32xf32>
    %c0_79 = arith.constant 0 : index
    %c1_80 = arith.constant 1 : index
    %c0_81 = arith.constant 0 : index
    %47 = vector.load %arg10[%c0_79, %c1_80, %c0_81] : memref<18x18x8xf32, #tpu.memory_space<vmem>>, vector<16x16x8xf32>
    %48 = vector.shape_cast %47 : vector<16x16x8xf32> to vector<256x8xf32>
    %c1_82 = arith.constant 1 : index
    %c0_83 = arith.constant 0 : index
    %c0_84 = arith.constant 0 : index
    %49 = vector.load %arg4[%c1_82, %c0_83, %c0_84] : memref<9x8x32xf32, #tpu.memory_space<vmem>>, vector<1x8x32xf32>
    %50 = vector.shape_cast %49 : vector<1x8x32xf32> to vector<8x32xf32>
    %cst_85 = arith.constant dense<0.000000e+00> : vector<256x32xf32>
    %51 = tpu.matmul %48, %50, %cst_85 {dimension_numbers = #tpu.dot_dimension_numbers<[1], [0], [0], [1], [0, 0, 1, 1], [], []>} : vector<256x8xf32>, vector<8x32xf32>, vector<256x32xf32> -> vector<256x32xf32>
    %52 = arith.addf %46, %51 : vector<256x32xf32>
    %c0_86 = arith.constant 0 : index
    %c2 = arith.constant 2 : index
    %c0_87 = arith.constant 0 : index
    %53 = vector.load %arg9[%c0_86, %c2, %c0_87] : memref<18x18x8xf32, #tpu.memory_space<vmem>>, vector<16x16x8xf32>
    %54 = vector.shape_cast %53 : vector<16x16x8xf32> to vector<256x8xf32>
    %c2_88 = arith.constant 2 : index
    %c0_89 = arith.constant 0 : index
    %c0_90 = arith.constant 0 : index
    %55 = vector.load %arg3[%c2_88, %c0_89, %c0_90] : memref<9x8x32xf32, #tpu.memory_space<vmem>>, vector<1x8x32xf32>
    %56 = vector.shape_cast %55 : vector<1x8x32xf32> to vector<8x32xf32>
    %cst_91 = arith.constant dense<0.000000e+00> : vector<256x32xf32>
    %57 = tpu.matmul %54, %56, %cst_91 {dimension_numbers = #tpu.dot_dimension_numbers<[1], [0], [0], [1], [0, 0, 1, 1], [], []>} : vector<256x8xf32>, vector<8x32xf32>, vector<256x32xf32> -> vector<256x32xf32>
    %58 = arith.addf %52, %57 : vector<256x32xf32>
    %c0_92 = arith.constant 0 : index
    %c2_93 = arith.constant 2 : index
    %c0_94 = arith.constant 0 : index
    %59 = vector.load %arg10[%c0_92, %c2_93, %c0_94] : memref<18x18x8xf32, #tpu.memory_space<vmem>>, vector<16x16x8xf32>
    %60 = vector.shape_cast %59 : vector<16x16x8xf32> to vector<256x8xf32>
    %c2_95 = arith.constant 2 : index
    %c0_96 = arith.constant 0 : index
    %c0_97 = arith.constant 0 : index
    %61 = vector.load %arg4[%c2_95, %c0_96, %c0_97] : memref<9x8x32xf32, #tpu.memory_space<vmem>>, vector<1x8x32xf32>
    %62 = vector.shape_cast %61 : vector<1x8x32xf32> to vector<8x32xf32>
    %cst_98 = arith.constant dense<0.000000e+00> : vector<256x32xf32>
    %63 = tpu.matmul %60, %62, %cst_98 {dimension_numbers = #tpu.dot_dimension_numbers<[1], [0], [0], [1], [0, 0, 1, 1], [], []>} : vector<256x8xf32>, vector<8x32xf32>, vector<256x32xf32> -> vector<256x32xf32>
    %64 = arith.addf %58, %63 : vector<256x32xf32>
    %c1_99 = arith.constant 1 : index
    %c0_100 = arith.constant 0 : index
    %c0_101 = arith.constant 0 : index
    %65 = vector.load %arg9[%c1_99, %c0_100, %c0_101] : memref<18x18x8xf32, #tpu.memory_space<vmem>>, vector<16x16x8xf32>
    %66 = vector.shape_cast %65 : vector<16x16x8xf32> to vector<256x8xf32>
    %c3 = arith.constant 3 : index
    %c0_102 = arith.constant 0 : index
    %c0_103 = arith.constant 0 : index
    %67 = vector.load %arg3[%c3, %c0_102, %c0_103] : memref<9x8x32xf32, #tpu.memory_space<vmem>>, vector<1x8x32xf32>
    %68 = vector.shape_cast %67 : vector<1x8x32xf32> to vector<8x32xf32>
    %cst_104 = arith.constant dense<0.000000e+00> : vector<256x32xf32>
    %69 = tpu.matmul %66, %68, %cst_104 {dimension_numbers = #tpu.dot_dimension_numbers<[1], [0], [0], [1], [0, 0, 1, 1], [], []>} : vector<256x8xf32>, vector<8x32xf32>, vector<256x32xf32> -> vector<256x32xf32>
    %70 = arith.addf %64, %69 : vector<256x32xf32>
    %c1_105 = arith.constant 1 : index
    %c0_106 = arith.constant 0 : index
    %c0_107 = arith.constant 0 : index
    %71 = vector.load %arg10[%c1_105, %c0_106, %c0_107] : memref<18x18x8xf32, #tpu.memory_space<vmem>>, vector<16x16x8xf32>
    %72 = vector.shape_cast %71 : vector<16x16x8xf32> to vector<256x8xf32>
    %c3_108 = arith.constant 3 : index
    %c0_109 = arith.constant 0 : index
    %c0_110 = arith.constant 0 : index
    %73 = vector.load %arg4[%c3_108, %c0_109, %c0_110] : memref<9x8x32xf32, #tpu.memory_space<vmem>>, vector<1x8x32xf32>
    %74 = vector.shape_cast %73 : vector<1x8x32xf32> to vector<8x32xf32>
    %cst_111 = arith.constant dense<0.000000e+00> : vector<256x32xf32>
    %75 = tpu.matmul %72, %74, %cst_111 {dimension_numbers = #tpu.dot_dimension_numbers<[1], [0], [0], [1], [0, 0, 1, 1], [], []>} : vector<256x8xf32>, vector<8x32xf32>, vector<256x32xf32> -> vector<256x32xf32>
    %76 = arith.addf %70, %75 : vector<256x32xf32>
    %c1_112 = arith.constant 1 : index
    %c1_113 = arith.constant 1 : index
    %c0_114 = arith.constant 0 : index
    %77 = vector.load %arg9[%c1_112, %c1_113, %c0_114] : memref<18x18x8xf32, #tpu.memory_space<vmem>>, vector<16x16x8xf32>
    %78 = vector.shape_cast %77 : vector<16x16x8xf32> to vector<256x8xf32>
    %c4 = arith.constant 4 : index
    %c0_115 = arith.constant 0 : index
    %c0_116 = arith.constant 0 : index
    %79 = vector.load %arg3[%c4, %c0_115, %c0_116] : memref<9x8x32xf32, #tpu.memory_space<vmem>>, vector<1x8x32xf32>
    %80 = vector.shape_cast %79 : vector<1x8x32xf32> to vector<8x32xf32>
    %cst_117 = arith.constant dense<0.000000e+00> : vector<256x32xf32>
    %81 = tpu.matmul %78, %80, %cst_117 {dimension_numbers = #tpu.dot_dimension_numbers<[1], [0], [0], [1], [0, 0, 1, 1], [], []>} : vector<256x8xf32>, vector<8x32xf32>, vector<256x32xf32> -> vector<256x32xf32>
    %82 = arith.addf %76, %81 : vector<256x32xf32>
    %c1_118 = arith.constant 1 : index
    %c1_119 = arith.constant 1 : index
    %c0_120 = arith.constant 0 : index
    %83 = vector.load %arg10[%c1_118, %c1_119, %c0_120] : memref<18x18x8xf32, #tpu.memory_space<vmem>>, vector<16x16x8xf32>
    %84 = vector.shape_cast %83 : vector<16x16x8xf32> to vector<256x8xf32>
    %c4_121 = arith.constant 4 : index
    %c0_122 = arith.constant 0 : index
    %c0_123 = arith.constant 0 : index
    %85 = vector.load %arg4[%c4_121, %c0_122, %c0_123] : memref<9x8x32xf32, #tpu.memory_space<vmem>>, vector<1x8x32xf32>
    %86 = vector.shape_cast %85 : vector<1x8x32xf32> to vector<8x32xf32>
    %cst_124 = arith.constant dense<0.000000e+00> : vector<256x32xf32>
    %87 = tpu.matmul %84, %86, %cst_124 {dimension_numbers = #tpu.dot_dimension_numbers<[1], [0], [0], [1], [0, 0, 1, 1], [], []>} : vector<256x8xf32>, vector<8x32xf32>, vector<256x32xf32> -> vector<256x32xf32>
    %88 = arith.addf %82, %87 : vector<256x32xf32>
    %c1_125 = arith.constant 1 : index
    %c2_126 = arith.constant 2 : index
    %c0_127 = arith.constant 0 : index
    %89 = vector.load %arg9[%c1_125, %c2_126, %c0_127] : memref<18x18x8xf32, #tpu.memory_space<vmem>>, vector<16x16x8xf32>
    %90 = vector.shape_cast %89 : vector<16x16x8xf32> to vector<256x8xf32>
    %c5 = arith.constant 5 : index
    %c0_128 = arith.constant 0 : index
    %c0_129 = arith.constant 0 : index
    %91 = vector.load %arg3[%c5, %c0_128, %c0_129] : memref<9x8x32xf32, #tpu.memory_space<vmem>>, vector<1x8x32xf32>
    %92 = vector.shape_cast %91 : vector<1x8x32xf32> to vector<8x32xf32>
    %cst_130 = arith.constant dense<0.000000e+00> : vector<256x32xf32>
    %93 = tpu.matmul %90, %92, %cst_130 {dimension_numbers = #tpu.dot_dimension_numbers<[1], [0], [0], [1], [0, 0, 1, 1], [], []>} : vector<256x8xf32>, vector<8x32xf32>, vector<256x32xf32> -> vector<256x32xf32>
    %94 = arith.addf %88, %93 : vector<256x32xf32>
    %c1_131 = arith.constant 1 : index
    %c2_132 = arith.constant 2 : index
    %c0_133 = arith.constant 0 : index
    %95 = vector.load %arg10[%c1_131, %c2_132, %c0_133] : memref<18x18x8xf32, #tpu.memory_space<vmem>>, vector<16x16x8xf32>
    %96 = vector.shape_cast %95 : vector<16x16x8xf32> to vector<256x8xf32>
    %c5_134 = arith.constant 5 : index
    %c0_135 = arith.constant 0 : index
    %c0_136 = arith.constant 0 : index
    %97 = vector.load %arg4[%c5_134, %c0_135, %c0_136] : memref<9x8x32xf32, #tpu.memory_space<vmem>>, vector<1x8x32xf32>
    %98 = vector.shape_cast %97 : vector<1x8x32xf32> to vector<8x32xf32>
    %cst_137 = arith.constant dense<0.000000e+00> : vector<256x32xf32>
    %99 = tpu.matmul %96, %98, %cst_137 {dimension_numbers = #tpu.dot_dimension_numbers<[1], [0], [0], [1], [0, 0, 1, 1], [], []>} : vector<256x8xf32>, vector<8x32xf32>, vector<256x32xf32> -> vector<256x32xf32>
    %100 = arith.addf %94, %99 : vector<256x32xf32>
    %c2_138 = arith.constant 2 : index
    %c0_139 = arith.constant 0 : index
    %c0_140 = arith.constant 0 : index
    %101 = vector.load %arg9[%c2_138, %c0_139, %c0_140] : memref<18x18x8xf32, #tpu.memory_space<vmem>>, vector<16x16x8xf32>
    %102 = vector.shape_cast %101 : vector<16x16x8xf32> to vector<256x8xf32>
    %c6 = arith.constant 6 : index
    %c0_141 = arith.constant 0 : index
    %c0_142 = arith.constant 0 : index
    %103 = vector.load %arg3[%c6, %c0_141, %c0_142] : memref<9x8x32xf32, #tpu.memory_space<vmem>>, vector<1x8x32xf32>
    %104 = vector.shape_cast %103 : vector<1x8x32xf32> to vector<8x32xf32>
    %cst_143 = arith.constant dense<0.000000e+00> : vector<256x32xf32>
    %105 = tpu.matmul %102, %104, %cst_143 {dimension_numbers = #tpu.dot_dimension_numbers<[1], [0], [0], [1], [0, 0, 1, 1], [], []>} : vector<256x8xf32>, vector<8x32xf32>, vector<256x32xf32> -> vector<256x32xf32>
    %106 = arith.addf %100, %105 : vector<256x32xf32>
    %c2_144 = arith.constant 2 : index
    %c0_145 = arith.constant 0 : index
    %c0_146 = arith.constant 0 : index
    %107 = vector.load %arg10[%c2_144, %c0_145, %c0_146] : memref<18x18x8xf32, #tpu.memory_space<vmem>>, vector<16x16x8xf32>
    %108 = vector.shape_cast %107 : vector<16x16x8xf32> to vector<256x8xf32>
    %c6_147 = arith.constant 6 : index
    %c0_148 = arith.constant 0 : index
    %c0_149 = arith.constant 0 : index
    %109 = vector.load %arg4[%c6_147, %c0_148, %c0_149] : memref<9x8x32xf32, #tpu.memory_space<vmem>>, vector<1x8x32xf32>
    %110 = vector.shape_cast %109 : vector<1x8x32xf32> to vector<8x32xf32>
    %cst_150 = arith.constant dense<0.000000e+00> : vector<256x32xf32>
    %111 = tpu.matmul %108, %110, %cst_150 {dimension_numbers = #tpu.dot_dimension_numbers<[1], [0], [0], [1], [0, 0, 1, 1], [], []>} : vector<256x8xf32>, vector<8x32xf32>, vector<256x32xf32> -> vector<256x32xf32>
    %112 = arith.addf %106, %111 : vector<256x32xf32>
    %c2_151 = arith.constant 2 : index
    %c1_152 = arith.constant 1 : index
    %c0_153 = arith.constant 0 : index
    %113 = vector.load %arg9[%c2_151, %c1_152, %c0_153] : memref<18x18x8xf32, #tpu.memory_space<vmem>>, vector<16x16x8xf32>
    %114 = vector.shape_cast %113 : vector<16x16x8xf32> to vector<256x8xf32>
    %c7 = arith.constant 7 : index
    %c0_154 = arith.constant 0 : index
    %c0_155 = arith.constant 0 : index
    %115 = vector.load %arg3[%c7, %c0_154, %c0_155] : memref<9x8x32xf32, #tpu.memory_space<vmem>>, vector<1x8x32xf32>
    %116 = vector.shape_cast %115 : vector<1x8x32xf32> to vector<8x32xf32>
    %cst_156 = arith.constant dense<0.000000e+00> : vector<256x32xf32>
    %117 = tpu.matmul %114, %116, %cst_156 {dimension_numbers = #tpu.dot_dimension_numbers<[1], [0], [0], [1], [0, 0, 1, 1], [], []>} : vector<256x8xf32>, vector<8x32xf32>, vector<256x32xf32> -> vector<256x32xf32>
    %118 = arith.addf %112, %117 : vector<256x32xf32>
    %c2_157 = arith.constant 2 : index
    %c1_158 = arith.constant 1 : index
    %c0_159 = arith.constant 0 : index
    %119 = vector.load %arg10[%c2_157, %c1_158, %c0_159] : memref<18x18x8xf32, #tpu.memory_space<vmem>>, vector<16x16x8xf32>
    %120 = vector.shape_cast %119 : vector<16x16x8xf32> to vector<256x8xf32>
    %c7_160 = arith.constant 7 : index
    %c0_161 = arith.constant 0 : index
    %c0_162 = arith.constant 0 : index
    %121 = vector.load %arg4[%c7_160, %c0_161, %c0_162] : memref<9x8x32xf32, #tpu.memory_space<vmem>>, vector<1x8x32xf32>
    %122 = vector.shape_cast %121 : vector<1x8x32xf32> to vector<8x32xf32>
    %cst_163 = arith.constant dense<0.000000e+00> : vector<256x32xf32>
    %123 = tpu.matmul %120, %122, %cst_163 {dimension_numbers = #tpu.dot_dimension_numbers<[1], [0], [0], [1], [0, 0, 1, 1], [], []>} : vector<256x8xf32>, vector<8x32xf32>, vector<256x32xf32> -> vector<256x32xf32>
    %124 = arith.addf %118, %123 : vector<256x32xf32>
    %c2_164 = arith.constant 2 : index
    %c2_165 = arith.constant 2 : index
    %c0_166 = arith.constant 0 : index
    %125 = vector.load %arg9[%c2_164, %c2_165, %c0_166] : memref<18x18x8xf32, #tpu.memory_space<vmem>>, vector<16x16x8xf32>
    %126 = vector.shape_cast %125 : vector<16x16x8xf32> to vector<256x8xf32>
    %c8 = arith.constant 8 : index
    %c0_167 = arith.constant 0 : index
    %c0_168 = arith.constant 0 : index
    %127 = vector.load %arg3[%c8, %c0_167, %c0_168] : memref<9x8x32xf32, #tpu.memory_space<vmem>>, vector<1x8x32xf32>
    %128 = vector.shape_cast %127 : vector<1x8x32xf32> to vector<8x32xf32>
    %cst_169 = arith.constant dense<0.000000e+00> : vector<256x32xf32>
    %129 = tpu.matmul %126, %128, %cst_169 {dimension_numbers = #tpu.dot_dimension_numbers<[1], [0], [0], [1], [0, 0, 1, 1], [], []>} : vector<256x8xf32>, vector<8x32xf32>, vector<256x32xf32> -> vector<256x32xf32>
    %130 = arith.addf %124, %129 : vector<256x32xf32>
    %c2_170 = arith.constant 2 : index
    %c2_171 = arith.constant 2 : index
    %c0_172 = arith.constant 0 : index
    %131 = vector.load %arg10[%c2_170, %c2_171, %c0_172] : memref<18x18x8xf32, #tpu.memory_space<vmem>>, vector<16x16x8xf32>
    %132 = vector.shape_cast %131 : vector<16x16x8xf32> to vector<256x8xf32>
    %c8_173 = arith.constant 8 : index
    %c0_174 = arith.constant 0 : index
    %c0_175 = arith.constant 0 : index
    %133 = vector.load %arg4[%c8_173, %c0_174, %c0_175] : memref<9x8x32xf32, #tpu.memory_space<vmem>>, vector<1x8x32xf32>
    %134 = vector.shape_cast %133 : vector<1x8x32xf32> to vector<8x32xf32>
    %cst_176 = arith.constant dense<0.000000e+00> : vector<256x32xf32>
    %135 = tpu.matmul %132, %134, %cst_176 {dimension_numbers = #tpu.dot_dimension_numbers<[1], [0], [0], [1], [0, 0, 1, 1], [], []>} : vector<256x8xf32>, vector<8x32xf32>, vector<256x32xf32> -> vector<256x32xf32>
    %136 = arith.addf %130, %135 : vector<256x32xf32>
    %c0_177 = arith.constant 0 : index
    %c0_178 = arith.constant 0 : index
    %137 = vector.load %arg5[%c0_177, %c0_178] : memref<1x32xf32, #tpu.memory_space<vmem>>, vector<1x32xf32>
    %138 = vector.broadcast %137 : vector<1x32xf32> to vector<256x32xf32>
    %139 = arith.addf %136, %138 : vector<256x32xf32>
    %cst_179 = arith.constant 0.000000e+00 : f32
    %140 = vector.broadcast %cst_179 : f32 to vector<256x32xf32>
    %141 = arith.maximumf %139, %140 : vector<256x32xf32>
    %142 = vector.shape_cast %141 : vector<256x32xf32> to vector<16x16x32xf32>
    %c1_180 = arith.constant 1 : index
    %c1_181 = arith.constant 1 : index
    %c0_182 = arith.constant 0 : index
    %143 = vector.load %arg11[%c1_180, %c1_181, %c0_182] : memref<18x18x32xf32, #tpu.memory_space<vmem>>, vector<16x16x32xf32>
    tpu.vector_store %arg11[%c1_180, %c1_181, %c0_182], %142 {strides = array<i32>} : memref<18x18x32xf32, #tpu.memory_space<vmem>>, vector<16x16x32xf32>,
    %c0_183 = arith.constant 0 : index
    %c0_184 = arith.constant 0 : index
    %c0_185 = arith.constant 0 : index
    %144 = vector.load %arg11[%c0_183, %c0_184, %c0_185] : memref<18x18x32xf32, #tpu.memory_space<vmem>>, vector<16x16x32xf32>
    %145 = vector.shape_cast %144 : vector<16x16x32xf32> to vector<256x32xf32>
    %c0_186 = arith.constant 0 : index
    %c0_187 = arith.constant 0 : index
    %c0_188 = arith.constant 0 : index
    %146 = vector.load %arg6[%c0_186, %c0_187, %c0_188] : memref<9x32x32xf32, #tpu.memory_space<vmem>>, vector<1x32x32xf32>
    %147 = vector.shape_cast %146 : vector<1x32x32xf32> to vector<32x32xf32>
    %cst_189 = arith.constant dense<0.000000e+00> : vector<256x32xf32>
    %148 = tpu.matmul %145, %147, %cst_189 {dimension_numbers = #tpu.dot_dimension_numbers<[1], [0], [0], [1], [0, 0, 1, 1], [], []>} : vector<256x32xf32>, vector<32x32xf32>, vector<256x32xf32> -> vector<256x32xf32>
    %c0_190 = arith.constant 0 : index
    %c1_191 = arith.constant 1 : index
    %c0_192 = arith.constant 0 : index
    %149 = vector.load %arg11[%c0_190, %c1_191, %c0_192] : memref<18x18x32xf32, #tpu.memory_space<vmem>>, vector<16x16x32xf32>
    %150 = vector.shape_cast %149 : vector<16x16x32xf32> to vector<256x32xf32>
    %c1_193 = arith.constant 1 : index
    %c0_194 = arith.constant 0 : index
    %c0_195 = arith.constant 0 : index
    %151 = vector.load %arg6[%c1_193, %c0_194, %c0_195] : memref<9x32x32xf32, #tpu.memory_space<vmem>>, vector<1x32x32xf32>
    %152 = vector.shape_cast %151 : vector<1x32x32xf32> to vector<32x32xf32>
    %cst_196 = arith.constant dense<0.000000e+00> : vector<256x32xf32>
    %153 = tpu.matmul %150, %152, %cst_196 {dimension_numbers = #tpu.dot_dimension_numbers<[1], [0], [0], [1], [0, 0, 1, 1], [], []>} : vector<256x32xf32>, vector<32x32xf32>, vector<256x32xf32> -> vector<256x32xf32>
    %154 = arith.addf %148, %153 : vector<256x32xf32>
    %c0_197 = arith.constant 0 : index
    %c2_198 = arith.constant 2 : index
    %c0_199 = arith.constant 0 : index
    %155 = vector.load %arg11[%c0_197, %c2_198, %c0_199] : memref<18x18x32xf32, #tpu.memory_space<vmem>>, vector<16x16x32xf32>
    %156 = vector.shape_cast %155 : vector<16x16x32xf32> to vector<256x32xf32>
    %c2_200 = arith.constant 2 : index
    %c0_201 = arith.constant 0 : index
    %c0_202 = arith.constant 0 : index
    %157 = vector.load %arg6[%c2_200, %c0_201, %c0_202] : memref<9x32x32xf32, #tpu.memory_space<vmem>>, vector<1x32x32xf32>
    %158 = vector.shape_cast %157 : vector<1x32x32xf32> to vector<32x32xf32>
    %cst_203 = arith.constant dense<0.000000e+00> : vector<256x32xf32>
    %159 = tpu.matmul %156, %158, %cst_203 {dimension_numbers = #tpu.dot_dimension_numbers<[1], [0], [0], [1], [0, 0, 1, 1], [], []>} : vector<256x32xf32>, vector<32x32xf32>, vector<256x32xf32> -> vector<256x32xf32>
    %160 = arith.addf %154, %159 : vector<256x32xf32>
    %c1_204 = arith.constant 1 : index
    %c0_205 = arith.constant 0 : index
    %c0_206 = arith.constant 0 : index
    %161 = vector.load %arg11[%c1_204, %c0_205, %c0_206] : memref<18x18x32xf32, #tpu.memory_space<vmem>>, vector<16x16x32xf32>
    %162 = vector.shape_cast %161 : vector<16x16x32xf32> to vector<256x32xf32>
    %c3_207 = arith.constant 3 : index
    %c0_208 = arith.constant 0 : index
    %c0_209 = arith.constant 0 : index
    %163 = vector.load %arg6[%c3_207, %c0_208, %c0_209] : memref<9x32x32xf32, #tpu.memory_space<vmem>>, vector<1x32x32xf32>
    %164 = vector.shape_cast %163 : vector<1x32x32xf32> to vector<32x32xf32>
    %cst_210 = arith.constant dense<0.000000e+00> : vector<256x32xf32>
    %165 = tpu.matmul %162, %164, %cst_210 {dimension_numbers = #tpu.dot_dimension_numbers<[1], [0], [0], [1], [0, 0, 1, 1], [], []>} : vector<256x32xf32>, vector<32x32xf32>, vector<256x32xf32> -> vector<256x32xf32>
    %166 = arith.addf %160, %165 : vector<256x32xf32>
    %c1_211 = arith.constant 1 : index
    %c1_212 = arith.constant 1 : index
    %c0_213 = arith.constant 0 : index
    %167 = vector.load %arg11[%c1_211, %c1_212, %c0_213] : memref<18x18x32xf32, #tpu.memory_space<vmem>>, vector<16x16x32xf32>
    %168 = vector.shape_cast %167 : vector<16x16x32xf32> to vector<256x32xf32>
    %c4_214 = arith.constant 4 : index
    %c0_215 = arith.constant 0 : index
    %c0_216 = arith.constant 0 : index
    %169 = vector.load %arg6[%c4_214, %c0_215, %c0_216] : memref<9x32x32xf32, #tpu.memory_space<vmem>>, vector<1x32x32xf32>
    %170 = vector.shape_cast %169 : vector<1x32x32xf32> to vector<32x32xf32>
    %cst_217 = arith.constant dense<0.000000e+00> : vector<256x32xf32>
    %171 = tpu.matmul %168, %170, %cst_217 {dimension_numbers = #tpu.dot_dimension_numbers<[1], [0], [0], [1], [0, 0, 1, 1], [], []>} : vector<256x32xf32>, vector<32x32xf32>, vector<256x32xf32> -> vector<256x32xf32>
    %172 = arith.addf %166, %171 : vector<256x32xf32>
    %c1_218 = arith.constant 1 : index
    %c2_219 = arith.constant 2 : index
    %c0_220 = arith.constant 0 : index
    %173 = vector.load %arg11[%c1_218, %c2_219, %c0_220] : memref<18x18x32xf32, #tpu.memory_space<vmem>>, vector<16x16x32xf32>
    %174 = vector.shape_cast %173 : vector<16x16x32xf32> to vector<256x32xf32>
    %c5_221 = arith.constant 5 : index
    %c0_222 = arith.constant 0 : index
    %c0_223 = arith.constant 0 : index
    %175 = vector.load %arg6[%c5_221, %c0_222, %c0_223] : memref<9x32x32xf32, #tpu.memory_space<vmem>>, vector<1x32x32xf32>
    %176 = vector.shape_cast %175 : vector<1x32x32xf32> to vector<32x32xf32>
    %cst_224 = arith.constant dense<0.000000e+00> : vector<256x32xf32>
    %177 = tpu.matmul %174, %176, %cst_224 {dimension_numbers = #tpu.dot_dimension_numbers<[1], [0], [0], [1], [0, 0, 1, 1], [], []>} : vector<256x32xf32>, vector<32x32xf32>, vector<256x32xf32> -> vector<256x32xf32>
    %178 = arith.addf %172, %177 : vector<256x32xf32>
    %c2_225 = arith.constant 2 : index
    %c0_226 = arith.constant 0 : index
    %c0_227 = arith.constant 0 : index
    %179 = vector.load %arg11[%c2_225, %c0_226, %c0_227] : memref<18x18x32xf32, #tpu.memory_space<vmem>>, vector<16x16x32xf32>
    %180 = vector.shape_cast %179 : vector<16x16x32xf32> to vector<256x32xf32>
    %c6_228 = arith.constant 6 : index
    %c0_229 = arith.constant 0 : index
    %c0_230 = arith.constant 0 : index
    %181 = vector.load %arg6[%c6_228, %c0_229, %c0_230] : memref<9x32x32xf32, #tpu.memory_space<vmem>>, vector<1x32x32xf32>
    %182 = vector.shape_cast %181 : vector<1x32x32xf32> to vector<32x32xf32>
    %cst_231 = arith.constant dense<0.000000e+00> : vector<256x32xf32>
    %183 = tpu.matmul %180, %182, %cst_231 {dimension_numbers = #tpu.dot_dimension_numbers<[1], [0], [0], [1], [0, 0, 1, 1], [], []>} : vector<256x32xf32>, vector<32x32xf32>, vector<256x32xf32> -> vector<256x32xf32>
    %184 = arith.addf %178, %183 : vector<256x32xf32>
    %c2_232 = arith.constant 2 : index
    %c1_233 = arith.constant 1 : index
    %c0_234 = arith.constant 0 : index
    %185 = vector.load %arg11[%c2_232, %c1_233, %c0_234] : memref<18x18x32xf32, #tpu.memory_space<vmem>>, vector<16x16x32xf32>
    %186 = vector.shape_cast %185 : vector<16x16x32xf32> to vector<256x32xf32>
    %c7_235 = arith.constant 7 : index
    %c0_236 = arith.constant 0 : index
    %c0_237 = arith.constant 0 : index
    %187 = vector.load %arg6[%c7_235, %c0_236, %c0_237] : memref<9x32x32xf32, #tpu.memory_space<vmem>>, vector<1x32x32xf32>
    %188 = vector.shape_cast %187 : vector<1x32x32xf32> to vector<32x32xf32>
    %cst_238 = arith.constant dense<0.000000e+00> : vector<256x32xf32>
    %189 = tpu.matmul %186, %188, %cst_238 {dimension_numbers = #tpu.dot_dimension_numbers<[1], [0], [0], [1], [0, 0, 1, 1], [], []>} : vector<256x32xf32>, vector<32x32xf32>, vector<256x32xf32> -> vector<256x32xf32>
    %190 = arith.addf %184, %189 : vector<256x32xf32>
    %c2_239 = arith.constant 2 : index
    %c2_240 = arith.constant 2 : index
    %c0_241 = arith.constant 0 : index
    %191 = vector.load %arg11[%c2_239, %c2_240, %c0_241] : memref<18x18x32xf32, #tpu.memory_space<vmem>>, vector<16x16x32xf32>
    %192 = vector.shape_cast %191 : vector<16x16x32xf32> to vector<256x32xf32>
    %c8_242 = arith.constant 8 : index
    %c0_243 = arith.constant 0 : index
    %c0_244 = arith.constant 0 : index
    %193 = vector.load %arg6[%c8_242, %c0_243, %c0_244] : memref<9x32x32xf32, #tpu.memory_space<vmem>>, vector<1x32x32xf32>
    %194 = vector.shape_cast %193 : vector<1x32x32xf32> to vector<32x32xf32>
    %cst_245 = arith.constant dense<0.000000e+00> : vector<256x32xf32>
    %195 = tpu.matmul %192, %194, %cst_245 {dimension_numbers = #tpu.dot_dimension_numbers<[1], [0], [0], [1], [0, 0, 1, 1], [], []>} : vector<256x32xf32>, vector<32x32xf32>, vector<256x32xf32> -> vector<256x32xf32>
    %196 = arith.addf %190, %195 : vector<256x32xf32>
    %c0_246 = arith.constant 0 : index
    %c0_247 = arith.constant 0 : index
    %197 = vector.load %arg7[%c0_246, %c0_247] : memref<1x32xf32, #tpu.memory_space<vmem>>, vector<1x32xf32>
    %198 = vector.broadcast %197 : vector<1x32xf32> to vector<256x32xf32>
    %199 = arith.addf %196, %198 : vector<256x32xf32>
    %cst_248 = arith.constant 0.000000e+00 : f32
    %200 = vector.broadcast %cst_248 : f32 to vector<256x32xf32>
    %201 = arith.maximumf %199, %200 : vector<256x32xf32>
    %c0_249 = arith.constant 0 : index
    %c0_250 = arith.constant 0 : index
    %c0_251 = arith.constant 0 : index
    %202 = vector.load %arg8[%c0_249, %c0_250, %c0_251] : memref<1x256x32xf32, #tpu.memory_space<vmem>>, vector<1x256x32xf32>
    %203 = vector.shape_cast %202 : vector<1x256x32xf32> to vector<256x32xf32>
    %204 = vector.shape_cast %201 : vector<256x32xf32> to vector<1x256x32xf32>
    tpu.vector_store %arg8[%c0_249, %c0_250, %c0_251], %204 {strides = array<i32>} : memref<1x256x32xf32, #tpu.memory_space<vmem>>, vector<1x256x32xf32>,
    return
  }
  func.func @transform_0(%arg0: i32) -> (i32, i32, i32, i32) {
    %c0_i32 = arith.constant 0 : i32
    %c0_i32_0 = arith.constant 0 : i32
    %c0_i32_1 = arith.constant 0 : i32
    %c0_i32_2 = arith.constant 0 : i32
    return %arg0, %c0_i32, %c0_i32_0, %c0_i32_1 : i32, i32, i32, i32
  }
  func.func @transform_1(%arg0: i32) -> (i32, i32, i32, i32) {
    %c0_i32 = arith.constant 0 : i32
    %c0_i32_0 = arith.constant 0 : i32
    %c0_i32_1 = arith.constant 0 : i32
    %c0_i32_2 = arith.constant 0 : i32
    return %arg0, %c0_i32, %c0_i32_0, %c0_i32_1 : i32, i32, i32, i32
  }
  func.func @transform_2(%arg0: i32) -> (i32, i32, i32) {
    %c0_i32 = arith.constant 0 : i32
    %c0_i32_0 = arith.constant 0 : i32
    %c0_i32_1 = arith.constant 0 : i32
    %c0_i32_2 = arith.constant 0 : i32
    return %c0_i32, %c0_i32_0, %c0_i32_1 : i32, i32, i32
  }
  func.func @transform_3(%arg0: i32) -> (i32, i32, i32) {
    %c0_i32 = arith.constant 0 : i32
    %c0_i32_0 = arith.constant 0 : i32
    %c0_i32_1 = arith.constant 0 : i32
    %c0_i32_2 = arith.constant 0 : i32
    return %c0_i32, %c0_i32_0, %c0_i32_1 : i32, i32, i32
  }
  func.func @transform_4(%arg0: i32) -> (i32, i32) {
    %c0_i32 = arith.constant 0 : i32
    %c0_i32_0 = arith.constant 0 : i32
    %c0_i32_1 = arith.constant 0 : i32
    return %c0_i32, %c0_i32_0 : i32, i32
  }
  func.func @transform_5(%arg0: i32) -> (i32, i32, i32) {
    %c0_i32 = arith.constant 0 : i32
    %c0_i32_0 = arith.constant 0 : i32
    %c0_i32_1 = arith.constant 0 : i32
    %c0_i32_2 = arith.constant 0 : i32
    return %c0_i32, %c0_i32_0, %c0_i32_1 : i32, i32, i32
  }
  func.func @transform_6(%arg0: i32) -> (i32, i32) {
    %c0_i32 = arith.constant 0 : i32
    %c0_i32_0 = arith.constant 0 : i32
    %c0_i32_1 = arith.constant 0 : i32
    return %c0_i32, %c0_i32_0 : i32, i32
  }
  func.func @transform_7(%arg0: i32) -> (i32, i32, i32) {
    %c0_i32 = arith.constant 0 : i32
    %c0_i32_0 = arith.constant 0 : i32
    %c0_i32_1 = arith.constant 0 : i32
    return %arg0, %c0_i32, %c0_i32_0 : i32, i32, i32
  }
}

</mosaic_0001>

<bundles_post_ra>
// kernel: tpu_custom_call.1
= control target key start
LH: loop header
LB: loop body
LE: loop exit
PB: predicated region body
PF: predicated region fallthrough
CT: control target
= control target key end

     0   :  { %s9153_s24 = smov 0   ;;  %s12631_s0 = inlined_call_operand.vmem [shape: f32[2,16,16,8], index: 0, kind: input, shape index: {}]   ;;  %s12632_s1 = inlined_call_operand.vmem [shape: f32[2,16,16,8], index: 1, kind: input, shape index: {}]   ;;  %s12633_s2 = inlined_call_operand.vmem [shape: f32[9,8,32], index: 2, kind: input, shape index: {}]   ;;  %s12634_s3 = inlined_call_operand.vmem [shape: f32[9,8,32], index: 3, kind: input, shape index: {}]   ;;  %s12635_s4 = inlined_call_operand.vmem [shape: f32[1,32], index: 4, kind: input, shape index: {}]   ;;  %s12636_s5 = inlined_call_operand.vmem [shape: f32[9,32,32], index: 5, kind: input, shape index: {}]   ;;  %s12637_s6 = inlined_call_operand.vmem [shape: f32[1,32], index: 6, kind: input, shape index: {}]   ;;  %s12638_s7 = inlined_call_operand.vmem [shape: f32[2,256,32], index: 7, kind: output, shape index: {}]  }
   0x1 LB: > { %s8156_s25 = sadd.s32 4294967295, %s9110_s24   ;;  %p8160_p0 = scmp.ge.s32.totalorder %s9110_s24, 1  ;;  %s9110_s24 = sphi %s9153_s24, %s17_s24  }
   0x2   : > { %p247_p1 = scmp.lt.s32.totalorder %s9110_s24, 3 }
   0x4   : > { %p248_p2 = pnand %p8160_p0, %p247_p1 }
   0x6   : > { %251 = sbr.rel (%p248_p2) target bundleno = 2090 (0x82a), region = 48 }
   0xb   : > { %v629_v0 = vld [vmem:[%s12634_s3] sm:$0xff]  ;;  %vm299_vm0 = vcmask 64512   ;;  %vm308_vm1 = vcmask 57344   ;;  %v12639_v2 = vmov 0.0   ;;  %v8231_v5 = vld [vmem:[%s12633_s2 + $0x8] sm:$0xff]  ;;  %p284_p3 = scmp.lt.s32.totalorder %s8156_s25, 1 }
   0xc   : > { %v596_v1 = vld [vmem:[%s12633_s2] sm:$0xff]  ;;  %741 = vmatpush.msra.mxu0 %v629_v0  ;;  %345 = vst.msk [vmem:[#allocation3] sm:$0xff] %vm299_vm0, %v12639_v2  ;;  %9084 = vmatpush.msra.mxu3 %v629_v0  ;;  %v8297_v7 = vld [vmem:[%s12633_s2 + $0x10] sm:$0xff]  ;;  %vm302_vm2 = vcmask 58368   ;;  %vm388_vm3 = vcmask 261120   ;;  %vm391_vm4 = vcmask 254976  }
   0xd   : > { %950 = vmatpush.msra.mxu1 %v596_v1  ;;  %352 = vst.msk [vmem:[#allocation3] sm:$0x1] %vm308_vm1, %v12639_v2  ;;  %1193 = vmatpush.msra.mxu2 %v8231_v5  ;;  %v8330_v8 = vld [vmem:[%s12634_s3 + $0x10] sm:$0xff]  ;;  %s13062_s25 = smov (!%p284_p3, %s8156_s25), 1  ;;  %vm397_vm5 = vcmask 253952  }
   0xe   : > { %300 = vst.msk [vmem:[#allocation2] sm:$0xff] %vm299_vm0, %v12639_v2  ;;  %9085 = vmatpush.msrb.mxu3 %v596_v1  ;;  %1743 = vmatpush.msrb.mxu0 %v8297_v7  ;;  %s9319_s13 = sshll.u32 %s13062_s25, 8 }
   0xf   : > { %301 = vst.msk [vmem:[#allocation2 + $0x8] sm:$0xff] %vm299_vm0, %v12639_v2  ;;  %2018 = vmatpush.msrb.mxu1 %v8330_v8  ;;  %s9331_s16 = scalar_lea.vmem %s12632_s1, %s9319_s13  ;;  %s9344_s19 = scalar_lea.vmem %s12631_s0, %s9319_s13 }
  0x10   : > { %305 = vst.msk [vmem:[#allocation2 + $0x198] sm:$0xff] %vm299_vm0, %v12639_v2  ;;  %v521_v9 = vld [vmem:[%s9331_s16 + $0xb0] sm:$0xff]  ;;  %v522_v10 = vld [vmem:[%s9331_s16 + $0xb8] sm:$0xff]  ;;  %v499_v11 = vld [vmem:[%s9331_s16] sm:$0xff]  ;;  %s12477_s21 = scalar_lea.vmem %s12638_s7, %s9319_s13 }
  0x11   : > { %306 = vst.msk [vmem:[#allocation2 + $0x1a0] sm:$0xff] %vm299_vm0, %v12639_v2  ;;  %v434_v12 = vld [vmem:[%s9344_s19] sm:$0xff]  ;;  %v500_v18 = vld [vmem:[%s9331_s16 + $0x8] sm:$0xff]  ;;  %v501_v23 = vld [vmem:[%s9331_s16 + $0x10] sm:$0xff] }
  0x12   : > { %310 = vst.msk [vmem:[#allocation2 + $0x18] sm:$0x1] %vm308_vm1, %v12639_v2  ;;  %v523_v14 = vld [vmem:[%s9331_s16 + $0xc0] sm:$0xff]  ;;  %v435_v20 = vld [vmem:[%s9344_s19 + $0x8] sm:$0xff]  ;;  %v436_v24 = vld [vmem:[%s9344_s19 + $0x10] sm:$0xff] }
  0x13   : > { %311 = vst.msk [vmem:[#allocation2 + $0x30] sm:$0x1] %vm308_vm1, %v12639_v2  ;;  %v524_v21 = vld [vmem:[%s9331_s16 + $0xc8] sm:$0xff]  ;;  %v525_v25 = vld [vmem:[%s9331_s16 + $0xd0] sm:$0xff]  ;;  %v502_v26 = vld [vmem:[%s9331_s16 + $0x18] sm:$0xff] }
  0x14   : > { %v597_v3 = vld [vmem:[#allocation3] sm:$0xff]  ;;  %312 = vst.msk [vmem:[#allocation2 + $0x48] sm:$0x1] %vm308_vm1, %v12639_v2  ;;  %v437_v28 = vld [vmem:[%s9344_s19 + $0x18] sm:$0xff]  ;;  %v503_v31 = vld [vmem:[%s9331_s16 + $0x20] sm:$0xff] }
  0x15   : > { %8167 = vmatmul.msk.f32.vlgmr.msra.gmra.mxu0 %vm299_vm0, %v597_v3  ;;  %313 = vst.msk [vmem:[#allocation2 + $0x60] sm:$0x1] %vm308_vm1, %v12639_v2  ;;  %v526_v30 = vld [vmem:[%s9331_s16 + $0xd8] sm:$0xff]  ;;  %v438_v33 = vld [vmem:[%s9344_s19 + $0x20] sm:$0xff]  ;;  %v504_v36 = vld [vmem:[%s9331_s16 + $0x28] sm:$0xff] }
  0x16   : > { %314 = vst.msk [vmem:[#allocation2 + $0x78] sm:$0x1] %vm308_vm1, %v12639_v2  ;;  %v1048_v6 = vld [vmem:[#allocation2 + $0x1] sm:$0xff]  ;;  %v505_v42 = vld [vmem:[%s9331_s16 + $0x30] sm:$0xff]  ;;  %v506_v49 = vld [vmem:[%s9331_s16 + $0x38] sm:$0xff] }
  0x17   : > { %315 = vst.msk [vmem:[#allocation2 + $0x90] sm:$0x1] %vm308_vm1, %v12639_v2  ;;  %8232 = vmatmul.msk.f32.vlgmr.msra.gmra.mxu2 %vm299_vm0, %v1048_v6  ;;  %v565_v17 = vld [vmem:[#allocation2 + $0x8] sm:$0xff]  ;;  %v527_v35 = vld [vmem:[%s9331_s16 + $0xe0] sm:$0xff]  ;;  %v440_v43 = vld [vmem:[%s9344_s19 + $0x30] sm:$0xff] }
  0x18   : > { %316 = vst.msk [vmem:[#allocation2 + $0xa8] sm:$0x1] %vm308_vm1, %v12639_v2  ;;  %v439_v37 = vld [vmem:[%s9344_s19 + $0x28] sm:$0xff]  ;;  %v456_v46 = vld [vmem:[%s9344_s19 + $0xb0] sm:$0xff]  ;;  %v441_v50 = vld [vmem:[%s9344_s19 + $0x38] sm:$0xff] }
  0x19   : > { %317 = vst.msk [vmem:[#allocation2 + $0xc0] sm:$0x1] %vm308_vm1, %v12639_v2  ;;  %v528_v39 = vld [vmem:[%s9331_s16 + $0xe8] sm:$0xff]  ;;  %v457_v53 = vld [vmem:[%s9344_s19 + $0xb8] sm:$0xff]  ;;  %v507_v56 = vld [vmem:[%s9331_s16 + $0x40] sm:$0xff] }
  0x1a   : > { %318 = vst.msk [vmem:[#allocation2 + $0xd8] sm:$0x1] %vm308_vm1, %v12639_v2  ;;  %v442_v57 = vld [vmem:[%s9344_s19 + $0x40] sm:$0xff]  ;;  %v508_v63 = vld [vmem:[%s9331_s16 + $0x48] sm:$0xff]  ;;  %v509_v7 = vld [vmem:[%s9331_s16 + $0x50] sm:$0xff] }
  0x1b   : > { %319 = vst.msk [vmem:[#allocation2 + $0xf0] sm:$0x1] %vm308_vm1, %v12639_v2  ;;  %v458_v60 = vld [vmem:[%s9344_s19 + $0xc0] sm:$0xff]  ;;  %v443_v0 = vld [vmem:[%s9344_s19 + $0x48] sm:$0xff]  ;;  %v444_v8 = vld [vmem:[%s9344_s19 + $0x50] sm:$0xff] }
  0x1c   : > { %320 = vst.msk [vmem:[#allocation2 + $0x108] sm:$0x1] %vm308_vm1, %v12639_v2 }
  0x1d   : > { %321 = vst.msk [vmem:[#allocation2 + $0x120] sm:$0x1] %vm308_vm1, %v12639_v2 }
  0x1e   : > { %322 = vst.msk [vmem:[#allocation2 + $0x138] sm:$0x1] %vm308_vm1, %v12639_v2 }
  0x1f   : > { %323 = vst.msk [vmem:[#allocation2 + $0x150] sm:$0x1] %vm308_vm1, %v12639_v2 }
  0x20   : > { %324 = vst.msk [vmem:[#allocation2 + $0x168] sm:$0x1] %vm308_vm1, %v12639_v2 }
  0x21   : > { %325 = vst.msk [vmem:[#allocation2 + $0x180] sm:$0x1] %vm308_vm1, %v12639_v2 }
  0x22   : > { %328 = vst.msk [vmem:[#allocation2 + $0x29] sm:$0x1] %vm308_vm1, %v12639_v2 }
  0x23   : > { %329 = vst.msk [vmem:[#allocation2 + $0x41] sm:$0x1] %vm308_vm1, %v12639_v2 }
  0x24   : > { %330 = vst.msk [vmem:[#allocation2 + $0x59] sm:$0x1] %vm308_vm1, %v12639_v2 }
  0x25   : > { %331 = vst.msk [vmem:[#allocation2 + $0x71] sm:$0x1] %vm308_vm1, %v12639_v2 }
  0x26   : > { %332 = vst.msk [vmem:[#allocation2 + $0x89] sm:$0x1] %vm308_vm1, %v12639_v2 }
  0x27   : > { %333 = vst.msk [vmem:[#allocation2 + $0xa1] sm:$0x1] %vm308_vm1, %v12639_v2 }
  0x28   : > { %334 = vst.msk [vmem:[#allocation2 + $0xb9] sm:$0x1] %vm308_vm1, %v12639_v2 }
  0x29   : > { %335 = vst.msk [vmem:[#allocation2 + $0xd1] sm:$0x1] %vm308_vm1, %v12639_v2 }
  0x2a   : > { %336 = vst.msk [vmem:[#allocation2 + $0xe9] sm:$0x1] %vm308_vm1, %v12639_v2 }
  0x2b   : > { %337 = vst.msk [vmem:[#allocation2 + $0x101] sm:$0x1] %vm308_vm1, %v12639_v2 }
  0x2c   : > { %338 = vst.msk [vmem:[#allocation2 + $0x119] sm:$0x1] %vm308_vm1, %v12639_v2 }
  0x2d   : > { %339 = vst.msk [vmem:[#allocation2 + $0x131] sm:$0x1] %vm308_vm1, %v12639_v2 }
  0x2e   : > { %340 = vst.msk [vmem:[#allocation2 + $0x149] sm:$0x1] %vm308_vm1, %v12639_v2 }
  0x2f   : > { %341 = vst.msk [vmem:[#allocation2 + $0x161] sm:$0x1] %vm308_vm1, %v12639_v2 }
  0x30   : > { %342 = vst.msk [vmem:[#allocation2 + $0x179] sm:$0x1] %vm308_vm1, %v12639_v2 }
  0x31   : > { %343 = vst.msk [vmem:[#allocation2 + $0x191] sm:$0x1] %vm308_vm1, %v12639_v2 }
  0x32   : > { %346 = vst.msk [vmem:[#allocation3 + $0x8] sm:$0xff] %vm299_vm0, %v12639_v2 }
  0x33   : > { %349 = vst.msk [vmem:[#allocation3 + $0x198] sm:$0xff] %vm299_vm0, %v12639_v2 }
  0x34   : > { %350 = vst.msk [vmem:[#allocation3 + $0x1a0] sm:$0xff] %vm299_vm0, %v12639_v2 }
  0x35   : > { %353 = vst.msk [vmem:[#allocation3 + $0x18] sm:$0x1] %vm308_vm1, %v12639_v2 }
  0x36   : > { %354 = vst.msk [vmem:[#allocation3 + $0x30] sm:$0x1] %vm308_vm1, %v12639_v2 }
  0x37   : > { %355 = vst.msk [vmem:[#allocation3 + $0x48] sm:$0x1] %vm308_vm1, %v12639_v2 }
  0x38   : > { %356 = vst.msk [vmem:[#allocation3 + $0x60] sm:$0x1] %vm308_vm1, %v12639_v2 }
  0x39   : > { %357 = vst.msk [vmem:[#allocation3 + $0x78] sm:$0x1] %vm308_vm1, %v12639_v2  ;;  %v598_v4 = vld [vmem:[#allocation3 + $0x8] sm:$0xff] }
  0x3a   : > { %358 = vst.msk [vmem:[#allocation3 + $0x90] sm:$0x1] %vm308_vm1, %v12639_v2  ;;  %8168 = vmatmul.msk.f32.gmra.mxu0 %vm299_vm0, %v598_v4  ;;  %v459_v4 = vld [vmem:[%s9344_s19 + $0xc8] sm:$0xff] }
  0x3b   : > { %359 = vst.msk [vmem:[#allocation3 + $0xa8] sm:$0x1] %vm308_vm1, %v12639_v2 }
  0x3c   : > { %360 = vst.msk [vmem:[#allocation3 + $0xc0] sm:$0x1] %vm308_vm1, %v12639_v2 }
  0x3d   : > { %361 = vst.msk [vmem:[#allocation3 + $0xd8] sm:$0x1] %vm308_vm1, %v12639_v2 }
  0x3e   : > { %362 = vst.msk [vmem:[#allocation3 + $0xf0] sm:$0x1] %vm308_vm1, %v12639_v2 }
  0x3f   : > { %363 = vst.msk [vmem:[#allocation3 + $0x108] sm:$0x1] %vm308_vm1, %v12639_v2 }
  0x40   : > { %364 = vst.msk [vmem:[#allocation3 + $0x120] sm:$0x1] %vm308_vm1, %v12639_v2 }
  0x41   : > { %365 = vst.msk [vmem:[#allocation3 + $0x138] sm:$0x1] %vm308_vm1, %v12639_v2 }
  0x42   : > { %366 = vst.msk [vmem:[#allocation3 + $0x150] sm:$0x1] %vm308_vm1, %v12639_v2 }
  0x43   : > { %367 = vst.msk [vmem:[#allocation3 + $0x168] sm:$0x1] %vm308_vm1, %v12639_v2 }
  0x44   : > { %368 = vst.msk [vmem:[#allocation3 + $0x180] sm:$0x1] %vm308_vm1, %v12639_v2 }
  0x45   : > { %371 = vst.msk [vmem:[#allocation3 + $0x29] sm:$0x1] %vm308_vm1, %v12639_v2 }
  0x46   : > { %372 = vst.msk [vmem:[#allocation3 + $0x41] sm:$0x1] %vm308_vm1, %v12639_v2 }
  0x47   : > { %373 = vst.msk [vmem:[#allocation3 + $0x59] sm:$0x1] %vm308_vm1, %v12639_v2 }
  0x48   : > { %374 = vst.msk [vmem:[#allocation3 + $0x71] sm:$0x1] %vm308_vm1, %v12639_v2 }
  0x49   : > { %375 = vst.msk [vmem:[#allocation3 + $0x89] sm:$0x1] %vm308_vm1, %v12639_v2 }
  0x4a   : > { %376 = vst.msk [vmem:[#allocation3 + $0xa1] sm:$0x1] %vm308_vm1, %v12639_v2 }
  0x4b   : > { %377 = vst.msk [vmem:[#allocation3 + $0xb9] sm:$0x1] %vm308_vm1, %v12639_v2 }
  0x4c   : > { %378 = vst.msk [vmem:[#allocation3 + $0xd1] sm:$0x1] %vm308_vm1, %v12639_v2 }
  0x4d   : > { %379 = vst.msk [vmem:[#allocation3 + $0xe9] sm:$0x1] %vm308_vm1, %v12639_v2 }
  0x4e   : > { %380 = vst.msk [vmem:[#allocation3 + $0x101] sm:$0x1] %vm308_vm1, %v12639_v2 }
  0x4f   : > { %381 = vst.msk [vmem:[#allocation3 + $0x119] sm:$0x1] %vm308_vm1, %v12639_v2 }
  0x50   : > { %382 = vst.msk [vmem:[#allocation3 + $0x131] sm:$0x1] %vm308_vm1, %v12639_v2 }
  0x51   : > { %383 = vst.msk [vmem:[#allocation3 + $0x149] sm:$0x1] %vm308_vm1, %v12639_v2 }
  0x52   : > { %384 = vst.msk [vmem:[#allocation3 + $0x161] sm:$0x1] %vm308_vm1, %v12639_v2 }
  0x53   : > { %385 = vst.msk [vmem:[#allocation3 + $0x179] sm:$0x1] %vm308_vm1, %v12639_v2 }
  0x54   : > { %386 = vst.msk [vmem:[#allocation3 + $0x191] sm:$0x1] %vm308_vm1, %v12639_v2 }
  0x55   : > { %309 = vst.msk [vmem:[#allocation2] sm:$0x1] %vm308_vm1, %v12639_v2 }
  0x56   : > { %326 = vst.msk [vmem:[#allocation2 + $0x198] sm:$0x1] %vm308_vm1, %v12639_v2 }
  0x57   : > { %369 = vst.msk [vmem:[#allocation3 + $0x198] sm:$0x1] %vm308_vm1, %v12639_v2 }
  0x58   : > { %554 = vst.msk [vmem:[#allocation3 + $0x121] sm:$0xff] %vm299_vm0, %v521_v9 }
  0x59   : > { %555 = vst.msk [vmem:[#allocation3 + $0x129] sm:$0xff] %vm299_vm0, %v522_v10 }
  0x5a   : > { %532 = vst.msk [vmem:[#allocation3 + $0x19] sm:$0xff] %vm299_vm0, %v499_v11  ;;  %v460_v11 = vld [vmem:[%s9344_s19 + $0xd0] sm:$0xff] }
  0x5b   : > { %467 = vst.msk [vmem:[#allocation2 + $0x19] sm:$0xff] %vm299_vm0, %v434_v12 }
  0x5c   : > { %v564_v13 = vld [vmem:[#allocation2] sm:$0xff]  ;;  %303 = vst.msk [vmem:[#allocation2 + $0x10] sm:$0x3] %vm302_vm2, %v12639_v2 }
  0x5d   : > { %8199 = vmatmul.msk.f32.vlgmr.msra.gmra.mxu1 %vm299_vm0, %v564_v13  ;;  %307 = vst.msk [vmem:[#allocation2 + $0x1a8] sm:$0x3] %vm302_vm2, %v12639_v2 }
  0x5e   : > { %327 = vst.msk [vmem:[#allocation2 + $0x11] sm:$0x1] %vm308_vm1, %v12639_v2 }
  0x5f   : > { %v621_v15 = vld [vmem:[#allocation3 + $0x120] sm:$0xff]  ;;  %347 = vst.msk [vmem:[#allocation3 + $0x10] sm:$0x3] %vm302_vm2, %v12639_v2 }
  0x60   : > { %8191 = vmatmul.msk.f32.vlgmr.msra.gmra.mxu3 %vm299_vm0, %v621_v15  ;;  %351 = vst.msk [vmem:[#allocation3 + $0x1a8] sm:$0x3] %vm302_vm2, %v12639_v2  ;;  %v622_v22 = vld [vmem:[#allocation3 + $0x128] sm:$0xff] }
  0x61   : > { %v599_v16 = vld [vmem:[#allocation3 + $0x18] sm:$0xff]  ;;  %556 = vst.msk [vmem:[#allocation3 + $0x139] sm:$0xff] %vm299_vm0, %v523_v14  ;;  %9086 = vmatpush.msra.mxu3 %v8231_v5  ;;  %v510_v14 = vld [vmem:[%s9331_s16 + $0x58] sm:$0xff] }
  0x62   : > { %8169 = vmatmul.msk.f32.gmra.mxu0 %vm299_vm0, %v599_v16  ;;  %344 = vst.msk [vmem:[#allocation2 + $0x1a9] sm:$0x1] %vm308_vm1, %v12639_v2  ;;  %v1050_v27 = vld [vmem:[#allocation2 + $0x19] sm:$0xff] }
  0x63   : > { %v1049_v19 = vld [vmem:[#allocation2 + $0x9] sm:$0xff]  ;;  %370 = vst.msk [vmem:[#allocation3 + $0x11] sm:$0x1] %vm308_vm1, %v12639_v2  ;;  %v9390_v29 = vld [vmem:[#allocation2 + $0x18] sm:$0xff] }
  0x64   : > { %8233 = vmatmul.msk.f32.gmra.mxu2 %vm299_vm0, %v1049_v19  ;;  %387 = vst.msk [vmem:[#allocation3 + $0x1a9] sm:$0x1] %vm308_vm1, %v12639_v2  ;;  %v445_v15 = vld [vmem:[%s9344_s19 + $0x58] sm:$0xff] }
  0x65   : > { %8200 = vmatmul.msk.f32.gmra.mxu1 %vm299_vm0, %v565_v17  ;;  %533 = vst.msk [vmem:[#allocation3 + $0x21] sm:$0xff] %vm299_vm0, %v500_v18  ;;  %v461_v18 = vld [vmem:[%s9344_s19 + $0xd8] sm:$0xff] }
  0x66   : > { %468 = vst.msk [vmem:[#allocation2 + $0x21] sm:$0xff] %vm299_vm0, %v435_v20 }
  0x67   : > { %557 = vst.msk [vmem:[#allocation3 + $0x141] sm:$0xff] %vm299_vm0, %v524_v21  ;;  %v511_v21 = vld [vmem:[%s9331_s16 + $0x60] sm:$0xff] }
  0x68   : > { %8192 = vmatmul.msk.f32.gmra.mxu3 %vm299_vm0, %v622_v22  ;;  %534 = vst.msk [vmem:[#allocation3 + $0x31] sm:$0xff] %vm299_vm0, %v501_v23  ;;  %v623_v34 = vld [vmem:[#allocation3 + $0x138] sm:$0xff]  ;;  %v446_v22 = vld [vmem:[%s9344_s19 + $0x60] sm:$0xff] }
  0x69   : > { %469 = vst.msk [vmem:[#allocation2 + $0x31] sm:$0xff] %vm299_vm0, %v436_v24 }
  0x6a   : > { %558 = vst.msk [vmem:[#allocation3 + $0x151] sm:$0xff] %vm299_vm0, %v525_v25  ;;  %v462_v25 = vld [vmem:[%s9344_s19 + $0xe0] sm:$0xff] }
  0x6b   : > { %535 = vst.msk [vmem:[#allocation3 + $0x39] sm:$0xff] %vm299_vm0, %v502_v26 }
  0x6c   : > { %v600_v32 = vld [vmem:[#allocation3 + $0x20] sm:$0xff]  ;;  %8234 = vmatmul.msk.f32.gmra.mxu2 %vm299_vm0, %v1050_v27  ;;  %470 = vst.msk [vmem:[#allocation2 + $0x39] sm:$0xff] %vm299_vm0, %v437_v28  ;;  %v512_v28 = vld [vmem:[%s9331_s16 + $0x68] sm:$0xff] }
  0x6d   : > { %8201 = vmatmul.msk.f32.gmra.mxu1 %vm299_vm0, %v9390_v29  ;;  %8170 = vmatmul.msk.f32.gmra.mxu0 %vm299_vm0, %v600_v32  ;;  %559 = vst.msk [vmem:[#allocation3 + $0x159] sm:$0xff] %vm299_vm0, %v526_v30  ;;  %v1051_v38 = vld [vmem:[#allocation2 + $0x21] sm:$0xff] }
  0x6e   : > { %536 = vst.msk [vmem:[#allocation3 + $0x49] sm:$0xff] %vm299_vm0, %v503_v31  ;;  %v9412_v40 = vld [vmem:[#allocation2 + $0x20] sm:$0xff]  ;;  %v624_v44 = vld [vmem:[#allocation3 + $0x140] sm:$0xff]  ;;  %v447_v30 = vld [vmem:[%s9344_s19 + $0x68] sm:$0xff] }
  0x6f   : > { %471 = vst.msk [vmem:[#allocation2 + $0x49] sm:$0xff] %vm299_vm0, %v438_v33  ;;  %v601_v41 = vld [vmem:[#allocation3 + $0x30] sm:$0xff]  ;;  %v463_v33 = vld [vmem:[%s9344_s19 + $0xe8] sm:$0xff] }
  0x70   : > { %8193 = vmatmul.msk.f32.gmra.mxu3 %vm299_vm0, %v623_v34  ;;  %560 = vst.msk [vmem:[#allocation3 + $0x169] sm:$0xff] %vm299_vm0, %v527_v35  ;;  %v1052_v45 = vld [vmem:[#allocation2 + $0x31] sm:$0xff] }
  0x71   : > { %537 = vst.msk [vmem:[#allocation3 + $0x51] sm:$0xff] %vm299_vm0, %v504_v36  ;;  %v9426_v47 = vld [vmem:[#allocation2 + $0x30] sm:$0xff]  ;;  %v625_v51 = vld [vmem:[#allocation3 + $0x150] sm:$0xff] }
  0x72   : > { %472 = vst.msk [vmem:[#allocation2 + $0x51] sm:$0xff] %vm299_vm0, %v439_v37  ;;  %v602_v48 = vld [vmem:[#allocation3 + $0x38] sm:$0xff]  ;;  %v513_v36 = vld [vmem:[%s9331_s16 + $0x70] sm:$0xff] }
  0x73   : > { %561 = vst.msk [vmem:[#allocation3 + $0x171] sm:$0xff] %vm299_vm0, %v528_v39  ;;  %v1053_v52 = vld [vmem:[#allocation2 + $0x39] sm:$0xff]  ;;  %v448_v37 = vld [vmem:[%s9344_s19 + $0x70] sm:$0xff] }
  0x74   : > { %8235 = vmatmul.msk.f32.gmra.mxu2 %vm299_vm0, %v1051_v38  ;;  %538 = vst.msk [vmem:[#allocation3 + $0x61] sm:$0xff] %vm299_vm0, %v505_v42  ;;  %v9439_v54 = vld [vmem:[#allocation2 + $0x38] sm:$0xff]  ;;  %v626_v58 = vld [vmem:[#allocation3 + $0x158] sm:$0xff] }
  0x75   : > { %8202 = vmatmul.msk.f32.gmra.mxu1 %vm299_vm0, %v9412_v40  ;;  %8171 = vmatmul.msk.f32.gmra.mxu0 %vm299_vm0, %v601_v41  ;;  %473 = vst.msk [vmem:[#allocation2 + $0x61] sm:$0xff] %vm299_vm0, %v440_v43  ;;  %v603_v55 = vld [vmem:[#allocation3 + $0x48] sm:$0xff] }
  0x76   : > { %489 = vst.msk [vmem:[#allocation2 + $0x121] sm:$0xff] %vm299_vm0, %v456_v46  ;;  %v1054_v59 = vld [vmem:[#allocation2 + $0x49] sm:$0xff]  ;;  %v514_v43 = vld [vmem:[%s9331_s16 + $0x78] sm:$0xff] }
  0x77   : > { %539 = vst.msk [vmem:[#allocation3 + $0x69] sm:$0xff] %vm299_vm0, %v506_v49  ;;  %v9452_v61 = vld [vmem:[#allocation2 + $0x48] sm:$0xff]  ;;  %v627_v1 = vld [vmem:[#allocation3 + $0x168] sm:$0xff] }
  0x78   : > { %8194 = vmatmul.msk.f32.gmra.mxu3 %vm299_vm0, %v624_v44  ;;  %474 = vst.msk [vmem:[#allocation2 + $0x69] sm:$0xff] %vm299_vm0, %v441_v50  ;;  %v604_v62 = vld [vmem:[#allocation3 + $0x50] sm:$0xff]  ;;  %v449_v44 = vld [vmem:[%s9344_s19 + $0x78] sm:$0xff]  ;;  %v8264_v50 = vld [vmem:[%s12634_s3 + $0x8] sm:$0xff] }
  0x79   : > { %490 = vst.msk [vmem:[#allocation2 + $0x129] sm:$0xff] %vm299_vm0, %v457_v53  ;;  %v1055_v3 = vld [vmem:[#allocation2 + $0x51] sm:$0xff] }
  0x7a   : > { %540 = vst.msk [vmem:[#allocation3 + $0x79] sm:$0xff] %vm299_vm0, %v507_v56  ;;  %v9465_v5 = vld [vmem:[#allocation2 + $0x50] sm:$0xff]  ;;  %v628_v9 = vld [vmem:[#allocation3 + $0x170] sm:$0xff] }
  0x7b   : > { %475 = vst.msk [vmem:[#allocation2 + $0x79] sm:$0xff] %vm299_vm0, %v442_v57  ;;  %v605_v6 = vld [vmem:[#allocation3 + $0x60] sm:$0xff] }
  0x7c   : > { %8236 = vmatmul.msk.f32.gmra.mxu2 %vm299_vm0, %v1052_v45  ;;  %491 = vst.msk [vmem:[#allocation2 + $0x139] sm:$0xff] %vm299_vm0, %v458_v60  ;;  %v1056_v10 = vld [vmem:[#allocation2 + $0x61] sm:$0xff]  ;;  %v9816_v2 = vld [vmem:[#allocation3 + $0x61] sm:$0xff] }
  0x7d   : > { %8203 = vmatmul.msk.f32.gmra.mxu1 %vm299_vm0, %v9426_v47  ;;  %8172 = vmatmul.msk.f32.gmra.mxu0 %vm299_vm0, %v602_v48  ;;  %541 = vst.msk [vmem:[#allocation3 + $0x81] sm:$0xff] %vm299_vm0, %v508_v63  ;;  %v9478_v12 = vld [vmem:[#allocation2 + $0x60] sm:$0xff]  ;;  %v516_v60 = vld [vmem:[%s9331_s16 + $0x88] sm:$0xff] }
  0x7e   : > { %476 = vst.msk [vmem:[#allocation2 + $0x81] sm:$0xff] %vm299_vm0, %v443_v0  ;;  %v606_v13 = vld [vmem:[#allocation3 + $0x68] sm:$0xff]  ;;  %v588_v16 = vld [vmem:[#allocation2 + $0x120] sm:$0xff] }
  0x7f   : > { %492 = vst.msk [vmem:[#allocation2 + $0x141] sm:$0xff] %vm299_vm0, %v459_v4  ;;  %v1057_v17 = vld [vmem:[#allocation2 + $0x69] sm:$0xff] }
  0x80   : > { %8195 = vmatmul.msk.f32.gmra.mxu3 %vm299_vm0, %v625_v51  ;;  %542 = vst.msk [vmem:[#allocation3 + $0x91] sm:$0xff] %vm299_vm0, %v509_v7  ;;  %v9491_v19 = vld [vmem:[#allocation2 + $0x68] sm:$0xff]  ;;  %v515_v51 = vld [vmem:[%s9331_s16 + $0x80] sm:$0xff]  ;;  %v517_v4 = vld [vmem:[%s9331_s16 + $0x90] sm:$0xff] }
  0x81   : > { %477 = vst.msk [vmem:[#allocation2 + $0x91] sm:$0xff] %vm299_vm0, %v444_v8  ;;  %v607_v20 = vld [vmem:[#allocation3 + $0x78] sm:$0xff] }
  0x82   : > { %493 = vst.msk [vmem:[#allocation2 + $0x151] sm:$0xff] %vm299_vm0, %v460_v11  ;;  %v589_v23 = vld [vmem:[#allocation2 + $0x128] sm:$0xff]  ;;  %v1058_v24 = vld [vmem:[#allocation2 + $0x79] sm:$0xff] }
  0x83   : > { %543 = vst.msk [vmem:[#allocation3 + $0x99] sm:$0xff] %vm299_vm0, %v510_v14  ;;  %v9504_v26 = vld [vmem:[#allocation2 + $0x78] sm:$0xff] }
  0x84   : > { %8237 = vmatmul.msk.f32.gmra.mxu2 %vm299_vm0, %v1053_v52  ;;  %478 = vst.msk [vmem:[#allocation2 + $0x99] sm:$0xff] %vm299_vm0, %v445_v15  ;;  %v608_v27 = vld [vmem:[#allocation3 + $0x80] sm:$0xff]  ;;  %v590_v31 = vld [vmem:[#allocation2 + $0x138] sm:$0xff]  ;;  %v450_v52 = vld [vmem:[%s9344_s19 + $0x80] sm:$0xff] }
  0x85   : > { %8204 = vmatmul.msk.f32.gmra.mxu1 %vm299_vm0, %v9439_v54  ;;  %8173 = vmatmul.msk.f32.gmra.mxu0 %vm299_vm0, %v603_v55  ;;  %494 = vst.msk [vmem:[#allocation2 + $0x159] sm:$0xff] %vm299_vm0, %v461_v18  ;;  %v1059_v32 = vld [vmem:[#allocation2 + $0x81] sm:$0xff]  ;;  %v8363_v55 = vld [vmem:[%s12633_s2 + $0x18] sm:$0xff] }
  0x86   : > { %544 = vst.msk [vmem:[#allocation3 + $0xa9] sm:$0xff] %vm299_vm0, %v511_v21  ;;  %v9517_v34 = vld [vmem:[#allocation2 + $0x80] sm:$0xff]  ;;  %2293 = vmatpush.msrb.mxu2 %v8363_v55  ;;  %v518_v14 = vld [vmem:[%s9331_s16 + $0x98] sm:$0xff] }
  0x87   : > { %479 = vst.msk [vmem:[#allocation2 + $0xa9] sm:$0xff] %vm299_vm0, %v446_v22  ;;  %v609_v35 = vld [vmem:[#allocation3 + $0x90] sm:$0xff]  ;;  %v453_v15 = vld [vmem:[%s9344_s19 + $0x98] sm:$0xff] }
  0x88   : > { %8196 = vmatmul.msk.f32.gmra.mxu3 %vm299_vm0, %v626_v58  ;;  %495 = vst.msk [vmem:[#allocation2 + $0x169] sm:$0xff] %vm299_vm0, %v462_v25  ;;  %v591_v38 = vld [vmem:[#allocation2 + $0x140] sm:$0xff]  ;;  %v1060_v39 = vld [vmem:[#allocation2 + $0x91] sm:$0xff] }
  0x89   : > { %545 = vst.msk [vmem:[#allocation3 + $0xb1] sm:$0xff] %vm299_vm0, %v512_v28  ;;  %v9529_v41 = vld [vmem:[#allocation2 + $0x90] sm:$0xff]  ;;  %v454_v28 = vld [vmem:[%s9344_s19 + $0xa0] sm:$0xff] }
  0x8a   : > { %480 = vst.msk [vmem:[#allocation2 + $0xb1] sm:$0xff] %vm299_vm0, %v447_v30  ;;  %v610_v42 = vld [vmem:[#allocation3 + $0x98] sm:$0xff]  ;;  %v592_v45 = vld [vmem:[#allocation2 + $0x150] sm:$0xff] }
  0x8b   : > { %496 = vst.msk [vmem:[#allocation2 + $0x171] sm:$0xff] %vm299_vm0, %v463_v33  ;;  %v1061_v46 = vld [vmem:[#allocation2 + $0x99] sm:$0xff]  ;;  %v1073_v30 = vld [vmem:[#allocation2 + $0x129] sm:$0xff] }
  0x8c   : > { %8238 = vmatmul.msk.f32.gmra.mxu2 %vm299_vm0, %v1054_v59  ;;  %546 = vst.msk [vmem:[#allocation3 + $0xc1] sm:$0xff] %vm299_vm0, %v513_v36  ;;  %v9540_v48 = vld [vmem:[#allocation2 + $0x98] sm:$0xff] }
  0x8d   : > { %8205 = vmatmul.msk.f32.gmra.mxu1 %vm299_vm0, %v9452_v61  ;;  %8174 = vmatmul.msk.f32.gmra.mxu0 %vm299_vm0, %v604_v62  ;;  %481 = vst.msk [vmem:[#allocation2 + $0xc1] sm:$0xff] %vm299_vm0, %v448_v37  ;;  %v611_v49 = vld [vmem:[#allocation3 + $0xa8] sm:$0xff]  ;;  %v451_v62 = vld [vmem:[%s9344_s19 + $0x88] sm:$0xff] }
  0x8e   : > { %547 = vst.msk [vmem:[#allocation3 + $0xc9] sm:$0xff] %vm299_vm0, %v514_v43  ;;  %v593_v53 = vld [vmem:[#allocation2 + $0x158] sm:$0xff]  ;;  %v1062_v56 = vld [vmem:[#allocation2 + $0xa9] sm:$0xff] }
  0x8f   : > { %482 = vst.msk [vmem:[#allocation2 + $0xc9] sm:$0xff] %vm299_vm0, %v449_v44  ;;  %v9557_v57 = vld [vmem:[#allocation2 + $0xa8] sm:$0xff] }
  0x90   : > { %8197 = vmatmul.msk.f32.gmra.mxu3 %vm299_vm0, %v627_v1  ;;  %548 = vst.msk [vmem:[#allocation3 + $0xd9] sm:$0xff] %vm299_vm0, %v515_v51  ;;  %v612_v58 = vld [vmem:[#allocation3 + $0xb0] sm:$0xff]  ;;  %v594_v63 = vld [vmem:[#allocation2 + $0x168] sm:$0xff] }
  0x91   : > { %483 = vst.msk [vmem:[#allocation2 + $0xd9] sm:$0xff] %vm299_vm0, %v450_v52  ;;  %v1063_v0 = vld [vmem:[#allocation2 + $0xb1] sm:$0xff]  ;;  %v520_v43 = vld [vmem:[%s9331_s16 + $0xa8] sm:$0xff] }
  0x92   : > { %v9560_v59 = vpop.f32.mrf.mxu0  ;;  %549 = vst.msk [vmem:[#allocation3 + $0xe1] sm:$0xff] %vm299_vm0, %v516_v60  ;;  %v9570_v1 = vld [vmem:[#allocation2 + $0xb0] sm:$0xff]  ;;  %v455_v44 = vld [vmem:[%s9344_s19 + $0xa8] sm:$0xff] }
  0x93   : > { %484 = vst.msk [vmem:[#allocation2 + $0xe1] sm:$0xff] %vm299_vm0, %v451_v62  ;;  %v595_v7 = vld [vmem:[#allocation2 + $0x170] sm:$0xff]  ;;  %v1075_v60 = vld [vmem:[#allocation2 + $0x141] sm:$0xff] }
  0x94   : > { %8239 = vmatmul.msk.f32.gmra.mxu2 %vm299_vm0, %v1055_v3  ;;  %v613_v3 = vld [vmem:[#allocation3 + $0xc0] sm:$0xff]  ;;  %550 = vst.msk [vmem:[#allocation3 + $0xf1] sm:$0xff] %vm299_vm0, %v517_v4  ;;  %v9583_v11 = vld [vmem:[#allocation2 + $0xc0] sm:$0xff] }
  0x95   : > { %8206 = vmatmul.msk.f32.gmra.mxu1 %vm299_vm0, %v9465_v5  ;;  %8175 = vmatmul.msk.f32.gmra.mxu0 %vm299_vm0, %v605_v6  ;;  %v452_v6 = vld [vmem:[%s9344_s19 + $0x90] sm:$0xff]  ;;  %551 = vst.msk [vmem:[#allocation3 + $0xf9] sm:$0xff] %vm299_vm0, %v518_v14 }
  0x96   : > { %485 = vst.msk [vmem:[#allocation2 + $0xf1] sm:$0xff] %vm299_vm0, %v452_v6  ;;  %v9596_v22 = vld [vmem:[#allocation2 + $0xc8] sm:$0xff] }
  0x97   : > { %486 = vst.msk [vmem:[#allocation2 + $0xf9] sm:$0xff] %vm299_vm0, %v453_v15 }
  0x98   : > { %8198 = vmatmul.msk.f32.gmra.mxu3 %vm299_vm0, %v628_v9  ;;  %v1064_v9 = vld [vmem:[#allocation2 + $0xc1] sm:$0xff]  ;;  %487 = vst.msk [vmem:[#allocation2 + $0x109] sm:$0xff] %vm299_vm0, %v454_v28  ;;  %v1066_v33 = vld [vmem:[#allocation2 + $0xd9] sm:$0xff] }
  0x99   : > { %v9611_v36 = vld [vmem:[#allocation2 + $0xd8] sm:$0xff]  ;;  %553 = vst.msk [vmem:[#allocation3 + $0x111] sm:$0xff] %vm299_vm0, %v520_v43 }
  0x9a   : > { %488 = vst.msk [vmem:[#allocation2 + $0x111] sm:$0xff] %vm299_vm0, %v455_v44  ;;  %v9626_v52 = vld [vmem:[#allocation2 + $0xe0] sm:$0xff] }
  0x9b   : > { %v617_v55 = vld [vmem:[#allocation3 + $0xf0] sm:$0xff] }
  0x9c   : > { %8240 = vmatmul.msk.f32.gmra.mxu2 %vm299_vm0, %v1056_v10 }
  0x9d   : > { %8207 = vmatmul.msk.f32.gmra.mxu1 %vm299_vm0, %v9478_v12  ;;  %8176 = vmatmul.msk.f32.gmra.mxu0 %vm299_vm0, %v606_v13  ;;  %v614_v13 = vld [vmem:[#allocation3 + $0xc8] sm:$0xff]  ;;  %v9637_v4 = vld [vmem:[#allocation2 + $0xf0] sm:$0xff] }
  0xa0   : > { %8223 = vmatmul.msk.f32.vlgmr.msrb.gmra.mxu3 %vm299_vm0, %v588_v16  ;;  %v1072_v16 = vld [vmem:[#allocation2 + $0x121] sm:$0xff] }
  0xa1   : > { %1468 = vmatpush.msrb.mxu3 %v8264_v50  ;;  %v1067_v50 = vld [vmem:[#allocation2 + $0xe1] sm:$0xff] }
  0xa4   : > { %8241 = vmatmul.msk.f32.gmra.mxu2 %vm299_vm0, %v1057_v17  ;;  %v9591_v17 = vpop.f32.mrf.mxu2 }
  0xa5   : > { %8208 = vmatmul.msk.f32.gmra.mxu1 %vm299_vm0, %v9491_v19  ;;  %8177 = vmatmul.msk.f32.gmra.mxu0 %vm299_vm0, %v607_v20  ;;  %v1065_v20 = vld [vmem:[#allocation2 + $0xc9] sm:$0xff] }
  0xa8   : > { %8224 = vmatmul.msk.f32.gmra.mxu3 %vm299_vm0, %v589_v23  ;;  %v615_v23 = vld [vmem:[#allocation3 + $0xd8] sm:$0xff] }
  0xac   : > { %8242 = vmatmul.msk.f32.gmra.mxu2 %vm299_vm0, %v1058_v24 }
  0xad   : > { %8209 = vmatmul.msk.f32.gmra.mxu1 %vm299_vm0, %v9504_v26  ;;  %8178 = vmatmul.msk.f32.gmra.mxu0 %vm299_vm0, %v608_v27  ;;  %v519_v27 = vld [vmem:[%s9331_s16 + $0xa0] sm:$0xff] }
  0xae   : > { %552 = vst.msk [vmem:[#allocation3 + $0x109] sm:$0xff] %vm299_vm0, %v519_v27  ;;  %v8396_v27 = vld [vmem:[%s12634_s3 + $0x18] sm:$0xff] }
  0xb0   : > { %8225 = vmatmul.msk.f32.gmra.mxu3 %vm299_vm0, %v590_v31 }
  0xb4   : > { %8243 = vmatmul.msk.f32.gmra.mxu2 %vm299_vm0, %v1059_v32 }
  0xb5   : > { %8210 = vmatmul.msk.f32.gmra.mxu1 %vm299_vm0, %v9517_v34  ;;  %8179 = vmatmul.msk.f32.gmra.mxu0 %vm299_vm0, %v609_v35  ;;  %v620_v43 = vld [vmem:[#allocation3 + $0x110] sm:$0xff] }
  0xb7   : > { %v746_v8 = vpop.f32.mrf.mxu0 }
  0xb8   : > { %8226 = vmatmul.msk.f32.gmra.mxu3 %vm299_vm0, %v591_v38  ;;  %v616_v38 = vld [vmem:[#allocation3 + $0xe0] sm:$0xff] }
  0xbc   : > { %8244 = vmatmul.msk.f32.gmra.mxu2 %vm299_vm0, %v1060_v39 }
  0xbd   : > { %8211 = vmatmul.msk.f32.gmra.mxu1 %vm299_vm0, %v9529_v41  ;;  %8180 = vmatmul.msk.f32.gmra.mxu0 %vm299_vm0, %v610_v42 }
  0xc0   : > { %8227 = vmatmul.msk.f32.gmra.mxu3 %vm299_vm0, %v592_v45  ;;  %v1074_v45 = vld [vmem:[#allocation2 + $0x139] sm:$0xff] }
  0xc4   : > { %8245 = vmatmul.msk.f32.gmra.mxu2 %vm299_vm0, %v1061_v46 }
  0xc5   : > { %8212 = vmatmul.msk.f32.gmra.mxu1 %vm299_vm0, %v9540_v48  ;;  %8181 = vmatmul.msk.f32.gmra.mxu0 %vm299_vm0, %v611_v49 }
  0xc8   : > { %8228 = vmatmul.msk.f32.gmra.mxu3 %vm299_vm0, %v593_v53 }
  0xcc   : > { %8246 = vmatmul.msk.f32.gmra.mxu2 %vm299_vm0, %v1062_v56 }
  0xcd   : > { %8213 = vmatmul.msk.f32.gmra.mxu1 %vm299_vm0, %v9557_v57  ;;  %8182 = vmatmul.msk.f32.gmra.mxu0 %vm299_vm0, %v612_v58 }
  0xd0   : > { %8229 = vmatmul.msk.f32.gmra.mxu3 %vm299_vm0, %v594_v63 }
  0xd4   : > { %8247 = vmatmul.msk.f32.gmra.mxu2 %vm299_vm0, %v1063_v0  ;;  %v1068_v0 = vld [vmem:[#allocation2 + $0xf1] sm:$0xff] }
  0xd5   : > { %8214 = vmatmul.msk.f32.gmra.mxu1 %vm299_vm0, %v9570_v1  ;;  %8183 = vmatmul.msk.f32.gmra.mxu0 %vm299_vm0, %v613_v3 }
  0xd8   : > { %8230 = vmatmul.msk.f32.gmra.mxu3 %vm299_vm0, %v595_v7  ;;  %v618_v7 = vld [vmem:[#allocation3 + $0xf8] sm:$0xff] }
  0xda   : > { %v9581_v10 = vpop.f32.mrf.mxu1 }
  0xdc   : > { %8248 = vmatmul.msk.f32.gmra.mxu2 %vm299_vm0, %v1064_v9 }
  0xdd   : > { %8215 = vmatmul.msk.f32.gmra.mxu1 %vm299_vm0, %v9583_v11  ;;  %8184 = vmatmul.msk.f32.gmra.mxu0 %vm299_vm0, %v614_v13  ;;  %v1076_v13 = vld [vmem:[#allocation2 + $0x151] sm:$0xff] }
  0xdf   : > { %v749_v18 = vpop.f32.mrf.mxu0 }
  0xe0   : > { %8256 = vmatmul.msk.f32.vlgmr.msra.gmra.mxu3 %vm299_vm0, %v1072_v16  ;;  %v1069_v16 = vld [vmem:[#allocation2 + $0xf9] sm:$0xff] }
  0xe1   : > { %2568 = vmatpush.msra.mxu3 %v8396_v27 }
  0xe2   : > { %v955_v21 = vpop.f32.mrf.mxu1 }
  0xe3   : > { %v9598_v24 = vpop.f32.mrf.mxu3  ;;  %v956_v25 = vadd.f32 %v955_v21, %v746_v8 }
  0xe4   : > { %8249 = vmatmul.msk.f32.gmra.mxu2 %vm299_vm0, %v1065_v20  ;;  %v9648_v20 = vld [vmem:[#allocation2 + $0xf8] sm:$0xff] }
  0xe5   : > { %8216 = vmatmul.msk.f32.gmra.mxu1 %vm299_vm0, %v9596_v22  ;;  %8185 = vmatmul.msk.f32.gmra.mxu0 %vm299_vm0, %v615_v23  ;;  %v619_v23 = vld [vmem:[#allocation3 + $0x108] sm:$0xff] }
  0xe7   : > { %v1198_v31 = vpop.f32.mrf.mxu2 }
  0xe8   : > { %8257 = vmatmul.msk.f32.gmra.mxu3 %vm299_vm0, %v1073_v30  ;;  %v9609_v32 = vadd.f32 %v1198_v31, %v956_v25  ;;  %v1077_v30 = vld [vmem:[#allocation2 + $0x159] sm:$0xff] }
  0xea   : > { %v958_v35 = vpop.f32.mrf.mxu1  ;;  %v752_v37 = vpop.f32.mrf.mxu0 }
  0xeb   : > { %v9613_v39 = vpop.f32.mrf.mxu3  ;;  %v959_v42 = vadd.f32 %v958_v35, %v749_v18  ;;  %v1070_v35 = vld [vmem:[#allocation2 + $0x109] sm:$0xff] }
  0xec   : > { %8250 = vmatmul.msk.f32.gmra.mxu2 %vm299_vm0, %v1066_v33 }
  0xed   : > { %8217 = vmatmul.msk.f32.gmra.mxu1 %vm299_vm0, %v9611_v36  ;;  %8186 = vmatmul.msk.f32.gmra.mxu0 %vm299_vm0, %v616_v38  ;;  %v9662_v38 = vld [vmem:[#allocation2 + $0x108] sm:$0xff] }
  0xef   : > { %v1201_v46 = vpop.f32.mrf.mxu2 }
  0xf0   : > { %8258 = vmatmul.msk.f32.gmra.mxu3 %vm299_vm0, %v1074_v45  ;;  %v9624_v49 = vadd.f32 %v1201_v46, %v959_v42  ;;  %v8429_v45 = vld [vmem:[%s12633_s2 + $0x20] sm:$0xff] }
  0xf1   : > { %v8462_v46 = vld [vmem:[%s12634_s3 + $0x20] sm:$0xff]  ;;  %2843 = vmatpush.msra.mxu0 %v8429_v45 }
  0xf2   : > { %v961_v51 = vpop.f32.mrf.mxu1  ;;  %v755_v53 = vpop.f32.mrf.mxu0  ;;  %3118 = vmatpush.msra.mxu1 %v8462_v46  ;;  %v9699_v45 = vld [vmem:[#allocation2 + $0x1a] sm:$0xff] }
  0xf3   : > { %v9628_v56 = vpop.f32.mrf.mxu3  ;;  %v962_v58 = vadd.f32 %v961_v51, %v752_v37  ;;  %v1078_v51 = vld [vmem:[#allocation2 + $0x169] sm:$0xff] }
  0xf4   : > { %8251 = vmatmul.msk.f32.gmra.mxu2 %vm299_vm0, %v1067_v50 }
  0xf5   : > { %8218 = vmatmul.msk.f32.gmra.mxu1 %vm299_vm0, %v9626_v52  ;;  %8187 = vmatmul.msk.f32.gmra.mxu0 %vm299_vm0, %v617_v55 }
  0xf7   : > { %v1204_v62 = vpop.f32.mrf.mxu2 }
  0xf8   : > { %8259 = vmatmul.msk.f32.gmra.mxu3 %vm299_vm0, %v1075_v60  ;;  %v9635_v63 = vadd.f32 %v1204_v62, %v962_v58  ;;  %v1071_v58 = vld [vmem:[#allocation2 + $0x111] sm:$0xff] }
  0xf9   : > { %v9679_v62 = vld [vmem:[#allocation2 + $0x110] sm:$0xff] }
  0xfa   : > { %v964_v3 = vpop.f32.mrf.mxu1  ;;  %v758_v6 = vpop.f32.mrf.mxu0 }
  0xfb   : > { %v9639_v8 = vpop.f32.mrf.mxu3  ;;  %v965_v9 = vadd.f32 %v964_v3, %v755_v53  ;;  %v1598_v3 = vld [vmem:[#allocation2 + $0x2] sm:$0xff] }
  0xfc   : > { %8252 = vmatmul.msk.f32.gmra.mxu2 %vm299_vm0, %v1068_v0 }
  0xfd   : > { %8219 = vmatmul.msk.f32.gmra.mxu1 %vm299_vm0, %v9637_v4  ;;  %8188 = vmatmul.msk.f32.gmra.mxu0 %vm299_vm0, %v618_v7 }
  0xff   : > { %v1207_v14 = vpop.f32.mrf.mxu2 }
 0x100   : > { %8260 = vmatmul.msk.f32.gmra.mxu3 %vm299_vm0, %v1076_v13  ;;  %v9646_v15 = vadd.f32 %v1207_v14, %v965_v9  ;;  %v1079_v9 = vld [vmem:[#allocation2 + $0x171] sm:$0xff] }
 0x102   : > { %v967_v18 = vpop.f32.mrf.mxu1  ;;  %v761_v21 = vpop.f32.mrf.mxu0 }
 0x103   : > { %v9650_v25 = vpop.f32.mrf.mxu3  ;;  %v968_v28 = vadd.f32 %v967_v18, %v758_v6  ;;  %v1873_v18 = vld [vmem:[#allocation3 + $0x2] sm:$0xff] }
 0x104   : > { %8253 = vmatmul.msk.f32.gmra.mxu2 %vm299_vm0, %v1069_v16 }
 0x105   : > { %8220 = vmatmul.msk.f32.gmra.mxu1 %vm299_vm0, %v9648_v20  ;;  %8189 = vmatmul.msk.f32.gmra.mxu0 %vm299_vm0, %v619_v23  ;;  %v1599_v23 = vld [vmem:[#allocation2 + $0xa] sm:$0xff] }
 0x107   : > { %v1210_v31 = vpop.f32.mrf.mxu2 }
 0x108   : > { %8261 = vmatmul.msk.f32.gmra.mxu3 %vm299_vm0, %v1077_v30  ;;  %v9660_v33 = vadd.f32 %v1210_v31, %v968_v28  ;;  %v1323_v30 = vld [vmem:[#allocation3 + $0x1] sm:$0xff] }
 0x10a   : > { %v970_v37 = vpop.f32.mrf.mxu1  ;;  %v764_v42 = vpop.f32.mrf.mxu0 }
 0x10b   : > { %v9664_v44 = vpop.f32.mrf.mxu3  ;;  %v971_v50 = vadd.f32 %v970_v37, %v761_v21 }
 0x10c   : > { %8254 = vmatmul.msk.f32.gmra.mxu2 %vm299_vm0, %v1070_v35 }
 0x10d   : > { %8221 = vmatmul.msk.f32.gmra.mxu1 %vm299_vm0, %v9662_v38  ;;  %8190 = vmatmul.msk.f32.gmra.mxu0 %vm299_vm0, %v620_v43 }
 0x10f   : > { %v1213_v53 = vpop.f32.mrf.mxu2 }
 0x110   : > { %8262 = vmatmul.msk.f32.gmra.mxu3 %vm299_vm0, %v1078_v51  ;;  %v9677_v55 = vadd.f32 %v1213_v53, %v971_v50 }
 0x112   : > { %v973_v60 = vpop.f32.mrf.mxu1  ;;  %v767_v0 = vpop.f32.mrf.mxu0 }
 0x113   : > { %v9681_v6 = vpop.f32.mrf.mxu3  ;;  %v974_v7 = vadd.f32 %v973_v60, %v764_v42  ;;  %v1874_v42 = vld [vmem:[#allocation3 + $0xa] sm:$0xff] }
 0x114   : > { %8255 = vmatmul.msk.f32.gmra.mxu2 %vm299_vm0, %v1071_v58 }
 0x115   : > { %8222 = vmatmul.msk.f32.gmra.mxu1 %vm299_vm0, %v9679_v62  ;;  %8298 = vmatmul.msk.f32.vlgmr.msrb.gmra.mxu0 %vm299_vm0, %v1598_v3 }
 0x117   : > { %v1216_v13 = vpop.f32.mrf.mxu2 }
 0x118   : > { %8263 = vmatmul.msk.f32.gmra.mxu3 %vm299_vm0, %v1079_v9  ;;  %v9688_v14 = vadd.f32 %v1216_v13, %v974_v7  ;;  %v9712_v7 = vld [vmem:[#allocation2 + $0x22] sm:$0xff] }
 0x119   : > { %v9720_v13 = vld [vmem:[#allocation3 + $0x19] sm:$0xff] }
 0x11a   : > { %v976_v16 = vpop.f32.mrf.mxu1  ;;  %v770_v21 = vpop.f32.mrf.mxu0 }
 0x11b   : > { %v9690_v27 = vpop.f32.mrf.mxu3  ;;  %v977_v28 = vadd.f32 %v976_v16, %v767_v0  ;;  %v1875_v0 = vld [vmem:[#allocation3 + $0x1a] sm:$0xff] }
 0x11c   : > { %8364 = vmatmul.msk.f32.vlgmr.msrb.gmra.mxu2 %vm299_vm0, %v9390_v29  ;;  %v1324_v29 = vld [vmem:[#allocation3 + $0x9] sm:$0xff] }
 0x11d   : > { %8331 = vmatmul.msk.f32.vlgmr.msrb.gmra.mxu1 %vm299_vm0, %v1873_v18  ;;  %8299 = vmatmul.msk.f32.gmra.mxu0 %vm299_vm0, %v1599_v23  ;;  %v1876_v23 = vld [vmem:[#allocation3 + $0x22] sm:$0xff] }
 0x11f   : > { %v1219_v31 = vpop.f32.mrf.mxu2 }
 0x120   : > { %8265 = vmatmul.msk.f32.vlgmr.msrb.gmra.mxu3 %vm299_vm0, %v1323_v30  ;;  %v9697_v35 = vadd.f32 %v1219_v31, %v977_v28  ;;  %v9728_v28 = vld [vmem:[#allocation2 + $0x32] sm:$0xff] }
 0x122   : > { %v979_v37 = vpop.f32.mrf.mxu1  ;;  %v773_v43 = vpop.f32.mrf.mxu0 }
 0x123   : > { %v1024_v46 = vpop.f32.mrf.mxu3  ;;  %v980_v50 = vadd.f32 %v979_v37, %v770_v21  ;;  %v9736_v37 = vld [vmem:[#allocation3 + $0x21] sm:$0xff] }
 0x124   : > { %v9702_v51 = vadd.f32 %v1024_v46, %v9598_v24  ;;  %8365 = vmatmul.msk.f32.gmra.mxu2 %vm299_vm0, %v9412_v40 }
 0x125   : > { %8332 = vmatmul.msk.f32.gmra.mxu1 %vm299_vm0, %v1874_v42  ;;  %8300 = vmatmul.msk.f32.gmra.mxu0 %vm299_vm0, %v9699_v45 }
 0x127   : > { %v1222_v53 = vpop.f32.mrf.mxu2 }
 0x128   : > { %8266 = vmatmul.msk.f32.gmra.mxu3 %vm299_vm0, %v1324_v29  ;;  %v9710_v58 = vadd.f32 %v1222_v53, %v980_v50  ;;  %v1877_v50 = vld [vmem:[#allocation3 + $0x32] sm:$0xff]  ;;  %v9744_v29 = vld [vmem:[#allocation2 + $0x3a] sm:$0xff] }
 0x12a   : > { %v982_v60 = vpop.f32.mrf.mxu1  ;;  %v776_v3 = vpop.f32.mrf.mxu0 }
 0x12b   : > { %v1027_v24 = vpop.f32.mrf.mxu3  ;;  %v983_v9 = vadd.f32 %v982_v60, %v773_v43 }
 0x12c   : > { %v9715_v40 = vadd.f32 %v1027_v24, %v9613_v39  ;;  %8366 = vmatmul.msk.f32.gmra.mxu2 %vm299_vm0, %v9426_v47 }
 0x12d   : > { %8333 = vmatmul.msk.f32.gmra.mxu1 %vm299_vm0, %v1875_v0  ;;  %8301 = vmatmul.msk.f32.gmra.mxu0 %vm299_vm0, %v9712_v7  ;;  %v9752_v0 = vld [vmem:[#allocation3 + $0x31] sm:$0xff] }
 0x12f   : > { %v1225_v16 = vpop.f32.mrf.mxu2 }
 0x130   : > { %8267 = vmatmul.msk.f32.gmra.mxu3 %vm299_vm0, %v9720_v13  ;;  %v9726_v18 = vadd.f32 %v1225_v16, %v983_v9  ;;  %v1878_v16 = vld [vmem:[#allocation3 + $0x3a] sm:$0xff] }
 0x132   : > { %v985_v21 = vpop.f32.mrf.mxu1  ;;  %v779_v39 = vpop.f32.mrf.mxu0 }
 0x133   : > { %v1030_v30 = vpop.f32.mrf.mxu3  ;;  %v986_v47 = vadd.f32 %v985_v21, %v776_v3  ;;  %v9760_v21 = vld [vmem:[#allocation2 + $0x4a] sm:$0xff] }
 0x134   : > { %v9731_v31 = vadd.f32 %v1030_v30, %v9628_v56  ;;  %8367 = vmatmul.msk.f32.gmra.mxu2 %vm299_vm0, %v9439_v54  ;;  %v9768_v30 = vld [vmem:[#allocation3 + $0x39] sm:$0xff] }
 0x135   : > { %8334 = vmatmul.msk.f32.gmra.mxu1 %vm299_vm0, %v1876_v23  ;;  %8302 = vmatmul.msk.f32.gmra.mxu0 %vm299_vm0, %v9728_v28 }
 0x137   : > { %v1228_v42 = vpop.f32.mrf.mxu2 }
 0x138   : > { %8268 = vmatmul.msk.f32.gmra.mxu3 %vm299_vm0, %v9736_v37  ;;  %v9742_v43 = vadd.f32 %v1228_v42, %v986_v47 }
 0x13a   : > { %v988_v46 = vpop.f32.mrf.mxu1  ;;  %v782_v56 = vpop.f32.mrf.mxu0 }
 0x13b   : > { %v1033_v53 = vpop.f32.mrf.mxu3  ;;  %v989_v54 = vadd.f32 %v988_v46, %v779_v39 }
 0x13c   : > { %v9747_v60 = vadd.f32 %v1033_v53, %v9639_v8  ;;  %8368 = vmatmul.msk.f32.gmra.mxu2 %vm299_vm0, %v9452_v61 }
 0x13d   : > { %8335 = vmatmul.msk.f32.gmra.mxu1 %vm299_vm0, %v1877_v50  ;;  %8303 = vmatmul.msk.f32.gmra.mxu0 %vm299_vm0, %v9744_v29  ;;  %v1879_v50 = vld [vmem:[#allocation3 + $0x4a] sm:$0xff] }
 0x13f   : > { %v1231_v3 = vpop.f32.mrf.mxu2 }
 0x140   : > { %8269 = vmatmul.msk.f32.gmra.mxu3 %vm299_vm0, %v9752_v0  ;;  %v9758_v24 = vadd.f32 %v1231_v3, %v989_v54  ;;  %v9784_v3 = vld [vmem:[#allocation3 + $0x49] sm:$0xff] }
 0x142   : > { %v991_v9 = vpop.f32.mrf.mxu1  ;;  %v785_v8 = vpop.f32.mrf.mxu0 }
 0x143   : > { %v1036_v23 = vpop.f32.mrf.mxu3  ;;  %v992_v61 = vadd.f32 %v991_v9, %v782_v56  ;;  %v9776_v56 = vld [vmem:[#allocation2 + $0x52] sm:$0xff] }
 0x144   : > { %v9763_v39 = vadd.f32 %v1036_v23, %v9650_v25  ;;  %8369 = vmatmul.msk.f32.gmra.mxu2 %vm299_vm0, %v9465_v5  ;;  %v1880_v23 = vld [vmem:[#allocation3 + $0x52] sm:$0xff] }
 0x145   : > { %8336 = vmatmul.msk.f32.gmra.mxu1 %vm299_vm0, %v1878_v16  ;;  %8304 = vmatmul.msk.f32.gmra.mxu0 %vm299_vm0, %v9760_v21 }
 0x147   : > { %v1234_v47 = vpop.f32.mrf.mxu2 }
 0x148   : > { %8270 = vmatmul.msk.f32.gmra.mxu3 %vm299_vm0, %v9768_v30  ;;  %v9774_v42 = vadd.f32 %v1234_v47, %v992_v61  ;;  %v9792_v61 = vld [vmem:[#allocation2 + $0x62] sm:$0xff] }
 0x149   : > { %12736 = vst [vmem:[#allocation5_spill] sm:$0xff] %v9792_v61 }
 0x14a   : > { %v994_v46 = vpop.f32.mrf.mxu1  ;;  %v788_v25 = vpop.f32.mrf.mxu0 }
 0x14b   : > { %v1039_v53 = vpop.f32.mrf.mxu3  ;;  %v995_v5 = vadd.f32 %v994_v46, %v785_v8 }
 0x14c   : > { %v9779_v54 = vadd.f32 %v1039_v53, %v9664_v44  ;;  %8370 = vmatmul.msk.f32.gmra.mxu2 %vm299_vm0, %v9478_v12 }
 0x14d   : > { %8337 = vmatmul.msk.f32.gmra.mxu1 %vm299_vm0, %v1879_v50  ;;  %8305 = vmatmul.msk.f32.gmra.mxu0 %vm299_vm0, %v9776_v56  ;;  %v9800_v50 = vld [vmem:[#allocation3 + $0x51] sm:$0xff] }
 0x14f   : > { %v1237_v9 = vpop.f32.mrf.mxu2 }
 0x150   : > { %8271 = vmatmul.msk.f32.gmra.mxu3 %vm299_vm0, %v9784_v3  ;;  %v9790_v16 = vadd.f32 %v1237_v9, %v995_v5  ;;  %v1881_v9 = vld [vmem:[#allocation3 + $0x62] sm:$0xff] }
 0x152   : > { %v997_v8 = vpop.f32.mrf.mxu1  ;;  %v791_v44 = vpop.f32.mrf.mxu0 }
 0x153   : > { %v1042_v47 = vpop.f32.mrf.mxu3  ;;  %v998_v12 = vadd.f32 %v997_v8, %v788_v25  ;;  %v9808_v8 = vld [vmem:[#allocation2 + $0x6a] sm:$0xff] }
 0x154   : > { %v9795_v46 = vadd.f32 %v1042_v47, %v9681_v6  ;;  %8371 = vmatmul.msk.f32.gmra.mxu2 %vm299_vm0, %v9491_v19  ;;  %12737 = vst [vmem:[#allocation6_spill] sm:$0xff] %v9808_v8 }
 0x155   : > { %8338 = vmatmul.msk.f32.gmra.mxu1 %vm299_vm0, %v1880_v23  ;;  %8306 = vmatmul.msk.f32.gmra.mxu0 %vm299_vm0, %v9792_v61 }
 0x157   : > { %v1240_v53 = vpop.f32.mrf.mxu2 }
 0x158   : > { %8272 = vmatmul.msk.f32.gmra.mxu3 %vm299_vm0, %v9800_v50  ;;  %v9806_v5 = vadd.f32 %v1240_v53, %v998_v12 }
 0x15a   : > { %v1000_v25 = vpop.f32.mrf.mxu1  ;;  %v794_v6 = vpop.f32.mrf.mxu0 }
 0x15b   : > { %v1045_v47 = vpop.f32.mrf.mxu3  ;;  %v1001_v19 = vadd.f32 %v1000_v25, %v791_v44  ;;  %v1882_v25 = vld [vmem:[#allocation3 + $0x6a] sm:$0xff] }
 0x15c   : > { %v9811_v23 = vadd.f32 %v1045_v47, %v9690_v27  ;;  %8372 = vmatmul.msk.f32.gmra.mxu2 %vm299_vm0, %v9504_v26  ;;  %v9824_v47 = vld [vmem:[#allocation2 + $0x7a] sm:$0xff] }
 0x15d   : > { %8339 = vmatmul.msk.f32.gmra.mxu1 %vm299_vm0, %v1881_v9  ;;  %8307 = vmatmul.msk.f32.gmra.mxu0 %vm299_vm0, %v9808_v8  ;;  %12738 = vst [vmem:[#allocation7_spill] sm:$0xff] %v9824_v47  ;;  %v9832_v8 = vld [vmem:[#allocation3 + $0x69] sm:$0xff] }
 0x15f   : > { %v1243_v12 = vpop.f32.mrf.mxu2 }
 0x160   : > { %8273 = vmatmul.msk.f32.gmra.mxu3 %vm299_vm0, %v9816_v2  ;;  %v9822_v53 = vadd.f32 %v1243_v12, %v1001_v19 }
 0x162   : > { %v1003_v44 = vpop.f32.mrf.mxu1  ;;  %v797_v27 = vpop.f32.mrf.mxu0 }
 0x163   : > { %v1267_v61 = vpop.f32.mrf.mxu3  ;;  %v1004_v26 = vadd.f32 %v1003_v44, %v794_v6  ;;  %v1883_v44 = vld [vmem:[#allocation3 + $0x7a] sm:$0xff] }
 0x164   : > { %v9827_v9 = vadd.f32 %v1267_v61, %v9702_v51  ;;  %8373 = vmatmul.msk.f32.gmra.mxu2 %vm299_vm0, %v9517_v34  ;;  %v9840_v61 = vld [vmem:[#allocation2 + $0x82] sm:$0xff] }
 0x165   : > { %8340 = vmatmul.msk.f32.gmra.mxu1 %vm299_vm0, %v1882_v25  ;;  %8308 = vmatmul.msk.f32.gmra.mxu0 %vm299_vm0, %v9824_v47  ;;  %12740 = vst [vmem:[#allocation9_spill] sm:$0xff] %v9840_v61  ;;  %v9848_v47 = vld [vmem:[#allocation3 + $0x79] sm:$0xff] }
 0x166   : > { %12739 = vst [vmem:[#allocation8_spill] sm:$0xff] %v9827_v9 }
 0x167   : > { %v1246_v19 = vpop.f32.mrf.mxu2 }
 0x168   : > { %8274 = vmatmul.msk.f32.gmra.mxu3 %vm299_vm0, %v9832_v8  ;;  %v9838_v12 = vadd.f32 %v1246_v19, %v1004_v26 }
 0x16a   : > { %v1006_v6 = vpop.f32.mrf.mxu1  ;;  %v800_v51 = vpop.f32.mrf.mxu0 }
 0x16b   : > { %v1270_v9 = vpop.f32.mrf.mxu3  ;;  %v1007_v34 = vadd.f32 %v1006_v6, %v797_v27  ;;  %v1884_v6 = vld [vmem:[#allocation3 + $0x82] sm:$0xff] }
 0x16c   : > { %v9843_v25 = vadd.f32 %v1270_v9, %v9715_v40  ;;  %8374 = vmatmul.msk.f32.gmra.mxu2 %vm299_vm0, %v9529_v41  ;;  %v9856_v9 = vld [vmem:[#allocation2 + $0x92] sm:$0xff] }
 0x16d   : > { %8341 = vmatmul.msk.f32.gmra.mxu1 %vm299_vm0, %v1883_v44  ;;  %8309 = vmatmul.msk.f32.gmra.mxu0 %vm299_vm0, %v9840_v61  ;;  %12742 = vst [vmem:[#allocation11_spill] sm:$0xff] %v9856_v9  ;;  %v9864_v61 = vld [vmem:[#allocation3 + $0x81] sm:$0xff] }
 0x16e   : > { %12741 = vst [vmem:[#allocation10_spill] sm:$0xff] %v9843_v25 }
 0x16f   : > { %v1249_v26 = vpop.f32.mrf.mxu2 }
 0x170   : > { %8275 = vmatmul.msk.f32.gmra.mxu3 %vm299_vm0, %v9848_v47  ;;  %v9854_v19 = vadd.f32 %v1249_v26, %v1007_v34 }
 0x172   : > { %v1009_v27 = vpop.f32.mrf.mxu1  ;;  %v803_v40 = vpop.f32.mrf.mxu0 }
 0x173   : > { %v1273_v25 = vpop.f32.mrf.mxu3  ;;  %v1010_v41 = vadd.f32 %v1009_v27, %v800_v51  ;;  %v1885_v27 = vld [vmem:[#allocation3 + $0x92] sm:$0xff] }
 0x174   : > { %v9859_v44 = vadd.f32 %v1273_v25, %v9731_v31  ;;  %8375 = vmatmul.msk.f32.gmra.mxu2 %vm299_vm0, %v9540_v48  ;;  %v9872_v25 = vld [vmem:[#allocation2 + $0x9a] sm:$0xff] }
 0x175   : > { %8342 = vmatmul.msk.f32.gmra.mxu1 %vm299_vm0, %v1884_v6  ;;  %8310 = vmatmul.msk.f32.gmra.mxu0 %vm299_vm0, %v9856_v9  ;;  %12744 = vst [vmem:[#allocation13_spill] sm:$0xff] %v9872_v25  ;;  %v9880_v9 = vld [vmem:[#allocation3 + $0x91] sm:$0xff] }
 0x176   : > { %12743 = vst [vmem:[#allocation12_spill] sm:$0xff] %v9859_v44 }
 0x177   : > { %v1252_v34 = vpop.f32.mrf.mxu2 }
 0x178   : > { %8276 = vmatmul.msk.f32.gmra.mxu3 %vm299_vm0, %v9864_v61  ;;  %v9870_v26 = vadd.f32 %v1252_v34, %v1010_v41 }
 0x17a   : > { %v1012_v51 = vpop.f32.mrf.mxu1  ;;  %v806_v31 = vpop.f32.mrf.mxu0 }
 0x17b   : > { %v1276_v44 = vpop.f32.mrf.mxu3  ;;  %v1013_v48 = vadd.f32 %v1012_v51, %v803_v40  ;;  %v1886_v51 = vld [vmem:[#allocation3 + $0x9a] sm:$0xff] }
 0x17c   : > { %v9875_v6 = vadd.f32 %v1276_v44, %v9747_v60  ;;  %8376 = vmatmul.msk.f32.gmra.mxu2 %vm299_vm0, %v9557_v57  ;;  %v9888_v44 = vld [vmem:[#allocation2 + $0xaa] sm:$0xff] }
 0x17d   : > { %8343 = vmatmul.msk.f32.gmra.mxu1 %vm299_vm0, %v1885_v27  ;;  %8311 = vmatmul.msk.f32.gmra.mxu0 %vm299_vm0, %v9872_v25  ;;  %12746 = vst [vmem:[#allocation15_spill] sm:$0xff] %v9888_v44  ;;  %v9896_v25 = vld [vmem:[#allocation3 + $0x99] sm:$0xff] }
 0x17e   : > { %12745 = vst [vmem:[#allocation14_spill] sm:$0xff] %v9875_v6 }
 0x17f   : > { %v1255_v41 = vpop.f32.mrf.mxu2 }
 0x180   : > { %8277 = vmatmul.msk.f32.gmra.mxu3 %vm299_vm0, %v9880_v9  ;;  %v9886_v34 = vadd.f32 %v1255_v41, %v1013_v48  ;;  %v8495_v48 = vld [vmem:[%s12633_s2 + $0x28] sm:$0xff] }
 0x181   : > { %3393 = vmatpush.msra.mxu2 %v8495_v48  ;;  %v9915_v48 = vld [vmem:[#allocation3 + $0xa9] sm:$0xff] }
 0x182   : > { %v1015_v40 = vpop.f32.mrf.mxu1  ;;  %v809_v60 = vpop.f32.mrf.mxu0  ;;  %12750 = vst [vmem:[#allocation19_spill] sm:$0xff] %v9915_v48 }
 0x183   : > { %v1279_v6 = vpop.f32.mrf.mxu3  ;;  %v1016_v57 = vadd.f32 %v1015_v40, %v806_v31  ;;  %v9907_v40 = vld [vmem:[#allocation2 + $0xb2] sm:$0xff] }
 0x184   : > { %v9891_v27 = vadd.f32 %v1279_v6, %v9763_v39  ;;  %8377 = vmatmul.msk.f32.gmra.mxu2 %vm299_vm0, %v9570_v1  ;;  %v1887_v1 = vld [vmem:[#allocation3 + $0xaa] sm:$0xff]  ;;  %12748 = vst [vmem:[#allocation17_spill] sm:$0xff] %v9907_v40 }
 0x185   : > { %8344 = vmatmul.msk.f32.gmra.mxu1 %vm299_vm0, %v1886_v51  ;;  %8312 = vmatmul.msk.f32.gmra.mxu0 %vm299_vm0, %v9888_v44 }
 0x186   : > { %12747 = vst [vmem:[#allocation16_spill] sm:$0xff] %v9891_v27 }
 0x187   : > { %v1258_v41 = vpop.f32.mrf.mxu2 }
 0x188   : > { %8278 = vmatmul.msk.f32.gmra.mxu3 %vm299_vm0, %v9896_v25  ;;  %v9905_v39 = vadd.f32 %v1258_v41, %v1016_v57 }
 0x18a   : > { %v1018_v31 = vpop.f32.mrf.mxu1  ;;  %v812_v6 = vpop.f32.mrf.mxu0 }
 0x18b   : > { %v1282_v51 = vpop.f32.mrf.mxu3  ;;  %v1019_v27 = vadd.f32 %v1018_v31, %v809_v60  ;;  %v1888_v31 = vld [vmem:[#allocation3 + $0xb2] sm:$0xff] }
 0x18c   : > { %v9910_v44 = vadd.f32 %v1282_v51, %v9779_v54  ;;  %8378 = vmatmul.msk.f32.gmra.mxu2 %vm299_vm0, %v9583_v11  ;;  %v9923_v51 = vld [vmem:[#allocation2 + $0xc2] sm:$0xff] }
 0x18d   : > { %8345 = vmatmul.msk.f32.gmra.mxu1 %vm299_vm0, %v1887_v1  ;;  %8313 = vmatmul.msk.f32.gmra.mxu0 %vm299_vm0, %v9907_v40  ;;  %12751 = vst [vmem:[#allocation20_spill] sm:$0xff] %v9923_v51  ;;  %v9931_v40 = vld [vmem:[#allocation3 + $0xb1] sm:$0xff] }
 0x18e   : > { %12749 = vst [vmem:[#allocation18_spill] sm:$0xff] %v9910_v44 }
 0x18f   : > { %v1261_v57 = vpop.f32.mrf.mxu2  ;;  %12753 = vst [vmem:[#allocation22_spill] sm:$0xff] %v9931_v40 }
 0x190   : > { %8279 = vmatmul.msk.f32.gmra.mxu3 %vm299_vm0, %v9915_v48  ;;  %v9921_v41 = vadd.f32 %v1261_v57, %v1019_v27  ;;  %v9969_v48 = vld [vmem:[#allocation2 + $0xe2] sm:$0xff] }
 0x192   : > { %v1021_v60 = vpop.f32.mrf.mxu1  ;;  %v1745_v54 = vpop.f32.mrf.mxu0 }
 0x193   : > { %v1285_v44 = vpop.f32.mrf.mxu3  ;;  %v1022_v11 = vadd.f32 %v1021_v60, %v812_v6  ;;  %v1889_v60 = vld [vmem:[#allocation3 + $0xc2] sm:$0xff] }
 0x194   : > { %v9926_v1 = vadd.f32 %v1285_v44, %v9795_v46  ;;  %8379 = vmatmul.msk.f32.gmra.mxu2 %vm299_vm0, %v9596_v22  ;;  %v9939_v44 = vld [vmem:[#allocation2 + $0xca] sm:$0xff] }
 0x195   : > { %8346 = vmatmul.msk.f32.gmra.mxu1 %vm299_vm0, %v1888_v31  ;;  %8314 = vmatmul.msk.f32.gmra.mxu0 %vm299_vm0, %v9923_v51  ;;  %12754 = vst [vmem:[#allocation23_spill] sm:$0xff] %v9939_v44  ;;  %v9947_v31 = vld [vmem:[#allocation3 + $0xc1] sm:$0xff] }
 0x196   : > { %12752 = vst [vmem:[#allocation21_spill] sm:$0xff] %v9926_v1 }
 0x197   : > { %v1264_v27 = vpop.f32.mrf.mxu2  ;;  %12756 = vst [vmem:[#allocation25_spill] sm:$0xff] %v9947_v31 }
 0x198   : > { %8280 = vmatmul.msk.f32.gmra.mxu3 %vm299_vm0, %v9931_v40  ;;  %v9937_v57 = vadd.f32 %v1264_v27, %v1022_v11  ;;  %v953_v11 = vadd.f32 %v9581_v10, %v9560_v59 }
 0x19a   : > { %v2020_v6 = vpop.f32.mrf.mxu1  ;;  %v1748_v46 = vpop.f32.mrf.mxu0 }
 0x19b   : > { %v1288_v1 = vpop.f32.mrf.mxu3 }
 0x19c   : > { %v9942_v22 = vadd.f32 %v1288_v1, %v9811_v23  ;;  %8380 = vmatmul.msk.f32.gmra.mxu2 %vm299_vm0, %v9611_v36  ;;  %v1291_v23 = vadd.f32 %v9591_v17, %v953_v11  ;;  %v9956_v36 = vld [vmem:[#allocation2 + $0xda] sm:$0xff] }
 0x19d   : > { %8347 = vmatmul.msk.f32.gmra.mxu1 %vm299_vm0, %v1889_v60  ;;  %8315 = vmatmul.msk.f32.gmra.mxu0 %vm299_vm0, %v9939_v44  ;;  %v9961_v44 = vld [vmem:[#allocation3 + $0xc9] sm:$0xff] }
 0x19e   : > { %12755 = vst [vmem:[#allocation24_spill] sm:$0xff] %v9942_v22  ;;  %v1890_v22 = vld [vmem:[#allocation3 + $0xca] sm:$0xff] }
 0x19f   : > { %v2295_v27 = vpop.f32.mrf.mxu2 }
 0x1a0   : > { %8281 = vmatmul.msk.f32.gmra.mxu3 %vm299_vm0, %v9947_v31 }
 0x1a2   : > { %v2023_v1 = vpop.f32.mrf.mxu1  ;;  %v1751_v51 = vpop.f32.mrf.mxu0 }
 0x1a3   : > { %v1470_v60 = vpop.f32.mrf.mxu3 }
 0x1a4   : > { %v1566_v40 = vadd.f32 %v1470_v60, %v1291_v23  ;;  %8381 = vmatmul.msk.f32.gmra.mxu2 %vm299_vm0, %v9626_v52  ;;  %v1891_v23 = vld [vmem:[#allocation3 + $0xda] sm:$0xff] }
 0x1a5   : > { %8348 = vmatmul.msk.f32.gmra.mxu1 %vm299_vm0, %v1890_v22  ;;  %8316 = vmatmul.msk.f32.gmra.mxu0 %vm299_vm0, %v9956_v36 }
 0x1a6   : > { %v1841_v59 = vadd.f32 %v1745_v54, %v1566_v40  ;;  %v9975_v40 = vld [vmem:[#allocation3 + $0xd9] sm:$0xff] }
 0x1a7   : > { %v2298_v10 = vpop.f32.mrf.mxu2 }
 0x1a8   : > { %8282 = vmatmul.msk.f32.gmra.mxu3 %vm299_vm0, %v9961_v44  ;;  %v2116_v17 = vadd.f32 %v2020_v6, %v1841_v59 }
 0x1aa   : > { %v2026_v11 = vpop.f32.mrf.mxu1  ;;  %v9967_v31 = vadd.f32 %v2295_v27, %v2116_v17  ;;  %v1754_v60 = vpop.f32.mrf.mxu0 }
 0x1ab   : > { %v1473_v52 = vpop.f32.mrf.mxu3 }
 0x1ac   : > { %12757 = vst [vmem:[#allocation26_spill] sm:$0xff] %v9967_v31  ;;  %v1567_v22 = vadd.f32 %v1473_v52, %v9609_v32  ;;  %8382 = vmatmul.msk.f32.gmra.mxu2 %vm299_vm0, %v9637_v4  ;;  %v1892_v32 = vld [vmem:[#allocation3 + $0xe2] sm:$0xff] }
 0x1ad   : > { %8349 = vmatmul.msk.f32.gmra.mxu1 %vm299_vm0, %v1891_v23  ;;  %8317 = vmatmul.msk.f32.gmra.mxu0 %vm299_vm0, %v9969_v48  ;;  %v9983_v31 = vld [vmem:[#allocation2 + $0xf2] sm:$0xff] }
 0x1ae   : > { %v1842_v54 = vadd.f32 %v1748_v46, %v1567_v22  ;;  %v9989_v46 = vld [vmem:[#allocation3 + $0xe1] sm:$0xff] }
 0x1af   : > { %v2301_v6 = vpop.f32.mrf.mxu2 }
 0x1b0   : > { %8283 = vmatmul.msk.f32.gmra.mxu3 %vm299_vm0, %v9975_v40  ;;  %v2117_v27 = vadd.f32 %v2023_v1, %v1842_v54 }
 0x1b2   : > { %v2029_v59 = vpop.f32.mrf.mxu1  ;;  %v9981_v17 = vadd.f32 %v2298_v10, %v2117_v27  ;;  %v1757_v52 = vpop.f32.mrf.mxu0 }
 0x1b3   : > { %v1476_v4 = vpop.f32.mrf.mxu3 }
 0x1b4   : > { %12758 = vst [vmem:[#allocation27_spill] sm:$0xff] %v9981_v17  ;;  %v1568_v23 = vadd.f32 %v1476_v4, %v9624_v49  ;;  %8383 = vmatmul.msk.f32.gmra.mxu2 %vm299_vm0, %v9648_v20  ;;  %v1893_v49 = vld [vmem:[#allocation3 + $0xf2] sm:$0xff]  ;;  %v9997_v17 = vld [vmem:[#allocation2 + $0xfa] sm:$0xff] }
 0x1b5   : > { %8350 = vmatmul.msk.f32.gmra.mxu1 %vm299_vm0, %v1892_v32  ;;  %8318 = vmatmul.msk.f32.gmra.mxu0 %vm299_vm0, %v9983_v31  ;;  %12760 = vst [vmem:[#allocation29_spill] sm:$0xff] %v9997_v17 }
 0x1b6   : > { %v1843_v1 = vadd.f32 %v1751_v51, %v1568_v23  ;;  %v10003_v51 = vld [vmem:[#allocation3 + $0xf1] sm:$0xff] }
 0x1b7   : > { %v2304_v10 = vpop.f32.mrf.mxu2 }
 0x1b8   : > { %8284 = vmatmul.msk.f32.gmra.mxu3 %vm299_vm0, %v9989_v46  ;;  %v2118_v22 = vadd.f32 %v2026_v11, %v1843_v1 }
 0x1ba   : > { %v2032_v54 = vpop.f32.mrf.mxu1  ;;  %v9995_v27 = vadd.f32 %v2301_v6, %v2118_v22  ;;  %v1760_v4 = vpop.f32.mrf.mxu0 }
 0x1bb   : > { %v1479_v20 = vpop.f32.mrf.mxu3 }
 0x1bc   : > { %12759 = vst [vmem:[#allocation28_spill] sm:$0xff] %v9995_v27  ;;  %v1569_v32 = vadd.f32 %v1479_v20, %v9635_v63  ;;  %8384 = vmatmul.msk.f32.gmra.mxu2 %vm299_vm0, %v9662_v38  ;;  %v1894_v63 = vld [vmem:[#allocation3 + $0xfa] sm:$0xff] }
 0x1bd   : > { %8351 = vmatmul.msk.f32.gmra.mxu1 %vm299_vm0, %v1893_v49  ;;  %8319 = vmatmul.msk.f32.gmra.mxu0 %vm299_vm0, %v9997_v17  ;;  %v10011_v27 = vld [vmem:[#allocation2 + $0x10a] sm:$0xff] }
 0x1be   : > { %v1844_v11 = vadd.f32 %v1754_v60, %v1569_v32  ;;  %12762 = vst [vmem:[#allocation31_spill] sm:$0xff] %v10011_v27  ;;  %v10017_v60 = vld [vmem:[#allocation3 + $0xf9] sm:$0xff] }
 0x1bf   : > { %v2307_v6 = vpop.f32.mrf.mxu2 }
 0x1c0   : > { %8285 = vmatmul.msk.f32.gmra.mxu3 %vm299_vm0, %v10003_v51  ;;  %v2119_v23 = vadd.f32 %v2029_v59, %v1844_v11  ;;  %v2170_v11 = vld [vmem:[#allocation2 + $0x120] sm:$0xff] }
 0x1c2   : > { %v2035_v1 = vpop.f32.mrf.mxu1  ;;  %v10009_v22 = vadd.f32 %v2304_v10, %v2119_v23  ;;  %v1763_v20 = vpop.f32.mrf.mxu0 }
 0x1c3   : > { %v1482_v38 = vpop.f32.mrf.mxu3 }
 0x1c4   : > { %12761 = vst [vmem:[#allocation30_spill] sm:$0xff] %v10009_v22  ;;  %v1570_v49 = vadd.f32 %v1482_v38, %v9646_v15  ;;  %8385 = vmatmul.msk.f32.gmra.mxu2 %vm299_vm0, %v9679_v62  ;;  %v1895_v15 = vld [vmem:[#allocation3 + $0x10a] sm:$0xff]  ;;  %v10025_v62 = vld [vmem:[#allocation2 + $0x112] sm:$0xff] }
 0x1c5   : > { %8352 = vmatmul.msk.f32.gmra.mxu1 %vm299_vm0, %v1894_v63  ;;  %8320 = vmatmul.msk.f32.gmra.mxu0 %vm299_vm0, %v10011_v27  ;;  %12764 = vst [vmem:[#allocation33_spill] sm:$0xff] %v10025_v62 }
 0x1c6   : > { %v1845_v59 = vadd.f32 %v1757_v52, %v1570_v49  ;;  %v10030_v52 = vld [vmem:[#allocation3 + $0x109] sm:$0xff] }
 0x1c7   : > { %v2310_v10 = vpop.f32.mrf.mxu2 }
 0x1c8   : > { %8286 = vmatmul.msk.f32.gmra.mxu3 %vm299_vm0, %v10017_v60  ;;  %v2120_v32 = vadd.f32 %v2032_v54, %v1845_v59  ;;  %v2171_v59 = vld [vmem:[#allocation2 + $0x128] sm:$0xff] }
 0x1ca   : > { %v2038_v23 = vpop.f32.mrf.mxu1  ;;  %v10023_v22 = vadd.f32 %v2307_v6, %v2120_v32  ;;  %v1766_v38 = vpop.f32.mrf.mxu0 }
 0x1cb   : > { %v1485_v63 = vpop.f32.mrf.mxu3 }
 0x1cc   : > { %12763 = vst [vmem:[#allocation32_spill] sm:$0xff] %v10023_v22  ;;  %v1571_v17 = vadd.f32 %v1485_v63, %v9660_v33  ;;  %8386 = vmatmul.msk.f32.gmra.mxu2 %vm299_vm0, %v2170_v11  ;;  %v1896_v33 = vld [vmem:[#allocation3 + $0x112] sm:$0xff] }
 0x1cd   : > { %8353 = vmatmul.msk.f32.gmra.mxu1 %vm299_vm0, %v1895_v15  ;;  %8321 = vmatmul.msk.f32.gmra.mxu0 %vm299_vm0, %v10025_v62  ;;  %v10038_v11 = vld [vmem:[#allocation2 + $0x122] sm:$0xff] }
 0x1ce   : > { %v1846_v54 = vadd.f32 %v1760_v4, %v1571_v17  ;;  %12766 = vst [vmem:[#allocation35_spill] sm:$0xff] %v10038_v11  ;;  %v10043_v17 = vld [vmem:[#allocation3 + $0x111] sm:$0xff] }
 0x1cf   : > { %v2313_v49 = vpop.f32.mrf.mxu2 }
 0x1d0   : > { %8287 = vmatmul.msk.f32.gmra.mxu3 %vm299_vm0, %v10030_v52  ;;  %v2121_v6 = vadd.f32 %v2035_v1, %v1846_v54  ;;  %v2172_v54 = vld [vmem:[#allocation2 + $0x138] sm:$0xff] }
 0x1d2   : > { %v2041_v32 = vpop.f32.mrf.mxu1  ;;  %v10036_v22 = vadd.f32 %v2310_v10, %v2121_v6  ;;  %v1769_v63 = vpop.f32.mrf.mxu0 }
 0x1d3   : > { %v1488_v15 = vpop.f32.mrf.mxu3 }
 0x1d4   : > { %12765 = vst [vmem:[#allocation34_spill] sm:$0xff] %v10036_v22  ;;  %v1572_v27 = vadd.f32 %v1488_v15, %v9677_v55  ;;  %8387 = vmatmul.msk.f32.gmra.mxu2 %vm299_vm0, %v2171_v59  ;;  %v1897_v55 = vld [vmem:[#allocation3 + $0x122] sm:$0xff]  ;;  %v10051_v59 = vld [vmem:[#allocation2 + $0x12a] sm:$0xff] }
 0x1d5   : > { %8354 = vmatmul.msk.f32.gmra.mxu1 %vm299_vm0, %v1896_v33  ;;  %8322 = vmatmul.msk.f32.gmra.mxu0 %vm299_vm0, %v10038_v11  ;;  %12768 = vst [vmem:[#allocation37_spill] sm:$0xff] %v10051_v59 }
 0x1d6   : > { %v1847_v4 = vadd.f32 %v1763_v20, %v1572_v27  ;;  %v10056_v27 = vld [vmem:[#allocation3 + $0x121] sm:$0xff] }
 0x1d7   : > { %v2316_v1 = vpop.f32.mrf.mxu2 }
 0x1d8   : > { %8288 = vmatmul.msk.f32.gmra.mxu3 %vm299_vm0, %v10043_v17  ;;  %v2122_v10 = vadd.f32 %v2038_v23, %v1847_v4  ;;  %v2173_v4 = vld [vmem:[#allocation2 + $0x140] sm:$0xff] }
 0x1da   : > { %v2044_v6 = vpop.f32.mrf.mxu1  ;;  %v10049_v22 = vadd.f32 %v2313_v49, %v2122_v10  ;;  %v1772_v15 = vpop.f32.mrf.mxu0 }
 0x1db   : > { %v1491_v33 = vpop.f32.mrf.mxu3 }
 0x1dc   : > { %12767 = vst [vmem:[#allocation36_spill] sm:$0xff] %v10049_v22  ;;  %v1573_v62 = vadd.f32 %v1491_v33, %v9688_v14  ;;  %8388 = vmatmul.msk.f32.gmra.mxu2 %vm299_vm0, %v2172_v54  ;;  %v1898_v14 = vld [vmem:[#allocation3 + $0x12a] sm:$0xff] }
 0x1dd   : > { %8355 = vmatmul.msk.f32.gmra.mxu1 %vm299_vm0, %v1897_v55  ;;  %8323 = vmatmul.msk.f32.gmra.mxu0 %vm299_vm0, %v10051_v59  ;;  %v10064_v54 = vld [vmem:[#allocation2 + $0x13a] sm:$0xff] }
 0x1de   : > { %v1848_v20 = vadd.f32 %v1766_v38, %v1573_v62  ;;  %12770 = vst [vmem:[#allocation39_spill] sm:$0xff] %v10064_v54  ;;  %v10069_v38 = vld [vmem:[#allocation3 + $0x129] sm:$0xff] }
 0x1df   : > { %v2319_v23 = vpop.f32.mrf.mxu2 }
 0x1e0   : > { %8289 = vmatmul.msk.f32.gmra.mxu3 %vm299_vm0, %v10056_v27  ;;  %v2123_v49 = vadd.f32 %v2041_v32, %v1848_v20  ;;  %v2174_v20 = vld [vmem:[#allocation2 + $0x150] sm:$0xff] }
 0x1e2   : > { %v2047_v10 = vpop.f32.mrf.mxu1  ;;  %v10062_v22 = vadd.f32 %v2316_v1, %v2123_v49  ;;  %v1775_v33 = vpop.f32.mrf.mxu0 }
 0x1e3   : > { %v1494_v55 = vpop.f32.mrf.mxu3 }
 0x1e4   : > { %12769 = vst [vmem:[#allocation38_spill] sm:$0xff] %v10062_v22  ;;  %v1574_v11 = vadd.f32 %v1494_v55, %v9697_v35  ;;  %8389 = vmatmul.msk.f32.gmra.mxu2 %vm299_vm0, %v2173_v4  ;;  %v1899_v35 = vld [vmem:[#allocation3 + $0x13a] sm:$0xff]  ;;  %v10077_v55 = vld [vmem:[#allocation2 + $0x142] sm:$0xff] }
 0x1e5   : > { %8356 = vmatmul.msk.f32.gmra.mxu1 %vm299_vm0, %v1898_v14  ;;  %8324 = vmatmul.msk.f32.gmra.mxu0 %vm299_vm0, %v10064_v54  ;;  %12772 = vst [vmem:[#allocation41_spill] sm:$0xff] %v10077_v55 }
 0x1e6   : > { %v1849_v62 = vadd.f32 %v1769_v63, %v1574_v11  ;;  %v10082_v63 = vld [vmem:[#allocation3 + $0x139] sm:$0xff] }
 0x1e7   : > { %v2322_v32 = vpop.f32.mrf.mxu2 }
 0x1e8   : > { %8290 = vmatmul.msk.f32.gmra.mxu3 %vm299_vm0, %v10069_v38  ;;  %v2124_v1 = vadd.f32 %v2044_v6, %v1849_v62 }
 0x1ea   : > { %v2050_v49 = vpop.f32.mrf.mxu1  ;;  %v10075_v22 = vadd.f32 %v2319_v23, %v2124_v1  ;;  %v1778_v4 = vpop.f32.mrf.mxu0  ;;  %v464_v23 = vld [vmem:[%s9344_s19 + $0xf0] sm:$0xff] }
 0x1eb   : > { %v1497_v14 = vpop.f32.mrf.mxu3  ;;  %497 = vst.msk [vmem:[#allocation2 + $0x181] sm:$0xff] %vm299_vm0, %v464_v23 }
 0x1ec   : > { %12771 = vst [vmem:[#allocation40_spill] sm:$0xff] %v10075_v22  ;;  %v1575_v59 = vadd.f32 %v1497_v14, %v9710_v58  ;;  %8390 = vmatmul.msk.f32.gmra.mxu2 %vm299_vm0, %v2174_v20  ;;  %v2175_v58 = vld [vmem:[#allocation2 + $0x158] sm:$0xff] }
 0x1ed   : > { %8357 = vmatmul.msk.f32.gmra.mxu1 %vm299_vm0, %v1899_v35  ;;  %8325 = vmatmul.msk.f32.gmra.mxu0 %vm299_vm0, %v10077_v55  ;;  %v1900_v35 = vld [vmem:[#allocation3 + $0x142] sm:$0xff] }
 0x1ee   : > { %v1850_v11 = vadd.f32 %v1772_v15, %v1575_v59  ;;  %v10092_v22 = vld [vmem:[#allocation2 + $0x152] sm:$0xff] }
 0x1ef   : > { %v2325_v6 = vpop.f32.mrf.mxu2  ;;  %12774 = vst [vmem:[#allocation43_spill] sm:$0xff] %v10092_v22  ;;  %v10097_v59 = vld [vmem:[#allocation3 + $0x141] sm:$0xff] }
 0x1f0   : > { %8291 = vmatmul.msk.f32.gmra.mxu3 %vm299_vm0, %v10082_v63  ;;  %v2125_v62 = vadd.f32 %v2047_v10, %v1850_v11 }
 0x1f2   : > { %v2053_v1 = vpop.f32.mrf.mxu1  ;;  %v10090_v20 = vadd.f32 %v2322_v32, %v2125_v62  ;;  %v1781_v14 = vpop.f32.mrf.mxu0  ;;  %v465_v32 = vld [vmem:[%s9344_s19 + $0xf8] sm:$0xff]  ;;  %v2176_v62 = vld [vmem:[#allocation2 + $0x168] sm:$0xff] }
 0x1f3   : > { %v1500_v54 = vpop.f32.mrf.mxu3  ;;  %498 = vst.msk [vmem:[#allocation2 + $0x189] sm:$0xff] %vm299_vm0, %v465_v32 }
 0x1f4   : > { %12773 = vst [vmem:[#allocation42_spill] sm:$0xff] %v10090_v20  ;;  %v1576_v15 = vadd.f32 %v1500_v54, %v9726_v18  ;;  %8391 = vmatmul.msk.f32.gmra.mxu2 %vm299_vm0, %v2175_v58  ;;  %v1901_v58 = vld [vmem:[#allocation3 + $0x152] sm:$0xff]  ;;  %v10107_v20 = vld [vmem:[#allocation2 + $0x15a] sm:$0xff] }
 0x1f5   : > { %8358 = vmatmul.msk.f32.gmra.mxu1 %vm299_vm0, %v1900_v35  ;;  %8326 = vmatmul.msk.f32.gmra.mxu0 %vm299_vm0, %v10092_v22  ;;  %12776 = vst [vmem:[#allocation45_spill] sm:$0xff] %v10107_v20 }
 0x1f6   : > { %v1851_v10 = vadd.f32 %v1775_v33, %v1576_v15  ;;  %v10112_v33 = vld [vmem:[#allocation3 + $0x151] sm:$0xff] }
 0x1f7   : > { %v2328_v11 = vpop.f32.mrf.mxu2 }
 0x1f8   : > { %8292 = vmatmul.msk.f32.gmra.mxu3 %vm299_vm0, %v10097_v59  ;;  %v2126_v23 = vadd.f32 %v2050_v49, %v1851_v10  ;;  %v2177_v10 = vld [vmem:[#allocation2 + $0x170] sm:$0xff] }
 0x1fa   : > { %v2056_v18 = vpop.f32.mrf.mxu1  ;;  %v10105_v54 = vadd.f32 %v2325_v6, %v2126_v23  ;;  %v1784_v35 = vpop.f32.mrf.mxu0 }
 0x1fb   : > { %v1503_v55 = vpop.f32.mrf.mxu3 }
 0x1fc   : > { %12775 = vst [vmem:[#allocation44_spill] sm:$0xff] %v10105_v54  ;;  %v1577_v22 = vadd.f32 %v1503_v55, %v9742_v43  ;;  %8392 = vmatmul.msk.f32.gmra.mxu2 %vm299_vm0, %v2176_v62  ;;  %v1902_v43 = vld [vmem:[#allocation3 + $0x15a] sm:$0xff] }
 0x1fd   : > { %8359 = vmatmul.msk.f32.gmra.mxu1 %vm299_vm0, %v1901_v58  ;;  %8327 = vmatmul.msk.f32.gmra.mxu0 %vm299_vm0, %v10107_v20  ;;  %v10120_v62 = vld [vmem:[#allocation2 + $0x16a] sm:$0xff] }
 0x1fe   : > { %v1852_v49 = vadd.f32 %v1778_v4, %v1577_v22  ;;  %12778 = vst [vmem:[#allocation47_spill] sm:$0xff] %v10120_v62  ;;  %v8528_v58 = vld [vmem:[%s12634_s3 + $0x28] sm:$0xff] }
 0x1ff   : > { %v2331_v15 = vpop.f32.mrf.mxu2  ;;  %3668 = vmatpush.msrb.mxu3 %v8528_v58  ;;  %v10128_v4 = vld [vmem:[#allocation3 + $0x159] sm:$0xff] }
 0x200   : > { %8293 = vmatmul.msk.f32.gmra.mxu3 %vm299_vm0, %v10112_v33  ;;  %v2127_v6 = vadd.f32 %v2053_v1, %v1852_v49 }
 0x202   : > { %v2059_v32 = vpop.f32.mrf.mxu1  ;;  %v10118_v23 = vadd.f32 %v2328_v11, %v2127_v6  ;;  %v1787_v55 = vpop.f32.mrf.mxu0  ;;  %v1903_v6 = vld [vmem:[#allocation3 + $0x16a] sm:$0xff] }
 0x203   : > { %v1506_v54 = vpop.f32.mrf.mxu3 }
 0x204   : > { %12777 = vst [vmem:[#allocation46_spill] sm:$0xff] %v10118_v23  ;;  %v1578_v22 = vadd.f32 %v1506_v54, %v9758_v24  ;;  %8393 = vmatmul.msk.f32.gmra.mxu2 %vm299_vm0, %v2177_v10  ;;  %v2178_v23 = vld [vmem:[#allocation2 + $0x180] sm:$0xff]  ;;  %v1629_v54 = vld [vmem:[#allocation2 + $0x172] sm:$0xff] }
 0x205   : > { %8360 = vmatmul.msk.f32.gmra.mxu1 %vm299_vm0, %v1902_v43  ;;  %8328 = vmatmul.msk.f32.gmra.mxu0 %vm299_vm0, %v10120_v62  ;;  %v8561_v10 = vld [vmem:[%s12633_s2 + $0x30] sm:$0xff] }
 0x206   : > { %v1853_v1 = vadd.f32 %v1781_v14, %v1578_v22  ;;  %v8594_v14 = vld [vmem:[%s12634_s3 + $0x30] sm:$0xff]  ;;  %3944 = vmatpush.msrb.mxu0 %v8561_v10 }
 0x207   : > { %v2334_v11 = vpop.f32.mrf.mxu2  ;;  %4220 = vmatpush.msrb.mxu1 %v8594_v14  ;;  %v1904_v14 = vld [vmem:[#allocation3 + $0x172] sm:$0xff] }
 0x208   : > { %8294 = vmatmul.msk.f32.gmra.mxu3 %vm299_vm0, %v10128_v4  ;;  %v2128_v49 = vadd.f32 %v2056_v18, %v1853_v1 }
 0x20a   : > { %v2062_v58 = vpop.f32.mrf.mxu1  ;;  %v10134_v20 = vadd.f32 %v2331_v15, %v2128_v49  ;;  %v1790_v24 = vpop.f32.mrf.mxu0  ;;  %v10145_v15 = vld [vmem:[#allocation3 + $0x169] sm:$0xff] }
 0x20b   : > { %v1509_v43 = vpop.f32.mrf.mxu3 }
 0x20c   : > { %12779 = vst [vmem:[#allocation48_spill] sm:$0xff] %v10134_v20  ;;  %v1579_v18 = vadd.f32 %v1509_v43, %v9774_v42  ;;  %8394 = vmatmul.msk.f32.gmra.mxu2 %vm299_vm0, %v2178_v23  ;;  %v2179_v20 = vld [vmem:[#allocation2 + $0x188] sm:$0xff]  ;;  %v2698_v43 = vld [vmem:[#allocation2 + $0x19] sm:$0xff] }
 0x20d   : > { %8361 = vmatmul.msk.f32.gmra.mxu1 %vm299_vm0, %v1903_v6  ;;  %8329 = vmatmul.msk.f32.gmra.mxu0 %vm299_vm0, %v1629_v54 }
 0x20e   : > { %v1854_v22 = vadd.f32 %v1784_v35, %v1579_v18  ;;  %v10155_v35 = vld [vmem:[#allocation3 + $0x171] sm:$0xff] }
 0x20f   : > { %v2337_v1 = vpop.f32.mrf.mxu2 }
 0x210   : > { %8295 = vmatmul.msk.f32.gmra.mxu3 %vm299_vm0, %v10145_v15  ;;  %v2129_v49 = vadd.f32 %v2059_v32, %v1854_v22 }
 0x212   : > { %v2065_v62 = vpop.f32.mrf.mxu1  ;;  %v10150_v10 = vadd.f32 %v2334_v11, %v2129_v49  ;;  %v1793_v42 = vpop.f32.mrf.mxu0 }
 0x213   : > { %v1512_v23 = vpop.f32.mrf.mxu3 }
 0x214   : > { %12780 = vst [vmem:[#allocation49_spill] sm:$0xff] %v10150_v10  ;;  %v1580_v6 = vadd.f32 %v1512_v23, %v9790_v16  ;;  %8395 = vmatmul.msk.f32.gmra.mxu2 %vm299_vm0, %v2179_v20  ;;  %v2699_v10 = vld [vmem:[#allocation2 + $0x21] sm:$0xff] }
 0x215   : > { %8362 = vmatmul.msk.f32.gmra.mxu1 %vm299_vm0, %v1904_v14  ;;  %8430 = vmatmul.msk.f32.vlgmr.msra.gmra.mxu0 %vm299_vm0, %v2698_v43 }
 0x216   : > { %v1855_v54 = vadd.f32 %v1787_v55, %v1580_v6  ;;  %v2423_v55 = vld [vmem:[#allocation3 + $0x18] sm:$0xff] }
 0x217   : > { %v2340_v32 = vpop.f32.mrf.mxu2 }
 0x218   : > { %8296 = vmatmul.msk.f32.gmra.mxu3 %vm299_vm0, %v10155_v35  ;;  %v2130_v11 = vadd.f32 %v2062_v58, %v1855_v54  ;;  %v10171_v54 = vld [vmem:[#allocation2 + $0x31] sm:$0xff] }
 0x21a   : > { %v2068_v18 = vpop.f32.mrf.mxu1  ;;  %v10160_v22 = vadd.f32 %v2337_v1, %v2130_v11  ;;  %v1796_v49 = vpop.f32.mrf.mxu0 }
 0x21b   : > { %v1515_v16 = vpop.f32.mrf.mxu3 }
 0x21c   : > { %v1581_v20 = vadd.f32 %v1515_v16, %v9806_v5  ;;  %8496 = vmatmul.msk.f32.vlgmr.msra.gmra.mxu2 %vm299_vm0, %v9699_v45 }
 0x21d   : > { %8463 = vmatmul.msk.f32.vlgmr.msra.gmra.mxu1 %vm299_vm0, %v9720_v13  ;;  %8431 = vmatmul.msk.f32.gmra.mxu0 %vm299_vm0, %v2699_v10  ;;  %v2424_v13 = vld [vmem:[#allocation3 + $0x20] sm:$0xff] }
 0x21e   : > { %v1856_v14 = vadd.f32 %v1790_v24, %v1581_v20 }
 0x21f   : > { %v2343_v43 = vpop.f32.mrf.mxu2 }
 0x220   : > { %8397 = vmatmul.msk.f32.vlgmr.msra.gmra.mxu3 %vm299_vm0, %v2423_v55  ;;  %v2131_v58 = vadd.f32 %v2065_v62, %v1856_v14 }
 0x222   : > { %v2071_v1 = vpop.f32.mrf.mxu1  ;;  %v10169_v23 = vadd.f32 %v2340_v32, %v2131_v58  ;;  %v1799_v6 = vpop.f32.mrf.mxu0  ;;  %v10198_v58 = vld [vmem:[#allocation2 + $0x49] sm:$0xff] }
 0x223   : > { %v1518_v5 = vpop.f32.mrf.mxu3 }
 0x224   : > { %v1582_v45 = vadd.f32 %v1518_v5, %v9822_v53  ;;  %8497 = vmatmul.msk.f32.gmra.mxu2 %vm299_vm0, %v9712_v7  ;;  %v10183_v53 = vld [vmem:[#allocation2 + $0x39] sm:$0xff] }
 0x225   : > { %8464 = vmatmul.msk.f32.gmra.mxu1 %vm299_vm0, %v9736_v37  ;;  %8432 = vmatmul.msk.f32.gmra.mxu0 %vm299_vm0, %v10171_v54  ;;  %v10190_v37 = vld [vmem:[#allocation3 + $0x30] sm:$0xff] }
 0x226   : > { %v1857_v62 = vadd.f32 %v1793_v42, %v1582_v45 }
 0x227   : > { %v2346_v24 = vpop.f32.mrf.mxu2 }
 0x228   : > { %8398 = vmatmul.msk.f32.gmra.mxu3 %vm299_vm0, %v2424_v13  ;;  %v2132_v10 = vadd.f32 %v2068_v18, %v1857_v62 }
 0x22a   : > { %v2074_v32 = vpop.f32.mrf.mxu1  ;;  %v10181_v11 = vadd.f32 %v2343_v43, %v2132_v10  ;;  %v1802_v16 = vpop.f32.mrf.mxu0 }
 0x22b   : > { %v1521_v20 = vpop.f32.mrf.mxu3 }
 0x22c   : > { %v1583_v7 = vadd.f32 %v1521_v20, %v9838_v12  ;;  %8498 = vmatmul.msk.f32.gmra.mxu2 %vm299_vm0, %v9728_v28 }
 0x22d   : > { %8465 = vmatmul.msk.f32.gmra.mxu1 %vm299_vm0, %v9752_v0  ;;  %8433 = vmatmul.msk.f32.gmra.mxu0 %vm299_vm0, %v10183_v53 }
 0x22e   : > { %v1858_v42 = vadd.f32 %v1796_v49, %v1583_v7  ;;  %v10205_v49 = vld [vmem:[#allocation3 + $0x38] sm:$0xff] }
 0x22f   : > { %v2349_v18 = vpop.f32.mrf.mxu2 }
 0x230   : > { %8399 = vmatmul.msk.f32.gmra.mxu3 %vm299_vm0, %v10190_v37  ;;  %v2133_v55 = vadd.f32 %v2071_v1, %v1858_v42 }
 0x232   : > { %v2077_v14 = vpop.f32.mrf.mxu1  ;;  %v10196_v43 = vadd.f32 %v2346_v24, %v2133_v55  ;;  %v1805_v12 = vpop.f32.mrf.mxu0  ;;  %v10213_v24 = vld [vmem:[#allocation2 + $0x51] sm:$0xff] }
 0x233   : > { %v1524_v28 = vpop.f32.mrf.mxu3 }
 0x234   : > { %v1584_v0 = vadd.f32 %v1524_v28, %v9854_v19  ;;  %8499 = vmatmul.msk.f32.gmra.mxu2 %vm299_vm0, %v9744_v29 }
 0x235   : > { %8466 = vmatmul.msk.f32.gmra.mxu1 %vm299_vm0, %v9768_v30  ;;  %8434 = vmatmul.msk.f32.gmra.mxu0 %vm299_vm0, %v10198_v58 }
 0x236   : > { %v1859_v1 = vadd.f32 %v1799_v6, %v1584_v0  ;;  %v10220_v6 = vld [vmem:[#allocation3 + $0x48] sm:$0xff] }
 0x237   : > { %v2352_v5 = vpop.f32.mrf.mxu2 }
 0x238   : > { %8400 = vmatmul.msk.f32.gmra.mxu3 %vm299_vm0, %v10205_v49  ;;  %v2134_v45 = vadd.f32 %v2074_v32, %v1859_v1 }
 0x23a   : > { %v2080_v13 = vpop.f32.mrf.mxu1  ;;  %v10211_v62 = vadd.f32 %v2349_v18, %v2134_v45  ;;  %v1808_v19 = vpop.f32.mrf.mxu0  ;;  %v10228_v18 = vld [vmem:[#allocation2 + $0x61] sm:$0xff]  ;;  %v12781_v45 = vld [vmem:[#allocation5_spill] sm:$0xff] }
 0x23b   : > { %v1527_v29 = vpop.f32.mrf.mxu3 }
 0x23c   : > { %v1585_v30 = vadd.f32 %v1527_v29, %v9870_v26  ;;  %8500 = vmatmul.msk.f32.gmra.mxu2 %vm299_vm0, %v9760_v21 }
 0x23d   : > { %8467 = vmatmul.msk.f32.gmra.mxu1 %vm299_vm0, %v9784_v3  ;;  %8435 = vmatmul.msk.f32.gmra.mxu0 %vm299_vm0, %v10213_v24 }
 0x23e   : > { %v1860_v10 = vadd.f32 %v1802_v16, %v1585_v30  ;;  %v10235_v16 = vld [vmem:[#allocation3 + $0x50] sm:$0xff] }
 0x23f   : > { %v2355_v32 = vpop.f32.mrf.mxu2 }
 0x240   : > { %8401 = vmatmul.msk.f32.gmra.mxu3 %vm299_vm0, %v10220_v6  ;;  %v2135_v20 = vadd.f32 %v2077_v14, %v1860_v10 }
 0x242   : > { %v2083_v7 = vpop.f32.mrf.mxu1  ;;  %v10226_v42 = vadd.f32 %v2352_v5, %v2135_v20  ;;  %v1811_v26 = vpop.f32.mrf.mxu0  ;;  %v10243_v5 = vld [vmem:[#allocation2 + $0x69] sm:$0xff]  ;;  %v10258_v20 = vld [vmem:[#allocation2 + $0x79] sm:$0xff] }
 0x243   : > { %v1530_v21 = vpop.f32.mrf.mxu3 }
 0x244   : > { %v1586_v3 = vadd.f32 %v1530_v21, %v9886_v34  ;;  %8501 = vmatmul.msk.f32.gmra.mxu2 %vm299_vm0, %v9776_v56 }
 0x245   : > { %8468 = vmatmul.msk.f32.gmra.mxu1 %vm299_vm0, %v9800_v50  ;;  %8436 = vmatmul.msk.f32.gmra.mxu0 %vm299_vm0, %v10228_v18 }
 0x246   : > { %v1861_v55 = vadd.f32 %v1805_v12, %v1586_v3  ;;  %v10250_v12 = vld [vmem:[#allocation3 + $0x60] sm:$0xff]  ;;  %v12782_v3 = vld [vmem:[#allocation6_spill] sm:$0xff] }
 0x247   : > { %v2358_v14 = vpop.f32.mrf.mxu2 }
 0x248   : > { %8402 = vmatmul.msk.f32.gmra.mxu3 %vm299_vm0, %v10235_v16  ;;  %v2136_v28 = vadd.f32 %v2080_v13, %v1861_v55 }
 0x24a   : > { %v2086_v0 = vpop.f32.mrf.mxu1  ;;  %v10241_v1 = vadd.f32 %v2355_v32, %v2136_v28  ;;  %v1814_v34 = vpop.f32.mrf.mxu0 }
 0x24b   : > { %v1533_v56 = vpop.f32.mrf.mxu3 }
 0x24c   : > { %v1587_v50 = vadd.f32 %v1533_v56, %v9905_v39  ;;  %8502 = vmatmul.msk.f32.gmra.mxu2 %vm299_vm0, %v12781_v45 }
 0x24d   : > { %8469 = vmatmul.msk.f32.gmra.mxu1 %vm299_vm0, %v9816_v2  ;;  %8437 = vmatmul.msk.f32.gmra.mxu0 %vm299_vm0, %v10243_v5 }
 0x24e   : > { %v1862_v13 = vadd.f32 %v1808_v19, %v1587_v50  ;;  %v10265_v19 = vld [vmem:[#allocation3 + $0x68] sm:$0xff]  ;;  %v10273_v50 = vld [vmem:[#allocation2 + $0x81] sm:$0xff] }
 0x24f   : > { %v2361_v29 = vpop.f32.mrf.mxu2 }
 0x250   : > { %8403 = vmatmul.msk.f32.gmra.mxu3 %vm299_vm0, %v10250_v12  ;;  %v2137_v30 = vadd.f32 %v2083_v7, %v1862_v13  ;;  %v12783_v13 = vld [vmem:[#allocation7_spill] sm:$0xff] }
 0x252   : > { %v2089_v10 = vpop.f32.mrf.mxu1  ;;  %v10256_v32 = vadd.f32 %v2358_v14, %v2137_v30  ;;  %v1817_v39 = vpop.f32.mrf.mxu0 }
 0x253   : > { %v1536_v21 = vpop.f32.mrf.mxu3 }
 0x254   : > { %v1588_v2 = vadd.f32 %v1536_v21, %v9921_v41  ;;  %8503 = vmatmul.msk.f32.gmra.mxu2 %vm299_vm0, %v12782_v3  ;;  %v10288_v3 = vld [vmem:[#allocation2 + $0x91] sm:$0xff] }
 0x255   : > { %8470 = vmatmul.msk.f32.gmra.mxu1 %vm299_vm0, %v9832_v8  ;;  %8438 = vmatmul.msk.f32.gmra.mxu0 %vm299_vm0, %v10258_v20  ;;  %12785 = vst [vmem:[#allocation6_spill] sm:$0xff] %v10288_v3 }
 0x256   : > { %v1863_v7 = vadd.f32 %v1811_v26, %v1588_v2  ;;  %v10280_v26 = vld [vmem:[#allocation3 + $0x78] sm:$0xff] }
 0x257   : > { %v2364_v55 = vpop.f32.mrf.mxu2 }
 0x258   : > { %8404 = vmatmul.msk.f32.gmra.mxu3 %vm299_vm0, %v10265_v19  ;;  %v2138_v14 = vadd.f32 %v2086_v0, %v1863_v7 }
 0x25a   : > { %v2092_v28 = vpop.f32.mrf.mxu1  ;;  %v10271_v56 = vadd.f32 %v2361_v29, %v2138_v14  ;;  %v1820_v41 = vpop.f32.mrf.mxu0  ;;  %v12786_v14 = vld [vmem:[#allocation8_spill] sm:$0xff] }
 0x25b   : > { %v1539_v45 = vpop.f32.mrf.mxu3 }
 0x25c   : > { %v1589_v8 = vadd.f32 %v1539_v45, %v9937_v57  ;;  %8504 = vmatmul.msk.f32.gmra.mxu2 %vm299_vm0, %v12783_v13  ;;  %v12787_v45 = vld [vmem:[#allocation9_spill] sm:$0xff] }
 0x25d   : > { %8471 = vmatmul.msk.f32.gmra.mxu1 %vm299_vm0, %v9848_v47  ;;  %8439 = vmatmul.msk.f32.gmra.mxu0 %vm299_vm0, %v10273_v50 }
 0x25e   : > { %v1864_v0 = vadd.f32 %v1814_v34, %v1589_v8  ;;  %v10295_v34 = vld [vmem:[#allocation3 + $0x80] sm:$0xff] }
 0x25f   : > { %v2367_v29 = vpop.f32.mrf.mxu2 }
 0x260   : > { %8405 = vmatmul.msk.f32.gmra.mxu3 %vm299_vm0, %v10280_v26  ;;  %v2139_v30 = vadd.f32 %v2089_v10, %v1864_v0 }
 0x262   : > { %v2095_v21 = vpop.f32.mrf.mxu1  ;;  %v10286_v2 = vadd.f32 %v2364_v55, %v2139_v30  ;;  %v1823_v57 = vpop.f32.mrf.mxu0 }
 0x263   : > { %v1542_v7 = vpop.f32.mrf.mxu3 }
 0x264   : > { %12784 = vst [vmem:[#allocation5_spill] sm:$0xff] %v10286_v2  ;;  %v1590_v47 = vadd.f32 %v1542_v7, %v12786_v14  ;;  %8505 = vmatmul.msk.f32.gmra.mxu2 %vm299_vm0, %v12787_v45  ;;  %v10303_v7 = vld [vmem:[#allocation2 + $0x99] sm:$0xff] }
 0x265   : > { %8472 = vmatmul.msk.f32.gmra.mxu1 %vm299_vm0, %v9864_v61  ;;  %8440 = vmatmul.msk.f32.gmra.mxu0 %vm299_vm0, %v10288_v3  ;;  %12789 = vst [vmem:[#allocation8_spill] sm:$0xff] %v10303_v7  ;;  %v12790_v45 = vld [vmem:[#allocation10_spill] sm:$0xff]  ;;  %v12791_v2 = vld [vmem:[#allocation11_spill] sm:$0xff]  ;;  %v12796_v3 = vld [vmem:[#allocation13_spill] sm:$0xff] }
 0x266   : > { %v1865_v10 = vadd.f32 %v1817_v39, %v1590_v47  ;;  %v10310_v39 = vld [vmem:[#allocation3 + $0x90] sm:$0xff] }
 0x267   : > { %v2370_v55 = vpop.f32.mrf.mxu2  ;;  %12792 = vst [vmem:[#allocation9_spill] sm:$0xff] %v10310_v39 }
 0x268   : > { %8406 = vmatmul.msk.f32.gmra.mxu3 %vm299_vm0, %v10295_v34  ;;  %v2140_v8 = vadd.f32 %v2092_v28, %v1865_v10 }
 0x26a   : > { %v2098_v13 = vpop.f32.mrf.mxu1  ;;  %v10301_v0 = vadd.f32 %v2367_v29, %v2140_v8  ;;  %v1826_v30 = vpop.f32.mrf.mxu0 }
 0x26b   : > { %v1545_v14 = vpop.f32.mrf.mxu3 }
 0x26c   : > { %12788 = vst [vmem:[#allocation7_spill] sm:$0xff] %v10301_v0  ;;  %v1591_v61 = vadd.f32 %v1545_v14, %v12790_v45  ;;  %8506 = vmatmul.msk.f32.gmra.mxu2 %vm299_vm0, %v12791_v2  ;;  %v10318_v45 = vld [vmem:[#allocation2 + $0xa9] sm:$0xff] }
 0x26d   : > { %8473 = vmatmul.msk.f32.gmra.mxu1 %vm299_vm0, %v9880_v9  ;;  %8441 = vmatmul.msk.f32.gmra.mxu0 %vm299_vm0, %v10303_v7  ;;  %12794 = vst [vmem:[#allocation11_spill] sm:$0xff] %v10318_v45  ;;  %v12795_v0 = vld [vmem:[#allocation12_spill] sm:$0xff]  ;;  %v12801_v7 = vld [vmem:[#allocation15_spill] sm:$0xff] }
 0x26e   : > { %v1866_v28 = vadd.f32 %v1820_v41, %v1591_v61  ;;  %v10325_v41 = vld [vmem:[#allocation3 + $0x98] sm:$0xff] }
 0x26f   : > { %v2373_v29 = vpop.f32.mrf.mxu2  ;;  %12797 = vst [vmem:[#allocation12_spill] sm:$0xff] %v10325_v41 }
 0x270   : > { %8407 = vmatmul.msk.f32.gmra.mxu3 %vm299_vm0, %v10310_v39  ;;  %v2141_v47 = vadd.f32 %v2095_v21, %v1866_v28  ;;  %v12802_v39 = vld [vmem:[#allocation19_spill] sm:$0xff] }
 0x272   : > { %v2101_v10 = vpop.f32.mrf.mxu1  ;;  %v10316_v8 = vadd.f32 %v2370_v55, %v2141_v47  ;;  %v1829_v14 = vpop.f32.mrf.mxu0 }
 0x273   : > { %v1548_v2 = vpop.f32.mrf.mxu3 }
 0x274   : > { %12793 = vst [vmem:[#allocation10_spill] sm:$0xff] %v10316_v8  ;;  %v1592_v9 = vadd.f32 %v1548_v2, %v12795_v0  ;;  %8507 = vmatmul.msk.f32.gmra.mxu2 %vm299_vm0, %v12796_v3  ;;  %v10333_v2 = vld [vmem:[#allocation2 + $0xb1] sm:$0xff] }
 0x275   : > { %8474 = vmatmul.msk.f32.gmra.mxu1 %vm299_vm0, %v9896_v25  ;;  %8442 = vmatmul.msk.f32.gmra.mxu0 %vm299_vm0, %v10318_v45  ;;  %12799 = vst [vmem:[#allocation50_spill] sm:$0xff] %v10333_v2  ;;  %v12800_v8 = vld [vmem:[#allocation14_spill] sm:$0xff]  ;;  %v12806_v45 = vld [vmem:[#allocation17_spill] sm:$0xff] }
 0x276   : > { %v1867_v21 = vadd.f32 %v1823_v57, %v1592_v9  ;;  %v10340_v57 = vld [vmem:[#allocation3 + $0xa8] sm:$0xff] }
 0x277   : > { %v2376_v55 = vpop.f32.mrf.mxu2 }
 0x278   : > { %8408 = vmatmul.msk.f32.gmra.mxu3 %vm299_vm0, %v10325_v41  ;;  %v2142_v61 = vadd.f32 %v2098_v13, %v1867_v21  ;;  %v12807_v41 = vld [vmem:[#allocation22_spill] sm:$0xff] }
 0x27a   : > { %v2104_v28 = vpop.f32.mrf.mxu1  ;;  %v10331_v47 = vadd.f32 %v2373_v29, %v2142_v61  ;;  %v1832_v0 = vpop.f32.mrf.mxu0 }
 0x27b   : > { %v1551_v3 = vpop.f32.mrf.mxu3 }
 0x27c   : > { %12798 = vst [vmem:[#allocation13_spill] sm:$0xff] %v10331_v47  ;;  %v1593_v25 = vadd.f32 %v1551_v3, %v12800_v8  ;;  %8508 = vmatmul.msk.f32.gmra.mxu2 %vm299_vm0, %v12801_v7  ;;  %v10348_v3 = vld [vmem:[#allocation2 + $0xc1] sm:$0xff] }
 0x27d   : > { %8475 = vmatmul.msk.f32.gmra.mxu1 %vm299_vm0, %v12802_v39  ;;  %8443 = vmatmul.msk.f32.gmra.mxu0 %vm299_vm0, %v10333_v2  ;;  %12804 = vst [vmem:[#allocation15_spill] sm:$0xff] %v10348_v3  ;;  %v12805_v47 = vld [vmem:[#allocation16_spill] sm:$0xff]  ;;  %v12815_v2 = vld [vmem:[#allocation23_spill] sm:$0xff] }
 0x27e   : > { %v1868_v13 = vadd.f32 %v1826_v30, %v1593_v25  ;;  %v10355_v30 = vld [vmem:[#allocation3 + $0xb0] sm:$0xff] }
 0x27f   : > { %v2379_v29 = vpop.f32.mrf.mxu2  ;;  %12808 = vst [vmem:[#allocation19_spill] sm:$0xff] %v10355_v30 }
 0x280   : > { %8409 = vmatmul.msk.f32.gmra.mxu3 %vm299_vm0, %v10340_v57  ;;  %v2143_v9 = vadd.f32 %v2101_v10, %v1868_v13 }
 0x282   : > { %v2107_v21 = vpop.f32.mrf.mxu1  ;;  %v10346_v61 = vadd.f32 %v2376_v55, %v2143_v9  ;;  %v1835_v8 = vpop.f32.mrf.mxu0  ;;  %v8627_v55 = vld [vmem:[%s12633_s2 + $0x38] sm:$0xff]  ;;  %v10366_v9 = vld [vmem:[#allocation2 + $0xc9] sm:$0xff] }
 0x283   : > { %v1554_v7 = vpop.f32.mrf.mxu3  ;;  %4495 = vmatpush.msrb.mxu2 %v8627_v55  ;;  %v10373_v55 = vld [vmem:[#allocation3 + $0xc0] sm:$0xff] }
 0x284   : > { %12803 = vst [vmem:[#allocation14_spill] sm:$0xff] %v10346_v61  ;;  %v1594_v39 = vadd.f32 %v1554_v7, %v12805_v47  ;;  %8509 = vmatmul.msk.f32.gmra.mxu2 %vm299_vm0, %v12806_v45  ;;  %v12810_v61 = vld [vmem:[#allocation18_spill] sm:$0xff] }
 0x285   : > { %8476 = vmatmul.msk.f32.gmra.mxu1 %vm299_vm0, %v12807_v41  ;;  %8444 = vmatmul.msk.f32.gmra.mxu0 %vm299_vm0, %v10348_v3 }
 0x286   : > { %v1869_v10 = vadd.f32 %v1829_v14, %v1594_v39  ;;  %v12811_v14 = vld [vmem:[#allocation20_spill] sm:$0xff]  ;;  %v12812_v39 = vld [vmem:[#allocation25_spill] sm:$0xff] }
 0x287   : > { %v2382_v25 = vpop.f32.mrf.mxu2 }
 0x288   : > { %8410 = vmatmul.msk.f32.gmra.mxu3 %vm299_vm0, %v10355_v30  ;;  %v2144_v47 = vadd.f32 %v2104_v28, %v1869_v10  ;;  %v12814_v30 = vld [vmem:[#allocation21_spill] sm:$0xff] }
 0x28a   : > { %v2110_v45 = vpop.f32.mrf.mxu1  ;;  %v10364_v13 = vadd.f32 %v2379_v29, %v2144_v47  ;;  %v1838_v41 = vpop.f32.mrf.mxu0 }
 0x28b   : > { %v1557_v7 = vpop.f32.mrf.mxu3 }
 0x28c   : > { %12809 = vst [vmem:[#allocation16_spill] sm:$0xff] %v10364_v13  ;;  %v1595_v3 = vadd.f32 %v1557_v7, %v12810_v61  ;;  %8510 = vmatmul.msk.f32.gmra.mxu2 %vm299_vm0, %v12811_v14  ;;  %v10381_v7 = vld [vmem:[#allocation2 + $0xd9] sm:$0xff] }
 0x28d   : > { %8477 = vmatmul.msk.f32.gmra.mxu1 %vm299_vm0, %v12812_v39  ;;  %8445 = vmatmul.msk.f32.gmra.mxu0 %vm299_vm0, %v10366_v9 }
 0x28e   : > { %v1870_v28 = vadd.f32 %v1832_v0, %v1595_v3  ;;  %v10388_v0 = vld [vmem:[#allocation3 + $0xc8] sm:$0xff] }
 0x28f   : > { %v2385_v29 = vpop.f32.mrf.mxu2 }
 0x290   : > { %8411 = vmatmul.msk.f32.gmra.mxu3 %vm299_vm0, %v10373_v55  ;;  %v2145_v10 = vadd.f32 %v2107_v21, %v1870_v28 }
 0x292   : > { %v2113_v47 = vpop.f32.mrf.mxu1  ;;  %v10379_v13 = vadd.f32 %v2382_v25, %v2145_v10  ;;  %v2845_v61 = vpop.f32.mrf.mxu0 }
 0x293   : > { %v1560_v14 = vpop.f32.mrf.mxu3 }
 0x294   : > { %12813 = vst [vmem:[#allocation17_spill] sm:$0xff] %v10379_v13  ;;  %v1596_v39 = vadd.f32 %v1560_v14, %v12814_v30  ;;  %8511 = vmatmul.msk.f32.gmra.mxu2 %vm299_vm0, %v12815_v2  ;;  %v10396_v14 = vld [vmem:[#allocation2 + $0xe1] sm:$0xff] }
 0x295   : > { %8478 = vmatmul.msk.f32.gmra.mxu1 %vm299_vm0, %v9961_v44  ;;  %8446 = vmatmul.msk.f32.gmra.mxu0 %vm299_vm0, %v10381_v7  ;;  %v12817_v13 = vld [vmem:[#allocation24_spill] sm:$0xff] }
 0x296   : > { %v1871_v21 = vadd.f32 %v1835_v8, %v1596_v39  ;;  %v10403_v8 = vld [vmem:[#allocation3 + $0xd8] sm:$0xff] }
 0x297   : > { %v2388_v3 = vpop.f32.mrf.mxu2 }
 0x298   : > { %8412 = vmatmul.msk.f32.gmra.mxu3 %vm299_vm0, %v10388_v0  ;;  %v2146_v25 = vadd.f32 %v2110_v45, %v1871_v21 }
 0x29a   : > { %v3120_v28 = vpop.f32.mrf.mxu1  ;;  %v10394_v10 = vadd.f32 %v2385_v29, %v2146_v25  ;;  %v2848_v30 = vpop.f32.mrf.mxu0 }
 0x29b   : > { %v1563_v2 = vpop.f32.mrf.mxu3 }
 0x29c   : > { %12816 = vst [vmem:[#allocation22_spill] sm:$0xff] %v10394_v10  ;;  %v1597_v44 = vadd.f32 %v1563_v2, %v12817_v13  ;;  %8512 = vmatmul.msk.f32.gmra.mxu2 %vm299_vm0, %v9956_v36  ;;  %v10411_v2 = vld [vmem:[#allocation2 + $0xf1] sm:$0xff] }
 0x29d   : > { %8479 = vmatmul.msk.f32.gmra.mxu1 %vm299_vm0, %v9975_v40  ;;  %8447 = vmatmul.msk.f32.gmra.mxu0 %vm299_vm0, %v10396_v14  ;;  %12819 = vst [vmem:[#allocation20_spill] sm:$0xff] %v10411_v2  ;;  %v12820_v10 = vld [vmem:[#allocation26_spill] sm:$0xff] }
 0x29e   : > { %v1872_v45 = vadd.f32 %v1838_v41, %v1597_v44  ;;  %v10418_v41 = vld [vmem:[#allocation3 + $0xe0] sm:$0xff] }
 0x29f   : > { %v3395_v29 = vpop.f32.mrf.mxu2 }
 0x2a0   : > { %8413 = vmatmul.msk.f32.gmra.mxu3 %vm299_vm0, %v10403_v8  ;;  %v2147_v39 = vadd.f32 %v2113_v47, %v1872_v45 }
 0x2a2   : > { %v3123_v21 = vpop.f32.mrf.mxu1  ;;  %v10409_v25 = vadd.f32 %v2388_v3, %v2147_v39  ;;  %v2851_v13 = vpop.f32.mrf.mxu0 }
 0x2a3   : > { %v2570_v36 = vpop.f32.mrf.mxu3 }
 0x2a4   : > { %12818 = vst [vmem:[#allocation18_spill] sm:$0xff] %v10409_v25  ;;  %v2666_v40 = vadd.f32 %v2570_v36, %v12820_v10  ;;  %8513 = vmatmul.msk.f32.gmra.mxu2 %vm299_vm0, %v9969_v48  ;;  %v10426_v36 = vld [vmem:[#allocation2 + $0xf9] sm:$0xff] }
 0x2a5   : > { %8480 = vmatmul.msk.f32.gmra.mxu1 %vm299_vm0, %v9989_v46  ;;  %8448 = vmatmul.msk.f32.gmra.mxu0 %vm299_vm0, %v10411_v2  ;;  %12822 = vst [vmem:[#allocation21_spill] sm:$0xff] %v10426_v36  ;;  %v12823_v25 = vld [vmem:[#allocation27_spill] sm:$0xff]  ;;  %v12827_v2 = vld [vmem:[#allocation29_spill] sm:$0xff] }
 0x2a6   : > { %v2941_v47 = vadd.f32 %v2845_v61, %v2666_v40  ;;  %v10433_v61 = vld [vmem:[#allocation3 + $0xf0] sm:$0xff] }
 0x2a7   : > { %v3398_v3 = vpop.f32.mrf.mxu2 }
 0x2a8   : > { %8414 = vmatmul.msk.f32.gmra.mxu3 %vm299_vm0, %v10418_v41  ;;  %v3216_v44 = vadd.f32 %v3120_v28, %v2941_v47 }
 0x2aa   : > { %v3126_v45 = vpop.f32.mrf.mxu1  ;;  %v10424_v39 = vadd.f32 %v3395_v29, %v3216_v44  ;;  %v2854_v10 = vpop.f32.mrf.mxu0 }
 0x2ab   : > { %v2573_v48 = vpop.f32.mrf.mxu3 }
 0x2ac   : > { %12821 = vst [vmem:[#allocation25_spill] sm:$0xff] %v10424_v39  ;;  %v2667_v46 = vadd.f32 %v2573_v48, %v12823_v25  ;;  %8514 = vmatmul.msk.f32.gmra.mxu2 %vm299_vm0, %v9983_v31  ;;  %v10441_v48 = vld [vmem:[#allocation2 + $0x109] sm:$0xff] }
 0x2ad   : > { %8481 = vmatmul.msk.f32.gmra.mxu1 %vm299_vm0, %v10003_v51  ;;  %8449 = vmatmul.msk.f32.gmra.mxu0 %vm299_vm0, %v10426_v36  ;;  %12825 = vst [vmem:[#allocation24_spill] sm:$0xff] %v10441_v48  ;;  %v12826_v39 = vld [vmem:[#allocation28_spill] sm:$0xff]  ;;  %v12831_v36 = vld [vmem:[#allocation31_spill] sm:$0xff] }
 0x2ae   : > { %v2942_v28 = vadd.f32 %v2848_v30, %v2667_v46  ;;  %v10448_v30 = vld [vmem:[#allocation3 + $0xf8] sm:$0xff] }
 0x2af   : > { %v3401_v29 = vpop.f32.mrf.mxu2 }
 0x2b0   : > { %8415 = vmatmul.msk.f32.gmra.mxu3 %vm299_vm0, %v10433_v61  ;;  %v3217_v40 = vadd.f32 %v3123_v21, %v2942_v28 }
 0x2b2   : > { %v3129_v47 = vpop.f32.mrf.mxu1  ;;  %v10439_v44 = vadd.f32 %v3398_v3, %v3217_v40  ;;  %v2857_v25 = vpop.f32.mrf.mxu0 }
 0x2b3   : > { %v2576_v31 = vpop.f32.mrf.mxu3 }
 0x2b4   : > { %12824 = vst [vmem:[#allocation23_spill] sm:$0xff] %v10439_v44  ;;  %v2668_v51 = vadd.f32 %v2576_v31, %v12826_v39  ;;  %8515 = vmatmul.msk.f32.gmra.mxu2 %vm299_vm0, %v12827_v2  ;;  %v10456_v31 = vld [vmem:[#allocation2 + $0x111] sm:$0xff] }
 0x2b5   : > { %8482 = vmatmul.msk.f32.gmra.mxu1 %vm299_vm0, %v10017_v60  ;;  %8450 = vmatmul.msk.f32.gmra.mxu0 %vm299_vm0, %v10441_v48  ;;  %12829 = vst [vmem:[#allocation27_spill] sm:$0xff] %v10456_v31  ;;  %v12830_v44 = vld [vmem:[#allocation30_spill] sm:$0xff]  ;;  %v12835_v48 = vld [vmem:[#allocation33_spill] sm:$0xff] }
 0x2b6   : > { %v2943_v21 = vadd.f32 %v2851_v13, %v2668_v51  ;;  %v10463_v13 = vld [vmem:[#allocation3 + $0x108] sm:$0xff] }
 0x2b7   : > { %v3404_v3 = vpop.f32.mrf.mxu2 }
 0x2b8   : > { %8416 = vmatmul.msk.f32.gmra.mxu3 %vm299_vm0, %v10448_v30  ;;  %v3218_v46 = vadd.f32 %v3126_v45, %v2943_v21 }
 0x2ba   : > { %v3132_v28 = vpop.f32.mrf.mxu1  ;;  %v10454_v40 = vadd.f32 %v3401_v29, %v3218_v46  ;;  %v2860_v39 = vpop.f32.mrf.mxu0 }
 0x2bb   : > { %v2579_v2 = vpop.f32.mrf.mxu3 }
 0x2bc   : > { %12828 = vst [vmem:[#allocation26_spill] sm:$0xff] %v10454_v40  ;;  %v2669_v60 = vadd.f32 %v2579_v2, %v12830_v44  ;;  %8516 = vmatmul.msk.f32.gmra.mxu2 %vm299_vm0, %v12831_v36  ;;  %v10471_v2 = vld [vmem:[#allocation2 + $0x121] sm:$0xff] }
 0x2bd   : > { %8483 = vmatmul.msk.f32.gmra.mxu1 %vm299_vm0, %v10030_v52  ;;  %8451 = vmatmul.msk.f32.gmra.mxu0 %vm299_vm0, %v10456_v31  ;;  %12833 = vst [vmem:[#allocation29_spill] sm:$0xff] %v10471_v2  ;;  %v12834_v40 = vld [vmem:[#allocation32_spill] sm:$0xff]  ;;  %v12839_v31 = vld [vmem:[#allocation35_spill] sm:$0xff] }
 0x2be   : > { %v2944_v45 = vadd.f32 %v2854_v10, %v2669_v60  ;;  %v10478_v10 = vld [vmem:[#allocation3 + $0x110] sm:$0xff] }
 0x2bf   : > { %v3407_v29 = vpop.f32.mrf.mxu2 }
 0x2c0   : > { %8417 = vmatmul.msk.f32.gmra.mxu3 %vm299_vm0, %v10463_v13  ;;  %v3219_v51 = vadd.f32 %v3129_v47, %v2944_v45 }
 0x2c2   : > { %v3135_v21 = vpop.f32.mrf.mxu1  ;;  %v10469_v46 = vadd.f32 %v3404_v3, %v3219_v51  ;;  %v2863_v44 = vpop.f32.mrf.mxu0 }
 0x2c3   : > { %v2582_v36 = vpop.f32.mrf.mxu3 }
 0x2c4   : > { %12832 = vst [vmem:[#allocation28_spill] sm:$0xff] %v10469_v46  ;;  %v2670_v52 = vadd.f32 %v2582_v36, %v12834_v40  ;;  %8517 = vmatmul.msk.f32.gmra.mxu2 %vm299_vm0, %v12835_v48  ;;  %v10486_v36 = vld [vmem:[#allocation2 + $0x129] sm:$0xff]  ;;  %v12838_v46 = vld [vmem:[#allocation34_spill] sm:$0xff] }
 0x2c5   : > { %8484 = vmatmul.msk.f32.gmra.mxu1 %vm299_vm0, %v10043_v17  ;;  %8452 = vmatmul.msk.f32.gmra.mxu0 %vm299_vm0, %v10471_v2  ;;  %12837 = vst [vmem:[#allocation31_spill] sm:$0xff] %v10486_v36  ;;  %v12843_v2 = vld [vmem:[#allocation37_spill] sm:$0xff] }
 0x2c6   : > { %v2945_v47 = vadd.f32 %v2857_v25, %v2670_v52  ;;  %v10493_v25 = vld [vmem:[#allocation3 + $0x120] sm:$0xff] }
 0x2c7   : > { %v3410_v3 = vpop.f32.mrf.mxu2 }
 0x2c8   : > { %8418 = vmatmul.msk.f32.gmra.mxu3 %vm299_vm0, %v10478_v10  ;;  %v3220_v60 = vadd.f32 %v3132_v28, %v2945_v47 }
 0x2ca   : > { %v3138_v45 = vpop.f32.mrf.mxu1  ;;  %v10484_v51 = vadd.f32 %v3407_v29, %v3220_v60  ;;  %v2866_v40 = vpop.f32.mrf.mxu0 }
 0x2cb   : > { %v2585_v48 = vpop.f32.mrf.mxu3 }
 0x2cc   : > { %12836 = vst [vmem:[#allocation30_spill] sm:$0xff] %v10484_v51  ;;  %v2671_v17 = vadd.f32 %v2585_v48, %v12838_v46  ;;  %8518 = vmatmul.msk.f32.gmra.mxu2 %vm299_vm0, %v12839_v31  ;;  %v10501_v48 = vld [vmem:[#allocation2 + $0x139] sm:$0xff]  ;;  %v12842_v51 = vld [vmem:[#allocation36_spill] sm:$0xff] }
 0x2cd   : > { %8485 = vmatmul.msk.f32.gmra.mxu1 %vm299_vm0, %v10056_v27  ;;  %8453 = vmatmul.msk.f32.gmra.mxu0 %vm299_vm0, %v10486_v36  ;;  %12841 = vst [vmem:[#allocation33_spill] sm:$0xff] %v10501_v48  ;;  %v12848_v36 = vld [vmem:[#allocation39_spill] sm:$0xff] }
 0x2ce   : > { %v2946_v28 = vadd.f32 %v2860_v39, %v2671_v17  ;;  %v10508_v39 = vld [vmem:[#allocation3 + $0x128] sm:$0xff] }
 0x2cf   : > { %v3413_v29 = vpop.f32.mrf.mxu2  ;;  %12844 = vst [vmem:[#allocation34_spill] sm:$0xff] %v10508_v39 }
 0x2d0   : > { %8419 = vmatmul.msk.f32.gmra.mxu3 %vm299_vm0, %v10493_v25  ;;  %v3221_v52 = vadd.f32 %v3135_v21, %v2946_v28 }
 0x2d2   : > { %v3141_v47 = vpop.f32.mrf.mxu1  ;;  %v10499_v60 = vadd.f32 %v3410_v3, %v3221_v52  ;;  %v2869_v46 = vpop.f32.mrf.mxu0 }
 0x2d3   : > { %v2588_v31 = vpop.f32.mrf.mxu3 }
 0x2d4   : > { %12840 = vst [vmem:[#allocation32_spill] sm:$0xff] %v10499_v60  ;;  %v2672_v27 = vadd.f32 %v2588_v31, %v12842_v51  ;;  %8519 = vmatmul.msk.f32.gmra.mxu2 %vm299_vm0, %v12843_v2  ;;  %v10516_v31 = vld [vmem:[#allocation2 + $0x141] sm:$0xff]  ;;  %v12847_v60 = vld [vmem:[#allocation38_spill] sm:$0xff] }
 0x2d5   : > { %8486 = vmatmul.msk.f32.gmra.mxu1 %vm299_vm0, %v10069_v38  ;;  %8454 = vmatmul.msk.f32.gmra.mxu0 %vm299_vm0, %v10501_v48  ;;  %12846 = vst [vmem:[#allocation36_spill] sm:$0xff] %v10516_v31  ;;  %v12852_v48 = vld [vmem:[#allocation41_spill] sm:$0xff] }
 0x2d6   : > { %v2947_v21 = vadd.f32 %v2863_v44, %v2672_v27  ;;  %v10523_v44 = vld [vmem:[#allocation3 + $0x138] sm:$0xff] }
 0x2d7   : > { %v3416_v3 = vpop.f32.mrf.mxu2 }
 0x2d8   : > { %8420 = vmatmul.msk.f32.gmra.mxu3 %vm299_vm0, %v10508_v39  ;;  %v3222_v17 = vadd.f32 %v3138_v45, %v2947_v21  ;;  %v529_v39 = vld [vmem:[%s9331_s16 + $0xf0] sm:$0xff] }
 0x2d9   : > { %562 = vst.msk [vmem:[#allocation3 + $0x181] sm:$0xff] %vm299_vm0, %v529_v39 }
 0x2da   : > { %v3144_v28 = vpop.f32.mrf.mxu1  ;;  %v10514_v52 = vadd.f32 %v3413_v29, %v3222_v17  ;;  %v2872_v51 = vpop.f32.mrf.mxu0 }
 0x2db   : > { %v2591_v2 = vpop.f32.mrf.mxu3 }
 0x2dc   : > { %12845 = vst [vmem:[#allocation35_spill] sm:$0xff] %v10514_v52  ;;  %v2673_v38 = vadd.f32 %v2591_v2, %v12847_v60  ;;  %8520 = vmatmul.msk.f32.gmra.mxu2 %vm299_vm0, %v12848_v36  ;;  %v10531_v2 = vld [vmem:[#allocation2 + $0x151] sm:$0xff]  ;;  %v12851_v52 = vld [vmem:[#allocation40_spill] sm:$0xff] }
 0x2dd   : > { %8487 = vmatmul.msk.f32.gmra.mxu1 %vm299_vm0, %v10082_v63  ;;  %8455 = vmatmul.msk.f32.gmra.mxu0 %vm299_vm0, %v10516_v31  ;;  %12850 = vst [vmem:[#allocation38_spill] sm:$0xff] %v10531_v2  ;;  %v12855_v31 = vld [vmem:[#allocation43_spill] sm:$0xff] }
 0x2de   : > { %v2948_v45 = vadd.f32 %v2866_v40, %v2673_v38  ;;  %v10539_v40 = vld [vmem:[#allocation3 + $0x140] sm:$0xff] }
 0x2df   : > { %v3419_v29 = vpop.f32.mrf.mxu2 }
 0x2e0   : > { %8421 = vmatmul.msk.f32.gmra.mxu3 %vm299_vm0, %v10523_v44  ;;  %v3223_v27 = vadd.f32 %v3141_v47, %v2948_v45 }
 0x2e2   : > { %v3147_v21 = vpop.f32.mrf.mxu1  ;;  %v10529_v60 = vadd.f32 %v3416_v3, %v3223_v27  ;;  %v2875_v17 = vpop.f32.mrf.mxu0  ;;  %v2725_v27 = vld [vmem:[#allocation2 + $0x159] sm:$0xff] }
 0x2e3   : > { %v2594_v36 = vpop.f32.mrf.mxu3 }
 0x2e4   : > { %12849 = vst [vmem:[#allocation37_spill] sm:$0xff] %v10529_v60  ;;  %v2674_v63 = vadd.f32 %v2594_v36, %v12851_v52  ;;  %8521 = vmatmul.msk.f32.gmra.mxu2 %vm299_vm0, %v12852_v48 }
 0x2e5   : > { %8488 = vmatmul.msk.f32.gmra.mxu1 %vm299_vm0, %v10097_v59  ;;  %8456 = vmatmul.msk.f32.gmra.mxu0 %vm299_vm0, %v10531_v2  ;;  %v12854_v59 = vld [vmem:[#allocation42_spill] sm:$0xff] }
 0x2e6   : > { %v2949_v47 = vadd.f32 %v2869_v46, %v2674_v63  ;;  %v530_v2 = vld [vmem:[%s9331_s16 + $0xf8] sm:$0xff]  ;;  %v10554_v46 = vld [vmem:[#allocation3 + $0x150] sm:$0xff] }
 0x2e7   : > { %v3422_v3 = vpop.f32.mrf.mxu2  ;;  %563 = vst.msk [vmem:[#allocation3 + $0x189] sm:$0xff] %vm299_vm0, %v530_v2 }
 0x2e8   : > { %8422 = vmatmul.msk.f32.gmra.mxu3 %vm299_vm0, %v10539_v40  ;;  %v3224_v52 = vadd.f32 %v3144_v28, %v2949_v47 }
 0x2ea   : > { %v3150_v38 = vpop.f32.mrf.mxu1  ;;  %v10546_v48 = vadd.f32 %v3419_v29, %v3224_v52  ;;  %v2878_v45 = vpop.f32.mrf.mxu0  ;;  %v2726_v52 = vld [vmem:[#allocation2 + $0x169] sm:$0xff] }
 0x2eb   : > { %v2597_v36 = vpop.f32.mrf.mxu3 }
 0x2ec   : > { %12853 = vst [vmem:[#allocation39_spill] sm:$0xff] %v10546_v48  ;;  %v2675_v60 = vadd.f32 %v2597_v36, %v12854_v59  ;;  %8522 = vmatmul.msk.f32.gmra.mxu2 %vm299_vm0, %v12855_v31  ;;  %v12857_v59 = vld [vmem:[#allocation44_spill] sm:$0xff]  ;;  %v12858_v48 = vld [vmem:[#allocation45_spill] sm:$0xff] }
 0x2ed   : > { %8489 = vmatmul.msk.f32.gmra.mxu1 %vm299_vm0, %v10112_v33  ;;  %8457 = vmatmul.msk.f32.gmra.mxu0 %vm299_vm0, %v2725_v27 }
 0x2ee   : > { %v2950_v39 = vadd.f32 %v2872_v51, %v2675_v60  ;;  %v10567_v51 = vld [vmem:[#allocation3 + $0x158] sm:$0xff] }
 0x2ef   : > { %v3425_v28 = vpop.f32.mrf.mxu2 }
 0x2f0   : > { %8423 = vmatmul.msk.f32.gmra.mxu3 %vm299_vm0, %v10554_v46  ;;  %v3225_v29 = vadd.f32 %v3147_v21, %v2950_v39 }
 0x2f2   : > { %v3153_v63 = vpop.f32.mrf.mxu1  ;;  %v10560_v47 = vadd.f32 %v3422_v3, %v3225_v29  ;;  %v2881_v31 = vpop.f32.mrf.mxu0  ;;  %v2727_v29 = vld [vmem:[#allocation2 + $0x171] sm:$0xff] }
 0x2f3   : > { %v2600_v36 = vpop.f32.mrf.mxu3 }
 0x2f4   : > { %12856 = vst [vmem:[#allocation40_spill] sm:$0xff] %v10560_v47  ;;  %v2676_v33 = vadd.f32 %v2600_v36, %v12857_v59  ;;  %8523 = vmatmul.msk.f32.gmra.mxu2 %vm299_vm0, %v12858_v48  ;;  %v12859_v48 = vld [vmem:[#allocation46_spill] sm:$0xff]  ;;  %v12860_v47 = vld [vmem:[#allocation47_spill] sm:$0xff] }
 0x2f5   : > { %8490 = vmatmul.msk.f32.gmra.mxu1 %vm299_vm0, %v10128_v4  ;;  %8458 = vmatmul.msk.f32.gmra.mxu0 %vm299_vm0, %v2726_v52  ;;  %v10579_v4 = vld [vmem:[#allocation3 + $0x168] sm:$0xff] }
 0x2f6   : > { %v2951_v60 = vadd.f32 %v2875_v17, %v2676_v33  ;;  %v3277_v52 = vld [vmem:[#allocation2 + $0x172] sm:$0xff] }
 0x2f7   : > { %v3428_v21 = vpop.f32.mrf.mxu2 }
 0x2f8   : > { %8424 = vmatmul.msk.f32.gmra.mxu3 %vm299_vm0, %v10567_v51  ;;  %v3226_v2 = vadd.f32 %v3150_v38, %v2951_v60 }
 0x2fa   : > { %v3156_v3 = vpop.f32.mrf.mxu1  ;;  %v10572_v27 = vadd.f32 %v3425_v28, %v3226_v2  ;;  %v2884_v39 = vpop.f32.mrf.mxu0 }
 0x2fb   : > { %v2603_v36 = vpop.f32.mrf.mxu3 }
 0x2fc   : > { %v2677_v59 = vadd.f32 %v2603_v36, %v12859_v48  ;;  %8524 = vmatmul.msk.f32.gmra.mxu2 %vm299_vm0, %v12860_v47  ;;  %v2728_v36 = vld [vmem:[#allocation2 + $0x181] sm:$0xff] }
 0x2fd   : > { %8491 = vmatmul.msk.f32.gmra.mxu1 %vm299_vm0, %v10145_v15  ;;  %8459 = vmatmul.msk.f32.gmra.mxu0 %vm299_vm0, %v2727_v29  ;;  %v8660_v15 = vld [vmem:[%s12634_s3 + $0x38] sm:$0xff]  ;;  %v12862_v48 = vld [vmem:[#allocation48_spill] sm:$0xff] }
 0x2fe   : > { %v2952_v17 = vadd.f32 %v2878_v45, %v2677_v59  ;;  %4770 = vmatpush.msra.mxu3 %v8660_v15  ;;  %v10593_v45 = vld [vmem:[#allocation3 + $0x170] sm:$0xff] }
 0x2ff   : > { %v3431_v38 = vpop.f32.mrf.mxu2  ;;  %12863 = vst [vmem:[#allocation42_spill] sm:$0xff] %v10593_v45 }
 0x300   : > { %8425 = vmatmul.msk.f32.gmra.mxu3 %vm299_vm0, %v10579_v4  ;;  %v3227_v28 = vadd.f32 %v3153_v63, %v2952_v17  ;;  %v3003_v17 = vld [vmem:[#allocation3 + $0x181] sm:$0xff] }
 0x302   : > { %v3159_v33 = vpop.f32.mrf.mxu1  ;;  %v10584_v60 = vadd.f32 %v3428_v21, %v3227_v28  ;;  %v2887_v2 = vpop.f32.mrf.mxu0  ;;  %v3278_v28 = vld [vmem:[#allocation2 + $0x182] sm:$0xff] }
 0x303   : > { %v2606_v47 = vpop.f32.mrf.mxu3 }
 0x304   : > { %12861 = vst [vmem:[#allocation41_spill] sm:$0xff] %v10584_v60  ;;  %v2678_v29 = vadd.f32 %v2606_v47, %v12862_v48  ;;  %8525 = vmatmul.msk.f32.gmra.mxu2 %vm299_vm0, %v3277_v52  ;;  %v10600_v52 = vld [vmem:[#allocation2 + $0x189] sm:$0xff] }
 0x305   : > { %8492 = vmatmul.msk.f32.gmra.mxu1 %vm299_vm0, %v10155_v35  ;;  %8460 = vmatmul.msk.f32.gmra.mxu0 %vm299_vm0, %v2728_v36  ;;  %12865 = vst [vmem:[#allocation44_spill] sm:$0xff] %v10600_v52  ;;  %v8693_v35 = vld [vmem:[%s12633_s2 + $0x40] sm:$0xff] }
 0x306   : > { %v2953_v63 = vadd.f32 %v2881_v31, %v2678_v29  ;;  %v8726_v31 = vld [vmem:[%s12634_s3 + $0x40] sm:$0xff]  ;;  %5045 = vmatpush.msra.mxu0 %v8693_v35 }
 0x307   : > { %v3434_v21 = vpop.f32.mrf.mxu2  ;;  %5320 = vmatpush.msra.mxu1 %v8726_v31 }
 0x308   : > { %8426 = vmatmul.msk.f32.gmra.mxu3 %vm299_vm0, %v10593_v45  ;;  %v3228_v59 = vadd.f32 %v3156_v3, %v2953_v63  ;;  %v12866_v3 = vld [vmem:[#allocation49_spill] sm:$0xff] }
 0x30a   : > { %v3162_v15 = vpop.f32.mrf.mxu1  ;;  %v10598_v60 = vadd.f32 %v3431_v38, %v3228_v59  ;;  %v2890_v47 = vpop.f32.mrf.mxu0  ;;  %v10611_v38 = vld [vmem:[#allocation3 + $0x180] sm:$0xff] }
 0x30b   : > { %v2609_v36 = vpop.f32.mrf.mxu3 }
 0x30c   : > { %12864 = vst [vmem:[#allocation43_spill] sm:$0xff] %v10598_v60  ;;  %v2679_v48 = vadd.f32 %v2609_v36, %v12866_v3  ;;  %8526 = vmatmul.msk.f32.gmra.mxu2 %vm299_vm0, %v3278_v28  ;;  %v3279_v60 = vld [vmem:[#allocation2 + $0x18a] sm:$0xff]  ;;  %v3004_v36 = vld [vmem:[#allocation3 + $0x189] sm:$0xff] }
 0x30d   : > { %8493 = vmatmul.msk.f32.gmra.mxu1 %vm299_vm0, %v3003_v17  ;;  %8461 = vmatmul.msk.f32.gmra.mxu0 %vm299_vm0, %v10600_v52  ;;  %v3799_v28 = vld [vmem:[#allocation2 + $0x30] sm:$0xff]  ;;  %v3800_v52 = vld [vmem:[#allocation2 + $0x38] sm:$0xff] }
 0x30e   : > { %v2954_v29 = vadd.f32 %v2884_v39, %v2679_v48  ;;  %v10622_v39 = vld [vmem:[#allocation3 + $0x188] sm:$0xff] }
 0x30f   : > { %v3437_v63 = vpop.f32.mrf.mxu2 }
 0x310   : > { %8427 = vmatmul.msk.f32.gmra.mxu3 %vm299_vm0, %v10611_v38  ;;  %v3229_v59 = vadd.f32 %v3159_v33, %v2954_v29 }
 0x312   : > { %v3165_v35 = vpop.f32.mrf.mxu1  ;;  %v10617_v31 = vadd.f32 %v3434_v21, %v3229_v59  ;;  %v2893_v3 = vpop.f32.mrf.mxu0 }
 0x313   : > { %v2612_v45 = vpop.f32.mrf.mxu3 }
 0x314   : > { %12867 = vst [vmem:[#allocation45_spill] sm:$0xff] %v10617_v31  ;;  %v2680_v17 = vadd.f32 %v2612_v45, %v10160_v22  ;;  %8527 = vmatmul.msk.f32.gmra.mxu2 %vm299_vm0, %v3279_v60 }
 0x315   : > { %8494 = vmatmul.msk.f32.gmra.mxu1 %vm299_vm0, %v3004_v36  ;;  %8562 = vmatmul.msk.f32.vlgmr.msrb.gmra.mxu0 %vm299_vm0, %v3799_v28 }
 0x316   : > { %v2955_v48 = vadd.f32 %v2887_v2, %v2680_v17  ;;  %v3523_v2 = vld [vmem:[#allocation3 + $0x1a] sm:$0xff] }
 0x317   : > { %v3440_v33 = vpop.f32.mrf.mxu2 }
 0x318   : > { %8428 = vmatmul.msk.f32.gmra.mxu3 %vm299_vm0, %v10622_v39  ;;  %v3230_v21 = vadd.f32 %v3162_v15, %v2955_v48  ;;  %v3801_v48 = vld [vmem:[#allocation2 + $0x48] sm:$0xff] }
 0x31a   : > { %v3168_v29 = vpop.f32.mrf.mxu1  ;;  %v10627_v59 = vadd.f32 %v3437_v63, %v3230_v21  ;;  %v2896_v31 = vpop.f32.mrf.mxu0 }
 0x31b   : > { %v2615_v22 = vpop.f32.mrf.mxu3 }
 0x31c   : > { %v2681_v60 = vadd.f32 %v2615_v22, %v10169_v23  ;;  %8628 = vmatmul.msk.f32.vlgmr.msrb.gmra.mxu2 %vm299_vm0, %v10171_v54  ;;  %v3524_v54 = vld [vmem:[#allocation3 + $0x22] sm:$0xff] }
 0x31d   : > { %8595 = vmatmul.msk.f32.vlgmr.msrb.gmra.mxu1 %vm299_vm0, %v10190_v37  ;;  %8563 = vmatmul.msk.f32.gmra.mxu0 %vm299_vm0, %v3800_v52 }
 0x31e   : > { %v2956_v45 = vadd.f32 %v2890_v47, %v2681_v60  ;;  %v3802_v60 = vld [vmem:[#allocation2 + $0x50] sm:$0xff] }
 0x31f   : > { %v3443_v36 = vpop.f32.mrf.mxu2 }
 0x320   : > { %8529 = vmatmul.msk.f32.vlgmr.msrb.gmra.mxu3 %vm299_vm0, %v3523_v2  ;;  %v3231_v15 = vadd.f32 %v3165_v35, %v2956_v45 }
 0x322   : > { %v3171_v63 = vpop.f32.mrf.mxu1  ;;  %v10636_v28 = vadd.f32 %v3440_v33, %v3231_v15  ;;  %v2899_v17 = vpop.f32.mrf.mxu0  ;;  %v3803_v15 = vld [vmem:[#allocation2 + $0x60] sm:$0xff] }
 0x323   : > { %v2618_v23 = vpop.f32.mrf.mxu3 }
 0x324   : > { %v2682_v21 = vadd.f32 %v2618_v23, %v10181_v11  ;;  %8629 = vmatmul.msk.f32.gmra.mxu2 %vm299_vm0, %v10183_v53  ;;  %v10652_v53 = vld [vmem:[#allocation3 + $0x32] sm:$0xff] }
 0x325   : > { %8596 = vmatmul.msk.f32.gmra.mxu1 %vm299_vm0, %v10205_v49  ;;  %8564 = vmatmul.msk.f32.gmra.mxu0 %vm299_vm0, %v3801_v48 }
 0x326   : > { %v2957_v37 = vadd.f32 %v2893_v3, %v2682_v21 }
 0x327   : > { %v3446_v47 = vpop.f32.mrf.mxu2 }
 0x328   : > { %8530 = vmatmul.msk.f32.gmra.mxu3 %vm299_vm0, %v3524_v54  ;;  %v3232_v52 = vadd.f32 %v3168_v29, %v2957_v37  ;;  %v3804_v37 = vld [vmem:[#allocation2 + $0x68] sm:$0xff] }
 0x32a   : > { %v3174_v35 = vpop.f32.mrf.mxu1  ;;  %v10645_v33 = vadd.f32 %v3443_v36, %v3232_v52  ;;  %v2902_v22 = vpop.f32.mrf.mxu0 }
 0x32b   : > { %v2621_v11 = vpop.f32.mrf.mxu3 }
 0x32c   : > { %v2683_v2 = vadd.f32 %v2621_v11, %v10196_v43  ;;  %8630 = vmatmul.msk.f32.gmra.mxu2 %vm299_vm0, %v10198_v58 }
 0x32d   : > { %8597 = vmatmul.msk.f32.gmra.mxu1 %vm299_vm0, %v10220_v6  ;;  %8565 = vmatmul.msk.f32.gmra.mxu0 %vm299_vm0, %v3802_v60  ;;  %v10664_v6 = vld [vmem:[#allocation3 + $0x3a] sm:$0xff] }
 0x32e   : > { %v2958_v49 = vadd.f32 %v2896_v31, %v2683_v2  ;;  %v3805_v2 = vld [vmem:[#allocation2 + $0x78] sm:$0xff] }
 0x32f   : > { %v3449_v3 = vpop.f32.mrf.mxu2 }
 0x330   : > { %8531 = vmatmul.msk.f32.gmra.mxu3 %vm299_vm0, %v10652_v53  ;;  %v3233_v29 = vadd.f32 %v3171_v63, %v2958_v49 }
 0x332   : > { %v3177_v45 = vpop.f32.mrf.mxu1  ;;  %v10657_v36 = vadd.f32 %v3446_v47, %v3233_v29  ;;  %v2905_v43 = vpop.f32.mrf.mxu0 }
 0x333   : > { %v2624_v48 = vpop.f32.mrf.mxu3 }
 0x334   : > { %v2684_v58 = vadd.f32 %v2624_v48, %v10211_v62  ;;  %8631 = vmatmul.msk.f32.gmra.mxu2 %vm299_vm0, %v10213_v24  ;;  %v3806_v48 = vld [vmem:[#allocation2 + $0x80] sm:$0xff] }
 0x335   : > { %8598 = vmatmul.msk.f32.gmra.mxu1 %vm299_vm0, %v10235_v16  ;;  %8566 = vmatmul.msk.f32.gmra.mxu0 %vm299_vm0, %v3803_v15  ;;  %v10676_v16 = vld [vmem:[#allocation3 + $0x4a] sm:$0xff] }
 0x336   : > { %v2959_v31 = vadd.f32 %v2899_v17, %v2684_v58 }
 0x337   : > { %v3452_v63 = vpop.f32.mrf.mxu2 }
 0x338   : > { %8532 = vmatmul.msk.f32.gmra.mxu3 %vm299_vm0, %v10664_v6  ;;  %v3234_v23 = vadd.f32 %v3174_v35, %v2959_v31 }
 0x33a   : > { %v3180_v21 = vpop.f32.mrf.mxu1  ;;  %v10669_v54 = vadd.f32 %v3449_v3, %v3234_v23  ;;  %v2908_v62 = vpop.f32.mrf.mxu0 }
 0x33b   : > { %v2627_v47 = vpop.f32.mrf.mxu3 }
 0x33c   : > { %v2685_v24 = vadd.f32 %v2627_v47, %v10226_v42  ;;  %8632 = vmatmul.msk.f32.gmra.mxu2 %vm299_vm0, %v10228_v18 }
 0x33d   : > { %8599 = vmatmul.msk.f32.gmra.mxu1 %vm299_vm0, %v10250_v12  ;;  %8567 = vmatmul.msk.f32.gmra.mxu0 %vm299_vm0, %v3804_v37  ;;  %v10688_v12 = vld [vmem:[#allocation3 + $0x52] sm:$0xff]  ;;  %v3807_v37 = vld [vmem:[#allocation2 + $0x90] sm:$0xff] }
 0x33e   : > { %v2960_v17 = vadd.f32 %v2902_v22, %v2685_v24 }
 0x33f   : > { %v3455_v52 = vpop.f32.mrf.mxu2 }
 0x340   : > { %8533 = vmatmul.msk.f32.gmra.mxu3 %vm299_vm0, %v10676_v16  ;;  %v3235_v35 = vadd.f32 %v3177_v45, %v2960_v17 }
 0x342   : > { %v3183_v60 = vpop.f32.mrf.mxu1  ;;  %v10681_v11 = vadd.f32 %v3452_v63, %v3235_v35  ;;  %v2911_v42 = vpop.f32.mrf.mxu0 }
 0x343   : > { %v2630_v49 = vpop.f32.mrf.mxu3 }
 0x344   : > { %v2686_v18 = vadd.f32 %v2630_v49, %v10241_v1  ;;  %8633 = vmatmul.msk.f32.gmra.mxu2 %vm299_vm0, %v10243_v5 }
 0x345   : > { %8600 = vmatmul.msk.f32.gmra.mxu1 %vm299_vm0, %v10265_v19  ;;  %8568 = vmatmul.msk.f32.gmra.mxu0 %vm299_vm0, %v3805_v2  ;;  %v10700_v19 = vld [vmem:[#allocation3 + $0x62] sm:$0xff] }
 0x346   : > { %v2961_v22 = vadd.f32 %v2905_v43, %v2686_v18  ;;  %v12869_v18 = vld [vmem:[#allocation6_spill] sm:$0xff] }
 0x347   : > { %v3458_v3 = vpop.f32.mrf.mxu2 }
 0x348   : > { %8534 = vmatmul.msk.f32.gmra.mxu3 %vm299_vm0, %v10688_v12  ;;  %v3236_v29 = vadd.f32 %v3180_v21, %v2961_v22 }
 0x34a   : > { %v3186_v45 = vpop.f32.mrf.mxu1  ;;  %v10693_v15 = vadd.f32 %v3455_v52, %v3236_v29  ;;  %v2914_v1 = vpop.f32.mrf.mxu0 }
 0x34b   : > { %v2633_v58 = vpop.f32.mrf.mxu3 }
 0x34c   : > { %v2687_v5 = vadd.f32 %v2633_v58, %v10256_v32  ;;  %8634 = vmatmul.msk.f32.gmra.mxu2 %vm299_vm0, %v10258_v20 }
 0x34d   : > { %8601 = vmatmul.msk.f32.gmra.mxu1 %vm299_vm0, %v10280_v26  ;;  %8569 = vmatmul.msk.f32.gmra.mxu0 %vm299_vm0, %v3806_v48  ;;  %v10712_v26 = vld [vmem:[#allocation3 + $0x6a] sm:$0xff] }
 0x34e   : > { %v2962_v43 = vadd.f32 %v2908_v62, %v2687_v5  ;;  %v3809_v5 = vld [vmem:[#allocation2 + $0xa8] sm:$0xff] }
 0x34f   : > { %v3461_v31 = vpop.f32.mrf.mxu2 }
 0x350   : > { %8535 = vmatmul.msk.f32.gmra.mxu3 %vm299_vm0, %v10700_v19  ;;  %v3237_v63 = vadd.f32 %v3183_v60, %v2962_v43  ;;  %v3808_v60 = vld [vmem:[#allocation2 + $0x98] sm:$0xff] }
 0x352   : > { %v3189_v23 = vpop.f32.mrf.mxu1  ;;  %v10705_v21 = vadd.f32 %v3458_v3, %v3237_v63  ;;  %v2917_v32 = vpop.f32.mrf.mxu0 }
 0x353   : > { %v2636_v47 = vpop.f32.mrf.mxu3 }
 0x354   : > { %v2688_v20 = vadd.f32 %v2636_v47, %v10271_v56  ;;  %8635 = vmatmul.msk.f32.gmra.mxu2 %vm299_vm0, %v10273_v50  ;;  %v12868_v50 = vld [vmem:[#allocation5_spill] sm:$0xff]  ;;  %v12873_v47 = vld [vmem:[#allocation12_spill] sm:$0xff] }
 0x355   : > { %8602 = vmatmul.msk.f32.gmra.mxu1 %vm299_vm0, %v10295_v34  ;;  %8570 = vmatmul.msk.f32.gmra.mxu0 %vm299_vm0, %v3807_v37  ;;  %v12870_v34 = vld [vmem:[#allocation9_spill] sm:$0xff]  ;;  %v12872_v37 = vld [vmem:[#allocation8_spill] sm:$0xff] }
 0x356   : > { %v2963_v62 = vadd.f32 %v2911_v42, %v2688_v20  ;;  %v10724_v42 = vld [vmem:[#allocation3 + $0x7a] sm:$0xff] }
 0x357   : > { %v3464_v24 = vpop.f32.mrf.mxu2 }
 0x358   : > { %8536 = vmatmul.msk.f32.gmra.mxu3 %vm299_vm0, %v10712_v26  ;;  %v3238_v17 = vadd.f32 %v3186_v45, %v2963_v62 }
 0x35a   : > { %v3192_v52 = vpop.f32.mrf.mxu1  ;;  %v10717_v35 = vadd.f32 %v3461_v31, %v3238_v17  ;;  %v2920_v56 = vpop.f32.mrf.mxu0  ;;  %v12871_v31 = vld [vmem:[#allocation7_spill] sm:$0xff] }
 0x35b   : > { %v2639_v2 = vpop.f32.mrf.mxu3 }
 0x35c   : > { %v2689_v49 = vadd.f32 %v2639_v2, %v12868_v50  ;;  %8636 = vmatmul.msk.f32.gmra.mxu2 %vm299_vm0, %v12869_v18  ;;  %v3810_v2 = vld [vmem:[#allocation2 + $0xb0] sm:$0xff] }
 0x35d   : > { %8603 = vmatmul.msk.f32.gmra.mxu1 %vm299_vm0, %v12870_v34  ;;  %8571 = vmatmul.msk.f32.gmra.mxu0 %vm299_vm0, %v3808_v60  ;;  %v12875_v34 = vld [vmem:[#allocation11_spill] sm:$0xff] }
 0x35e   : > { %v2964_v22 = vadd.f32 %v2914_v1, %v2689_v49  ;;  %v10736_v1 = vld [vmem:[#allocation3 + $0x82] sm:$0xff] }
 0x35f   : > { %v3467_v3 = vpop.f32.mrf.mxu2  ;;  %v12874_v49 = vld [vmem:[#allocation10_spill] sm:$0xff] }
 0x360   : > { %8537 = vmatmul.msk.f32.gmra.mxu3 %vm299_vm0, %v10724_v42  ;;  %v3239_v29 = vadd.f32 %v3189_v23, %v2964_v22 }
 0x362   : > { %v3195_v45 = vpop.f32.mrf.mxu1  ;;  %v10729_v48 = vadd.f32 %v3464_v24, %v3239_v29  ;;  %v2923_v58 = vpop.f32.mrf.mxu0 }
 0x363   : > { %v2642_v43 = vpop.f32.mrf.mxu3 }
 0x364   : > { %v2690_v63 = vadd.f32 %v2642_v43, %v12871_v31  ;;  %8637 = vmatmul.msk.f32.gmra.mxu2 %vm299_vm0, %v12872_v37  ;;  %v3811_v31 = vld [vmem:[#allocation2 + $0xc0] sm:$0xff]  ;;  %v12876_v37 = vld [vmem:[#allocation13_spill] sm:$0xff] }
 0x365   : > { %8604 = vmatmul.msk.f32.gmra.mxu1 %vm299_vm0, %v12873_v47  ;;  %8572 = vmatmul.msk.f32.gmra.mxu0 %vm299_vm0, %v3809_v5 }
 0x366   : > { %v2965_v20 = vadd.f32 %v2917_v32, %v2690_v63  ;;  %v10748_v32 = vld [vmem:[#allocation3 + $0x92] sm:$0xff] }
 0x367   : > { %v3470_v23 = vpop.f32.mrf.mxu2 }
 0x368   : > { %8538 = vmatmul.msk.f32.gmra.mxu3 %vm299_vm0, %v10736_v1  ;;  %v3240_v62 = vadd.f32 %v3192_v52, %v2965_v20  ;;  %v12877_v20 = vld [vmem:[#allocation50_spill] sm:$0xff] }
 0x36a   : > { %v3198_v24 = vpop.f32.mrf.mxu1  ;;  %v10741_v17 = vadd.f32 %v3467_v3, %v3240_v62  ;;  %v2926_v60 = vpop.f32.mrf.mxu0 }
 0x36b   : > { %v2645_v50 = vpop.f32.mrf.mxu3 }
 0x36c   : > { %v2691_v18 = vadd.f32 %v2645_v50, %v12874_v49  ;;  %8638 = vmatmul.msk.f32.gmra.mxu2 %vm299_vm0, %v12875_v34 }
 0x36d   : > { %8605 = vmatmul.msk.f32.gmra.mxu1 %vm299_vm0, %v10340_v57  ;;  %8573 = vmatmul.msk.f32.gmra.mxu0 %vm299_vm0, %v3810_v2  ;;  %v12878_v57 = vld [vmem:[#allocation19_spill] sm:$0xff] }
 0x36e   : > { %v2966_v22 = vadd.f32 %v2920_v56, %v2691_v18  ;;  %v10760_v56 = vld [vmem:[#allocation3 + $0x9a] sm:$0xff] }
 0x36f   : > { %v3473_v52 = vpop.f32.mrf.mxu2  ;;  %v3812_v18 = vld [vmem:[#allocation2 + $0xc8] sm:$0xff] }
 0x370   : > { %8539 = vmatmul.msk.f32.gmra.mxu3 %vm299_vm0, %v10748_v32  ;;  %v3241_v3 = vadd.f32 %v3195_v45, %v2966_v22  ;;  %v12879_v22 = vld [vmem:[#allocation14_spill] sm:$0xff] }
 0x372   : > { %v3201_v29 = vpop.f32.mrf.mxu1  ;;  %v10753_v5 = vadd.f32 %v3470_v23, %v3241_v3  ;;  %v2929_v43 = vpop.f32.mrf.mxu0 }
 0x373   : > { %v2648_v63 = vpop.f32.mrf.mxu3 }
 0x374   : > { %v2692_v47 = vadd.f32 %v2648_v63, %v12876_v37  ;;  %8639 = vmatmul.msk.f32.gmra.mxu2 %vm299_vm0, %v12877_v20  ;;  %v12880_v63 = vld [vmem:[#allocation15_spill] sm:$0xff] }
 0x375   : > { %8606 = vmatmul.msk.f32.gmra.mxu1 %vm299_vm0, %v12878_v57  ;;  %8574 = vmatmul.msk.f32.gmra.mxu0 %vm299_vm0, %v3811_v31  ;;  %v3813_v57 = vld [vmem:[#allocation2 + $0xd8] sm:$0xff] }
 0x376   : > { %v2967_v62 = vadd.f32 %v2923_v58, %v2692_v47  ;;  %v10772_v58 = vld [vmem:[#allocation3 + $0xaa] sm:$0xff] }
 0x377   : > { %v3476_v45 = vpop.f32.mrf.mxu2 }
 0x378   : > { %8540 = vmatmul.msk.f32.gmra.mxu3 %vm299_vm0, %v10760_v56  ;;  %v3242_v23 = vadd.f32 %v3198_v24, %v2967_v62 }
 0x37a   : > { %v3204_v2 = vpop.f32.mrf.mxu1  ;;  %v10765_v50 = vadd.f32 %v3473_v52, %v3242_v23  ;;  %v2932_v49 = vpop.f32.mrf.mxu0  ;;  %v12881_v23 = vld [vmem:[#allocation16_spill] sm:$0xff] }
 0x37b   : > { %v2651_v34 = vpop.f32.mrf.mxu3 }
 0x37c   : > { %v2693_v3 = vadd.f32 %v2651_v34, %v12879_v22  ;;  %8640 = vmatmul.msk.f32.gmra.mxu2 %vm299_vm0, %v12880_v63 }
 0x37d   : > { %8607 = vmatmul.msk.f32.gmra.mxu1 %vm299_vm0, %v10373_v55  ;;  %8575 = vmatmul.msk.f32.gmra.mxu0 %vm299_vm0, %v3812_v18  ;;  %v10784_v55 = vld [vmem:[#allocation3 + $0xb2] sm:$0xff] }
 0x37e   : > { %v2968_v31 = vadd.f32 %v2926_v60, %v2693_v3 }
 0x37f   : > { %v3479_v24 = vpop.f32.mrf.mxu2 }
 0x380   : > { %8541 = vmatmul.msk.f32.gmra.mxu3 %vm299_vm0, %v10772_v58  ;;  %v3243_v52 = vadd.f32 %v3201_v29, %v2968_v31  ;;  %v8762_v29 = vld [vmem:[%s12636_s5 + $0x38] sm:$0xff]  ;;  %v12882_v31 = vld [vmem:[#allocation17_spill] sm:$0xff] }
 0x381   : > { %5732 = vmatpush.msra.mxu2 %v8762_v29 }
 0x382   : > { %v3207_v37 = vpop.f32.mrf.mxu1  ;;  %v10777_v47 = vadd.f32 %v3476_v45, %v3243_v52  ;;  %v2935_v20 = vpop.f32.mrf.mxu0 }
 0x383   : > { %v2654_v62 = vpop.f32.mrf.mxu3 }
 0x384   : > { %v2694_v34 = vadd.f32 %v2654_v62, %v12881_v23  ;;  %8641 = vmatmul.msk.f32.gmra.mxu2 %vm299_vm0, %v10366_v9 }
 0x385   : > { %8608 = vmatmul.msk.f32.gmra.mxu1 %vm299_vm0, %v10388_v0  ;;  %8576 = vmatmul.msk.f32.gmra.mxu0 %vm299_vm0, %v3813_v57  ;;  %v3814_v0 = vld [vmem:[#allocation2 + $0xe0] sm:$0xff] }
 0x386   : > { %v2969_v60 = vadd.f32 %v2929_v43, %v2694_v34  ;;  %v10799_v43 = vld [vmem:[#allocation3 + $0xc2] sm:$0xff] }
 0x387   : > { %v3482_v45 = vpop.f32.mrf.mxu2 }
 0x388   : > { %8542 = vmatmul.msk.f32.gmra.mxu3 %vm299_vm0, %v10784_v55  ;;  %v3244_v18 = vadd.f32 %v3204_v2, %v2969_v60  ;;  %v3815_v60 = vld [vmem:[#allocation2 + $0xf0] sm:$0xff] }
 0x38a   : > { %v3210_v22 = vpop.f32.mrf.mxu1  ;;  %v10792_v9 = vadd.f32 %v3479_v24, %v3244_v18  ;;  %v2938_v3 = vpop.f32.mrf.mxu0 }
 0x38b   : > { %v2657_v63 = vpop.f32.mrf.mxu3 }
 0x38c   : > { %v2695_v52 = vadd.f32 %v2657_v63, %v12882_v31  ;;  %8642 = vmatmul.msk.f32.gmra.mxu2 %vm299_vm0, %v10381_v7  ;;  %v12883_v7 = vld [vmem:[#allocation22_spill] sm:$0xff] }
 0x38d   : > { %8609 = vmatmul.msk.f32.gmra.mxu1 %vm299_vm0, %v10403_v8  ;;  %8577 = vmatmul.msk.f32.gmra.mxu0 %vm299_vm0, %v3814_v0  ;;  %v10811_v8 = vld [vmem:[#allocation3 + $0xca] sm:$0xff] }
 0x38e   : > { %v2970_v57 = vadd.f32 %v2932_v49, %v2695_v52  ;;  %v3816_v52 = vld [vmem:[#allocation2 + $0xf8] sm:$0xff] }
 0x38f   : > { %v3485_v2 = vpop.f32.mrf.mxu2 }
 0x390   : > { %8543 = vmatmul.msk.f32.gmra.mxu3 %vm299_vm0, %v10799_v43  ;;  %v3245_v24 = vadd.f32 %v3207_v37, %v2970_v57 }
 0x392   : > { %v3213_v62 = vpop.f32.mrf.mxu1  ;;  %v10804_v23 = vadd.f32 %v3482_v45, %v3245_v24  ;;  %v3946_v34 = vpop.f32.mrf.mxu0 }
 0x393   : > { %v2660_v29 = vpop.f32.mrf.mxu3 }
 0x394   : > { %v2696_v18 = vadd.f32 %v2660_v29, %v12883_v7  ;;  %8643 = vmatmul.msk.f32.gmra.mxu2 %vm299_vm0, %v10396_v14  ;;  %v12884_v14 = vld [vmem:[#allocation18_spill] sm:$0xff]  ;;  %v12885_v29 = vld [vmem:[#allocation20_spill] sm:$0xff] }
 0x395   : > { %8610 = vmatmul.msk.f32.gmra.mxu1 %vm299_vm0, %v10418_v41  ;;  %8578 = vmatmul.msk.f32.gmra.mxu0 %vm299_vm0, %v3815_v60  ;;  %v10823_v41 = vld [vmem:[#allocation3 + $0xda] sm:$0xff] }
 0x396   : > { %v2971_v49 = vadd.f32 %v2935_v20, %v2696_v18 }
 0x397   : > { %v3488_v37 = vpop.f32.mrf.mxu2 }
 0x398   : > { %8544 = vmatmul.msk.f32.gmra.mxu3 %vm299_vm0, %v10811_v8  ;;  %v3246_v45 = vadd.f32 %v3210_v22, %v2971_v49  ;;  %v3817_v49 = vld [vmem:[#allocation2 + $0x108] sm:$0xff] }
 0x39a   : > { %v4222_v0 = vpop.f32.mrf.mxu1  ;;  %v10816_v63 = vadd.f32 %v3485_v2, %v3246_v45  ;;  %v3949_v31 = vpop.f32.mrf.mxu0 }
 0x39b   : > { %v2663_v57 = vpop.f32.mrf.mxu3 }
 0x39c   : > { %v2697_v24 = vadd.f32 %v2663_v57, %v12884_v14  ;;  %8644 = vmatmul.msk.f32.gmra.mxu2 %vm299_vm0, %v12885_v29  ;;  %v12887_v57 = vld [vmem:[#allocation25_spill] sm:$0xff] }
 0x39d   : > { %8611 = vmatmul.msk.f32.gmra.mxu1 %vm299_vm0, %v10433_v61  ;;  %8579 = vmatmul.msk.f32.gmra.mxu0 %vm299_vm0, %v3816_v52  ;;  %v12888_v29 = vld [vmem:[#allocation21_spill] sm:$0xff] }
 0x39e   : > { %v2972_v20 = vadd.f32 %v2938_v3, %v2697_v24  ;;  %v10835_v61 = vld [vmem:[#allocation3 + $0xe2] sm:$0xff] }
 0x39f   : > { %v4497_v22 = vpop.f32.mrf.mxu2 }
 0x3a0   : > { %8545 = vmatmul.msk.f32.gmra.mxu3 %vm299_vm0, %v10823_v41  ;;  %v3247_v2 = vadd.f32 %v3213_v62, %v2972_v20 }
 0x3a2   : > { %v4225_v60 = vpop.f32.mrf.mxu1  ;;  %v10828_v7 = vadd.f32 %v3488_v37, %v3247_v2  ;;  %v3952_v18 = vpop.f32.mrf.mxu0  ;;  %v3818_v2 = vld [vmem:[#allocation2 + $0x110] sm:$0xff] }
 0x3a3   : > { %v3670_v45 = vpop.f32.mrf.mxu3 }
 0x3a4   : > { %12886 = vst [vmem:[#allocation46_spill] sm:$0xff] %v10828_v7  ;;  %v3766_v14 = vadd.f32 %v3670_v45, %v12887_v57  ;;  %8645 = vmatmul.msk.f32.gmra.mxu2 %vm299_vm0, %v12888_v29  ;;  %v12890_v57 = vld [vmem:[#allocation23_spill] sm:$0xff]  ;;  %v12891_v7 = vld [vmem:[#allocation24_spill] sm:$0xff] }
 0x3a5   : > { %8612 = vmatmul.msk.f32.gmra.mxu1 %vm299_vm0, %v10448_v30  ;;  %8580 = vmatmul.msk.f32.gmra.mxu0 %vm299_vm0, %v3817_v49  ;;  %v10847_v30 = vld [vmem:[#allocation3 + $0xf2] sm:$0xff] }
 0x3a6   : > { %v4042_v3 = vadd.f32 %v3946_v34, %v3766_v14 }
 0x3a7   : > { %v4500_v62 = vpop.f32.mrf.mxu2 }
 0x3a8   : > { %8546 = vmatmul.msk.f32.gmra.mxu3 %vm299_vm0, %v10835_v61  ;;  %v4318_v37 = vadd.f32 %v4222_v0, %v4042_v3 }
 0x3aa   : > { %v4228_v52 = vpop.f32.mrf.mxu1  ;;  %v10840_v24 = vadd.f32 %v4497_v22, %v4318_v37  ;;  %v3955_v20 = vpop.f32.mrf.mxu0  ;;  %v3819_v37 = vld [vmem:[#allocation2 + $0x120] sm:$0xff] }
 0x3ab   : > { %v3673_v45 = vpop.f32.mrf.mxu3 }
 0x3ac   : > { %12889 = vst [vmem:[#allocation47_spill] sm:$0xff] %v10840_v24  ;;  %v3767_v29 = vadd.f32 %v3673_v45, %v12890_v57  ;;  %8646 = vmatmul.msk.f32.gmra.mxu2 %vm299_vm0, %v12891_v7  ;;  %v12893_v7 = vld [vmem:[#allocation26_spill] sm:$0xff]  ;;  %v12894_v24 = vld [vmem:[#allocation27_spill] sm:$0xff] }
 0x3ad   : > { %8613 = vmatmul.msk.f32.gmra.mxu1 %vm299_vm0, %v10463_v13  ;;  %8581 = vmatmul.msk.f32.gmra.mxu0 %vm299_vm0, %v3818_v2  ;;  %v10859_v13 = vld [vmem:[#allocation3 + $0xfa] sm:$0xff] }
 0x3ae   : > { %v4043_v34 = vadd.f32 %v3949_v31, %v3767_v29 }
 0x3af   : > { %v4503_v0 = vpop.f32.mrf.mxu2 }
 0x3b0   : > { %8547 = vmatmul.msk.f32.gmra.mxu3 %vm299_vm0, %v10847_v30  ;;  %v4319_v22 = vadd.f32 %v4225_v60, %v4043_v34 }
 0x3b2   : > { %v4231_v49 = vpop.f32.mrf.mxu1  ;;  %v10852_v14 = vadd.f32 %v4500_v62, %v4319_v22  ;;  %v3958_v3 = vpop.f32.mrf.mxu0  ;;  %v3820_v22 = vld [vmem:[#allocation2 + $0x128] sm:$0xff] }
 0x3b3   : > { %v3676_v45 = vpop.f32.mrf.mxu3 }
 0x3b4   : > { %12892 = vst [vmem:[#allocation48_spill] sm:$0xff] %v10852_v14  ;;  %v3768_v57 = vadd.f32 %v3676_v45, %v12893_v7  ;;  %8647 = vmatmul.msk.f32.gmra.mxu2 %vm299_vm0, %v12894_v24  ;;  %v12896_v24 = vld [vmem:[#allocation28_spill] sm:$0xff]  ;;  %v12897_v14 = vld [vmem:[#allocation29_spill] sm:$0xff] }
 0x3b5   : > { %8614 = vmatmul.msk.f32.gmra.mxu1 %vm299_vm0, %v10478_v10  ;;  %8582 = vmatmul.msk.f32.gmra.mxu0 %vm299_vm0, %v3819_v37  ;;  %v10871_v10 = vld [vmem:[#allocation3 + $0x10a] sm:$0xff] }
 0x3b6   : > { %v4044_v31 = vadd.f32 %v3952_v18, %v3768_v57 }
 0x3b7   : > { %v4506_v60 = vpop.f32.mrf.mxu2 }
 0x3b8   : > { %8548 = vmatmul.msk.f32.gmra.mxu3 %vm299_vm0, %v10859_v13  ;;  %v4320_v62 = vadd.f32 %v4228_v52, %v4044_v31 }
 0x3ba   : > { %v4234_v2 = vpop.f32.mrf.mxu1  ;;  %v10864_v29 = vadd.f32 %v4503_v0, %v4320_v62  ;;  %v3961_v34 = vpop.f32.mrf.mxu0  ;;  %v3821_v62 = vld [vmem:[#allocation2 + $0x138] sm:$0xff] }
 0x3bb   : > { %v3679_v45 = vpop.f32.mrf.mxu3 }
 0x3bc   : > { %12895 = vst [vmem:[#allocation49_spill] sm:$0xff] %v10864_v29  ;;  %v3769_v7 = vadd.f32 %v3679_v45, %v12896_v24  ;;  %8648 = vmatmul.msk.f32.gmra.mxu2 %vm299_vm0, %v12897_v14  ;;  %v12899_v14 = vld [vmem:[#allocation30_spill] sm:$0xff]  ;;  %v12900_v29 = vld [vmem:[#allocation31_spill] sm:$0xff] }
 0x3bd   : > { %8615 = vmatmul.msk.f32.gmra.mxu1 %vm299_vm0, %v10493_v25  ;;  %8583 = vmatmul.msk.f32.gmra.mxu0 %vm299_vm0, %v3820_v22  ;;  %v12901_v25 = vld [vmem:[#allocation34_spill] sm:$0xff] }
 0x3be   : > { %v4045_v18 = vadd.f32 %v3955_v20, %v3769_v7  ;;  %v10883_v20 = vld [vmem:[#allocation3 + $0x112] sm:$0xff] }
 0x3bf   : > { %v4509_v0 = vpop.f32.mrf.mxu2 }
 0x3c0   : > { %8549 = vmatmul.msk.f32.gmra.mxu3 %vm299_vm0, %v10871_v10  ;;  %v4321_v52 = vadd.f32 %v4231_v49, %v4045_v18 }
 0x3c2   : > { %v4237_v37 = vpop.f32.mrf.mxu1  ;;  %v10876_v57 = vadd.f32 %v4506_v60, %v4321_v52  ;;  %v3964_v31 = vpop.f32.mrf.mxu0  ;;  %v8761_v60 = vld [vmem:[%s12636_s5 + $0x30] sm:$0xff]  ;;  %v3822_v52 = vld [vmem:[#allocation2 + $0x140] sm:$0xff] }
 0x3c3   : > { %v3682_v45 = vpop.f32.mrf.mxu3  ;;  %5733 = vmatpush.msra.mxu2 %v8761_v60 }
 0x3c4   : > { %12898 = vst [vmem:[#allocation5_spill] sm:$0xff] %v10876_v57  ;;  %v3770_v24 = vadd.f32 %v3682_v45, %v12899_v14  ;;  %8649 = vmatmul.msk.f32.gmra.mxu2 %vm299_vm0, %v12900_v29 }
 0x3c5   : > { %8616 = vmatmul.msk.f32.gmra.mxu1 %vm299_vm0, %v12901_v25  ;;  %8584 = vmatmul.msk.f32.gmra.mxu0 %vm299_vm0, %v3821_v62  ;;  %v12903_v25 = vld [vmem:[#allocation32_spill] sm:$0xff]  ;;  %v12904_v62 = vld [vmem:[#allocation33_spill] sm:$0xff] }
 0x3c6   : > { %v4046_v49 = vadd.f32 %v3958_v3, %v3770_v24  ;;  %v10898_v3 = vld [vmem:[#allocation3 + $0x122] sm:$0xff] }
 0x3c7   : > { %v4512_v14 = vpop.f32.mrf.mxu2 }
 0x3c8   : > { %8550 = vmatmul.msk.f32.gmra.mxu3 %vm299_vm0, %v10883_v20  ;;  %v4322_v22 = vadd.f32 %v4234_v2, %v4046_v49 }
 0x3ca   : > { %v4240_v7 = vpop.f32.mrf.mxu1  ;;  %v10891_v18 = vadd.f32 %v4509_v0, %v4322_v22  ;;  %v3967_v29 = vpop.f32.mrf.mxu0  ;;  %v3823_v22 = vld [vmem:[#allocation2 + $0x150] sm:$0xff] }
 0x3cb   : > { %v3685_v45 = vpop.f32.mrf.mxu3 }
 0x3cc   : > { %12902 = vst [vmem:[#allocation6_spill] sm:$0xff] %v10891_v18  ;;  %v3771_v57 = vadd.f32 %v3685_v45, %v12903_v25  ;;  %8650 = vmatmul.msk.f32.gmra.mxu2 %vm299_vm0, %v12904_v62  ;;  %v12906_v25 = vld [vmem:[#allocation35_spill] sm:$0xff]  ;;  %v12907_v18 = vld [vmem:[#allocation36_spill] sm:$0xff] }
 0x3cd   : > { %8617 = vmatmul.msk.f32.gmra.mxu1 %vm299_vm0, %v10523_v44  ;;  %8585 = vmatmul.msk.f32.gmra.mxu0 %vm299_vm0, %v3822_v52  ;;  %v10910_v44 = vld [vmem:[#allocation3 + $0x12a] sm:$0xff] }
 0x3ce   : > { %v4047_v2 = vadd.f32 %v3961_v34, %v3771_v57 }
 0x3cf   : > { %v4515_v34 = vpop.f32.mrf.mxu2 }
 0x3d0   : > { %8551 = vmatmul.msk.f32.gmra.mxu3 %vm299_vm0, %v10898_v3  ;;  %v4323_v0 = vadd.f32 %v4237_v37, %v4047_v2 }
 0x3d2   : > { %v4243_v24 = vpop.f32.mrf.mxu1  ;;  %v10903_v49 = vadd.f32 %v4512_v14, %v4323_v0  ;;  %v3970_v60 = vpop.f32.mrf.mxu0  ;;  %v3824_v0 = vld [vmem:[#allocation2 + $0x158] sm:$0xff] }
 0x3d3   : > { %v3688_v45 = vpop.f32.mrf.mxu3 }
 0x3d4   : > { %12905 = vst [vmem:[#allocation9_spill] sm:$0xff] %v10903_v49  ;;  %v3772_v62 = vadd.f32 %v3688_v45, %v12906_v25  ;;  %8651 = vmatmul.msk.f32.gmra.mxu2 %vm299_vm0, %v12907_v18  ;;  %v12909_v18 = vld [vmem:[#allocation37_spill] sm:$0xff]  ;;  %v12910_v49 = vld [vmem:[#allocation38_spill] sm:$0xff] }
 0x3d5   : > { %8618 = vmatmul.msk.f32.gmra.mxu1 %vm299_vm0, %v10539_v40  ;;  %8586 = vmatmul.msk.f32.gmra.mxu0 %vm299_vm0, %v3823_v22  ;;  %v10922_v40 = vld [vmem:[#allocation3 + $0x13a] sm:$0xff] }
 0x3d6   : > { %v4048_v37 = vadd.f32 %v3964_v31, %v3772_v62  ;;  %v4375_v62 = vld [vmem:[#allocation2 + $0x159] sm:$0xff] }
 0x3d8   : > { %8552 = vmatmul.msk.f32.gmra.mxu3 %vm299_vm0, %v10910_v44  ;;  %v4324_v57 = vadd.f32 %v4240_v7, %v4048_v37  ;;  %v4518_v7 = vpop.f32.mrf.mxu2 }
 0x3da   : > { %v4246_v52 = vpop.f32.mrf.mxu1  ;;  %v10915_v14 = vadd.f32 %v4515_v34, %v4324_v57  ;;  %v3973_v2 = vpop.f32.mrf.mxu0 }
 0x3db   : > { %v3691_v45 = vpop.f32.mrf.mxu3 }
 0x3dc   : > { %12908 = vst [vmem:[#allocation7_spill] sm:$0xff] %v10915_v14  ;;  %v3773_v25 = vadd.f32 %v3691_v45, %v12909_v18  ;;  %8652 = vmatmul.msk.f32.gmra.mxu2 %vm299_vm0, %v12910_v49  ;;  %v3825_v45 = vld [vmem:[#allocation2 + $0x168] sm:$0xff]  ;;  %v12911_v18 = vld [vmem:[#allocation39_spill] sm:$0xff] }
 0x3dd   : > { %8619 = vmatmul.msk.f32.gmra.mxu1 %vm299_vm0, %v10554_v46  ;;  %8587 = vmatmul.msk.f32.gmra.mxu0 %vm299_vm0, %v3824_v0  ;;  %v10933_v46 = vld [vmem:[#allocation3 + $0x142] sm:$0xff]  ;;  %v4376_v0 = vld [vmem:[#allocation2 + $0x169] sm:$0xff] }
 0x3de   : > { %v4049_v31 = vadd.f32 %v3967_v29, %v3773_v25 }
 0x3e0   : > { %8553 = vmatmul.msk.f32.gmra.mxu3 %vm299_vm0, %v10922_v40  ;;  %v4325_v22 = vadd.f32 %v4243_v24, %v4049_v31 }
 0x3e2   : > { %v4249_v34 = vpop.f32.mrf.mxu1  ;;  %v10927_v37 = vadd.f32 %v4518_v7, %v4325_v22  ;;  %v3976_v57 = vpop.f32.mrf.mxu0  ;;  %v3826_v7 = vld [vmem:[#allocation2 + $0x170] sm:$0xff] }
 0x3e3   : > { %v3694_v49 = vpop.f32.mrf.mxu3 }
 0x3e4   : > { %v3774_v14 = vadd.f32 %v3694_v49, %v12911_v18  ;;  %8653 = vmatmul.msk.f32.gmra.mxu2 %vm299_vm0, %v4375_v62  ;;  %v12912_v49 = vld [vmem:[#allocation40_spill] sm:$0xff] }
 0x3e5   : > { %8620 = vmatmul.msk.f32.gmra.mxu1 %vm299_vm0, %v10567_v51  ;;  %8588 = vmatmul.msk.f32.gmra.mxu0 %vm299_vm0, %v3825_v45  ;;  %v10944_v51 = vld [vmem:[#allocation3 + $0x152] sm:$0xff] }
 0x3e6   : > { %v4050_v29 = vadd.f32 %v3970_v60, %v3774_v14  ;;  %v4377_v14 = vld [vmem:[#allocation2 + $0x171] sm:$0xff] }
 0x3e8   : > { %8554 = vmatmul.msk.f32.gmra.mxu3 %vm299_vm0, %v10933_v46  ;;  %v10938_v24 = vadd.f32 %v4246_v52, %v4050_v29  ;;  %v3827_v29 = vld [vmem:[#allocation2 + $0x180] sm:$0xff] }
 0x3ea   : > { %v4252_v25 = vpop.f32.mrf.mxu1  ;;  %v3979_v31 = vpop.f32.mrf.mxu0 }
 0x3eb   : > { %v3697_v22 = vpop.f32.mrf.mxu3 }
 0x3ec   : > { %v3775_v62 = vadd.f32 %v3697_v22, %v12912_v49  ;;  %8654 = vmatmul.msk.f32.gmra.mxu2 %vm299_vm0, %v4376_v0  ;;  %v10955_v49 = vld [vmem:[#allocation3 + $0x15a] sm:$0xff] }
 0x3ed   : > { %8621 = vmatmul.msk.f32.gmra.mxu1 %vm299_vm0, %v10579_v4  ;;  %8589 = vmatmul.msk.f32.gmra.mxu0 %vm299_vm0, %v3826_v7  ;;  %v12914_v4 = vld [vmem:[#allocation42_spill] sm:$0xff]  ;;  %v4378_v7 = vld [vmem:[#allocation2 + $0x181] sm:$0xff] }
 0x3ee   : > { %v4051_v60 = vadd.f32 %v3973_v2, %v3775_v62 }
 0x3f0   : > { %8555 = vmatmul.msk.f32.gmra.mxu3 %vm299_vm0, %v10944_v51  ;;  %v10949_v52 = vadd.f32 %v4249_v34, %v4051_v60 }
 0x3f2   : > { %12913 = vst [vmem:[#allocation8_spill] sm:$0xff] %v10949_v52  ;;  %v4255_v45 = vpop.f32.mrf.mxu1  ;;  %v3982_v18 = vpop.f32.mrf.mxu0  ;;  %v3828_v52 = vld [vmem:[#allocation2 + $0x188] sm:$0xff] }
 0x3f3   : > { %v3700_v22 = vpop.f32.mrf.mxu3 }
 0x3f4   : > { %v3776_v0 = vadd.f32 %v3700_v22, %v10572_v27  ;;  %8655 = vmatmul.msk.f32.gmra.mxu2 %vm299_vm0, %v4377_v14  ;;  %v12916_v22 = vld [vmem:[#allocation41_spill] sm:$0xff] }
 0x3f5   : > { %8622 = vmatmul.msk.f32.gmra.mxu1 %vm299_vm0, %v12914_v4  ;;  %8590 = vmatmul.msk.f32.gmra.mxu0 %vm299_vm0, %v3827_v29  ;;  %v10966_v4 = vld [vmem:[#allocation3 + $0x16a] sm:$0xff] }
 0x3f6   : > { %v4052_v2 = vadd.f32 %v3976_v57, %v3776_v0  ;;  %12917 = vst [vmem:[#allocation10_spill] sm:$0xff] %v10966_v4 }
 0x3f8   : > { %8556 = vmatmul.msk.f32.gmra.mxu3 %vm299_vm0, %v10955_v49  ;;  %v10960_v34 = vadd.f32 %v4252_v25, %v4052_v2  ;;  %v3829_v2 = vld [vmem:[#allocation2 + $0x198] sm:$0xff] }
 0x3fa   : > { %12915 = vst [vmem:[#allocation12_spill] sm:$0xff] %v10960_v34  ;;  %v4258_v62 = vpop.f32.mrf.mxu1  ;;  %v3985_v60 = vpop.f32.mrf.mxu0 }
 0x3fb   : > { %v3703_v27 = vpop.f32.mrf.mxu3 }
 0x3fc   : > { %v3777_v14 = vadd.f32 %v3703_v27, %v12916_v22  ;;  %8656 = vmatmul.msk.f32.gmra.mxu2 %vm299_vm0, %v4378_v7  ;;  %v12919_v27 = vld [vmem:[#allocation43_spill] sm:$0xff]  ;;  %v12920_v7 = vld [vmem:[#allocation44_spill] sm:$0xff] }
 0x3fd   : > { %8623 = vmatmul.msk.f32.gmra.mxu1 %vm299_vm0, %v10611_v38  ;;  %8591 = vmatmul.msk.f32.gmra.mxu0 %vm299_vm0, %v3828_v52  ;;  %v10978_v38 = vld [vmem:[#allocation3 + $0x172] sm:$0xff] }
 0x3fe   : > { %v4053_v57 = vadd.f32 %v3979_v31, %v3777_v14  ;;  %12921 = vst [vmem:[#allocation13_spill] sm:$0xff] %v10978_v38  ;;  %v8760_v52 = vld [vmem:[%s12636_s5 + $0x28] sm:$0xff] }
 0x3ff   : > { %5734 = vmatpush.msra.mxu2 %v8760_v52  ;;  %v4106_v52 = vld [vmem:[#allocation3 + $0x1a0] sm:$0xff] }
 0x400   : > { %8557 = vmatmul.msk.f32.gmra.mxu3 %vm299_vm0, %v10966_v4  ;;  %v10971_v25 = vadd.f32 %v4255_v45, %v4053_v57  ;;  %v4105_v57 = vld [vmem:[#allocation3 + $0x198] sm:$0xff] }
 0x402   : > { %12918 = vst [vmem:[#allocation11_spill] sm:$0xff] %v10971_v25  ;;  %v4261_v29 = vpop.f32.mrf.mxu1  ;;  %v3988_v0 = vpop.f32.mrf.mxu0  ;;  %v12923_v25 = vld [vmem:[#allocation45_spill] sm:$0xff] }
 0x403   : > { %v3706_v34 = vpop.f32.mrf.mxu3 }
 0x404   : > { %v3778_v22 = vadd.f32 %v3706_v34, %v12919_v27  ;;  %8657 = vmatmul.msk.f32.gmra.mxu2 %vm299_vm0, %v12920_v7  ;;  %v4380_v34 = vld [vmem:[#allocation2 + $0x199] sm:$0xff] }
 0x405   : > { %8624 = vmatmul.msk.f32.gmra.mxu1 %vm299_vm0, %v10622_v39  ;;  %8592 = vmatmul.msk.f32.gmra.mxu0 %vm299_vm0, %v3829_v2  ;;  %v3830_v39 = vld [vmem:[#allocation2 + $0x1a0] sm:$0xff] }
 0x406   : > { %v4054_v31 = vadd.f32 %v3982_v18, %v3778_v22  ;;  %v10991_v18 = vld [vmem:[#allocation3 + $0x182] sm:$0xff]  ;;  %v4381_v22 = vld [vmem:[#allocation2 + $0x1a1] sm:$0xff] }
 0x408   : > { %8558 = vmatmul.msk.f32.gmra.mxu3 %vm299_vm0, %v10978_v38  ;;  %v10986_v45 = vadd.f32 %v4258_v62, %v4054_v31  ;;  %v4900_v38 = vld [vmem:[#allocation2 + $0x32] sm:$0xff] }
 0x40a   : > { %12922 = vst [vmem:[#allocation50_spill] sm:$0xff] %v10986_v45  ;;  %v4264_v14 = vpop.f32.mrf.mxu1  ;;  %v3991_v27 = vpop.f32.mrf.mxu0 }
 0x40b   : > { %v3709_v7 = vpop.f32.mrf.mxu3 }
 0x40c   : > { %v3779_v4 = vadd.f32 %v3709_v7, %v12923_v25  ;;  %8658 = vmatmul.msk.f32.gmra.mxu2 %vm299_vm0, %v4380_v34  ;;  %v4901_v7 = vld [vmem:[#allocation2 + $0x3a] sm:$0xff] }
 0x40d   : > { %8625 = vmatmul.msk.f32.gmra.mxu1 %vm299_vm0, %v4105_v57  ;;  %8593 = vmatmul.msk.f32.gmra.mxu0 %vm299_vm0, %v3830_v39  ;;  %v11001_v57 = vld [vmem:[#allocation3 + $0x18a] sm:$0xff] }
 0x40e   : > { %v4055_v2 = vadd.f32 %v3985_v60, %v3779_v4 }
 0x410   : > { %8559 = vmatmul.msk.f32.gmra.mxu3 %vm299_vm0, %v10991_v18  ;;  %v10996_v62 = vadd.f32 %v4261_v29, %v4055_v2 }
 0x412   : > { %v4267_v31 = vpop.f32.mrf.mxu1  ;;  %v3994_v45 = vpop.f32.mrf.mxu0 }
 0x413   : > { %v3712_v25 = vpop.f32.mrf.mxu3 }
 0x414   : > { %v3780_v34 = vadd.f32 %v3712_v25, %v10627_v59  ;;  %8659 = vmatmul.msk.f32.gmra.mxu2 %vm299_vm0, %v4381_v22  ;;  %v4625_v22 = vld [vmem:[#allocation3 + $0x31] sm:$0xff]  ;;  %v4902_v25 = vld [vmem:[#allocation2 + $0x4a] sm:$0xff] }
 0x415   : > { %8626 = vmatmul.msk.f32.gmra.mxu1 %vm299_vm0, %v4106_v52  ;;  %8694 = vmatmul.msk.f32.vlgmr.msra.gmra.mxu0 %vm299_vm0, %v4900_v38 }
 0x416   : > { %v4056_v60 = vadd.f32 %v3988_v0, %v3780_v34 }
 0x418   : > { %8560 = vmatmul.msk.f32.gmra.mxu3 %vm299_vm0, %v11001_v57  ;;  %v11006_v4 = vadd.f32 %v4264_v14, %v4056_v60 }
 0x41a   : > { %v4270_v29 = vpop.f32.mrf.mxu1  ;;  %v3997_v39 = vpop.f32.mrf.mxu0 }
 0x41b   : > { %v3715_v2 = vpop.f32.mrf.mxu3 }
 0x41c   : > { %v3781_v59 = vadd.f32 %v3715_v2, %v10636_v28  ;;  %v4626_v28 = vld [vmem:[#allocation3 + $0x39] sm:$0xff]  ;;  %v4903_v2 = vld [vmem:[#allocation2 + $0x52] sm:$0xff] }
 0x41d   : > { %8727 = vmatmul.msk.f32.vlgmr.msra.gmra.mxu1 %vm299_vm0, %v10652_v53  ;;  %8695 = vmatmul.msk.f32.gmra.mxu0 %vm299_vm0, %v4901_v7 }
 0x41e   : > { %v4057_v52 = vadd.f32 %v3991_v27, %v3781_v59 }
 0x420   : > { %8661 = vmatmul.msk.f32.vlgmr.msra.gmra.mxu3 %vm299_vm0, %v4625_v22  ;;  %v11013_v0 = vadd.f32 %v4267_v31, %v4057_v52 }
 0x422   : > { %v4273_v38 = vpop.f32.mrf.mxu1  ;;  %v4000_v14 = vpop.f32.mrf.mxu0 }
 0x423   : > { %v3718_v34 = vpop.f32.mrf.mxu3 }
 0x424   : > { %v3782_v60 = vadd.f32 %v3718_v34, %v10645_v33  ;;  %v4627_v33 = vld [vmem:[#allocation3 + $0x49] sm:$0xff] }
 0x425   : > { %8728 = vmatmul.msk.f32.gmra.mxu1 %vm299_vm0, %v10664_v6  ;;  %8696 = vmatmul.msk.f32.gmra.mxu0 %vm299_vm0, %v4902_v25  ;;  %v4904_v25 = vld [vmem:[#allocation2 + $0x62] sm:$0xff] }
 0x426   : > { %v4058_v53 = vadd.f32 %v3994_v45, %v3782_v60 }
 0x428   : > { %8662 = vmatmul.msk.f32.gmra.mxu3 %vm299_vm0, %v4626_v28  ;;  %v11020_v27 = vadd.f32 %v4270_v29, %v4058_v53  ;;  %v11033_v28 = vpop.f32.mrf.mxu2 }
 0x42a   : > { %v4276_v7 = vpop.f32.mrf.mxu1  ;;  %v4003_v31 = vpop.f32.mrf.mxu0 }
 0x42b   : > { %v3721_v59 = vpop.f32.mrf.mxu3 }
 0x42c   : > { %v3783_v22 = vadd.f32 %v3721_v59, %v10657_v36  ;;  %v4628_v36 = vld [vmem:[#allocation3 + $0x51] sm:$0xff] }
 0x42d   : > { %8729 = vmatmul.msk.f32.gmra.mxu1 %vm299_vm0, %v10676_v16  ;;  %8697 = vmatmul.msk.f32.gmra.mxu0 %vm299_vm0, %v4903_v2  ;;  %v4905_v2 = vld [vmem:[#allocation2 + $0x6a] sm:$0xff] }
 0x42e   : > { %v4059_v6 = vadd.f32 %v3997_v39, %v3783_v22 }
 0x430   : > { %8663 = vmatmul.msk.f32.gmra.mxu3 %vm299_vm0, %v4627_v33  ;;  %v11027_v45 = vadd.f32 %v4273_v38, %v4059_v6  ;;  %v11045_v33 = vpop.f32.mrf.mxu2 }
 0x432   : > { %v4279_v52 = vpop.f32.mrf.mxu1  ;;  %v4006_v29 = vpop.f32.mrf.mxu0 }
 0x433   : > { %v3724_v34 = vpop.f32.mrf.mxu3 }
 0x434   : > { %v3784_v60 = vadd.f32 %v3724_v34, %v10669_v54  ;;  %v4629_v54 = vld [vmem:[#allocation3 + $0x61] sm:$0xff] }
 0x435   : > { %8730 = vmatmul.msk.f32.gmra.mxu1 %vm299_vm0, %v10688_v12  ;;  %8698 = vmatmul.msk.f32.gmra.mxu0 %vm299_vm0, %v4904_v25  ;;  %v4906_v25 = vld [vmem:[#allocation2 + $0x7a] sm:$0xff] }
 0x436   : > { %v4060_v16 = vadd.f32 %v4000_v14, %v3784_v60 }
 0x438   : > { %8664 = vmatmul.msk.f32.gmra.mxu3 %vm299_vm0, %v4628_v36  ;;  %v11036_v39 = vadd.f32 %v4276_v7, %v4060_v16 }
 0x43a   : > { %v4282_v38 = vpop.f32.mrf.mxu1  ;;  %v4009_v53 = vpop.f32.mrf.mxu0 }
 0x43b   : > { %v3727_v59 = vpop.f32.mrf.mxu3 }
 0x43c   : > { %v3785_v22 = vadd.f32 %v3727_v59, %v10681_v11  ;;  %v4630_v11 = vld [vmem:[#allocation3 + $0x69] sm:$0xff] }
 0x43d   : > { %8731 = vmatmul.msk.f32.gmra.mxu1 %vm299_vm0, %v10700_v19  ;;  %8699 = vmatmul.msk.f32.gmra.mxu0 %vm299_vm0, %v4905_v2  ;;  %v4907_v2 = vld [vmem:[#allocation2 + $0x82] sm:$0xff] }
 0x43e   : > { %v4061_v12 = vadd.f32 %v4003_v31, %v3785_v22  ;;  %v8759_v31 = vld [vmem:[%s12636_s5 + $0x20] sm:$0xff] }
 0x43f   : > { %5735 = vmatpush.msra.mxu2 %v8759_v31  ;;  %v4909_v31 = vld [vmem:[#allocation2 + $0x9a] sm:$0xff] }
 0x440   : > { %8665 = vmatmul.msk.f32.gmra.mxu3 %vm299_vm0, %v4629_v54  ;;  %v11043_v14 = vadd.f32 %v4279_v52, %v4061_v12 }
 0x442   : > { %v4285_v7 = vpop.f32.mrf.mxu1  ;;  %v4012_v6 = vpop.f32.mrf.mxu0 }
 0x443   : > { %v3730_v34 = vpop.f32.mrf.mxu3 }
 0x444   : > { %v3786_v60 = vadd.f32 %v3730_v34, %v10693_v15  ;;  %v11057_v15 = vpop.f32.mrf.mxu2 }
 0x445   : > { %8732 = vmatmul.msk.f32.gmra.mxu1 %vm299_vm0, %v10712_v26  ;;  %8700 = vmatmul.msk.f32.gmra.mxu0 %vm299_vm0, %v4906_v25  ;;  %v4908_v25 = vld [vmem:[#allocation2 + $0x92] sm:$0xff] }
 0x446   : > { %v4062_v19 = vadd.f32 %v4006_v29, %v3786_v60  ;;  %v4631_v29 = vld [vmem:[#allocation3 + $0x79] sm:$0xff] }
 0x448   : > { %8666 = vmatmul.msk.f32.gmra.mxu3 %vm299_vm0, %v4630_v11  ;;  %v11055_v52 = vadd.f32 %v4282_v38, %v4062_v19 }
 0x44a   : > { %v4288_v36 = vpop.f32.mrf.mxu1  ;;  %v4015_v16 = vpop.f32.mrf.mxu0 }
 0x44b   : > { %v3733_v59 = vpop.f32.mrf.mxu3 }
 0x44c   : > { %v3787_v26 = vadd.f32 %v3733_v59, %v10705_v21  ;;  %v11067_v11 = vpop.f32.mrf.mxu2  ;;  %v4632_v21 = vld [vmem:[#allocation3 + $0x81] sm:$0xff] }
 0x44d   : > { %8733 = vmatmul.msk.f32.gmra.mxu1 %vm299_vm0, %v10724_v42  ;;  %8701 = vmatmul.msk.f32.gmra.mxu0 %vm299_vm0, %v4907_v2 }
 0x44e   : > { %v4063_v22 = vadd.f32 %v4009_v53, %v3787_v26 }
 0x450   : > { %8667 = vmatmul.msk.f32.gmra.mxu3 %vm299_vm0, %v4631_v29  ;;  %v11064_v54 = vadd.f32 %v4285_v7, %v4063_v22  ;;  %v4910_v22 = vld [vmem:[#allocation2 + $0xaa] sm:$0xff] }
 0x452   : > { %v4291_v38 = vpop.f32.mrf.mxu1  ;;  %v4018_v12 = vpop.f32.mrf.mxu0 }
 0x453   : > { %v3736_v34 = vpop.f32.mrf.mxu3 }
 0x454   : > { %v3788_v60 = vadd.f32 %v3736_v34, %v10717_v35  ;;  %v4633_v35 = vld [vmem:[#allocation3 + $0x91] sm:$0xff]  ;;  %v11079_v26 = vpop.f32.mrf.mxu2 }
 0x455   : > { %8734 = vmatmul.msk.f32.gmra.mxu1 %vm299_vm0, %v10736_v1  ;;  %8702 = vmatmul.msk.f32.gmra.mxu0 %vm299_vm0, %v4908_v25 }
 0x456   : > { %v4064_v42 = vadd.f32 %v4012_v6, %v3788_v60 }
 0x458   : > { %8668 = vmatmul.msk.f32.gmra.mxu3 %vm299_vm0, %v4632_v21  ;;  %v11073_v53 = vadd.f32 %v4288_v36, %v4064_v42  ;;  %v4911_v42 = vld [vmem:[#allocation2 + $0xb2] sm:$0xff] }
 0x45a   : > { %v4294_v7 = vpop.f32.mrf.mxu1  ;;  %v4021_v19 = vpop.f32.mrf.mxu0 }
 0x45b   : > { %v3739_v2 = vpop.f32.mrf.mxu3 }
 0x45c   : > { %v3789_v59 = vadd.f32 %v3739_v2, %v10729_v48  ;;  %v4634_v48 = vld [vmem:[#allocation3 + $0x99] sm:$0xff]  ;;  %v11091_v60 = vpop.f32.mrf.mxu2 }
 0x45d   : > { %8735 = vmatmul.msk.f32.gmra.mxu1 %vm299_vm0, %v10748_v32  ;;  %8703 = vmatmul.msk.f32.gmra.mxu0 %vm299_vm0, %v4909_v31 }
 0x45e   : > { %v4065_v1 = vadd.f32 %v4015_v16, %v3789_v59 }
 0x460   : > { %8669 = vmatmul.msk.f32.gmra.mxu3 %vm299_vm0, %v4633_v35  ;;  %v11082_v6 = vadd.f32 %v4291_v38, %v4065_v1  ;;  %v4912_v35 = vld [vmem:[#allocation2 + $0xc2] sm:$0xff] }
 0x462   : > { %v4297_v36 = vpop.f32.mrf.mxu1  ;;  %v4024_v29 = vpop.f32.mrf.mxu0 }
 0x463   : > { %v3742_v25 = vpop.f32.mrf.mxu3 }
 0x464   : > { %v3790_v34 = vadd.f32 %v3742_v25, %v10741_v17  ;;  %v4635_v17 = vld [vmem:[#allocation3 + $0xa9] sm:$0xff]  ;;  %v11100_v1 = vpop.f32.mrf.mxu2 }
 0x465   : > { %8736 = vmatmul.msk.f32.gmra.mxu1 %vm299_vm0, %v10760_v56  ;;  %8704 = vmatmul.msk.f32.gmra.mxu0 %vm299_vm0, %v4910_v22 }
 0x466   : > { %v4066_v32 = vadd.f32 %v4018_v12, %v3790_v34 }
 0x468   : > { %8670 = vmatmul.msk.f32.gmra.mxu3 %vm299_vm0, %v4634_v48  ;;  %v11089_v16 = vadd.f32 %v4294_v7, %v4066_v32  ;;  %v4913_v48 = vld [vmem:[#allocation2 + $0xca] sm:$0xff] }
 0x46a   : > { %v4300_v38 = vpop.f32.mrf.mxu1  ;;  %v4027_v21 = vpop.f32.mrf.mxu0 }
 0x46b   : > { %v3745_v31 = vpop.f32.mrf.mxu3 }
 0x46c   : > { %v3791_v2 = vadd.f32 %v3745_v31, %v10753_v5  ;;  %v4636_v5 = vld [vmem:[#allocation3 + $0xb1] sm:$0xff]  ;;  %v11110_v31 = vpop.f32.mrf.mxu2 }
 0x46d   : > { %8737 = vmatmul.msk.f32.gmra.mxu1 %vm299_vm0, %v10772_v58  ;;  %8705 = vmatmul.msk.f32.gmra.mxu0 %vm299_vm0, %v4911_v42 }
 0x46e   : > { %v4067_v56 = vadd.f32 %v4021_v19, %v3791_v2 }
 0x470   : > { %8671 = vmatmul.msk.f32.gmra.mxu3 %vm299_vm0, %v4635_v17  ;;  %v11098_v12 = vadd.f32 %v4297_v36, %v4067_v56  ;;  %v4914_v17 = vld [vmem:[#allocation2 + $0xda] sm:$0xff] }
 0x472   : > { %v4303_v7 = vpop.f32.mrf.mxu1  ;;  %v4030_v59 = vpop.f32.mrf.mxu0 }
 0x473   : > { %v3748_v22 = vpop.f32.mrf.mxu3 }
 0x474   : > { %v3792_v25 = vadd.f32 %v3748_v22, %v10765_v50  ;;  %v4637_v50 = vld [vmem:[#allocation3 + $0xc1] sm:$0xff]  ;;  %v11133_v22 = vpop.f32.mrf.mxu2 }
 0x475   : > { %8738 = vmatmul.msk.f32.gmra.mxu1 %vm299_vm0, %v10784_v55  ;;  %8706 = vmatmul.msk.f32.gmra.mxu0 %vm299_vm0, %v4912_v35 }
 0x476   : > { %v4068_v58 = vadd.f32 %v4024_v29, %v3792_v25 }
 0x478   : > { %8672 = vmatmul.msk.f32.gmra.mxu3 %vm299_vm0, %v4636_v5  ;;  %v11107_v19 = vadd.f32 %v4300_v38, %v4068_v58  ;;  %v12924_v38 = vmov 0.0   ;;  %v4915_v58 = vld [vmem:[#allocation2 + $0xe2] sm:$0xff] }
 0x479   : > { %389 = vst.msk [vmem:[#allocation4] sm:$0xff] %vm388_vm3, %v12924_v38 }
 0x47a   : > { %v4306_v36 = vpop.f32.mrf.mxu1  ;;  %v4033_v34 = vpop.f32.mrf.mxu0  ;;  %390 = vst.msk [vmem:[#allocation4 + $0x8] sm:$0xff] %vm388_vm3, %v12924_v38 }
 0x47b   : > { %v3751_v32 = vpop.f32.mrf.mxu3  ;;  %394 = vst.msk [vmem:[#allocation4 + $0x198] sm:$0xff] %vm388_vm3, %v12924_v38 }
 0x47c   : > { %v3793_v42 = vadd.f32 %v3751_v32, %v10777_v47  ;;  %395 = vst.msk [vmem:[#allocation4 + $0x1a0] sm:$0xff] %vm388_vm3, %v12924_v38  ;;  %v4639_v32 = vld [vmem:[#allocation3 + $0xd9] sm:$0xff] }
 0x47d   : > { %8739 = vmatmul.msk.f32.gmra.mxu1 %vm299_vm0, %v10799_v43  ;;  %8707 = vmatmul.msk.f32.gmra.mxu0 %vm299_vm0, %v4913_v48  ;;  %v5586_v43 = vld [vmem:[%s12636_s5 + $0x18] sm:$0xff]  ;;  %392 = vst.msk [vmem:[#allocation4 + $0x10] sm:$0x3] %vm391_vm4, %v12924_v38 }
 0x47e   : > { %v4069_v55 = vadd.f32 %v4027_v21, %v3793_v42  ;;  %5941 = vmatpush.msrb.mxu3 %v5586_v43  ;;  %396 = vst.msk [vmem:[#allocation4 + $0x1a8] sm:$0x3] %vm391_vm4, %v12924_v38  ;;  %v8902_v42 = vld [vmem:[%s12636_s5 + $0x98] sm:$0xff] }
 0x47f   : > { %6743 = vmatpush.msrb.mxu2 %v8902_v42  ;;  %399 = vst.msk [vmem:[#allocation4 + $0x18] sm:$0x1] %vm397_vm5, %v12924_v38 }
 0x480   : > { %8673 = vmatmul.msk.f32.gmra.mxu3 %vm299_vm0, %v4637_v50  ;;  %v11116_v29 = vadd.f32 %v4303_v7, %v4069_v55  ;;  %v4638_v7 = vld [vmem:[#allocation3 + $0xc9] sm:$0xff]  ;;  %398 = vst.msk [vmem:[#allocation4] sm:$0x1] %vm397_vm5, %v12924_v38 }
 0x481   : > { %v5587_v5 = vld [vmem:[#allocation4 + $0x1] sm:$0xff]  ;;  %v8830_v50 = vld [vmem:[%s12636_s5 + $0x58] sm:$0xff]  ;;  %400 = vst.msk [vmem:[#allocation4 + $0x30] sm:$0x1] %vm397_vm5, %v12924_v38 }
 0x482   : > { %v4309_v47 = vpop.f32.mrf.mxu1  ;;  %v4036_v2 = vpop.f32.mrf.mxu0  ;;  %8763 = vmatmul.msk.f32.vlgmr.msra.gmra.mxu2 %vm388_vm3, %v5587_v5  ;;  %v8866_v55 = vld [vmem:[%s12636_s5 + $0x78] sm:$0xff]  ;;  %6187 = vmatpush.msrb.mxu0 %v8830_v50  ;;  %401 = vst.msk [vmem:[#allocation4 + $0x48] sm:$0x1] %vm397_vm5, %v12924_v38 }
 0x483   : > { %v3754_v21 = vpop.f32.mrf.mxu3  ;;  %6465 = vmatpush.msrb.mxu1 %v8866_v55  ;;  %402 = vst.msk [vmem:[#allocation4 + $0x60] sm:$0x1] %vm397_vm5, %v12924_v38  ;;  %v4918_v55 = vld [vmem:[#allocation2 + $0x10a] sm:$0xff] }
 0x484   : > { %v3794_v56 = vadd.f32 %v3754_v21, %v10792_v9  ;;  %v4916_v21 = vld [vmem:[#allocation2 + $0xf2] sm:$0xff]  ;;  %403 = vst.msk [vmem:[#allocation4 + $0x78] sm:$0x1] %vm397_vm5, %v12924_v38 }
 0x485   : > { %8740 = vmatmul.msk.f32.gmra.mxu1 %vm299_vm0, %v10811_v8  ;;  %8708 = vmatmul.msk.f32.gmra.mxu0 %vm299_vm0, %v4914_v17  ;;  %404 = vst.msk [vmem:[#allocation4 + $0x90] sm:$0x1] %vm397_vm5, %v12924_v38 }
 0x486   : > { %v4070_v35 = vadd.f32 %v4030_v59, %v3794_v56  ;;  %405 = vst.msk [vmem:[#allocation4 + $0xa8] sm:$0x1] %vm397_vm5, %v12924_v38 }
 0x487   : > { %406 = vst.msk [vmem:[#allocation4 + $0xc0] sm:$0x1] %vm397_vm5, %v12924_v38 }
 0x488   : > { %8674 = vmatmul.msk.f32.gmra.mxu3 %vm299_vm0, %v4638_v7  ;;  %v11136_v25 = vadd.f32 %v4306_v36, %v4070_v35  ;;  %v4640_v7 = vld [vmem:[#allocation3 + $0xe1] sm:$0xff]  ;;  %407 = vst.msk [vmem:[#allocation4 + $0xd8] sm:$0x1] %vm397_vm5, %v12924_v38 }
 0x489   : > { %408 = vst.msk [vmem:[#allocation4 + $0xf0] sm:$0x1] %vm397_vm5, %v12924_v38 }
 0x48a   : > { %v4312_v9 = vpop.f32.mrf.mxu1  ;;  %v4039_v8 = vpop.f32.mrf.mxu0  ;;  %409 = vst.msk [vmem:[#allocation4 + $0x108] sm:$0x1] %vm397_vm5, %v12924_v38 }
 0x48b   : > { %v3757_v48 = vpop.f32.mrf.mxu3  ;;  %410 = vst.msk [vmem:[#allocation4 + $0x120] sm:$0x1] %vm397_vm5, %v12924_v38 }
 0x48c   : > { %v3795_v59 = vadd.f32 %v3757_v48, %v10804_v23  ;;  %v5588_v23 = vld [vmem:[#allocation4 + $0x9] sm:$0xff]  ;;  %411 = vst.msk [vmem:[#allocation4 + $0x138] sm:$0x1] %vm397_vm5, %v12924_v38 }
 0x48d   : > { %8741 = vmatmul.msk.f32.gmra.mxu1 %vm299_vm0, %v10823_v41  ;;  %8709 = vmatmul.msk.f32.gmra.mxu0 %vm299_vm0, %v4915_v58  ;;  %v4917_v58 = vld [vmem:[#allocation2 + $0xfa] sm:$0xff]  ;;  %412 = vst.msk [vmem:[#allocation4 + $0x150] sm:$0x1] %vm397_vm5, %v12924_v38 }
 0x48e   : > { %v4071_v36 = vadd.f32 %v4033_v34, %v3795_v59  ;;  %v11159_v34 = vpop.f32.mrf.mxu2  ;;  %8764 = vmatmul.msk.f32.gmra.mxu2 %vm388_vm3, %v5588_v23  ;;  %413 = vst.msk [vmem:[#allocation4 + $0x168] sm:$0x1] %vm397_vm5, %v12924_v38  ;;  %v12926_v23 = vld [vmem:[#allocation47_spill] sm:$0xff] }
 0x48f   : > { %414 = vst.msk [vmem:[#allocation4 + $0x180] sm:$0x1] %vm397_vm5, %v12924_v38 }
 0x490   : > { %8675 = vmatmul.msk.f32.gmra.mxu3 %vm299_vm0, %v4639_v32  ;;  %v11155_v41 = vadd.f32 %v4309_v47, %v4071_v36  ;;  %v4641_v32 = vld [vmem:[#allocation3 + $0xf1] sm:$0xff]  ;;  %415 = vst.msk [vmem:[#allocation4 + $0x198] sm:$0x1] %vm397_vm5, %v12924_v38 }
 0x491   : > { %416 = vst.msk [vmem:[#allocation4 + $0x11] sm:$0x1] %vm397_vm5, %v12924_v38 }
 0x492   : > { %v4315_v17 = vpop.f32.mrf.mxu1  ;;  %v5047_v43 = vpop.f32.mrf.mxu0  ;;  %417 = vst.msk [vmem:[#allocation4 + $0x29] sm:$0x1] %vm397_vm5, %v12924_v38 }
 0x493   : > { %v3760_v56 = vpop.f32.mrf.mxu3  ;;  %418 = vst.msk [vmem:[#allocation4 + $0x41] sm:$0x1] %vm397_vm5, %v12924_v38 }
 0x494   : > { %v3796_v47 = vadd.f32 %v3760_v56, %v10816_v63  ;;  %v4642_v56 = vld [vmem:[#allocation3 + $0xf9] sm:$0xff]  ;;  %419 = vst.msk [vmem:[#allocation4 + $0x59] sm:$0x1] %vm397_vm5, %v12924_v38 }
 0x495   : > { %8742 = vmatmul.msk.f32.gmra.mxu1 %vm299_vm0, %v10835_v61  ;;  %8710 = vmatmul.msk.f32.gmra.mxu0 %vm299_vm0, %v4916_v21  ;;  %420 = vst.msk [vmem:[#allocation4 + $0x71] sm:$0x1] %vm397_vm5, %v12924_v38 }
 0x496   : > { %v4072_v35 = vadd.f32 %v4036_v2, %v3796_v47  ;;  %v11189_v2 = vpop.f32.mrf.mxu2  ;;  %421 = vst.msk [vmem:[#allocation4 + $0x89] sm:$0x1] %vm397_vm5, %v12924_v38 }
 0x497   : > { %422 = vst.msk [vmem:[#allocation4 + $0xa1] sm:$0x1] %vm397_vm5, %v12924_v38 }
 0x498   : > { %8676 = vmatmul.msk.f32.gmra.mxu3 %vm299_vm0, %v4640_v7  ;;  %v11181_v63 = vadd.f32 %v4312_v9, %v4072_v35  ;;  %v12925_v9 = vld [vmem:[#allocation46_spill] sm:$0xff]  ;;  %v11229_v7 = vld [vmem:[%s12635_s4] ss:$0 sm:$0xff]  ;;  %423 = vst.msk [vmem:[#allocation4 + $0xb9] sm:$0x1] %vm397_vm5, %v12924_v38 }
 0x499   : > { %424 = vst.msk [vmem:[#allocation4 + $0xd1] sm:$0x1] %vm397_vm5, %v12924_v38 }
 0x49a   : > { %v5322_v61 = vpop.f32.mrf.mxu1  ;;  %v5050_v5 = vpop.f32.mrf.mxu0  ;;  %425 = vst.msk [vmem:[#allocation4 + $0xe9] sm:$0x1] %vm397_vm5, %v12924_v38 }
 0x49b   : > { %v3763_v48 = vpop.f32.mrf.mxu3  ;;  %426 = vst.msk [vmem:[#allocation4 + $0x101] sm:$0x1] %vm397_vm5, %v12924_v38 }
 0x49c   : > { %v3797_v59 = vadd.f32 %v3763_v48, %v12925_v9  ;;  %v4919_v48 = vld [vmem:[#allocation2 + $0x112] sm:$0xff]  ;;  %427 = vst.msk [vmem:[#allocation4 + $0x119] sm:$0x1] %vm397_vm5, %v12924_v38 }
 0x49d   : > { %8743 = vmatmul.msk.f32.gmra.mxu1 %vm299_vm0, %v10847_v30  ;;  %8711 = vmatmul.msk.f32.gmra.mxu0 %vm299_vm0, %v4917_v58  ;;  %428 = vst.msk [vmem:[#allocation4 + $0x131] sm:$0x1] %vm397_vm5, %v12924_v38 }
 0x49e   : > { %v4073_v36 = vadd.f32 %v4039_v8, %v3797_v59  ;;  %v12927_v59 = vld [vmem:[#allocation48_spill] sm:$0xff]  ;;  %429 = vst.msk [vmem:[#allocation4 + $0x149] sm:$0x1] %vm397_vm5, %v12924_v38 }
 0x49f   : > { %430 = vst.msk [vmem:[#allocation4 + $0x161] sm:$0x1] %vm397_vm5, %v12924_v38 }
 0x4a0   : > { %8677 = vmatmul.msk.f32.gmra.mxu3 %vm299_vm0, %v4641_v32  ;;  %v11206_v42 = vadd.f32 %v4315_v17, %v4073_v36  ;;  %v11219_v17 = vpop.f32.mrf.mxu2  ;;  %v4643_v36 = vld [vmem:[#allocation3 + $0x109] sm:$0xff]  ;;  %431 = vst.msk [vmem:[#allocation4 + $0x179] sm:$0x1] %vm397_vm5, %v12924_v38 }
 0x4a1   : > { %432 = vst.msk [vmem:[#allocation4 + $0x191] sm:$0x1] %vm397_vm5, %v12924_v38 }
 0x4a2   : > { %v5325_v30 = vpop.f32.mrf.mxu1  ;;  %v5053_v50 = vpop.f32.mrf.mxu0  ;;  %433 = vst.msk [vmem:[#allocation4 + $0x1a9] sm:$0x1] %vm397_vm5, %v12924_v38 }
 0x4a3   : > { %v4772_v8 = vpop.f32.mrf.mxu3 }
 0x4a4   : > { %v4868_v21 = vadd.f32 %v4772_v8, %v12926_v23 }
 0x4a5   : > { %8744 = vmatmul.msk.f32.gmra.mxu1 %vm299_vm0, %v10859_v13  ;;  %8712 = vmatmul.msk.f32.gmra.mxu0 %vm299_vm0, %v4918_v55 }
 0x4a6   : > { %v5143_v47 = vadd.f32 %v5047_v43, %v4868_v21 }
 0x4a8   : > { %v5418_v35 = vadd.f32 %v5322_v61, %v5143_v47  ;;  %8678 = vmatmul.msk.f32.gmra.mxu3 %vm299_vm0, %v4642_v56  ;;  %v11254_v8 = vpop.f32.mrf.mxu2  ;;  %v4920_v47 = vld [vmem:[#allocation2 + $0x122] sm:$0xff] }
 0x4aa   : > { %v5454_v13 = vadd.f32 %v11229_v7, %v5418_v35  ;;  %v5328_v43 = vpop.f32.mrf.mxu1  ;;  %v5056_v58 = vpop.f32.mrf.mxu0  ;;  %v12928_v35 = vld [vmem:[#allocation49_spill] sm:$0xff] }
 0x4ab   : > { %v4775_v9 = vpop.f32.mrf.mxu3 }
 0x4ac   : > { %v5486_v61 = vmax.f32 %v5454_v13, 0.0  ;;  %v4869_v32 = vadd.f32 %v4775_v9, %v12927_v59  ;;  %v4644_v9 = vld [vmem:[#allocation3 + $0x111] sm:$0xff] }
 0x4ad   : > { %8745 = vmatmul.msk.f32.gmra.mxu1 %vm299_vm0, %v10871_v10  ;;  %8713 = vmatmul.msk.f32.gmra.mxu0 %vm299_vm0, %v4919_v48 }
 0x4ae   : > { %5519 = vst.msk [vmem:[#allocation4 + $0x19] sm:$0xff] %vm388_vm3, %v5486_v61  ;;  %v5144_v55 = vadd.f32 %v5050_v5, %v4869_v32 }
 0x4b0   : > { %v5419_v23 = vadd.f32 %v5325_v30, %v5144_v55  ;;  %8679 = vmatmul.msk.f32.gmra.mxu3 %vm299_vm0, %v4643_v36  ;;  %v11277_v32 = vpop.f32.mrf.mxu2 }
 0x4b2   : > { %v5455_v10 = vadd.f32 %v11229_v7, %v5419_v23  ;;  %v5331_v21 = vpop.f32.mrf.mxu1  ;;  %v5059_v56 = vpop.f32.mrf.mxu0  ;;  %v4921_v23 = vld [vmem:[#allocation2 + $0x12a] sm:$0xff] }
 0x4b3   : > { %v4778_v5 = vpop.f32.mrf.mxu3 }
 0x4b4   : > { %v5487_v30 = vmax.f32 %v5455_v10, 0.0  ;;  %v4870_v13 = vadd.f32 %v4778_v5, %v12928_v35  ;;  %v12929_v5 = vld [vmem:[#allocation5_spill] sm:$0xff] }
 0x4b5   : > { %8746 = vmatmul.msk.f32.gmra.mxu1 %vm299_vm0, %v10883_v20  ;;  %v5589_v48 = vld [vmem:[#allocation4 + $0x19] sm:$0xff]  ;;  %8714 = vmatmul.msk.f32.gmra.mxu0 %vm299_vm0, %v4920_v47  ;;  %v4645_v47 = vld [vmem:[#allocation3 + $0x121] sm:$0xff] }
 0x4b6   : > { %5520 = vst.msk [vmem:[#allocation4 + $0x21] sm:$0xff] %vm388_vm3, %v5487_v30  ;;  %v5145_v61 = vadd.f32 %v5053_v50, %v4870_v13  ;;  %8765 = vmatmul.msk.f32.gmra.mxu2 %vm388_vm3, %v5589_v48 }
 0x4b8   : > { %v5420_v59 = vadd.f32 %v5328_v43, %v5145_v61  ;;  %8680 = vmatmul.msk.f32.gmra.mxu3 %vm299_vm0, %v4644_v9  ;;  %v4922_v61 = vld [vmem:[#allocation2 + $0x13a] sm:$0xff] }
 0x4ba   : > { %v5456_v36 = vadd.f32 %v11229_v7, %v5420_v59  ;;  %v5334_v38 = vpop.f32.mrf.mxu1  ;;  %v5062_v55 = vpop.f32.mrf.mxu0 }
 0x4bb   : > { %v4781_v20 = vpop.f32.mrf.mxu3  ;;  %v11288_v59 = vpop.f32.mrf.mxu2 }
 0x4bc   : > { %v5488_v10 = vmax.f32 %v5456_v36, 0.0  ;;  %v4871_v35 = vadd.f32 %v4781_v20, %v12929_v5  ;;  %v12930_v20 = vld [vmem:[#allocation6_spill] sm:$0xff] }
 0x4bd   : > { %8747 = vmatmul.msk.f32.gmra.mxu1 %vm299_vm0, %v10898_v3  ;;  %v5590_v50 = vld [vmem:[#allocation4 + $0x21] sm:$0xff]  ;;  %8715 = vmatmul.msk.f32.gmra.mxu0 %vm299_vm0, %v4921_v23  ;;  %v4646_v23 = vld [vmem:[#allocation3 + $0x129] sm:$0xff] }
 0x4be   : > { %5521 = vst.msk [vmem:[#allocation4 + $0x31] sm:$0xff] %vm388_vm3, %v5488_v10  ;;  %v5146_v43 = vadd.f32 %v5056_v58, %v4871_v35  ;;  %8766 = vmatmul.msk.f32.gmra.mxu2 %vm388_vm3, %v5590_v50  ;;  %v5585_v10 = vld [vmem:[%s12636_s5 + $0x10] sm:$0xff] }
 0x4bf   : > { %5942 = vmatpush.msrb.mxu3 %v5585_v10 }
 0x4c0   : > { %v5421_v30 = vadd.f32 %v5331_v21, %v5146_v43  ;;  %8681 = vmatmul.msk.f32.gmra.mxu3 %vm299_vm0, %v4645_v47  ;;  %v4923_v43 = vld [vmem:[#allocation2 + $0x142] sm:$0xff] }
 0x4c2   : > { %v5457_v13 = vadd.f32 %v11229_v7, %v5421_v30  ;;  %v5337_v48 = vpop.f32.mrf.mxu1  ;;  %v5065_v9 = vpop.f32.mrf.mxu0 }
 0x4c3   : > { %v4784_v3 = vpop.f32.mrf.mxu3 }
 0x4c4   : > { %v5489_v36 = vmax.f32 %v5457_v13, 0.0  ;;  %v4872_v5 = vadd.f32 %v4784_v3, %v12930_v20  ;;  %v4647_v20 = vld [vmem:[#allocation3 + $0x139] sm:$0xff] }
 0x4c5   : > { %8748 = vmatmul.msk.f32.gmra.mxu1 %vm299_vm0, %v10910_v44  ;;  %v5591_v58 = vld [vmem:[#allocation4 + $0x31] sm:$0xff]  ;;  %8716 = vmatmul.msk.f32.gmra.mxu0 %vm299_vm0, %v4922_v61 }
 0x4c6   : > { %5522 = vst.msk [vmem:[#allocation4 + $0x39] sm:$0xff] %vm388_vm3, %v5489_v36  ;;  %v5147_v21 = vadd.f32 %v5059_v56, %v4872_v5  ;;  %8767 = vmatmul.msk.f32.gmra.mxu2 %vm388_vm3, %v5591_v58  ;;  %v12931_v61 = vld [vmem:[#allocation9_spill] sm:$0xff]  ;;  %v11302_v56 = vpop.f32.mrf.mxu2 }
 0x4c7   : > { %v8901_v5 = vld [vmem:[%s12636_s5 + $0x90] sm:$0xff] }
 0x4c8   : > { %v5422_v35 = vadd.f32 %v5334_v38, %v5147_v21  ;;  %8682 = vmatmul.msk.f32.gmra.mxu3 %vm299_vm0, %v4646_v23  ;;  %v8829_v58 = vld [vmem:[%s12636_s5 + $0x50] sm:$0xff]  ;;  %6744 = vmatpush.msrb.mxu2 %v8901_v5 }
 0x4c9   : > { %6188 = vmatpush.msrb.mxu0 %v8829_v58 }
 0x4ca   : > { %v5458_v50 = vadd.f32 %v11229_v7, %v5422_v35  ;;  %v5340_v44 = vpop.f32.mrf.mxu1  ;;  %v5068_v47 = vpop.f32.mrf.mxu0  ;;  %v4924_v35 = vld [vmem:[#allocation2 + $0x152] sm:$0xff] }
 0x4cb   : > { %v4787_v30 = vpop.f32.mrf.mxu3 }
 0x4cc   : > { %v5490_v13 = vmax.f32 %v5458_v50, 0.0  ;;  %v4873_v3 = vadd.f32 %v4787_v30, %v12931_v61  ;;  %v12932_v30 = vld [vmem:[#allocation7_spill] sm:$0xff] }
 0x4cd   : > { %8749 = vmatmul.msk.f32.gmra.mxu1 %vm299_vm0, %v10922_v40  ;;  %v5592_v36 = vld [vmem:[#allocation4 + $0x39] sm:$0xff]  ;;  %8717 = vmatmul.msk.f32.gmra.mxu0 %vm299_vm0, %v4923_v43  ;;  %v8865_v40 = vld [vmem:[%s12636_s5 + $0x70] sm:$0xff] }
 0x4ce   : > { %5523 = vst.msk [vmem:[#allocation4 + $0x49] sm:$0xff] %vm388_vm3, %v5490_v13  ;;  %v5148_v38 = vadd.f32 %v5062_v55, %v4873_v3  ;;  %8768 = vmatmul.msk.f32.gmra.mxu2 %vm388_vm3, %v5592_v36  ;;  %6466 = vmatpush.msrb.mxu1 %v8865_v40  ;;  %v4648_v3 = vld [vmem:[#allocation3 + $0x141] sm:$0xff]  ;;  %v11326_v36 = vpop.f32.mrf.mxu2  ;;  %v4925_v40 = vld [vmem:[#allocation2 + $0x15a] sm:$0xff] }
 0x4d0   : > { %v5423_v23 = vadd.f32 %v5337_v48, %v5148_v38  ;;  %8683 = vmatmul.msk.f32.gmra.mxu3 %vm299_vm0, %v4647_v20 }
 0x4d2   : > { %v5459_v55 = vadd.f32 %v11229_v7, %v5423_v23  ;;  %v5343_v21 = vpop.f32.mrf.mxu1  ;;  %v5071_v10 = vpop.f32.mrf.mxu0 }
 0x4d3   : > { %v4790_v50 = vpop.f32.mrf.mxu3 }
 0x4d4   : > { %v5491_v43 = vmax.f32 %v5459_v55, 0.0  ;;  %v4874_v13 = vadd.f32 %v4790_v50, %v12932_v30 }
 0x4d5   : > { %8750 = vmatmul.msk.f32.gmra.mxu1 %vm299_vm0, %v10933_v46  ;;  %v5593_v61 = vld [vmem:[#allocation4 + $0x49] sm:$0xff]  ;;  %8718 = vmatmul.msk.f32.gmra.mxu0 %vm299_vm0, %v4924_v35  ;;  %v4649_v35 = vld [vmem:[#allocation3 + $0x151] sm:$0xff] }
 0x4d6   : > { %5524 = vst.msk [vmem:[#allocation4 + $0x51] sm:$0xff] %vm388_vm3, %v5491_v43  ;;  %v5149_v48 = vadd.f32 %v5065_v9, %v4874_v13  ;;  %8769 = vmatmul.msk.f32.gmra.mxu2 %vm388_vm3, %v5593_v61  ;;  %v11337_v43 = vpop.f32.mrf.mxu2  ;;  %v4926_v61 = vld [vmem:[#allocation2 + $0x16a] sm:$0xff] }
 0x4d8   : > { %v5424_v20 = vadd.f32 %v5340_v44, %v5149_v48  ;;  %8684 = vmatmul.msk.f32.gmra.mxu3 %vm299_vm0, %v4648_v3 }
 0x4da   : > { %v5460_v38 = vadd.f32 %v11229_v7, %v5424_v20  ;;  %v5346_v5 = vpop.f32.mrf.mxu1  ;;  %v5074_v58 = vpop.f32.mrf.mxu0 }
 0x4db   : > { %v4793_v46 = vpop.f32.mrf.mxu3 }
 0x4dc   : > { %v5492_v23 = vmax.f32 %v5460_v38, 0.0  ;;  %v4875_v55 = vadd.f32 %v4793_v46, %v10927_v37  ;;  %v4601_v37 = vadd.f32 %v11033_v28, %v10938_v24  ;;  %v12933_v28 = vld [vmem:[#allocation8_spill] sm:$0xff] }
 0x4dd   : > { %8751 = vmatmul.msk.f32.gmra.mxu1 %vm299_vm0, %v10944_v51  ;;  %v5594_v9 = vld [vmem:[#allocation4 + $0x51] sm:$0xff]  ;;  %8719 = vmatmul.msk.f32.gmra.mxu0 %vm299_vm0, %v4925_v40  ;;  %v4602_v40 = vadd.f32 %v11045_v33, %v12933_v28 }
 0x4de   : > { %5525 = vst.msk [vmem:[#allocation4 + $0x61] sm:$0xff] %vm388_vm3, %v5492_v23  ;;  %v5150_v44 = vadd.f32 %v5068_v47, %v4875_v55  ;;  %8770 = vmatmul.msk.f32.gmra.mxu2 %vm388_vm3, %v5594_v9  ;;  %v11351_v9 = vpop.f32.mrf.mxu2 }
 0x4e0   : > { %v5425_v50 = vadd.f32 %v5343_v21, %v5150_v44  ;;  %8685 = vmatmul.msk.f32.gmra.mxu3 %vm299_vm0, %v4649_v35  ;;  %v4650_v21 = vld [vmem:[#allocation3 + $0x159] sm:$0xff] }
 0x4e2   : > { %v5461_v30 = vadd.f32 %v11229_v7, %v5425_v50  ;;  %v5349_v51 = vpop.f32.mrf.mxu1  ;;  %v5077_v13 = vpop.f32.mrf.mxu0 }
 0x4e3   : > { %v4796_v3 = vpop.f32.mrf.mxu3 }
 0x4e4   : > { %v5493_v48 = vmax.f32 %v5461_v30, 0.0  ;;  %v4876_v20 = vadd.f32 %v4796_v3, %v4601_v37  ;;  %v12934_v37 = vld [vmem:[#allocation10_spill] sm:$0xff] }
 0x4e5   : > { %8752 = vmatmul.msk.f32.gmra.mxu1 %vm299_vm0, %v10955_v49  ;;  %v5595_v47 = vld [vmem:[#allocation4 + $0x61] sm:$0xff]  ;;  %8720 = vmatmul.msk.f32.gmra.mxu0 %vm299_vm0, %v4926_v61  ;;  %v4927_v49 = vld [vmem:[#allocation2 + $0x172] sm:$0xff] }
 0x4e6   : > { %5526 = vst.msk [vmem:[#allocation4 + $0x69] sm:$0xff] %vm388_vm3, %v5493_v48  ;;  %v5151_v38 = vadd.f32 %v5071_v10, %v4876_v20  ;;  %8771 = vmatmul.msk.f32.gmra.mxu2 %vm388_vm3, %v5595_v47  ;;  %v12935_v61 = vld [vmem:[#allocation12_spill] sm:$0xff] }
 0x4e7   : > { %v4603_v3 = vadd.f32 %v11057_v15, %v12935_v61  ;;  %v8863_v61 = vld [vmem:[%s12636_s5 + $0x60] sm:$0xff] }
 0x4e8   : > { %v5426_v24 = vadd.f32 %v5346_v5, %v5151_v38  ;;  %8686 = vmatmul.msk.f32.gmra.mxu3 %vm299_vm0, %v4650_v21  ;;  %v4651_v5 = vld [vmem:[#allocation3 + $0x169] sm:$0xff]  ;;  %v4928_v21 = vld [vmem:[#allocation2 + $0x182] sm:$0xff] }
 0x4ea   : > { %v5462_v46 = vadd.f32 %v11229_v7, %v5426_v24  ;;  %v5352_v23 = vpop.f32.mrf.mxu1  ;;  %v5080_v55 = vpop.f32.mrf.mxu0 }
 0x4eb   : > { %v4799_v35 = vpop.f32.mrf.mxu3 }
 0x4ec   : > { %v5494_v44 = vmax.f32 %v5462_v46, 0.0  ;;  %v4877_v50 = vadd.f32 %v4799_v35, %v4602_v40  ;;  %v11362_v40 = vpop.f32.mrf.mxu2  ;;  %v12936_v46 = vld [vmem:[#allocation13_spill] sm:$0xff]  ;;  %v8828_v35 = vld [vmem:[%s12636_s5 + $0x48] sm:$0xff] }
 0x4ed   : > { %8753 = vmatmul.msk.f32.gmra.mxu1 %vm299_vm0, %v12934_v37  ;;  %v5596_v10 = vld [vmem:[#allocation4 + $0x69] sm:$0xff]  ;;  %8721 = vmatmul.msk.f32.gmra.mxu0 %vm299_vm0, %v4927_v49 }
 0x4ee   : > { %5527 = vst.msk [vmem:[#allocation4 + $0x79] sm:$0xff] %vm388_vm3, %v5494_v44  ;;  %v5152_v33 = vadd.f32 %v5074_v58, %v4877_v50  ;;  %8772 = vmatmul.msk.f32.gmra.mxu2 %vm388_vm3, %v5596_v10  ;;  %v8864_v44 = vld [vmem:[%s12636_s5 + $0x68] sm:$0xff]  ;;  %v12937_v50 = vld [vmem:[#allocation11_spill] sm:$0xff]  ;;  %6189 = vmatpush.msrb.mxu0 %v8828_v35 }
 0x4ef   : > { %v4604_v37 = vadd.f32 %v11067_v11, %v12937_v50  ;;  %6467 = vmatpush.msrb.mxu1 %v8864_v44  ;;  %v4930_v35 = vld [vmem:[#allocation2 + $0x19a] sm:$0xff] }
 0x4f0   : > { %v5427_v30 = vadd.f32 %v5349_v51, %v5152_v33  ;;  %8687 = vmatmul.msk.f32.gmra.mxu3 %vm299_vm0, %v4651_v5  ;;  %v4652_v51 = vld [vmem:[#allocation3 + $0x171] sm:$0xff]  ;;  %v4929_v33 = vld [vmem:[#allocation2 + $0x18a] sm:$0xff] }
 0x4f1   : > { %6468 = vmatpush.msrb.mxu1 %v8863_v61 }
 0x4f2   : > { %v5463_v48 = vadd.f32 %v11229_v7, %v5427_v30  ;;  %v5355_v20 = vpop.f32.mrf.mxu1  ;;  %v5083_v47 = vpop.f32.mrf.mxu0  ;;  %v8827_v30 = vld [vmem:[%s12636_s5 + $0x40] sm:$0xff] }
 0x4f3   : > { %v4802_v38 = vpop.f32.mrf.mxu3  ;;  %6190 = vmatpush.msrb.mxu0 %v8827_v30  ;;  %v4606_v30 = vadd.f32 %v11091_v60, %v10996_v62  ;;  %v8900_v62 = vld [vmem:[%s12636_s5 + $0x88] sm:$0xff] }
 0x4f4   : > { %v5495_v24 = vmax.f32 %v5463_v48, 0.0  ;;  %v4878_v28 = vadd.f32 %v4802_v38, %v4603_v3  ;;  %6745 = vmatpush.msrb.mxu2 %v8900_v62 }
 0x4f5   : > { %8754 = vmatmul.msk.f32.gmra.mxu1 %vm299_vm0, %v12936_v46  ;;  %v5597_v58 = vld [vmem:[#allocation4 + $0x79] sm:$0xff]  ;;  %8722 = vmatmul.msk.f32.gmra.mxu0 %vm299_vm0, %v4928_v21  ;;  %v4653_v21 = vld [vmem:[#allocation3 + $0x181] sm:$0xff] }
 0x4f6   : > { %5528 = vst.msk [vmem:[#allocation4 + $0x81] sm:$0xff] %vm388_vm3, %v5495_v24  ;;  %v5153_v15 = vadd.f32 %v5077_v13, %v4878_v28  ;;  %8773 = vmatmul.msk.f32.gmra.mxu2 %vm388_vm3, %v5597_v58  ;;  %v5584_v24 = vld [vmem:[%s12636_s5 + $0x8] sm:$0xff]  ;;  %v11393_v28 = vpop.f32.mrf.mxu2  ;;  %v12938_v58 = vld [vmem:[#allocation50_spill] sm:$0xff] }
 0x4f7   : > { %5943 = vmatpush.msrb.mxu3 %v5584_v24 }
 0x4f8   : > { %v5428_v49 = vadd.f32 %v5352_v23, %v5153_v15  ;;  %8688 = vmatmul.msk.f32.gmra.mxu3 %vm299_vm0, %v4652_v51 }
 0x4fa   : > { %v5464_v10 = vadd.f32 %v11229_v7, %v5428_v49  ;;  %v5358_v5 = vpop.f32.mrf.mxu1  ;;  %v5086_v13 = vpop.f32.mrf.mxu0 }
 0x4fb   : > { %v4805_v23 = vpop.f32.mrf.mxu3 }
 0x4fc   : > { %v5496_v3 = vmax.f32 %v5464_v10, 0.0  ;;  %v4879_v48 = vadd.f32 %v4805_v23, %v4604_v37  ;;  %v4654_v10 = vld [vmem:[#allocation3 + $0x189] sm:$0xff] }
 0x4fd   : > { %8755 = vmatmul.msk.f32.gmra.mxu1 %vm299_vm0, %v10991_v18  ;;  %v5598_v11 = vld [vmem:[#allocation4 + $0x81] sm:$0xff]  ;;  %8723 = vmatmul.msk.f32.gmra.mxu0 %vm299_vm0, %v4929_v33 }
 0x4fe   : > { %5529 = vst.msk [vmem:[#allocation4 + $0x91] sm:$0xff] %vm388_vm3, %v5496_v3  ;;  %v5154_v38 = vadd.f32 %v5080_v55, %v4879_v48  ;;  %8774 = vmatmul.msk.f32.gmra.mxu2 %vm388_vm3, %v5598_v11  ;;  %v5583_v18 = vld [vmem:[%s12636_s5] sm:$0xff]  ;;  %v4605_v55 = vadd.f32 %v11079_v26, %v12938_v58  ;;  %v11408_v23 = vpop.f32.mrf.mxu2  ;;  %v5205_v3 = vld [vmem:[#allocation3 + $0x19a] sm:$0xff] }
 0x4ff   : > { %5944 = vmatpush.msrb.mxu3 %v5583_v18  ;;  %v4931_v11 = vld [vmem:[#allocation2 + $0x1a2] sm:$0xff]  ;;  %v4607_v18 = vadd.f32 %v11100_v1, %v11006_v4 }
 0x500   : > { %v5429_v46 = vadd.f32 %v5355_v20, %v5154_v38  ;;  %8689 = vmatmul.msk.f32.gmra.mxu3 %vm299_vm0, %v4653_v21 }
 0x502   : > { %v5465_v51 = vadd.f32 %v11229_v7, %v5429_v46  ;;  %v5361_v15 = vpop.f32.mrf.mxu1  ;;  %v5089_v49 = vpop.f32.mrf.mxu0 }
 0x503   : > { %v4808_v44 = vpop.f32.mrf.mxu3 }
 0x504   : > { %v5497_v50 = vmax.f32 %v5465_v51, 0.0  ;;  %v4880_v37 = vadd.f32 %v4808_v44, %v4605_v55  ;;  %v5206_v51 = vld [vmem:[#allocation3 + $0x1a2] sm:$0xff]  ;;  %v6042_v44 = vld [vmem:[#allocation4 + $0x2] sm:$0xff] }
 0x505   : > { %8756 = vmatmul.msk.f32.gmra.mxu1 %vm299_vm0, %v11001_v57  ;;  %v5599_v20 = vld [vmem:[#allocation4 + $0x91] sm:$0xff]  ;;  %8724 = vmatmul.msk.f32.gmra.mxu0 %vm299_vm0, %v4930_v35 }
 0x506   : > { %5530 = vst.msk [vmem:[#allocation4 + $0x99] sm:$0xff] %vm388_vm3, %v5497_v50  ;;  %v5155_v33 = vadd.f32 %v5083_v47, %v4880_v37  ;;  %8775 = vmatmul.msk.f32.gmra.mxu2 %vm388_vm3, %v5599_v20 }
 0x508   : > { %v5430_v26 = vadd.f32 %v5358_v5, %v5155_v33  ;;  %8690 = vmatmul.msk.f32.gmra.mxu3 %vm299_vm0, %v4654_v10  ;;  %v4655_v5 = vld [vmem:[#allocation3 + $0x199] sm:$0xff]  ;;  %v4608_v33 = vadd.f32 %v11110_v31, %v11013_v0 }
 0x50a   : > { %v5466_v61 = vadd.f32 %v11229_v7, %v5430_v26  ;;  %v5364_v57 = vpop.f32.mrf.mxu1  ;;  %v5092_v48 = vpop.f32.mrf.mxu0 }
 0x50b   : > { %v4811_v21 = vpop.f32.mrf.mxu3 }
 0x50c   : > { %v5498_v38 = vmax.f32 %v5466_v61, 0.0  ;;  %v4881_v24 = vadd.f32 %v4811_v21, %v4606_v30 }
 0x50d   : > { %8757 = vmatmul.msk.f32.gmra.mxu1 %vm299_vm0, %v5205_v3  ;;  %v5600_v47 = vld [vmem:[#allocation4 + $0x99] sm:$0xff]  ;;  %8725 = vmatmul.msk.f32.gmra.mxu0 %vm299_vm0, %v4931_v11  ;;  %v6043_v3 = vld [vmem:[#allocation4 + $0xa] sm:$0xff] }
 0x50e   : > { %5531 = vst.msk [vmem:[#allocation4 + $0xa9] sm:$0xff] %vm388_vm3, %v5498_v38  ;;  %v5156_v46 = vadd.f32 %v5086_v13, %v4881_v24  ;;  %8776 = vmatmul.msk.f32.gmra.mxu2 %vm388_vm3, %v5600_v47  ;;  %v11424_v13 = vpop.f32.mrf.mxu2  ;;  %v6320_v24 = vld [vmem:[#allocation4 + $0x18] sm:$0xff] }
 0x510   : > { %v5431_v60 = vadd.f32 %v5361_v15, %v5156_v46  ;;  %8691 = vmatmul.msk.f32.gmra.mxu3 %vm299_vm0, %v4655_v5  ;;  %v4656_v15 = vld [vmem:[#allocation3 + $0x1a1] sm:$0xff]  ;;  %v4609_v5 = vadd.f32 %v11133_v22, %v11020_v27 }
 0x512   : > { %v5467_v58 = vadd.f32 %v11229_v7, %v5431_v60  ;;  %v5367_v55 = vpop.f32.mrf.mxu1  ;;  %v5095_v35 = vpop.f32.mrf.mxu0 }
 0x513   : > { %v4814_v50 = vpop.f32.mrf.mxu3 }
 0x514   : > { %v5499_v37 = vmax.f32 %v5467_v58, 0.0  ;;  %v4882_v20 = vadd.f32 %v4814_v50, %v4607_v18  ;;  %v6044_v50 = vld [vmem:[#allocation4 + $0x1a] sm:$0xff] }
 0x515   : > { %8758 = vmatmul.msk.f32.gmra.mxu1 %vm299_vm0, %v5206_v51  ;;  %v5601_v10 = vld [vmem:[#allocation4 + $0xa9] sm:$0xff]  ;;  %8831 = vmatmul.msk.f32.vlgmr.msrb.gmra.mxu0 %vm388_vm3, %v6042_v44  ;;  %v6321_v44 = vld [vmem:[#allocation4 + $0x20] sm:$0xff] }
 0x516   : > { %5532 = vst.msk [vmem:[#allocation4 + $0xb1] sm:$0xff] %vm388_vm3, %v5499_v37  ;;  %v5157_v4 = vadd.f32 %v5089_v49, %v4882_v20  ;;  %8777 = vmatmul.msk.f32.gmra.mxu2 %vm388_vm3, %v5601_v10  ;;  %v11434_v47 = vpop.f32.mrf.mxu2  ;;  %v5552_v37 = vld [vmem:[#allocation4 + $0x8] sm:$0xff] }
 0x518   : > { %v5432_v1 = vadd.f32 %v5364_v57, %v5157_v4  ;;  %8692 = vmatmul.msk.f32.gmra.mxu3 %vm299_vm0, %v4656_v15  ;;  %v5551_v57 = vld [vmem:[#allocation4] sm:$0xff] }
 0x51a   : > { %v5468_v26 = vadd.f32 %v11229_v7, %v5432_v1  ;;  %v5370_v30 = vpop.f32.mrf.mxu1  ;;  %v5098_v61 = vpop.f32.mrf.mxu0 }
 0x51b   : > { %v4817_v11 = vpop.f32.mrf.mxu3 }
 0x51c   : > { %v5500_v21 = vmax.f32 %v5468_v26, 0.0  ;;  %v4883_v38 = vadd.f32 %v4817_v11, %v4608_v33  ;;  %v6045_v11 = vld [vmem:[#allocation4 + $0x22] sm:$0xff] }
 0x51d   : > { %8867 = vmatmul.msk.f32.vlgmr.msrb.gmra.mxu1 %vm388_vm3, %v6320_v24  ;;  %v5602_v49 = vld [vmem:[#allocation4 + $0xb1] sm:$0xff]  ;;  %8832 = vmatmul.msk.f32.gmra.mxu0 %vm388_vm3, %v6043_v3 }
 0x51e   : > { %5533 = vst.msk [vmem:[#allocation4 + $0xc1] sm:$0xff] %vm388_vm3, %v5500_v21  ;;  %v5158_v0 = vadd.f32 %v5092_v48, %v4883_v38  ;;  %8778 = vmatmul.msk.f32.gmra.mxu2 %vm388_vm3, %v5602_v49  ;;  %v11445_v20 = vpop.f32.mrf.mxu2  ;;  %v11454_v3 = vld [vmem:[#allocation4 + $0x30] sm:$0xff]  ;;  %v4611_v21 = vadd.f32 %v11189_v2, %v11036_v39 }
 0x520   : > { %v5433_v31 = vadd.f32 %v5367_v55, %v5158_v0  ;;  %8795 = vmatmul.msk.f32.vlgmr.msrb.gmra.mxu3 %vm388_vm3, %v5551_v57  ;;  %v4610_v55 = vadd.f32 %v11159_v34, %v11027_v45 }
 0x522   : > { %v5469_v46 = vadd.f32 %v11229_v7, %v5433_v31  ;;  %v5373_v62 = vpop.f32.mrf.mxu1  ;;  %v5101_v60 = vpop.f32.mrf.mxu0 }
 0x523   : > { %v4820_v18 = vpop.f32.mrf.mxu3 }
 0x524   : > { %v5501_v58 = vmax.f32 %v5469_v46, 0.0  ;;  %v4884_v51 = vadd.f32 %v4820_v18, %v4609_v5  ;;  %v11470_v46 = vld [vmem:[#allocation4 + $0x38] sm:$0xff] }
 0x525   : > { %8868 = vmatmul.msk.f32.gmra.mxu1 %vm388_vm3, %v6321_v44  ;;  %v5603_v48 = vld [vmem:[#allocation4 + $0xc1] sm:$0xff]  ;;  %8833 = vmatmul.msk.f32.gmra.mxu0 %vm388_vm3, %v6044_v50 }
 0x526   : > { %5534 = vst.msk [vmem:[#allocation4 + $0xc9] sm:$0xff] %vm388_vm3, %v5501_v58  ;;  %v5159_v27 = vadd.f32 %v5095_v35, %v4884_v51  ;;  %8779 = vmatmul.msk.f32.gmra.mxu2 %vm388_vm3, %v5603_v48  ;;  %v11464_v34 = vpop.f32.mrf.mxu2 }
 0x528   : > { %v5434_v22 = vadd.f32 %v5370_v30, %v5159_v27  ;;  %8796 = vmatmul.msk.f32.gmra.mxu3 %vm388_vm3, %v5552_v37 }
 0x52a   : > { %v5470_v10 = vadd.f32 %v11229_v7, %v5434_v22  ;;  %v5376_v15 = vpop.f32.mrf.mxu1  ;;  %v5104_v4 = vpop.f32.mrf.mxu0  ;;  %v11486_v22 = vld [vmem:[#allocation4 + $0x48] sm:$0xff] }
 0x52b   : > { %v4823_v1 = vpop.f32.mrf.mxu3 }
 0x52c   : > { %v5502_v33 = vmax.f32 %v5470_v10, 0.0  ;;  %v4885_v26 = vadd.f32 %v4823_v1, %v4610_v55  ;;  %v4613_v10 = vadd.f32 %v11254_v8, %v11055_v52 }
 0x52d   : > { %8869 = vmatmul.msk.f32.gmra.mxu1 %vm388_vm3, %v11454_v3  ;;  %v11458_v35 = vld [vmem:[#allocation4 + $0xc9] sm:$0xff]  ;;  %8834 = vmatmul.msk.f32.gmra.mxu0 %vm388_vm3, %v6045_v11 }
 0x52e   : > { %5535 = vst.msk [vmem:[#allocation4 + $0xd9] sm:$0xff] %vm388_vm3, %v5502_v33  ;;  %v5160_v45 = vadd.f32 %v5098_v61, %v4885_v26  ;;  %8780 = vmatmul.msk.f32.gmra.mxu2 %vm388_vm3, %v11458_v35  ;;  %v6046_v61 = vld [vmem:[#allocation4 + $0x32] sm:$0xff] }
 0x530   : > { %v5435_v30 = vadd.f32 %v5373_v62, %v5160_v45  ;;  %8797 = vmatmul.msk.f32.gmra.mxu3 %vm388_vm3, %v6320_v24  ;;  %v4612_v62 = vadd.f32 %v11219_v17, %v11043_v14 }
 0x532   : > { %v5471_v38 = vadd.f32 %v11229_v7, %v5435_v30  ;;  %v5379_v49 = vpop.f32.mrf.mxu1  ;;  %v5107_v57 = vpop.f32.mrf.mxu0  ;;  %v11505_v30 = vld [vmem:[#allocation4 + $0x4a] sm:$0xff] }
 0x533   : > { %v4826_v0 = vpop.f32.mrf.mxu3 }
 0x534   : > { %v5503_v31 = vmax.f32 %v5471_v38, 0.0  ;;  %v4886_v5 = vadd.f32 %v4826_v0, %v4611_v21 }
 0x535   : > { %8870 = vmatmul.msk.f32.gmra.mxu1 %vm388_vm3, %v11470_v46  ;;  %v11474_v18 = vld [vmem:[#allocation4 + $0xd9] sm:$0xff]  ;;  %8835 = vmatmul.msk.f32.gmra.mxu0 %vm388_vm3, %v6046_v61 }
 0x536   : > { %5536 = vst.msk [vmem:[#allocation4 + $0xe1] sm:$0xff] %vm388_vm3, %v5503_v31  ;;  %v5161_v39 = vadd.f32 %v5101_v60, %v4886_v5  ;;  %8781 = vmatmul.msk.f32.gmra.mxu2 %vm388_vm3, %v11474_v18  ;;  %v6047_v60 = vld [vmem:[#allocation4 + $0x3a] sm:$0xff] }
 0x538   : > { %v5436_v2 = vadd.f32 %v5376_v15, %v5161_v39  ;;  %8798 = vmatmul.msk.f32.gmra.mxu3 %vm388_vm3, %v6321_v44 }
 0x539   : > { %v11481_v24 = vpop.f32.mrf.mxu2 }
 0x53a   : > { %v5472_v58 = vadd.f32 %v11229_v7, %v5436_v2  ;;  %v5382_v51 = vpop.f32.mrf.mxu1  ;;  %v5110_v50 = vpop.f32.mrf.mxu0 }
 0x53b   : > { %v4829_v48 = vpop.f32.mrf.mxu3 }
 0x53c   : > { %v5504_v37 = vmax.f32 %v5472_v58, 0.0  ;;  %v4887_v27 = vadd.f32 %v4829_v48, %v4612_v62  ;;  %v11525_v62 = vld [vmem:[#allocation4 + $0x52] sm:$0xff] }
 0x53d   : > { %8871 = vmatmul.msk.f32.gmra.mxu1 %vm388_vm3, %v11486_v22  ;;  %v11490_v55 = vld [vmem:[#allocation4 + $0xe1] sm:$0xff]  ;;  %8836 = vmatmul.msk.f32.gmra.mxu0 %vm388_vm3, %v6047_v60 }
 0x53e   : > { %5537 = vst.msk [vmem:[#allocation4 + $0xf1] sm:$0xff] %vm388_vm3, %v5504_v37  ;;  %v5162_v14 = vadd.f32 %v5104_v4, %v4887_v27  ;;  %8782 = vmatmul.msk.f32.gmra.mxu2 %vm388_vm3, %v11490_v55  ;;  %v11503_v4 = vld [vmem:[#allocation4 + $0x50] sm:$0xff]  ;;  %v4615_v37 = vadd.f32 %v11288_v59, %v11073_v53 }
 0x540   : > { %v5437_v17 = vadd.f32 %v5379_v49, %v5162_v14  ;;  %8799 = vmatmul.msk.f32.gmra.mxu3 %vm388_vm3, %v11454_v3  ;;  %v4614_v49 = vadd.f32 %v11277_v32, %v11064_v54  ;;  %v8899_v32 = vld [vmem:[%s12636_s5 + $0x80] sm:$0xff] }
 0x541   : > { %v11498_v44 = vpop.f32.mrf.mxu2  ;;  %6746 = vmatpush.msrb.mxu2 %v8899_v32  ;;  %v4617_v32 = vadd.f32 %v11326_v36, %v11089_v16 }
 0x542   : > { %v5473_v15 = vadd.f32 %v11229_v7, %v5437_v17  ;;  %v5385_v1 = vpop.f32.mrf.mxu1  ;;  %v5113_v33 = vpop.f32.mrf.mxu0 }
 0x543   : > { %v4832_v26 = vpop.f32.mrf.mxu3 }
 0x544   : > { %v5505_v11 = vmax.f32 %v5473_v15, 0.0  ;;  %v4888_v45 = vadd.f32 %v4832_v26, %v4613_v10  ;;  %v11546_v15 = vld [vmem:[#allocation4 + $0x68] sm:$0xff] }
 0x545   : > { %8872 = vmatmul.msk.f32.gmra.mxu1 %vm388_vm3, %v11503_v4  ;;  %v11509_v21 = vld [vmem:[#allocation4 + $0xf1] sm:$0xff]  ;;  %8837 = vmatmul.msk.f32.gmra.mxu0 %vm388_vm3, %v11505_v30  ;;  %v11548_v26 = vld [vmem:[#allocation4 + $0x62] sm:$0xff] }
 0x546   : > { %5538 = vst.msk [vmem:[#allocation4 + $0xf9] sm:$0xff] %vm388_vm3, %v5505_v11  ;;  %v5163_v52 = vadd.f32 %v5107_v57, %v4888_v45  ;;  %8783 = vmatmul.msk.f32.gmra.mxu2 %vm388_vm3, %v11509_v21  ;;  %v11523_v57 = vld [vmem:[#allocation4 + $0x60] sm:$0xff]  ;;  %v4616_v45 = vadd.f32 %v11302_v56, %v11082_v6 }
 0x548   : > { %v5438_v8 = vadd.f32 %v5382_v51, %v5163_v52  ;;  %8800 = vmatmul.msk.f32.gmra.mxu3 %vm388_vm3, %v11470_v46 }
 0x549   : > { %v11518_v38 = vpop.f32.mrf.mxu2 }
 0x54a   : > { %v5474_v0 = vadd.f32 %v11229_v7, %v5438_v8  ;;  %v5388_v31 = vpop.f32.mrf.mxu1  ;;  %v5116_v5 = vpop.f32.mrf.mxu0 }
 0x54b   : > { %v4835_v61 = vpop.f32.mrf.mxu3 }
 0x54c   : > { %v5506_v39 = vmax.f32 %v5474_v0, 0.0  ;;  %v4889_v2 = vadd.f32 %v4835_v61, %v4614_v49 }
 0x54d   : > { %8873 = vmatmul.msk.f32.gmra.mxu1 %vm388_vm3, %v11523_v57  ;;  %v11529_v58 = vld [vmem:[#allocation4 + $0xf9] sm:$0xff]  ;;  %8838 = vmatmul.msk.f32.gmra.mxu0 %vm388_vm3, %v11525_v62 }
 0x54e   : > { %5539 = vst.msk [vmem:[#allocation4 + $0x109] sm:$0xff] %vm388_vm3, %v5506_v39  ;;  %v5164_v54 = vadd.f32 %v5110_v50, %v4889_v2  ;;  %8784 = vmatmul.msk.f32.gmra.mxu2 %vm388_vm3, %v11529_v58  ;;  %v11568_v2 = vld [vmem:[#allocation4 + $0x6a] sm:$0xff] }
 0x54f   : > { %12939 = vst [vmem:[#allocation19_spill] sm:$0xff] %v11568_v2 }
 0x550   : > { %v5439_v51 = vadd.f32 %v5385_v1, %v5164_v54  ;;  %8801 = vmatmul.msk.f32.gmra.mxu3 %vm388_vm3, %v11486_v22 }
 0x551   : > { %v11541_v48 = vpop.f32.mrf.mxu2 }
 0x552   : > { %v5475_v27 = vadd.f32 %v11229_v7, %v5439_v51  ;;  %v5391_v50 = vpop.f32.mrf.mxu1  ;;  %v5119_v60 = vpop.f32.mrf.mxu0 }
 0x553   : > { %v4838_v14 = vpop.f32.mrf.mxu3 }
 0x554   : > { %v5507_v17 = vmax.f32 %v5475_v27, 0.0  ;;  %v4890_v10 = vadd.f32 %v4838_v14, %v4615_v37 }
 0x555   : > { %8874 = vmatmul.msk.f32.gmra.mxu1 %vm388_vm3, %v11546_v15  ;;  %v11552_v1 = vld [vmem:[#allocation4 + $0x109] sm:$0xff]  ;;  %8839 = vmatmul.msk.f32.gmra.mxu0 %vm388_vm3, %v11548_v26 }
 0x556   : > { %5540 = vst.msk [vmem:[#allocation4 + $0x111] sm:$0xff] %vm388_vm3, %v5507_v17  ;;  %v5165_v53 = vadd.f32 %v5113_v33, %v4890_v10  ;;  %8785 = vmatmul.msk.f32.gmra.mxu2 %vm388_vm3, %v11552_v1  ;;  %v11566_v33 = vld [vmem:[#allocation4 + $0x78] sm:$0xff] }
 0x558   : > { %v5440_v59 = vadd.f32 %v5388_v31, %v5165_v53  ;;  %8802 = vmatmul.msk.f32.gmra.mxu3 %vm388_vm3, %v11503_v4  ;;  %v11588_v53 = vld [vmem:[#allocation4 + $0x7a] sm:$0xff] }
 0x559   : > { %v11561_v11 = vpop.f32.mrf.mxu2  ;;  %12940 = vst [vmem:[#allocation14_spill] sm:$0xff] %v11588_v53 }
 0x55a   : > { %v5476_v52 = vadd.f32 %v11229_v7, %v5440_v59  ;;  %v5394_v8 = vpop.f32.mrf.mxu1  ;;  %v5122_v49 = vpop.f32.mrf.mxu0 }
 0x55b   : > { %v4841_v0 = vpop.f32.mrf.mxu3 }
 0x55c   : > { %v5508_v61 = vmax.f32 %v5476_v52, 0.0  ;;  %v4891_v39 = vadd.f32 %v4841_v0, %v4616_v45  ;;  %v4618_v45 = vadd.f32 %v11337_v43, %v11098_v12 }
 0x55d   : > { %8875 = vmatmul.msk.f32.gmra.mxu1 %vm388_vm3, %v11566_v33  ;;  %v11572_v31 = vld [vmem:[#allocation4 + $0x111] sm:$0xff]  ;;  %8840 = vmatmul.msk.f32.gmra.mxu0 %vm388_vm3, %v11568_v2 }
 0x55e   : > { %5541 = vst.msk [vmem:[#allocation4 + $0x121] sm:$0xff] %vm388_vm3, %v5508_v61  ;;  %v5166_v6 = vadd.f32 %v5116_v5, %v4891_v39  ;;  %8786 = vmatmul.msk.f32.gmra.mxu2 %vm388_vm3, %v11572_v31  ;;  %v11586_v5 = vld [vmem:[#allocation4 + $0x80] sm:$0xff] }
 0x560   : > { %v5441_v56 = vadd.f32 %v5391_v50, %v5166_v6  ;;  %8803 = vmatmul.msk.f32.gmra.mxu3 %vm388_vm3, %v11523_v57 }
 0x561   : > { %v11581_v54 = vpop.f32.mrf.mxu2 }
 0x562   : > { %v5477_v51 = vadd.f32 %v11229_v7, %v5441_v56  ;;  %v5397_v37 = vpop.f32.mrf.mxu1  ;;  %v5125_v27 = vpop.f32.mrf.mxu0 }
 0x563   : > { %v4844_v14 = vpop.f32.mrf.mxu3 }
 0x564   : > { %v5509_v17 = vmax.f32 %v5477_v51, 0.0  ;;  %v4892_v10 = vadd.f32 %v4844_v14, %v4617_v32  ;;  %v11608_v32 = vld [vmem:[#allocation4 + $0x82] sm:$0xff]  ;;  %v4619_v14 = vadd.f32 %v11351_v9, %v11107_v19 }
 0x565   : > { %8876 = vmatmul.msk.f32.gmra.mxu1 %vm388_vm3, %v11586_v5  ;;  %v11592_v50 = vld [vmem:[#allocation4 + $0x121] sm:$0xff]  ;;  %8841 = vmatmul.msk.f32.gmra.mxu0 %vm388_vm3, %v11588_v53  ;;  %12943 = vst [vmem:[#allocation17_spill] sm:$0xff] %v11608_v32 }
 0x566   : > { %12941 = vst [vmem:[#allocation15_spill] sm:$0xff] %v11592_v50  ;;  %v5167_v16 = vadd.f32 %v5119_v60, %v4892_v10  ;;  %8787 = vmatmul.msk.f32.gmra.mxu2 %vm388_vm3, %v11592_v50  ;;  %v11606_v60 = vld [vmem:[#allocation4 + $0x90] sm:$0xff] }
 0x567   : > { %5542 = vst.msk [vmem:[#allocation4 + $0x129] sm:$0xff] %vm388_vm3, %v5509_v17 }
 0x568   : > { %v5442_v36 = vadd.f32 %v5394_v8, %v5167_v16  ;;  %8804 = vmatmul.msk.f32.gmra.mxu3 %vm388_vm3, %v11546_v15  ;;  %12942 = vst [vmem:[#allocation16_spill] sm:$0xff] %v11606_v60 }
 0x569   : > { %v11601_v59 = vpop.f32.mrf.mxu2 }
 0x56a   : > { %v5478_v52 = vadd.f32 %v11229_v7, %v5442_v36  ;;  %v5400_v0 = vpop.f32.mrf.mxu1  ;;  %v5128_v61 = vpop.f32.mrf.mxu0 }
 0x56b   : > { %v4847_v39 = vpop.f32.mrf.mxu3 }
 0x56c   : > { %v5510_v6 = vmax.f32 %v5478_v52, 0.0  ;;  %v4893_v56 = vadd.f32 %v4847_v39, %v4618_v45  ;;  %v11628_v39 = vld [vmem:[#allocation4 + $0x92] sm:$0xff] }
 0x56d   : > { %8877 = vmatmul.msk.f32.gmra.mxu1 %vm388_vm3, %v11606_v60  ;;  %8842 = vmatmul.msk.f32.gmra.mxu0 %vm388_vm3, %v11608_v32  ;;  %12946 = vst [vmem:[#allocation20_spill] sm:$0xff] %v11628_v39 }
 0x56e   : > { %v11612_v8 = vld [vmem:[#allocation4 + $0x129] sm:$0xff]  ;;  %5543 = vst.msk [vmem:[#allocation4 + $0x139] sm:$0xff] %vm388_vm3, %v5510_v6  ;;  %v5168_v12 = vadd.f32 %v5122_v49, %v4893_v56  ;;  %v11626_v49 = vld [vmem:[#allocation4 + $0x98] sm:$0xff]  ;;  %v4620_v56 = vadd.f32 %v11362_v40, %v11116_v29 }
 0x56f   : > { %12944 = vst [vmem:[#allocation22_spill] sm:$0xff] %v11612_v8  ;;  %8788 = vmatmul.msk.f32.gmra.mxu2 %vm388_vm3, %v11612_v8  ;;  %v11883_v8 = vld [vmem:[#allocation4 + $0x128] sm:$0xff] }
 0x570   : > { %v5443_v43 = vadd.f32 %v5397_v37, %v5168_v12  ;;  %8805 = vmatmul.msk.f32.gmra.mxu3 %vm388_vm3, %v11566_v33  ;;  %12945 = vst [vmem:[#allocation18_spill] sm:$0xff] %v11626_v49  ;;  %v11904_v50 = vld [vmem:[#allocation4 + $0x12a] sm:$0xff] }
 0x571   : > { %v11621_v51 = vpop.f32.mrf.mxu2  ;;  %12975 = vst [vmem:[#allocation5_spill] sm:$0xff] %v11883_v8 }
 0x572   : > { %v5479_v17 = vadd.f32 %v11229_v7, %v5443_v43  ;;  %v5403_v10 = vpop.f32.mrf.mxu1  ;;  %v5131_v16 = vpop.f32.mrf.mxu0  ;;  %12979 = vst [vmem:[#allocation8_spill] sm:$0xff] %v11904_v50 }
 0x573   : > { %v4850_v36 = vpop.f32.mrf.mxu3 }
 0x574   : > { %v5511_v45 = vmax.f32 %v5479_v17, 0.0  ;;  %v4894_v52 = vadd.f32 %v4850_v36, %v4619_v14 }
 0x575   : > { %8878 = vmatmul.msk.f32.gmra.mxu1 %vm388_vm3, %v11626_v49  ;;  %v11632_v37 = vld [vmem:[#allocation4 + $0x139] sm:$0xff]  ;;  %8843 = vmatmul.msk.f32.gmra.mxu0 %vm388_vm3, %v11628_v39 }
 0x576   : > { %12947 = vst [vmem:[#allocation25_spill] sm:$0xff] %v11632_v37  ;;  %v5169_v19 = vadd.f32 %v5125_v27, %v4894_v52  ;;  %v11646_v27 = vld [vmem:[#allocation4 + $0xa8] sm:$0xff]  ;;  %v11648_v52 = vld [vmem:[#allocation4 + $0x9a] sm:$0xff] }
 0x577   : > { %5544 = vst.msk [vmem:[#allocation4 + $0x141] sm:$0xff] %vm388_vm3, %v5511_v45  ;;  %8789 = vmatmul.msk.f32.gmra.mxu2 %vm388_vm3, %v11632_v37  ;;  %v11902_v2 = vld [vmem:[#allocation4 + $0x138] sm:$0xff] }
 0x578   : > { %v5444_v9 = vadd.f32 %v5400_v0, %v5169_v19  ;;  %8806 = vmatmul.msk.f32.gmra.mxu3 %vm388_vm3, %v11586_v5  ;;  %12948 = vst [vmem:[#allocation21_spill] sm:$0xff] %v11646_v27  ;;  %v4621_v19 = vadd.f32 %v11393_v28, %v11136_v25 }
 0x579   : > { %v11641_v6 = vpop.f32.mrf.mxu2  ;;  %12949 = vst [vmem:[#allocation23_spill] sm:$0xff] %v11648_v52 }
 0x57a   : > { %v5480_v12 = vadd.f32 %v11229_v7, %v5444_v9  ;;  %v5406_v43 = vpop.f32.mrf.mxu1  ;;  %v5134_v14 = vpop.f32.mrf.mxu0  ;;  %v11668_v9 = vld [vmem:[%s12635_s4] ss:$0 sm:$0xff]  ;;  %12978 = vst [vmem:[#allocation7_spill] sm:$0xff] %v11902_v2 }
 0x57b   : > { %v4853_v17 = vpop.f32.mrf.mxu3 }
 0x57c   : > { %v5512_v36 = vmax.f32 %v5480_v12, 0.0  ;;  %v4895_v45 = vadd.f32 %v4853_v17, %v4620_v56 }
 0x57d   : > { %8879 = vmatmul.msk.f32.gmra.mxu1 %vm388_vm3, %v11646_v27  ;;  %8844 = vmatmul.msk.f32.gmra.mxu0 %vm388_vm3, %v11648_v52  ;;  %v8974_v52 = vld [vmem:[%s12636_s5 + $0xd8] sm:$0xff] }
 0x57e   : > { %v11652_v0 = vld [vmem:[#allocation4 + $0x141] sm:$0xff]  ;;  %5545 = vst.msk [vmem:[#allocation4 + $0x151] sm:$0xff] %vm388_vm3, %v5512_v36  ;;  %v5170_v29 = vadd.f32 %v5128_v61, %v4895_v45  ;;  %v11671_v45 = vld [vmem:[#allocation4 + $0xb0] sm:$0xff]  ;;  %7300 = vmatpush.msra.mxu0 %v8974_v52 }
 0x57f   : > { %12950 = vst [vmem:[#allocation24_spill] sm:$0xff] %v11652_v0  ;;  %8790 = vmatmul.msk.f32.gmra.mxu2 %vm388_vm3, %v11652_v0 }
 0x580   : > { %v5445_v7 = vadd.f32 %v5403_v10, %v5170_v29  ;;  %8807 = vmatmul.msk.f32.gmra.mxu3 %vm388_vm3, %v11606_v60  ;;  %12951 = vst [vmem:[#allocation26_spill] sm:$0xff] %v11671_v45  ;;  %v11673_v29 = vld [vmem:[#allocation4 + $0xaa] sm:$0xff]  ;;  %v11923_v60 = vld [vmem:[#allocation4 + $0x13a] sm:$0xff] }
 0x581   : > { %v11661_v40 = vpop.f32.mrf.mxu2  ;;  %12952 = vst [vmem:[#allocation27_spill] sm:$0xff] %v11673_v29 }
 0x582   : > { %v5481_v56 = vadd.f32 %v11668_v9, %v5445_v7  ;;  %v5409_v61 = vpop.f32.mrf.mxu1  ;;  %v5137_v12 = vpop.f32.mrf.mxu0  ;;  %v8938_v7 = vld [vmem:[%s12636_s5 + $0xb8] sm:$0xff]  ;;  %12983 = vst [vmem:[#allocation11_spill] sm:$0xff] %v11923_v60 }
 0x583   : > { %v4856_v17 = vpop.f32.mrf.mxu3  ;;  %7021 = vmatpush.msra.mxu3 %v8938_v7 }
 0x584   : > { %v5513_v36 = vmax.f32 %v5481_v56, 0.0  ;;  %v4896_v10 = vadd.f32 %v4856_v17, %v4621_v19  ;;  %v9046_v19 = vld [vmem:[%s12636_s5 + $0x118] sm:$0xff] }
 0x585   : > { %8880 = vmatmul.msk.f32.gmra.mxu1 %vm388_vm3, %v11671_v45  ;;  %v11677_v25 = vld [vmem:[#allocation4 + $0x151] sm:$0xff]  ;;  %8845 = vmatmul.msk.f32.gmra.mxu0 %vm388_vm3, %v11673_v29 }
 0x586   : > { %12953 = vst [vmem:[#allocation28_spill] sm:$0xff] %v11677_v25  ;;  %v5171_v28 = vadd.f32 %v5131_v16, %v4896_v10  ;;  %7856 = vmatpush.msra.mxu2 %v9046_v19  ;;  %v4622_v16 = vadd.f32 %v11408_v23, %v11155_v41  ;;  %v11705_v41 = vld [vmem:[#allocation4 + $0xb2] sm:$0xff] }
 0x587   : > { %5546 = vst.msk [vmem:[#allocation4 + $0x159] sm:$0xff] %vm388_vm3, %v5513_v36  ;;  %8791 = vmatmul.msk.f32.gmra.mxu2 %vm388_vm3, %v11677_v25  ;;  %v11703_v25 = vld [vmem:[#allocation4 + $0xc0] sm:$0xff] }
 0x588   : > { %v5446_v56 = vadd.f32 %v5406_v43, %v5171_v28  ;;  %8808 = vmatmul.msk.f32.gmra.mxu3 %vm388_vm3, %v11626_v49  ;;  %v9010_v43 = vld [vmem:[%s12636_s5 + $0xf8] sm:$0xff]  ;;  %12954 = vst [vmem:[#allocation29_spill] sm:$0xff] %v11703_v25  ;;  %v11885_v49 = vld [vmem:[#allocation4 + $0x122] sm:$0xff] }
 0x589   : > { %v11692_v17 = vpop.f32.mrf.mxu2  ;;  %7578 = vmatpush.msra.mxu1 %v9010_v43  ;;  %12955 = vst [vmem:[#allocation30_spill] sm:$0xff] %v11705_v41 }
 0x58a   : > { %v5482_v36 = vadd.f32 %v11668_v9, %v5446_v56  ;;  %v5412_v10 = vpop.f32.mrf.mxu1  ;;  %v5140_v29 = vpop.f32.mrf.mxu0  ;;  %12976 = vst [vmem:[#allocation6_spill] sm:$0xff] %v11885_v49 }
 0x58b   : > { %v4859_v28 = vpop.f32.mrf.mxu3 }
 0x58c   : > { %v5514_v7 = vmax.f32 %v5482_v36, 0.0  ;;  %v4897_v19 = vadd.f32 %v4859_v28, %v4622_v16  ;;  %v4623_v36 = vadd.f32 %v11424_v13, %v11181_v63 }
 0x58d   : > { %8881 = vmatmul.msk.f32.gmra.mxu1 %vm388_vm3, %v11703_v25  ;;  %8846 = vmatmul.msk.f32.gmra.mxu0 %vm388_vm3, %v11705_v41 }
 0x58e   : > { %v11709_v23 = vld [vmem:[#allocation4 + $0x159] sm:$0xff]  ;;  %5547 = vst.msk [vmem:[#allocation4 + $0x169] sm:$0xff] %vm388_vm3, %v5514_v7  ;;  %v5172_v56 = vadd.f32 %v5134_v14, %v4897_v19  ;;  %v11723_v14 = vld [vmem:[#allocation4 + $0xc8] sm:$0xff] }
 0x58f   : > { %12956 = vst [vmem:[#allocation31_spill] sm:$0xff] %v11709_v23  ;;  %8792 = vmatmul.msk.f32.gmra.mxu2 %vm388_vm3, %v11709_v23  ;;  %v11725_v19 = vld [vmem:[#allocation4 + $0xc2] sm:$0xff] }
 0x590   : > { %v5447_v52 = vadd.f32 %v5409_v61, %v5172_v56  ;;  %8809 = vmatmul.msk.f32.gmra.mxu3 %vm388_vm3, %v11646_v27  ;;  %12957 = vst [vmem:[#allocation34_spill] sm:$0xff] %v11723_v14  ;;  %v4624_v56 = vadd.f32 %v11434_v47, %v11206_v42 }
 0x591   : > { %v11718_v16 = vpop.f32.mrf.mxu2  ;;  %12958 = vst [vmem:[#allocation32_spill] sm:$0xff] %v11725_v19 }
 0x592   : > { %v5483_v43 = vadd.f32 %v11668_v9, %v5447_v52  ;;  %v5415_v28 = vpop.f32.mrf.mxu1  ;;  %v6192_v39 = vpop.f32.mrf.mxu0 }
 0x593   : > { %v4862_v41 = vpop.f32.mrf.mxu3 }
 0x594   : > { %v5515_v0 = vmax.f32 %v5483_v43, 0.0  ;;  %v4898_v7 = vadd.f32 %v4862_v41, %v4623_v36 }
 0x595   : > { %8882 = vmatmul.msk.f32.gmra.mxu1 %vm388_vm3, %v11723_v14  ;;  %v11729_v61 = vld [vmem:[#allocation4 + $0x169] sm:$0xff]  ;;  %8847 = vmatmul.msk.f32.gmra.mxu0 %vm388_vm3, %v11725_v19 }
 0x596   : > { %12959 = vst [vmem:[#allocation33_spill] sm:$0xff] %v11729_v61  ;;  %v5173_v63 = vadd.f32 %v5137_v12, %v4898_v7  ;;  %v11743_v12 = vld [vmem:[#allocation4 + $0xd8] sm:$0xff]  ;;  %v11745_v7 = vld [vmem:[#allocation4 + $0xca] sm:$0xff] }
 0x597   : > { %5548 = vst.msk [vmem:[#allocation4 + $0x171] sm:$0xff] %vm388_vm3, %v5515_v0  ;;  %8793 = vmatmul.msk.f32.gmra.mxu2 %vm388_vm3, %v11729_v61 }
 0x598   : > { %v5448_v13 = vadd.f32 %v5412_v10, %v5173_v63  ;;  %8810 = vmatmul.msk.f32.gmra.mxu3 %vm388_vm3, %v11671_v45  ;;  %12960 = vst [vmem:[#allocation35_spill] sm:$0xff] %v11743_v12  ;;  %v11762_v45 = vld [vmem:[#allocation4 + $0xe0] sm:$0xff] }
 0x599   : > { %v11738_v41 = vpop.f32.mrf.mxu2  ;;  %12961 = vst [vmem:[#allocation36_spill] sm:$0xff] %v11745_v7 }
 0x59a   : > { %v5484_v52 = vadd.f32 %v11668_v9, %v5448_v13  ;;  %v6470_v36 = vpop.f32.mrf.mxu1  ;;  %v6195_v43 = vpop.f32.mrf.mxu0  ;;  %12963 = vst [vmem:[#allocation38_spill] sm:$0xff] %v11762_v45 }
 0x59b   : > { %v4865_v19 = vpop.f32.mrf.mxu3 }
 0x59c   : > { %v5516_v23 = vmax.f32 %v5484_v52, 0.0  ;;  %v4899_v0 = vadd.f32 %v4865_v19, %v4624_v56 }
 0x59d   : > { %8883 = vmatmul.msk.f32.gmra.mxu1 %vm388_vm3, %v11743_v12  ;;  %8848 = vmatmul.msk.f32.gmra.mxu0 %vm388_vm3, %v11745_v7 }
 0x59e   : > { %v11749_v10 = vld [vmem:[#allocation4 + $0x171] sm:$0xff]  ;;  %5549 = vst.msk [vmem:[#allocation4 + $0x181] sm:$0xff] %vm388_vm3, %v5516_v23  ;;  %v5174_v42 = vadd.f32 %v5140_v29, %v4899_v0  ;;  %v11764_v29 = vld [vmem:[#allocation4 + $0xda] sm:$0xff] }
 0x59f   : > { %12962 = vst [vmem:[#allocation37_spill] sm:$0xff] %v11749_v10  ;;  %8794 = vmatmul.msk.f32.gmra.mxu2 %vm388_vm3, %v11749_v10  ;;  %v6598_v23 = vld [vmem:[#allocation4 + $0x19] sm:$0xff] }
 0x5a0   : > { %v5449_v47 = vadd.f32 %v5415_v28, %v5174_v42  ;;  %8811 = vmatmul.msk.f32.gmra.mxu3 %vm388_vm3, %v11703_v25  ;;  %12964 = vst [vmem:[#allocation39_spill] sm:$0xff] %v11764_v29  ;;  %v11795_v10 = vld [vmem:[#allocation4 + $0xf8] sm:$0xff] }
 0x5a1   : > { %v11758_v19 = vpop.f32.mrf.mxu2  ;;  %12967 = vst [vmem:[#allocation41_spill] sm:$0xff] %v11795_v10  ;;  %v11816_v25 = vld [vmem:[#allocation4 + $0xfa] sm:$0xff] }
 0x5a2   : > { %v5485_v63 = vadd.f32 %v11668_v9, %v5449_v47  ;;  %v6473_v13 = vpop.f32.mrf.mxu1  ;;  %v6198_v56 = vpop.f32.mrf.mxu0  ;;  %12970 = vst [vmem:[#allocation45_spill] sm:$0xff] %v11816_v25 }
 0x5a3   : > { %v5946_v52 = vpop.f32.mrf.mxu3 }
 0x5a4   : > { %v5517_v61 = vmax.f32 %v5485_v63, 0.0  ;;  %v5947_v7 = vadd.f32 %v5946_v52, %v11445_v20  ;;  %v11779_v52 = vld [vmem:[#allocation4 + $0xf0] sm:$0xff] }
 0x5a5   : > { %8884 = vmatmul.msk.f32.gmra.mxu1 %vm388_vm3, %v11762_v45  ;;  %8849 = vmatmul.msk.f32.gmra.mxu0 %vm388_vm3, %v11764_v29  ;;  %12965 = vst [vmem:[#allocation40_spill] sm:$0xff] %v11779_v52  ;;  %v11781_v29 = vld [vmem:[#allocation4 + $0xe2] sm:$0xff] }
 0x5a6   : > { %5550 = vst.msk [vmem:[#allocation4 + $0x189] sm:$0xff] %vm388_vm3, %v5517_v61  ;;  %v6288_v9 = vadd.f32 %v6192_v39, %v5947_v7  ;;  %v6599_v39 = vld [vmem:[#allocation4 + $0x21] sm:$0xff] }
 0x5a7   : > { %8903 = vmatmul.msk.f32.vlgmr.msrb.gmra.mxu2 %vm388_vm3, %v6598_v23  ;;  %12966 = vst [vmem:[#allocation42_spill] sm:$0xff] %v11781_v29 }
 0x5a8   : > { %8812 = vmatmul.msk.f32.gmra.mxu3 %vm388_vm3, %v11723_v14  ;;  %v11774_v20 = vadd.f32 %v6470_v36, %v6288_v9  ;;  %v11797_v14 = vld [vmem:[#allocation4 + $0xf2] sm:$0xff] }
 0x5a9   : > { %v11776_v28 = vpop.f32.mrf.mxu2  ;;  %12968 = vst [vmem:[#allocation43_spill] sm:$0xff] %v11797_v14 }
 0x5aa   : > { %v6476_v0 = vpop.f32.mrf.mxu1  ;;  %v6201_v42 = vpop.f32.mrf.mxu0 }
 0x5ab   : > { %v5949_v47 = vpop.f32.mrf.mxu3 }
 0x5ac   : > { %v5950_v63 = vadd.f32 %v5949_v47, %v11464_v34 }
 0x5ad   : > { %8885 = vmatmul.msk.f32.gmra.mxu1 %vm388_vm3, %v11779_v52  ;;  %8850 = vmatmul.msk.f32.gmra.mxu0 %vm388_vm3, %v11781_v29 }
 0x5ae   : > { %v6289_v61 = vadd.f32 %v6195_v43, %v5950_v63  ;;  %v11801_v43 = vld [vmem:[#allocation4 + $0x31] sm:$0xff] }
 0x5af   : > { %8904 = vmatmul.msk.f32.gmra.mxu2 %vm388_vm3, %v6599_v39 }
 0x5b0   : > { %8813 = vmatmul.msk.f32.gmra.mxu3 %vm388_vm3, %v11743_v12  ;;  %v11790_v36 = vadd.f32 %v6473_v13, %v6289_v61  ;;  %v11814_v12 = vld [vmem:[#allocation4 + $0x108] sm:$0xff] }
 0x5b1   : > { %v11792_v34 = vpop.f32.mrf.mxu2  ;;  %12969 = vst [vmem:[#allocation44_spill] sm:$0xff] %v11814_v12 }
 0x5b2   : > { %v6479_v7 = vpop.f32.mrf.mxu1  ;;  %v6204_v23 = vpop.f32.mrf.mxu0 }
 0x5b3   : > { %v5952_v9 = vpop.f32.mrf.mxu3 }
 0x5b4   : > { %v5953_v47 = vadd.f32 %v5952_v9, %v11481_v24 }
 0x5b5   : > { %8886 = vmatmul.msk.f32.gmra.mxu1 %vm388_vm3, %v11795_v10  ;;  %8851 = vmatmul.msk.f32.gmra.mxu0 %vm388_vm3, %v11797_v14  ;;  %v8937_v14 = vld [vmem:[%s12636_s5 + $0xb0] sm:$0xff] }
 0x5b6   : > { %v6290_v13 = vadd.f32 %v6198_v56, %v5953_v47  ;;  %v11820_v56 = vld [vmem:[#allocation4 + $0x39] sm:$0xff]  ;;  %7022 = vmatpush.msra.mxu3 %v8937_v14 }
 0x5b7   : > { %8905 = vmatmul.msk.f32.gmra.mxu2 %vm388_vm3, %v11801_v43 }
 0x5b8   : > { %8814 = vmatmul.msk.f32.gmra.mxu3 %vm388_vm3, %v11762_v45  ;;  %v11809_v24 = vadd.f32 %v6476_v0, %v6290_v13 }
 0x5b9   : > { %v11811_v63 = vpop.f32.mrf.mxu2 }
 0x5ba   : > { %v6482_v39 = vpop.f32.mrf.mxu1  ;;  %v6207_v61 = vpop.f32.mrf.mxu0 }
 0x5bb   : > { %v5955_v9 = vpop.f32.mrf.mxu3 }
 0x5bc   : > { %v5956_v29 = vadd.f32 %v5955_v9, %v11498_v44 }
 0x5bd   : > { %8887 = vmatmul.msk.f32.gmra.mxu1 %vm388_vm3, %v11814_v12  ;;  %8852 = vmatmul.msk.f32.gmra.mxu0 %vm388_vm3, %v11816_v25  ;;  %v11838_v25 = vld [vmem:[#allocation4 + $0x10a] sm:$0xff] }
 0x5be   : > { %v6291_v0 = vadd.f32 %v6201_v42, %v5956_v29  ;;  %v11836_v42 = vld [vmem:[#allocation4 + $0x110] sm:$0xff]  ;;  %12972 = vst [vmem:[#allocation47_spill] sm:$0xff] %v11838_v25 }
 0x5bf   : > { %8906 = vmatmul.msk.f32.gmra.mxu2 %vm388_vm3, %v11820_v56  ;;  %12971 = vst [vmem:[#allocation46_spill] sm:$0xff] %v11836_v42 }
 0x5c0   : > { %8815 = vmatmul.msk.f32.gmra.mxu3 %vm388_vm3, %v11779_v52  ;;  %v11828_v44 = vadd.f32 %v6479_v7, %v6291_v0  ;;  %v11842_v7 = vld [vmem:[#allocation4 + $0x49] sm:$0xff] }
 0x5c1   : > { %v11830_v47 = vpop.f32.mrf.mxu2 }
 0x5c2   : > { %v6485_v13 = vpop.f32.mrf.mxu1  ;;  %v6210_v9 = vpop.f32.mrf.mxu0 }
 0x5c3   : > { %v5958_v45 = vpop.f32.mrf.mxu3 }
 0x5c4   : > { %v5959_v29 = vadd.f32 %v5958_v45, %v11518_v38  ;;  %v9045_v38 = vld [vmem:[%s12636_s5 + $0x110] sm:$0xff] }
 0x5c5   : > { %8888 = vmatmul.msk.f32.gmra.mxu1 %vm388_vm3, %v11836_v42  ;;  %8853 = vmatmul.msk.f32.gmra.mxu0 %vm388_vm3, %v11838_v25 }
 0x5c6   : > { %v6292_v0 = vadd.f32 %v6204_v23, %v5959_v29  ;;  %7857 = vmatpush.msra.mxu2 %v9045_v38  ;;  %v8973_v23 = vld [vmem:[%s12636_s5 + $0xd0] sm:$0xff] }
 0x5c7   : > { %8907 = vmatmul.msk.f32.gmra.mxu2 %vm388_vm3, %v11842_v7  ;;  %v9009_v29 = vld [vmem:[%s12636_s5 + $0xf0] sm:$0xff]  ;;  %7301 = vmatpush.msra.mxu0 %v8973_v23 }
 0x5c8   : > { %8816 = vmatmul.msk.f32.gmra.mxu3 %vm388_vm3, %v11795_v10  ;;  %v11853_v45 = vadd.f32 %v6482_v39, %v6292_v0  ;;  %7579 = vmatpush.msra.mxu1 %v9009_v29  ;;  %v11864_v10 = vld [vmem:[#allocation4 + $0x120] sm:$0xff]  ;;  %v11866_v39 = vld [vmem:[#allocation4 + $0x112] sm:$0xff] }
 0x5c9   : > { %v11855_v14 = vpop.f32.mrf.mxu2  ;;  %12973 = vst [vmem:[#allocation48_spill] sm:$0xff] %v11864_v10  ;;  %v11870_v0 = vld [vmem:[#allocation4 + $0x51] sm:$0xff] }
 0x5ca   : > { %v6488_v52 = vpop.f32.mrf.mxu1  ;;  %v6213_v32 = vpop.f32.mrf.mxu0  ;;  %12974 = vst [vmem:[#allocation49_spill] sm:$0xff] %v11866_v39 }
 0x5cb   : > { %v5961_v25 = vpop.f32.mrf.mxu3 }
 0x5cc   : > { %v5962_v38 = vadd.f32 %v5961_v25, %v11541_v48 }
 0x5cd   : > { %8889 = vmatmul.msk.f32.gmra.mxu1 %vm388_vm3, %v11864_v10  ;;  %8854 = vmatmul.msk.f32.gmra.mxu0 %vm388_vm3, %v11866_v39 }
 0x5ce   : > { %v6293_v37 = vadd.f32 %v6207_v61, %v5962_v38  ;;  %v11889_v61 = vld [vmem:[#allocation4 + $0x61] sm:$0xff] }
 0x5cf   : > { %8908 = vmatmul.msk.f32.gmra.mxu2 %vm388_vm3, %v11870_v0 }
 0x5d0   : > { %8817 = vmatmul.msk.f32.gmra.mxu3 %vm388_vm3, %v11814_v12  ;;  %v11878_v48 = vadd.f32 %v6485_v13, %v6293_v37 }
 0x5d1   : > { %v11880_v25 = vpop.f32.mrf.mxu2 }
 0x5d2   : > { %v6491_v23 = vpop.f32.mrf.mxu1  ;;  %v6216_v29 = vpop.f32.mrf.mxu0 }
 0x5d3   : > { %v5964_v27 = vpop.f32.mrf.mxu3 }
 0x5d4   : > { %v5965_v53 = vadd.f32 %v5964_v27, %v11561_v11 }
 0x5d5   : > { %8890 = vmatmul.msk.f32.gmra.mxu1 %vm388_vm3, %v11883_v8  ;;  %8855 = vmatmul.msk.f32.gmra.mxu0 %vm388_vm3, %v11885_v49 }
 0x5d6   : > { %v6294_v37 = vadd.f32 %v6210_v9, %v5965_v53  ;;  %v11908_v53 = vld [vmem:[#allocation4 + $0x69] sm:$0xff] }
 0x5d7   : > { %8909 = vmatmul.msk.f32.gmra.mxu2 %vm388_vm3, %v11889_v61 }
 0x5d8   : > { %8818 = vmatmul.msk.f32.gmra.mxu3 %vm388_vm3, %v11836_v42  ;;  %v11897_v11 = vadd.f32 %v6488_v52, %v6294_v37 }
 0x5d9   : > { %v11899_v27 = vpop.f32.mrf.mxu2 }
 0x5da   : > { %12977 = vst [vmem:[#allocation9_spill] sm:$0xff] %v11897_v11  ;;  %v6494_v13 = vpop.f32.mrf.mxu1  ;;  %v6219_v38 = vpop.f32.mrf.mxu0  ;;  %v11921_v11 = vld [vmem:[#allocation4 + $0x140] sm:$0xff] }
 0x5db   : > { %v5967_v39 = vpop.f32.mrf.mxu3  ;;  %12982 = vst [vmem:[#allocation13_spill] sm:$0xff] %v11921_v11 }
 0x5dc   : > { %v5968_v12 = vadd.f32 %v5967_v39, %v11581_v54 }
 0x5dd   : > { %8891 = vmatmul.msk.f32.gmra.mxu1 %vm388_vm3, %v11902_v2  ;;  %8856 = vmatmul.msk.f32.gmra.mxu0 %vm388_vm3, %v11904_v50 }
 0x5de   : > { %v6295_v52 = vadd.f32 %v6213_v32, %v5968_v12  ;;  %v11927_v32 = vld [vmem:[#allocation4 + $0x79] sm:$0xff] }
 0x5df   : > { %8910 = vmatmul.msk.f32.gmra.mxu2 %vm388_vm3, %v11908_v53 }
 0x5e0   : > { %8819 = vmatmul.msk.f32.gmra.mxu3 %vm388_vm3, %v11864_v10  ;;  %v11916_v54 = vadd.f32 %v6491_v23, %v6295_v52 }
 0x5e1   : > { %v11918_v9 = vpop.f32.mrf.mxu2 }
 0x5e2   : > { %12980 = vst [vmem:[#allocation10_spill] sm:$0xff] %v11916_v54  ;;  %v6497_v39 = vpop.f32.mrf.mxu1  ;;  %v6222_v37 = vpop.f32.mrf.mxu0  ;;  %v11940_v54 = vld [vmem:[#allocation4 + $0x150] sm:$0xff] }
 0x5e3   : > { %12981 = vst [vmem:[#allocation12_spill] sm:$0xff] %v11918_v9  ;;  %v5970_v49 = vpop.f32.mrf.mxu3  ;;  %v11942_v9 = vld [vmem:[#allocation4 + $0x142] sm:$0xff] }
 0x5e4   : > { %v5971_v42 = vadd.f32 %v5970_v49, %v11601_v59  ;;  %12986 = vst [vmem:[#allocation52_spill] sm:$0xff] %v11940_v54 }
 0x5e5   : > { %8892 = vmatmul.msk.f32.gmra.mxu1 %vm388_vm3, %v11921_v11  ;;  %8857 = vmatmul.msk.f32.gmra.mxu0 %vm388_vm3, %v11923_v60  ;;  %12987 = vst [vmem:[#allocation53_spill] sm:$0xff] %v11942_v9 }
 0x5e6   : > { %v6296_v12 = vadd.f32 %v6216_v29, %v5971_v42  ;;  %v11946_v42 = vld [vmem:[#allocation4 + $0x81] sm:$0xff] }
 0x5e7   : > { %8911 = vmatmul.msk.f32.gmra.mxu2 %vm388_vm3, %v11927_v32 }
 0x5e8   : > { %8820 = vmatmul.msk.f32.gmra.mxu3 %vm388_vm3, %v11883_v8  ;;  %v11935_v59 = vadd.f32 %v6494_v13, %v6296_v12 }
 0x5e9   : > { %v11937_v49 = vpop.f32.mrf.mxu2 }
 0x5ea   : > { %12984 = vst [vmem:[#allocation50_spill] sm:$0xff] %v11935_v59  ;;  %v6500_v23 = vpop.f32.mrf.mxu1  ;;  %v6225_v52 = vpop.f32.mrf.mxu0  ;;  %v11959_v59 = vld [vmem:[#allocation4 + $0x158] sm:$0xff] }
 0x5eb   : > { %12985 = vst [vmem:[#allocation51_spill] sm:$0xff] %v11937_v49  ;;  %v5973_v50 = vpop.f32.mrf.mxu3  ;;  %v11961_v49 = vld [vmem:[#allocation4 + $0x152] sm:$0xff] }
 0x5ec   : > { %v5974_v10 = vadd.f32 %v5973_v50, %v11621_v51  ;;  %12989 = vst [vmem:[#allocation55_spill] sm:$0xff] %v11959_v59 }
 0x5ed   : > { %8893 = vmatmul.msk.f32.gmra.mxu1 %vm388_vm3, %v11940_v54  ;;  %8858 = vmatmul.msk.f32.gmra.mxu0 %vm388_vm3, %v11942_v9  ;;  %12990 = vst [vmem:[#allocation56_spill] sm:$0xff] %v11961_v49 }
 0x5ee   : > { %v6297_v29 = vadd.f32 %v6219_v38, %v5974_v10  ;;  %v11965_v10 = vld [vmem:[#allocation4 + $0x91] sm:$0xff] }
 0x5ef   : > { %8912 = vmatmul.msk.f32.gmra.mxu2 %vm388_vm3, %v11946_v42 }
 0x5f0   : > { %8821 = vmatmul.msk.f32.gmra.mxu3 %vm388_vm3, %v11902_v2  ;;  %v11954_v50 = vadd.f32 %v6497_v39, %v6297_v29  ;;  %v8972_v39 = vld [vmem:[%s12636_s5 + $0xc8] sm:$0xff]  ;;  %v11992_v2 = vld [vmem:[#allocation4 + $0x15a] sm:$0xff] }
 0x5f1   : > { %v9008_v29 = vld [vmem:[%s12636_s5 + $0xe8] sm:$0xff]  ;;  %7302 = vmatpush.msra.mxu0 %v8972_v39  ;;  %12993 = vst [vmem:[#allocation59_spill] sm:$0xff] %v11992_v2  ;;  %v11996_v39 = vld [vmem:[#allocation4 + $0x99] sm:$0xff] }
 0x5f2   : > { %12988 = vst [vmem:[#allocation54_spill] sm:$0xff] %v11954_v50  ;;  %v11956_v51 = vpop.f32.mrf.mxu2  ;;  %v6503_v13 = vpop.f32.mrf.mxu1  ;;  %7580 = vmatpush.msra.mxu1 %v9008_v29  ;;  %v12017_v50 = vld [vmem:[#allocation4 + $0x16a] sm:$0xff] }
 0x5f3   : > { %v6228_v12 = vpop.f32.mrf.mxu0  ;;  %v5976_v60 = vpop.f32.mrf.mxu3  ;;  %12995 = vst [vmem:[#allocation61_spill] sm:$0xff] %v12017_v50 }
 0x5f4   : > { %v5977_v8 = vadd.f32 %v5976_v60, %v11641_v6 }
 0x5f5   : > { %8894 = vmatmul.msk.f32.gmra.mxu1 %vm388_vm3, %v11959_v59  ;;  %8859 = vmatmul.msk.f32.gmra.mxu0 %vm388_vm3, %v11961_v49 }
 0x5f6   : > { %v6298_v38 = vadd.f32 %v6222_v37, %v5977_v8  ;;  %v8971_v37 = vld [vmem:[%s12636_s5 + $0xc0] sm:$0xff] }
 0x5f7   : > { %8913 = vmatmul.msk.f32.gmra.mxu2 %vm388_vm3, %v11965_v10  ;;  %7303 = vmatpush.msra.mxu0 %v8971_v37  ;;  %v8935_v37 = vld [vmem:[%s12636_s5 + $0xa0] sm:$0xff] }
 0x5f8   : > { %8822 = vmatmul.msk.f32.gmra.mxu3 %vm388_vm3, %v11921_v11  ;;  %v11973_v60 = vadd.f32 %v6500_v23, %v6298_v38  ;;  %v9007_v23 = vld [vmem:[%s12636_s5 + $0xe0] sm:$0xff]  ;;  %v11990_v11 = vld [vmem:[#allocation4 + $0x168] sm:$0xff] }
 0x5f9   : > { %7581 = vmatpush.msra.mxu1 %v9007_v23 }
 0x5fa   : > { %12991 = vst [vmem:[#allocation57_spill] sm:$0xff] %v11973_v60  ;;  %v11975_v6 = vpop.f32.mrf.mxu2  ;;  %v6506_v49 = vpop.f32.mrf.mxu1 }
 0x5fb   : > { %12992 = vst [vmem:[#allocation58_spill] sm:$0xff] %v11975_v6  ;;  %v6231_v8 = vpop.f32.mrf.mxu0  ;;  %v5979_v38 = vpop.f32.mrf.mxu3  ;;  %v12015_v6 = vld [vmem:[#allocation4 + $0x170] sm:$0xff] }
 0x5fc   : > { %v5980_v9 = vadd.f32 %v5979_v38, %v11661_v40  ;;  %v8936_v40 = vld [vmem:[%s12636_s5 + $0xa8] sm:$0xff] }
 0x5fd   : > { %8895 = vmatmul.msk.f32.gmra.mxu1 %vm388_vm3, %v11990_v11  ;;  %8860 = vmatmul.msk.f32.gmra.mxu0 %vm388_vm3, %v11992_v2 }
 0x5fe   : > { %v6299_v29 = vadd.f32 %v6225_v52, %v5980_v9  ;;  %7023 = vmatpush.msra.mxu3 %v8936_v40  ;;  %v12021_v40 = vld [vmem:[#allocation4 + $0xa9] sm:$0xff] }
 0x5ff   : > { %8914 = vmatmul.msk.f32.gmra.mxu2 %vm388_vm3, %v11996_v39 }
 0x600   : > { %8823 = vmatmul.msk.f32.gmra.mxu3 %vm388_vm3, %v11940_v54  ;;  %v12010_v23 = vadd.f32 %v6503_v13, %v6299_v29 }
 0x601   : > { %7024 = vmatpush.msra.mxu3 %v8935_v37 }
 0x602   : > { %12994 = vst [vmem:[#allocation60_spill] sm:$0xff] %v12010_v23  ;;  %v12012_v38 = vpop.f32.mrf.mxu2  ;;  %v6509_v9 = vpop.f32.mrf.mxu1 }
 0x603   : > { %v6234_v52 = vpop.f32.mrf.mxu0  ;;  %v5982_v2 = vpop.f32.mrf.mxu3 }
 0x604   : > { %v5983_v60 = vadd.f32 %v5982_v2, %v11692_v17  ;;  %v9044_v2 = vld [vmem:[%s12636_s5 + $0x108] sm:$0xff] }
 0x605   : > { %8896 = vmatmul.msk.f32.gmra.mxu1 %vm388_vm3, %v12015_v6  ;;  %8861 = vmatmul.msk.f32.gmra.mxu0 %vm388_vm3, %v12017_v50  ;;  %v12039_v50 = vld [vmem:[#allocation4 + $0x172] sm:$0xff] }
 0x606   : > { %v6300_v13 = vadd.f32 %v6228_v12, %v5983_v60  ;;  %7858 = vmatpush.msra.mxu2 %v9044_v2  ;;  %v12037_v60 = vld [vmem:[#allocation4 + $0x180] sm:$0xff]  ;;  %12999 = vst [vmem:[#allocation65_spill] sm:$0xff] %v12039_v50 }
 0x607   : > { %8915 = vmatmul.msk.f32.gmra.mxu2 %vm388_vm3, %v12021_v40  ;;  %12998 = vst [vmem:[#allocation64_spill] sm:$0xff] %v12037_v60 }
 0x608   : > { %8824 = vmatmul.msk.f32.gmra.mxu3 %vm388_vm3, %v11959_v59  ;;  %v12032_v17 = vadd.f32 %v6506_v49, %v6300_v13  ;;  %v9099_v49 = vld [vmem:[#allocation4 + $0xb1] sm:$0xff] }
 0x60a   : > { %12996 = vst [vmem:[#allocation62_spill] sm:$0xff] %v12032_v17  ;;  %v12034_v29 = vpop.f32.mrf.mxu2  ;;  %v6512_v37 = vpop.f32.mrf.mxu1 }
 0x60b   : > { %12997 = vst [vmem:[#allocation63_spill] sm:$0xff] %v12034_v29  ;;  %v6237_v54 = vpop.f32.mrf.mxu0  ;;  %v5985_v23 = vpop.f32.mrf.mxu3 }
 0x60c   : > { %v5986_v12 = vadd.f32 %v5985_v23, %v11718_v16 }
 0x60d   : > { %8897 = vmatmul.msk.f32.gmra.mxu1 %vm388_vm3, %v12037_v60  ;;  %8862 = vmatmul.msk.f32.gmra.mxu0 %vm388_vm3, %v12039_v50  ;;  %v12053_v60 = vld [vmem:[#allocation4 + $0x188] sm:$0xff] }
 0x60e   : > { %v6301_v2 = vadd.f32 %v6231_v8, %v5986_v12  ;;  %v9100_v12 = vld [vmem:[#allocation4 + $0xc1] sm:$0xff] }
 0x60f   : > { %8916 = vmatmul.msk.f32.gmra.mxu2 %vm388_vm3, %v9099_v49 }
 0x610   : > { %8825 = vmatmul.msk.f32.gmra.mxu3 %vm388_vm3, %v11990_v11  ;;  %v12048_v13 = vadd.f32 %v6509_v9, %v6301_v2 }
 0x612   : > { %v12050_v16 = vpop.f32.mrf.mxu2  ;;  %v6515_v23 = vpop.f32.mrf.mxu1 }
 0x613   : > { %v6240_v59 = vpop.f32.mrf.mxu0  ;;  %v5988_v17 = vpop.f32.mrf.mxu3 }
 0x614   : > { %v5989_v29 = vadd.f32 %v5988_v17, %v11738_v41 }
 0x615   : > { %8898 = vmatmul.msk.f32.gmra.mxu1 %vm388_vm3, %v12053_v60  ;;  %8975 = vmatmul.msk.f32.vlgmr.msra.gmra.mxu0 %vm388_vm3, %v11454_v3 }
 0x616   : > { %v6302_v8 = vadd.f32 %v6234_v52, %v5989_v29  ;;  %v6876_v52 = vld [vmem:[#allocation4 + $0x1a] sm:$0xff] }
 0x617   : > { %8917 = vmatmul.msk.f32.gmra.mxu2 %vm388_vm3, %v9100_v12 }
 0x618   : > { %8826 = vmatmul.msk.f32.gmra.mxu3 %vm388_vm3, %v12015_v6  ;;  %v12062_v9 = vadd.f32 %v6512_v37, %v6302_v8 }
 0x61a   : > { %v12064_v2 = vpop.f32.mrf.mxu2  ;;  %v6518_v41 = vpop.f32.mrf.mxu1 }
 0x61b   : > { %v6243_v17 = vpop.f32.mrf.mxu0  ;;  %v5991_v49 = vpop.f32.mrf.mxu3 }
 0x61c   : > { %v5992_v50 = vadd.f32 %v5991_v49, %v11758_v19 }
 0x61d   : > { %9011 = vmatmul.msk.f32.vlgmr.msra.gmra.mxu1 %vm388_vm3, %v11801_v43  ;;  %8976 = vmatmul.msk.f32.gmra.mxu0 %vm388_vm3, %v11470_v46 }
 0x61e   : > { %v6303_v3 = vadd.f32 %v6237_v54, %v5992_v50 }
 0x61f   : > { %8918 = vmatmul.msk.f32.gmra.mxu2 %vm388_vm3, %v11458_v35  ;;  %v9101_v35 = vld [vmem:[#allocation4 + $0x22] sm:$0xff] }
 0x620   : > { %8939 = vmatmul.msk.f32.vlgmr.msra.gmra.mxu3 %vm388_vm3, %v6876_v52  ;;  %v12074_v29 = vadd.f32 %v6515_v23, %v6303_v3 }
 0x622   : > { %v12076_v37 = vpop.f32.mrf.mxu2  ;;  %v6521_v8 = vpop.f32.mrf.mxu1 }
 0x623   : > { %v6246_v12 = vpop.f32.mrf.mxu0  ;;  %v5994_v19 = vpop.f32.mrf.mxu3 }
 0x624   : > { %v5995_v49 = vadd.f32 %v5994_v19, %v11776_v28 }
 0x625   : > { %9012 = vmatmul.msk.f32.gmra.mxu1 %vm388_vm3, %v11820_v56  ;;  %8977 = vmatmul.msk.f32.gmra.mxu0 %vm388_vm3, %v11486_v22  ;;  %v9102_v22 = vld [vmem:[#allocation4 + $0x32] sm:$0xff] }
 0x626   : > { %v6304_v46 = vadd.f32 %v6240_v59, %v5995_v49 }
 0x627   : > { %8919 = vmatmul.msk.f32.gmra.mxu2 %vm388_vm3, %v11474_v18 }
 0x628   : > { %8940 = vmatmul.msk.f32.gmra.mxu3 %vm388_vm3, %v9101_v35  ;;  %v12086_v43 = vadd.f32 %v6518_v41, %v6304_v46 }
 0x62a   : > { %v6748_v54 = vpop.f32.mrf.mxu2  ;;  %v6524_v50 = vpop.f32.mrf.mxu1 }
 0x62b   : > { %v12089_v23 = vadd.f32 %v6748_v54, %v11774_v20  ;;  %v6249_v28 = vpop.f32.mrf.mxu0  ;;  %v5997_v3 = vpop.f32.mrf.mxu3 }
 0x62c   : > { %v5998_v56 = vadd.f32 %v5997_v3, %v11792_v34 }
 0x62d   : > { %9013 = vmatmul.msk.f32.gmra.mxu1 %vm388_vm3, %v11842_v7  ;;  %8978 = vmatmul.msk.f32.gmra.mxu0 %vm388_vm3, %v11503_v4  ;;  %v9103_v4 = vld [vmem:[#allocation4 + $0x3a] sm:$0xff] }
 0x62e   : > { %v6305_v18 = vadd.f32 %v6243_v17, %v5998_v56 }
 0x62f   : > { %8920 = vmatmul.msk.f32.gmra.mxu2 %vm388_vm3, %v11490_v55 }
 0x630   : > { %8941 = vmatmul.msk.f32.gmra.mxu3 %vm388_vm3, %v9102_v22  ;;  %v12099_v59 = vadd.f32 %v6521_v8, %v6305_v18  ;;  %v13001_v22 = vld [vmem:[#allocation15_spill] sm:$0xff] }
 0x632   : > { %v6751_v20 = vpop.f32.mrf.mxu2  ;;  %v6527_v41 = vpop.f32.mrf.mxu1 }
 0x633   : > { %v12102_v52 = vadd.f32 %v6751_v20, %v11790_v36  ;;  %v6252_v34 = vpop.f32.mrf.mxu0  ;;  %v6000_v19 = vpop.f32.mrf.mxu3 }
 0x634   : > { %v6001_v7 = vadd.f32 %v6000_v19, %v11811_v63 }
 0x635   : > { %9014 = vmatmul.msk.f32.gmra.mxu1 %vm388_vm3, %v11870_v0  ;;  %8979 = vmatmul.msk.f32.gmra.mxu0 %vm388_vm3, %v11523_v57 }
 0x636   : > { %v6306_v55 = vadd.f32 %v6246_v12, %v6001_v7 }
 0x637   : > { %8921 = vmatmul.msk.f32.gmra.mxu2 %vm388_vm3, %v11509_v21 }
 0x638   : > { %8942 = vmatmul.msk.f32.gmra.mxu3 %vm388_vm3, %v9103_v4  ;;  %v12112_v17 = vadd.f32 %v6524_v50, %v6306_v55  ;;  %v13005_v4 = vld [vmem:[#allocation18_spill] sm:$0xff] }
 0x63a   : > { %v6754_v36 = vpop.f32.mrf.mxu2  ;;  %v6530_v8 = vpop.f32.mrf.mxu1 }
 0x63b   : > { %v12115_v49 = vadd.f32 %v6754_v36, %v11809_v24  ;;  %v6255_v63 = vpop.f32.mrf.mxu0  ;;  %v6003_v46 = vpop.f32.mrf.mxu3 }
 0x63c   : > { %v6004_v0 = vadd.f32 %v6003_v46, %v11830_v47 }
 0x63d   : > { %9015 = vmatmul.msk.f32.gmra.mxu1 %vm388_vm3, %v11889_v61  ;;  %8980 = vmatmul.msk.f32.gmra.mxu0 %vm388_vm3, %v11546_v15 }
 0x63e   : > { %v6307_v21 = vadd.f32 %v6249_v28, %v6004_v0 }
 0x63f   : > { %8922 = vmatmul.msk.f32.gmra.mxu2 %vm388_vm3, %v11529_v58 }
 0x640   : > { %8943 = vmatmul.msk.f32.gmra.mxu3 %vm388_vm3, %v11505_v30  ;;  %v12126_v57 = vadd.f32 %v6527_v41, %v6307_v21  ;;  %v9043_v30 = vld [vmem:[%s12636_s5 + $0x100] sm:$0xff] }
 0x641   : > { %7859 = vmatpush.msra.mxu2 %v9043_v30 }
 0x642   : > { %v6757_v24 = vpop.f32.mrf.mxu2  ;;  %v6533_v12 = vpop.f32.mrf.mxu1 }
 0x643   : > { %v12129_v35 = vadd.f32 %v6757_v24, %v11828_v44  ;;  %v6258_v47 = vpop.f32.mrf.mxu0  ;;  %v6006_v54 = vpop.f32.mrf.mxu3  ;;  %v13008_v24 = vld [vmem:[#allocation10_spill] sm:$0xff] }
 0x644   : > { %v6007_v61 = vadd.f32 %v6006_v54, %v11855_v14 }
 0x645   : > { %9016 = vmatmul.msk.f32.gmra.mxu1 %vm388_vm3, %v11908_v53  ;;  %8981 = vmatmul.msk.f32.gmra.mxu0 %vm388_vm3, %v11566_v33 }
 0x646   : > { %v6308_v58 = vadd.f32 %v6252_v34, %v6007_v61  ;;  %v13003_v34 = vld [vmem:[#allocation9_spill] sm:$0xff] }
 0x647   : > { %8923 = vmatmul.msk.f32.gmra.mxu2 %vm388_vm3, %v11552_v1 }
 0x648   : > { %8944 = vmatmul.msk.f32.gmra.mxu3 %vm388_vm3, %v11525_v62  ;;  %v12143_v15 = vadd.f32 %v6530_v8, %v6308_v58  ;;  %v13006_v8 = vld [vmem:[#allocation22_spill] sm:$0xff]  ;;  %v13010_v58 = vld [vmem:[#allocation21_spill] sm:$0xff] }
 0x64a   : > { %v6760_v44 = vpop.f32.mrf.mxu2  ;;  %v6536_v14 = vpop.f32.mrf.mxu1 }
 0x64b   : > { %v12146_v53 = vadd.f32 %v6760_v44, %v11853_v45  ;;  %v6261_v33 = vpop.f32.mrf.mxu0  ;;  %v6009_v50 = vpop.f32.mrf.mxu3  ;;  %v13011_v44 = vld [vmem:[#allocation25_spill] sm:$0xff] }
 0x64c   : > { %v6010_v28 = vadd.f32 %v6009_v50, %v11880_v25 }
 0x64d   : > { %9017 = vmatmul.msk.f32.gmra.mxu1 %vm388_vm3, %v11927_v32  ;;  %8982 = vmatmul.msk.f32.gmra.mxu0 %vm388_vm3, %v11586_v5  ;;  %v13000_v5 = vld [vmem:[#allocation16_spill] sm:$0xff] }
 0x64e   : > { %v6309_v1 = vadd.f32 %v6255_v63, %v6010_v28  ;;  %v13007_v63 = vld [vmem:[#allocation14_spill] sm:$0xff] }
 0x64f   : > { %8924 = vmatmul.msk.f32.gmra.mxu2 %vm388_vm3, %v11572_v31 }
 0x650   : > { %8945 = vmatmul.msk.f32.gmra.mxu3 %vm388_vm3, %v11548_v26  ;;  %v12157_v62 = vadd.f32 %v6533_v12, %v6309_v1  ;;  %v13002_v26 = vld [vmem:[#allocation19_spill] sm:$0xff]  ;;  %v13013_v1 = vld [vmem:[#allocation50_spill] sm:$0xff] }
 0x652   : > { %v6763_v45 = vpop.f32.mrf.mxu2  ;;  %v6539_v3 = vpop.f32.mrf.mxu1 }
 0x653   : > { %v12160_v56 = vadd.f32 %v6763_v45, %v11878_v48  ;;  %v6264_v25 = vpop.f32.mrf.mxu0  ;;  %v6012_v18 = vpop.f32.mrf.mxu3 }
 0x654   : > { %v6013_v32 = vadd.f32 %v6012_v18, %v11899_v27 }
 0x655   : > { %9018 = vmatmul.msk.f32.gmra.mxu1 %vm388_vm3, %v11946_v42  ;;  %8983 = vmatmul.msk.f32.gmra.mxu0 %vm388_vm3, %v13000_v5  ;;  %v13004_v42 = vld [vmem:[#allocation12_spill] sm:$0xff] }
 0x656   : > { %v6310_v31 = vadd.f32 %v6258_v47, %v6013_v32  ;;  %v13015_v5 = vld [vmem:[#allocation24_spill] sm:$0xff] }
 0x657   : > { %8925 = vmatmul.msk.f32.gmra.mxu2 %vm388_vm3, %v13001_v22 }
 0x658   : > { %8946 = vmatmul.msk.f32.gmra.mxu3 %vm388_vm3, %v13002_v26  ;;  %v12171_v20 = vadd.f32 %v6536_v14, %v6310_v31  ;;  %v13012_v14 = vld [vmem:[#allocation17_spill] sm:$0xff]  ;;  %v13016_v31 = vld [vmem:[#allocation20_spill] sm:$0xff] }
 0x65a   : > { %v6766_v48 = vpop.f32.mrf.mxu2  ;;  %v6542_v41 = vpop.f32.mrf.mxu1 }
 0x65b   : > { %v12174_v19 = vadd.f32 %v6766_v48, %v13003_v34  ;;  %v6267_v27 = vpop.f32.mrf.mxu0  ;;  %v6015_v7 = vpop.f32.mrf.mxu3 }
 0x65c   : > { %v6016_v55 = vadd.f32 %v6015_v7, %v13004_v42 }
 0x65d   : > { %9019 = vmatmul.msk.f32.gmra.mxu1 %vm388_vm3, %v11965_v10  ;;  %8984 = vmatmul.msk.f32.gmra.mxu0 %vm388_vm3, %v13005_v4  ;;  %v13009_v10 = vld [vmem:[#allocation51_spill] sm:$0xff] }
 0x65e   : > { %v6311_v36 = vadd.f32 %v6261_v33, %v6016_v55  ;;  %v7444_v55 = vld [vmem:[#allocation4 + $0xb1] sm:$0xff] }
 0x65f   : > { %8926 = vmatmul.msk.f32.gmra.mxu2 %vm388_vm3, %v13006_v8  ;;  %v13021_v8 = vld [vmem:[#allocation23_spill] sm:$0xff] }
 0x660   : > { %8947 = vmatmul.msk.f32.gmra.mxu3 %vm388_vm3, %v13007_v63  ;;  %v12185_v46 = vadd.f32 %v6539_v3, %v6311_v36  ;;  %v13020_v36 = vld [vmem:[#allocation28_spill] sm:$0xff] }
 0x662   : > { %v6769_v0 = vpop.f32.mrf.mxu2  ;;  %v6545_v21 = vpop.f32.mrf.mxu1 }
 0x663   : > { %v12188_v12 = vadd.f32 %v6769_v0, %v13008_v24  ;;  %v6270_v47 = vpop.f32.mrf.mxu0  ;;  %v6018_v54 = vpop.f32.mrf.mxu3  ;;  %v13022_v24 = vld [vmem:[#allocation57_spill] sm:$0xff] }
 0x664   : > { %v6019_v61 = vadd.f32 %v6018_v54, %v13009_v10 }
 0x665   : > { %9020 = vmatmul.msk.f32.gmra.mxu1 %vm388_vm3, %v11996_v39  ;;  %8985 = vmatmul.msk.f32.gmra.mxu0 %vm388_vm3, %v13010_v58 }
 0x666   : > { %v6312_v30 = vadd.f32 %v6264_v25, %v6019_v61  ;;  %v13014_v25 = vld [vmem:[#allocation26_spill] sm:$0xff] }
 0x667   : > { %8927 = vmatmul.msk.f32.gmra.mxu2 %vm388_vm3, %v13011_v44 }
 0x668   : > { %8948 = vmatmul.msk.f32.gmra.mxu3 %vm388_vm3, %v13012_v14  ;;  %v12199_v33 = vadd.f32 %v6542_v41, %v6312_v30  ;;  %v13017_v41 = vld [vmem:[#allocation54_spill] sm:$0xff]  ;;  %v7445_v30 = vld [vmem:[#allocation4 + $0xc1] sm:$0xff] }
 0x669   : > { %v13024_v14 = vld [vmem:[#allocation31_spill] sm:$0xff] }
 0x66a   : > { %v6772_v50 = vpop.f32.mrf.mxu2  ;;  %v6548_v28 = vpop.f32.mrf.mxu1 }
 0x66b   : > { %v12202_v45 = vadd.f32 %v6772_v50, %v13013_v1  ;;  %v6273_v3 = vpop.f32.mrf.mxu0  ;;  %v6021_v18 = vpop.f32.mrf.mxu3  ;;  %v13025_v50 = vld [vmem:[#allocation27_spill] sm:$0xff] }
 0x66c   : > { %v6022_v39 = vadd.f32 %v6021_v18, %v11956_v51 }
 0x66d   : > { %9021 = vmatmul.msk.f32.gmra.mxu1 %vm388_vm3, %v12021_v40  ;;  %8986 = vmatmul.msk.f32.gmra.mxu0 %vm388_vm3, %v13014_v25  ;;  %v13018_v40 = vld [vmem:[#allocation58_spill] sm:$0xff] }
 0x66e   : > { %v6313_v32 = vadd.f32 %v6267_v27, %v6022_v39  ;;  %v13019_v27 = vld [vmem:[#allocation29_spill] sm:$0xff]  ;;  %v13026_v39 = vld [vmem:[#allocation60_spill] sm:$0xff] }
 0x66f   : > { %8928 = vmatmul.msk.f32.gmra.mxu2 %vm388_vm3, %v13015_v5  ;;  %v13027_v5 = vld [vmem:[#allocation63_spill] sm:$0xff] }
 0x670   : > { %8949 = vmatmul.msk.f32.gmra.mxu3 %vm388_vm3, %v13016_v31  ;;  %v12213_v22 = vadd.f32 %v6545_v21, %v6313_v32 }
 0x672   : > { %v6775_v26 = vpop.f32.mrf.mxu2  ;;  %v6551_v48 = vpop.f32.mrf.mxu1 }
 0x673   : > { %v12216_v34 = vadd.f32 %v6775_v26, %v13017_v41  ;;  %v6276_v51 = vpop.f32.mrf.mxu0  ;;  %v6024_v7 = vpop.f32.mrf.mxu3  ;;  %v7446_v26 = vld [vmem:[#allocation4 + $0xc9] sm:$0xff] }
 0x674   : > { %v6025_v42 = vadd.f32 %v6024_v7, %v13018_v40  ;;  %v13029_v7 = vld [vmem:[#allocation33_spill] sm:$0xff] }
 0x675   : > { %9022 = vmatmul.msk.f32.gmra.mxu1 %vm388_vm3, %v7444_v55  ;;  %8987 = vmatmul.msk.f32.gmra.mxu0 %vm388_vm3, %v13019_v27  ;;  %v13031_v27 = vld [vmem:[#allocation62_spill] sm:$0xff] }
 0x676   : > { %v6314_v4 = vadd.f32 %v6270_v47, %v6025_v42  ;;  %v13023_v47 = vld [vmem:[#allocation34_spill] sm:$0xff] }
 0x677   : > { %8929 = vmatmul.msk.f32.gmra.mxu2 %vm388_vm3, %v13020_v36 }
 0x678   : > { %8950 = vmatmul.msk.f32.gmra.mxu3 %vm388_vm3, %v13021_v8  ;;  %v12226_v63 = vadd.f32 %v6548_v28, %v6314_v4 }
 0x67a   : > { %v6778_v0 = vpop.f32.mrf.mxu2  ;;  %v6554_v21 = vpop.f32.mrf.mxu1 }
 0x67b   : > { %v12229_v54 = vadd.f32 %v6778_v0, %v13022_v24  ;;  %v6279_v10 = vpop.f32.mrf.mxu0  ;;  %v6027_v61 = vpop.f32.mrf.mxu3  ;;  %v7447_v0 = vld [vmem:[#allocation4 + $0xd9] sm:$0xff] }
 0x67c   : > { %v6028_v58 = vadd.f32 %v6027_v61, %v12012_v38  ;;  %v13032_v24 = vld [vmem:[#allocation38_spill] sm:$0xff] }
 0x67d   : > { %9023 = vmatmul.msk.f32.gmra.mxu1 %vm388_vm3, %v7445_v30  ;;  %8988 = vmatmul.msk.f32.gmra.mxu0 %vm388_vm3, %v13023_v47 }
 0x67e   : > { %v6315_v44 = vadd.f32 %v6273_v3, %v6028_v58  ;;  %v13028_v3 = vld [vmem:[#allocation35_spill] sm:$0xff]  ;;  %v13033_v58 = vld [vmem:[#allocation37_spill] sm:$0xff] }
 0x67f   : > { %8930 = vmatmul.msk.f32.gmra.mxu2 %vm388_vm3, %v13024_v14 }
 0x680   : > { %8951 = vmatmul.msk.f32.gmra.mxu3 %vm388_vm3, %v13025_v50  ;;  %v12239_v28 = vadd.f32 %v6551_v48, %v6315_v44  ;;  %v13030_v48 = vld [vmem:[#allocation30_spill] sm:$0xff] }
 0x682   : > { %v6781_v1 = vpop.f32.mrf.mxu2  ;;  %v6557_v18 = vpop.f32.mrf.mxu1 }
 0x683   : > { %v12242_v25 = vadd.f32 %v6781_v1, %v13026_v39  ;;  %v6030_v38 = vpop.f32.mrf.mxu3  ;;  %v6282_v32 = vpop.f32.mrf.mxu0  ;;  %v7448_v1 = vld [vmem:[#allocation4 + $0xe1] sm:$0xff] }
 0x684   : > { %v6031_v31 = vadd.f32 %v6030_v38, %v13027_v5  ;;  %v13035_v39 = vld [vmem:[#allocation40_spill] sm:$0xff] }
 0x685   : > { %9024 = vmatmul.msk.f32.gmra.mxu1 %vm388_vm3, %v7446_v26  ;;  %8989 = vmatmul.msk.f32.gmra.mxu0 %vm388_vm3, %v13028_v3  ;;  %v13036_v5 = vld [vmem:[#allocation36_spill] sm:$0xff] }
 0x686   : > { %v6316_v41 = vadd.f32 %v6276_v51, %v6031_v31 }
 0x687   : > { %8931 = vmatmul.msk.f32.gmra.mxu2 %vm388_vm3, %v13029_v7  ;;  %v7449_v7 = vld [vmem:[#allocation4 + $0xf1] sm:$0xff] }
 0x688   : > { %8952 = vmatmul.msk.f32.gmra.mxu3 %vm388_vm3, %v13030_v48  ;;  %v12252_v40 = vadd.f32 %v6554_v21, %v6316_v41  ;;  %v13034_v21 = vld [vmem:[#allocation32_spill] sm:$0xff]  ;;  %v13037_v48 = vld [vmem:[#allocation41_spill] sm:$0xff] }
 0x68a   : > { %v6784_v42 = vpop.f32.mrf.mxu2  ;;  %v6560_v55 = vpop.f32.mrf.mxu1 }
 0x68b   : > { %v12255_v4 = vadd.f32 %v6784_v42, %v13031_v27  ;;  %v6033_v36 = vpop.f32.mrf.mxu3  ;;  %v6285_v51 = vpop.f32.mrf.mxu0 }
 0x68c   : > { %v6034_v8 = vadd.f32 %v6033_v36, %v12050_v16 }
 0x68d   : > { %9025 = vmatmul.msk.f32.gmra.mxu1 %vm388_vm3, %v7447_v0  ;;  %8990 = vmatmul.msk.f32.gmra.mxu0 %vm388_vm3, %v13032_v24 }
 0x68e   : > { %v6317_v61 = vadd.f32 %v6279_v10, %v6034_v8  ;;  %v12272_v10 = vld [vmem:[#allocation4 + $0x181] sm:$0xff] }
 0x68f   : > { %8932 = vmatmul.msk.f32.gmra.mxu2 %vm388_vm3, %v13033_v58  ;;  %v13039_v58 = vld [vmem:[#allocation44_spill] sm:$0xff] }
 0x690   : > { %8953 = vmatmul.msk.f32.gmra.mxu3 %vm388_vm3, %v13034_v21  ;;  %v12265_v30 = vadd.f32 %v6557_v18, %v6317_v61  ;;  %v7450_v61 = vld [vmem:[#allocation4 + $0xf9] sm:$0xff] }
 0x692   : > { %v6787_v47 = vpop.f32.mrf.mxu2  ;;  %v6563_v44 = vpop.f32.mrf.mxu1 }
 0x693   : > { %v12268_v16 = vadd.f32 %v6787_v47, %v12048_v13  ;;  %v6036_v14 = vpop.f32.mrf.mxu3  ;;  %v7305_v18 = vpop.f32.mrf.mxu0  ;;  %v13040_v47 = vld [vmem:[#allocation42_spill] sm:$0xff] }
 0x694   : > { %v6037_v50 = vadd.f32 %v6036_v14, %v12064_v2 }
 0x695   : > { %9026 = vmatmul.msk.f32.gmra.mxu1 %vm388_vm3, %v7448_v1  ;;  %8991 = vmatmul.msk.f32.gmra.mxu0 %vm388_vm3, %v13035_v39  ;;  %v7451_v39 = vld [vmem:[#allocation4 + $0x109] sm:$0xff] }
 0x696   : > { %v6318_v38 = vadd.f32 %v6282_v32, %v6037_v50  ;;  %v12287_v32 = vld [vmem:[#allocation4 + $0x189] sm:$0xff] }
 0x697   : > { %8933 = vmatmul.msk.f32.gmra.mxu2 %vm388_vm3, %v12272_v10 }
 0x698   : > { %8954 = vmatmul.msk.f32.gmra.mxu3 %vm388_vm3, %v13036_v5  ;;  %v12280_v13 = vadd.f32 %v6560_v55, %v6318_v38  ;;  %v13038_v55 = vld [vmem:[#allocation39_spill] sm:$0xff]  ;;  %v13041_v5 = vld [vmem:[#allocation46_spill] sm:$0xff] }
 0x69a   : > { %v6790_v31 = vpop.f32.mrf.mxu2  ;;  %v7583_v2 = vpop.f32.mrf.mxu1 }
 0x69b   : > { %v12283_v26 = vadd.f32 %v6790_v31, %v12062_v9  ;;  %v6039_v3 = vpop.f32.mrf.mxu3  ;;  %v7308_v27 = vpop.f32.mrf.mxu0 }
 0x69c   : > { %v6040_v41 = vadd.f32 %v6039_v3, %v12076_v37 }
 0x69d   : > { %9027 = vmatmul.msk.f32.gmra.mxu1 %vm388_vm3, %v7449_v7  ;;  %8992 = vmatmul.msk.f32.gmra.mxu0 %vm388_vm3, %v13037_v48  ;;  %v7452_v48 = vld [vmem:[#allocation4 + $0x111] sm:$0xff] }
 0x69e   : > { %v6319_v42 = vadd.f32 %v6285_v51, %v6040_v41  ;;  %v7711_v51 = vld [vmem:[#allocation4 + $0x32] sm:$0xff] }
 0x69f   : > { %8934 = vmatmul.msk.f32.gmra.mxu2 %vm388_vm3, %v12287_v32 }
 0x6a0   : > { %8955 = vmatmul.msk.f32.gmra.mxu3 %vm388_vm3, %v13038_v55  ;;  %v12295_v9 = vadd.f32 %v6563_v44, %v6319_v42  ;;  %v7713_v55 = vld [vmem:[#allocation4 + $0x4a] sm:$0xff] }
 0x6a2   : > { %v6793_v36 = vpop.f32.mrf.mxu2  ;;  %v7586_v8 = vpop.f32.mrf.mxu1 }
 0x6a3   : > { %v12298_v37 = vadd.f32 %v6793_v36, %v12074_v29  ;;  %v7026_v0 = vpop.f32.mrf.mxu3 }
 0x6a4   : > { %v7122_v24 = vadd.f32 %v7026_v0, %v12089_v23  ;;  %v7311_v23 = vpop.f32.mrf.mxu0  ;;  %v13044_v0 = vld [vmem:[#allocation45_spill] sm:$0xff] }
 0x6a5   : > { %9028 = vmatmul.msk.f32.gmra.mxu1 %vm388_vm3, %v7450_v61  ;;  %8993 = vmatmul.msk.f32.gmra.mxu0 %vm388_vm3, %v13039_v58  ;;  %v7453_v58 = vld [vmem:[#allocation4 + $0x121] sm:$0xff] }
 0x6a6   : > { %v7401_v21 = vadd.f32 %v7305_v18, %v7122_v24  ;;  %v7712_v18 = vld [vmem:[#allocation4 + $0x3a] sm:$0xff] }
 0x6a7   : > { %9047 = vmatmul.msk.f32.vlgmr.msra.gmra.mxu2 %vm388_vm3, %v7711_v51 }
 0x6a8   : > { %8956 = vmatmul.msk.f32.gmra.mxu3 %vm388_vm3, %v13040_v47  ;;  %v12307_v44 = vadd.f32 %v7583_v2, %v7401_v21  ;;  %v13042_v2 = vld [vmem:[#allocation43_spill] sm:$0xff]  ;;  %v7714_v21 = vld [vmem:[#allocation4 + $0x52] sm:$0xff] }
 0x6a9   : > { %v13045_v47 = vld [vmem:[#allocation5_spill] sm:$0xff] }
 0x6aa   : > { %v6796_v29 = vpop.f32.mrf.mxu2  ;;  %v7589_v38 = vpop.f32.mrf.mxu1 }
 0x6ab   : > { %v12310_v14 = vadd.f32 %v6796_v29, %v12086_v43  ;;  %v7029_v50 = vpop.f32.mrf.mxu3 }
 0x6ac   : > { %v7123_v1 = vadd.f32 %v7029_v50, %v12102_v52  ;;  %v7314_v42 = vpop.f32.mrf.mxu0  ;;  %v13046_v50 = vld [vmem:[#allocation47_spill] sm:$0xff] }
 0x6ad   : > { %9029 = vmatmul.msk.f32.gmra.mxu1 %vm388_vm3, %v7451_v39  ;;  %8994 = vmatmul.msk.f32.gmra.mxu0 %vm388_vm3, %v13041_v5  ;;  %v7454_v5 = vld [vmem:[#allocation4 + $0x129] sm:$0xff] }
 0x6ae   : > { %v7402_v31 = vadd.f32 %v7308_v27, %v7123_v1  ;;  %v13043_v27 = vld [vmem:[#allocation48_spill] sm:$0xff] }
 0x6af   : > { %9048 = vmatmul.msk.f32.gmra.mxu2 %vm388_vm3, %v7712_v18 }
 0x6b0   : > { %8957 = vmatmul.msk.f32.gmra.mxu3 %vm388_vm3, %v13042_v2  ;;  %v12319_v43 = vadd.f32 %v7586_v8, %v7402_v31  ;;  %v7715_v31 = vld [vmem:[#allocation4 + $0x62] sm:$0xff] }
 0x6b1   : > { %v13047_v2 = vld [vmem:[#allocation7_spill] sm:$0xff] }
 0x6b2   : > { %v6799_v3 = vpop.f32.mrf.mxu2  ;;  %v7592_v8 = vpop.f32.mrf.mxu1 }
 0x6b3   : > { %v12322_v41 = vadd.f32 %v6799_v3, %v12099_v59  ;;  %v7032_v52 = vpop.f32.mrf.mxu3 }
 0x6b4   : > { %v7124_v7 = vadd.f32 %v7032_v52, %v12115_v49  ;;  %v13048_v52 = vld [vmem:[#allocation49_spill] sm:$0xff] }
 0x6b5   : > { %9030 = vmatmul.msk.f32.gmra.mxu1 %vm388_vm3, %v7452_v48  ;;  %8995 = vmatmul.msk.f32.gmra.mxu0 %vm388_vm3, %v13043_v27 }
 0x6b6   : > { %v7403_v36 = vadd.f32 %v7311_v23, %v7124_v7  ;;  %v7317_v23 = vpop.f32.mrf.mxu0 }
 0x6b7   : > { %9049 = vmatmul.msk.f32.gmra.mxu2 %vm388_vm3, %v7713_v55 }
 0x6b8   : > { %8958 = vmatmul.msk.f32.gmra.mxu3 %vm388_vm3, %v13044_v0  ;;  %v12331_v59 = vadd.f32 %v7589_v38, %v7403_v36  ;;  %v7455_v36 = vld [vmem:[#allocation4 + $0x139] sm:$0xff]  ;;  %v13049_v0 = vld [vmem:[#allocation13_spill] sm:$0xff] }
 0x6ba   : > { %v6802_v24 = vpop.f32.mrf.mxu2 }
 0x6bb   : > { %v12334_v49 = vadd.f32 %v6802_v24, %v12112_v17  ;;  %v7035_v61 = vpop.f32.mrf.mxu3  ;;  %v7595_v17 = vpop.f32.mrf.mxu1 }
 0x6bc   : > { %v7125_v51 = vadd.f32 %v7035_v61, %v12129_v35  ;;  %v13050_v61 = vld [vmem:[#allocation6_spill] sm:$0xff] }
 0x6bd   : > { %9031 = vmatmul.msk.f32.gmra.mxu1 %vm388_vm3, %v7453_v58  ;;  %8996 = vmatmul.msk.f32.gmra.mxu0 %vm388_vm3, %v13045_v47 }
 0x6be   : > { %v7404_v29 = vadd.f32 %v7314_v42, %v7125_v51 }
 0x6bf   : > { %9050 = vmatmul.msk.f32.gmra.mxu2 %vm388_vm3, %v7714_v21 }
 0x6c0   : > { %8959 = vmatmul.msk.f32.gmra.mxu3 %vm388_vm3, %v13046_v50  ;;  %v12343_v1 = vadd.f32 %v7592_v8, %v7404_v29  ;;  %v7716_v8 = vld [vmem:[#allocation4 + $0x6a] sm:$0xff]  ;;  %v7456_v29 = vld [vmem:[#allocation4 + $0x141] sm:$0xff] }
 0x6c1   : > { %v7717_v50 = vld [vmem:[#allocation4 + $0x7a] sm:$0xff] }
 0x6c2   : > { %v6805_v39 = vpop.f32.mrf.mxu2 }
 0x6c3   : > { %v12346_v35 = vadd.f32 %v6805_v39, %v12126_v57  ;;  %v7038_v38 = vpop.f32.mrf.mxu3  ;;  %v7320_v57 = vpop.f32.mrf.mxu0 }
 0x6c4   : > { %v7126_v18 = vadd.f32 %v7038_v38, %v12146_v53  ;;  %v7598_v53 = vpop.f32.mrf.mxu1  ;;  %v13052_v38 = vld [vmem:[#allocation8_spill] sm:$0xff] }
 0x6c5   : > { %9032 = vmatmul.msk.f32.gmra.mxu1 %vm388_vm3, %v7454_v5  ;;  %8997 = vmatmul.msk.f32.gmra.mxu0 %vm388_vm3, %v13047_v2  ;;  %v7457_v2 = vld [vmem:[#allocation4 + $0x151] sm:$0xff] }
 0x6c6   : > { %v7405_v3 = vadd.f32 %v7317_v23, %v7126_v18 }
 0x6c7   : > { %9051 = vmatmul.msk.f32.gmra.mxu2 %vm388_vm3, %v7715_v31 }
 0x6c8   : > { %8960 = vmatmul.msk.f32.gmra.mxu3 %vm388_vm3, %v13048_v52  ;;  %v12355_v7 = vadd.f32 %v7595_v17, %v7405_v3  ;;  %v13051_v17 = vld [vmem:[#allocation52_spill] sm:$0xff] }
 0x6c9   : > { %v7718_v52 = vld [vmem:[#allocation4 + $0x82] sm:$0xff] }
 0x6ca   : > { %v6808_v48 = vpop.f32.mrf.mxu2 }
 0x6cb   : > { %v12358_v42 = vadd.f32 %v6808_v48, %v12143_v15  ;;  %v7041_v55 = vpop.f32.mrf.mxu3 }
 0x6cc   : > { %v7127_v27 = vadd.f32 %v7041_v55, %v12160_v56  ;;  %v7323_v56 = vpop.f32.mrf.mxu0  ;;  %v7601_v23 = vpop.f32.mrf.mxu1  ;;  %v13054_v55 = vld [vmem:[#allocation11_spill] sm:$0xff] }
 0x6cd   : > { %9033 = vmatmul.msk.f32.gmra.mxu1 %vm388_vm3, %v7455_v36  ;;  %8998 = vmatmul.msk.f32.gmra.mxu0 %vm388_vm3, %v13049_v0  ;;  %v7458_v36 = vld [vmem:[#allocation4 + $0x159] sm:$0xff]  ;;  %v13055_v0 = vld [vmem:[#allocation53_spill] sm:$0xff] }
 0x6ce   : > { %v7406_v24 = vadd.f32 %v7320_v57, %v7127_v27  ;;  %v13053_v57 = vld [vmem:[#allocation55_spill] sm:$0xff] }
 0x6cf   : > { %9052 = vmatmul.msk.f32.gmra.mxu2 %vm388_vm3, %v7716_v8  ;;  %v7719_v8 = vld [vmem:[#allocation4 + $0x92] sm:$0xff] }
 0x6d0   : > { %8961 = vmatmul.msk.f32.gmra.mxu3 %vm388_vm3, %v13050_v61  ;;  %v12367_v51 = vadd.f32 %v7598_v53, %v7406_v24 }
 0x6d2   : > { %v6811_v15 = vpop.f32.mrf.mxu2 }
 0x6d3   : > { %v12370_v58 = vadd.f32 %v6811_v15, %v12157_v62  ;;  %v7044_v21 = vpop.f32.mrf.mxu3  ;;  %v7459_v15 = vld [vmem:[#allocation4 + $0x169] sm:$0xff] }
 0x6d4   : > { %v7128_v47 = vadd.f32 %v7044_v21, %v12174_v19  ;;  %v7326_v3 = vpop.f32.mrf.mxu0  ;;  %v7604_v53 = vpop.f32.mrf.mxu1 }
 0x6d5   : > { %9034 = vmatmul.msk.f32.gmra.mxu1 %vm388_vm3, %v7456_v29  ;;  %8999 = vmatmul.msk.f32.gmra.mxu0 %vm388_vm3, %v13051_v17  ;;  %v13057_v29 = vld [vmem:[#allocation64_spill] sm:$0xff]  ;;  %v13059_v17 = vld [vmem:[#allocation61_spill] sm:$0xff] }
 0x6d6   : > { %v7407_v39 = vadd.f32 %v7323_v56, %v7128_v47  ;;  %v13056_v56 = vld [vmem:[#allocation56_spill] sm:$0xff]  ;;  %v7460_v47 = vld [vmem:[#allocation4 + $0x171] sm:$0xff] }
 0x6d7   : > { %9053 = vmatmul.msk.f32.gmra.mxu2 %vm388_vm3, %v7717_v50 }
 0x6d8   : > { %8962 = vmatmul.msk.f32.gmra.mxu3 %vm388_vm3, %v13052_v38  ;;  %v12379_v62 = vadd.f32 %v7601_v23, %v7407_v39  ;;  %v13058_v23 = vld [vmem:[#allocation59_spill] sm:$0xff] }
 0x6da   : > { %v6814_v18 = vpop.f32.mrf.mxu2 }
 0x6db   : > { %v12382_v5 = vadd.f32 %v6814_v18, %v12171_v20  ;;  %v7047_v19 = vpop.f32.mrf.mxu3  ;;  %v7185_v18 = vld [vmem:[#allocation4 + $0x198] sm:$0xff] }
 0x6dc   : > { %v7129_v31 = vadd.f32 %v7047_v19, %v12188_v12 }
 0x6dd   : > { %9035 = vmatmul.msk.f32.gmra.mxu1 %vm388_vm3, %v7457_v2  ;;  %9000 = vmatmul.msk.f32.gmra.mxu0 %vm388_vm3, %v13053_v57  ;;  %v7186_v2 = vld [vmem:[#allocation4 + $0x1a0] sm:$0xff] }
 0x6de   : > { %v7408_v48 = vadd.f32 %v7326_v3, %v7129_v31  ;;  %v7463_v31 = vld [vmem:[#allocation4 + $0x199] sm:$0xff] }
 0x6df   : > { %9054 = vmatmul.msk.f32.gmra.mxu2 %vm388_vm3, %v7718_v52  ;;  %v7725_v57 = vld [vmem:[#allocation4 + $0xda] sm:$0xff] }
 0x6e0   : > { %8963 = vmatmul.msk.f32.gmra.mxu3 %vm388_vm3, %v13054_v55  ;;  %v12391_v20 = vadd.f32 %v7604_v53, %v7408_v48  ;;  %v12454_v48 = vld [vmem:[#allocation4 + $0x18a] sm:$0xff] }
 0x6e2   : > { %v6817_v27 = vpop.f32.mrf.mxu2 }
 0x6e3   : > { %v12394_v12 = vadd.f32 %v6817_v27, %v12185_v46  ;;  %v7720_v46 = vld [vmem:[#allocation4 + $0x9a] sm:$0xff]  ;;  %v7726_v27 = vld [vmem:[#allocation4 + $0xe2] sm:$0xff] }
 0x6e5   : > { %9036 = vmatmul.msk.f32.gmra.mxu1 %vm388_vm3, %v7458_v36  ;;  %9001 = vmatmul.msk.f32.gmra.mxu0 %vm388_vm3, %v11990_v11 }
 0x6e7   : > { %9055 = vmatmul.msk.f32.gmra.mxu2 %vm388_vm3, %v7719_v8  ;;  %v7727_v8 = vld [vmem:[#allocation4 + $0xf2] sm:$0xff] }
 0x6e8   : > { %8964 = vmatmul.msk.f32.gmra.mxu3 %vm388_vm3, %v13055_v0  ;;  %v12469_v0 = vld [vmem:[%s12637_s6] ss:$0 sm:$0xff] }
 0x6ea   : > { %v6820_v24 = vpop.f32.mrf.mxu2 }
 0x6eb   : > { %v12403_v61 = vadd.f32 %v6820_v24, %v12199_v33  ;;  %v7721_v33 = vld [vmem:[#allocation4 + $0xaa] sm:$0xff] }
 0x6ed   : > { %9037 = vmatmul.msk.f32.gmra.mxu1 %vm388_vm3, %v7459_v15  ;;  %9002 = vmatmul.msk.f32.gmra.mxu0 %vm388_vm3, %v12015_v6 }
 0x6ef   : > { %9056 = vmatmul.msk.f32.gmra.mxu2 %vm388_vm3, %v7720_v46 }
 0x6f0   : > { %8965 = vmatmul.msk.f32.gmra.mxu3 %vm388_vm3, %v13056_v56  ;;  %v7050_v56 = vpop.f32.mrf.mxu3 }
 0x6f2   : > { %v6823_v11 = vpop.f32.mrf.mxu2 }
 0x6f3   : > { %v12412_v21 = vadd.f32 %v6823_v11, %v12213_v22  ;;  %v7722_v22 = vld [vmem:[#allocation4 + $0xb2] sm:$0xff] }
 0x6f5   : > { %9038 = vmatmul.msk.f32.gmra.mxu1 %vm388_vm3, %v7460_v47  ;;  %9003 = vmatmul.msk.f32.gmra.mxu0 %vm388_vm3, %v13057_v29  ;;  %v7729_v29 = vld [vmem:[#allocation4 + $0x10a] sm:$0xff] }
 0x6f7   : > { %9057 = vmatmul.msk.f32.gmra.mxu2 %vm388_vm3, %v7721_v33  ;;  %v7329_v33 = vpop.f32.mrf.mxu0 }
 0x6f8   : > { %8966 = vmatmul.msk.f32.gmra.mxu3 %vm388_vm3, %v13058_v23 }
 0x6fa   : > { %v6826_v6 = vpop.f32.mrf.mxu2 }
 0x6fb   : > { %v12421_v50 = vadd.f32 %v6826_v6, %v12226_v63  ;;  %v7723_v63 = vld [vmem:[#allocation4 + $0xc2] sm:$0xff]  ;;  %v7607_v6 = vpop.f32.mrf.mxu1 }
 0x6fd   : > { %9039 = vmatmul.msk.f32.gmra.mxu1 %vm388_vm3, %v12272_v10  ;;  %9004 = vmatmul.msk.f32.gmra.mxu0 %vm388_vm3, %v12053_v60  ;;  %v13060_v10 = vld [vmem:[#allocation65_spill] sm:$0xff] }
 0x6ff   : > { %9058 = vmatmul.msk.f32.gmra.mxu2 %vm388_vm3, %v7722_v22  ;;  %v7053_v22 = vpop.f32.mrf.mxu3 }
 0x700   : > { %8967 = vmatmul.msk.f32.gmra.mxu3 %vm388_vm3, %v13059_v17 }
 0x702   : > { %v6829_v39 = vpop.f32.mrf.mxu2 }
 0x703   : > { %v12431_v38 = vadd.f32 %v6829_v39, %v12239_v28  ;;  %v7724_v28 = vld [vmem:[#allocation4 + $0xca] sm:$0xff] }
 0x705   : > { %9040 = vmatmul.msk.f32.gmra.mxu1 %vm388_vm3, %v12287_v32  ;;  %9005 = vmatmul.msk.f32.gmra.mxu0 %vm388_vm3, %v7185_v18  ;;  %v12445_v32 = vld [vmem:[#allocation4 + $0x182] sm:$0xff] }
 0x707   : > { %9059 = vmatmul.msk.f32.gmra.mxu2 %vm388_vm3, %v7723_v63  ;;  %v7730_v63 = vld [vmem:[#allocation4 + $0x112] sm:$0xff] }
 0x708   : > { %8968 = vmatmul.msk.f32.gmra.mxu3 %vm388_vm3, %v13060_v10  ;;  %v7332_v10 = vpop.f32.mrf.mxu0 }
 0x70a   : > { %v6832_v60 = vpop.f32.mrf.mxu2 }
 0x70b   : > { %v12440_v19 = vadd.f32 %v6832_v60, %v12252_v40  ;;  %v7464_v40 = vld [vmem:[#allocation4 + $0x1a1] sm:$0xff] }
 0x70d   : > { %9041 = vmatmul.msk.f32.gmra.mxu1 %vm388_vm3, %v7463_v31  ;;  %9006 = vmatmul.msk.f32.gmra.mxu0 %vm388_vm3, %v7186_v2  ;;  %v7610_v31 = vpop.f32.mrf.mxu1 }
 0x70f   : > { %9060 = vmatmul.msk.f32.gmra.mxu2 %vm388_vm3, %v7724_v28  ;;  %v7056_v28 = vpop.f32.mrf.mxu3 }
 0x710   : > { %8969 = vmatmul.msk.f32.gmra.mxu3 %vm388_vm3, %v12445_v32 }
 0x712   : > { %v6835_v3 = vpop.f32.mrf.mxu2 }
 0x713   : > { %v12450_v52 = vadd.f32 %v6835_v3, %v12265_v30 }
 0x715   : > { %9042 = vmatmul.msk.f32.gmra.mxu1 %vm388_vm3, %v7464_v40  ;;  %v7731_v40 = vld [vmem:[#allocation4 + $0x122] sm:$0xff] }
 0x717   : > { %9061 = vmatmul.msk.f32.gmra.mxu2 %vm388_vm3, %v7725_v57 }
 0x718   : > { %8970 = vmatmul.msk.f32.gmra.mxu3 %vm388_vm3, %v12454_v48 }
 0x71a   : > { %v6838_v53 = vpop.f32.mrf.mxu2 }
 0x71b   : > { %v12459_v55 = vadd.f32 %v6838_v53, %v12280_v13 }
 0x71f   : > { %9062 = vmatmul.msk.f32.gmra.mxu2 %vm388_vm3, %v7726_v27 }
 0x722   : > { %v6841_v30 = vpop.f32.mrf.mxu2 }
 0x723   : > { %v12463_v36 = vadd.f32 %v6841_v30, %v12295_v9  ;;  %v7728_v9 = vld [vmem:[#allocation4 + $0xfa] sm:$0xff]  ;;  %v12498_v30 = vpop.f32.mrf.mxu1 }
 0x727   : > { %9063 = vmatmul.msk.f32.gmra.mxu2 %vm388_vm3, %v7727_v8 }
 0x72a   : > { %v7861_v24 = vpop.f32.mrf.mxu2 }
 0x72b   : > { %v7957_v15 = vadd.f32 %v7861_v24, %v12307_v44  ;;  %v7732_v24 = vld [vmem:[#allocation4 + $0x12a] sm:$0xff] }
 0x72d   : > { %v7993_v13 = vadd.f32 %v12469_v0, %v7957_v15 }
 0x72f   : > { %v8025_v46 = vmax.f32 %v7993_v13, 0.0  ;;  %9064 = vmatmul.msk.f32.gmra.mxu2 %vm388_vm3, %v7728_v9 }
 0x731   : > { %8057 = vst.msk [vmem:[%s12477_s21] sm:$0xff] %vm388_vm3, %v8025_v46 }
 0x732   : > { %v7864_v11 = vpop.f32.mrf.mxu2 }
 0x733   : > { %v7958_v47 = vadd.f32 %v7864_v11, %v12319_v43 }
 0x735   : > { %v7994_v44 = vadd.f32 %v12469_v0, %v7958_v47  ;;  %v12506_v47 = vpop.f32.mrf.mxu1 }
 0x737   : > { %v8026_v23 = vmax.f32 %v7994_v44, 0.0  ;;  %9065 = vmatmul.msk.f32.gmra.mxu2 %vm388_vm3, %v7729_v29 }
 0x739   : > { %8058 = vst.msk [vmem:[%s12477_s21 + $0x8] sm:$0xff] %vm388_vm3, %v8026_v23 }
 0x73a   : > { %v7867_v17 = vpop.f32.mrf.mxu2 }
 0x73b   : > { %v7959_v39 = vadd.f32 %v7867_v17, %v12331_v59  ;;  %v7335_v59 = vpop.f32.mrf.mxu0 }
 0x73d   : > { %v7995_v18 = vadd.f32 %v12469_v0, %v7959_v39 }
 0x73f   : > { %v8027_v43 = vmax.f32 %v7995_v18, 0.0  ;;  %9066 = vmatmul.msk.f32.gmra.mxu2 %vm388_vm3, %v7730_v63 }
 0x741   : > { %8059 = vst.msk [vmem:[%s12477_s21 + $0x10] sm:$0xff] %vm388_vm3, %v8027_v43  ;;  %v7130_v43 = vadd.f32 %v7050_v56, %v12202_v45 }
 0x742   : > { %v7870_v60 = vpop.f32.mrf.mxu2 }
 0x743   : > { %v7960_v2 = vadd.f32 %v7870_v60, %v12343_v1  ;;  %v7059_v1 = vpop.f32.mrf.mxu3  ;;  %v7338_v46 = vpop.f32.mrf.mxu0 }
 0x744   : > { %v7619_v60 = vpop.f32.mrf.mxu1 }
 0x745   : > { %v7996_v3 = vadd.f32 %v12469_v0, %v7960_v2 }
 0x747   : > { %v8028_v57 = vmax.f32 %v7996_v3, 0.0  ;;  %9067 = vmatmul.msk.f32.gmra.mxu2 %vm388_vm3, %v7731_v40 }
 0x749   : > { %8060 = vst.msk [vmem:[%s12477_s21 + $0x18] sm:$0xff] %vm388_vm3, %v8028_v57  ;;  %v7409_v57 = vadd.f32 %v7329_v33, %v7130_v43  ;;  %v7736_v33 = vld [vmem:[#allocation4 + $0x15a] sm:$0xff] }
 0x74a   : > { %v7873_v53 = vpop.f32.mrf.mxu2 }
 0x74b   : > { %v7961_v27 = vadd.f32 %v7873_v53, %v12355_v7  ;;  %v7733_v7 = vld [vmem:[#allocation4 + $0x13a] sm:$0xff]  ;;  %v7062_v29 = vpop.f32.mrf.mxu3  ;;  %v7341_v18 = vpop.f32.mrf.mxu0  ;;  %v7735_v53 = vld [vmem:[#allocation4 + $0x152] sm:$0xff]  ;;  %v7687_v45 = vadd.f32 %v7607_v6, %v7409_v57 }
 0x74d   : > { %v7997_v8 = vadd.f32 %v12469_v0, %v7961_v27 }
 0x74f   : > { %v8029_v15 = vmax.f32 %v7997_v8, 0.0  ;;  %9068 = vmatmul.msk.f32.gmra.mxu2 %vm388_vm3, %v7732_v24  ;;  %v7131_v24 = vadd.f32 %v7053_v22, %v12216_v34 }
 0x751   : > { %8061 = vst.msk [vmem:[%s12477_s21 + $0x20] sm:$0xff] %vm388_vm3, %v8029_v15  ;;  %v7622_v15 = vpop.f32.mrf.mxu1 }
 0x752   : > { %v7876_v13 = vpop.f32.mrf.mxu2 }
 0x753   : > { %v7962_v9 = vadd.f32 %v7876_v13, %v12367_v51  ;;  %v7734_v51 = vld [vmem:[#allocation4 + $0x142] sm:$0xff]  ;;  %v7065_v2 = vpop.f32.mrf.mxu3  ;;  %v7344_v8 = vpop.f32.mrf.mxu0 }
 0x755   : > { %v7998_v11 = vadd.f32 %v12469_v0, %v7962_v9 }
 0x757   : > { %v8030_v44 = vmax.f32 %v7998_v11, 0.0  ;;  %9069 = vmatmul.msk.f32.gmra.mxu2 %vm388_vm3, %v7733_v7  ;;  %v7410_v11 = vadd.f32 %v7332_v10, %v7131_v24 }
 0x759   : > { %8062 = vst.msk [vmem:[%s12477_s21 + $0x28] sm:$0xff] %vm388_vm3, %v8030_v44  ;;  %v7132_v44 = vadd.f32 %v7056_v28, %v12229_v54  ;;  %v7688_v34 = vadd.f32 %v7610_v31, %v7410_v11 }
 0x75a   : > { %v7879_v23 = vpop.f32.mrf.mxu2 }
 0x75b   : > { %v7963_v17 = vadd.f32 %v7879_v23, %v12379_v62  ;;  %v7068_v9 = vpop.f32.mrf.mxu3  ;;  %v7347_v22 = vpop.f32.mrf.mxu0 }
 0x75d   : > { %v7999_v39 = vadd.f32 %v12469_v0, %v7963_v17  ;;  %v7411_v17 = vadd.f32 %v7335_v59, %v7132_v44 }
 0x75f   : > { %v8031_v63 = vmax.f32 %v7999_v39, 0.0  ;;  %9070 = vmatmul.msk.f32.gmra.mxu2 %vm388_vm3, %v7734_v51  ;;  %v7625_v39 = vpop.f32.mrf.mxu1  ;;  %v7689_v54 = vadd.f32 %v12498_v30, %v7411_v17 }
 0x761   : > { %8063 = vst.msk [vmem:[%s12477_s21 + $0x30] sm:$0xff] %vm388_vm3, %v8031_v63  ;;  %v7737_v63 = vld [vmem:[#allocation4 + $0x16a] sm:$0xff] }
 0x762   : > { %v7882_v3 = vpop.f32.mrf.mxu2 }
 0x763   : > { %v7964_v40 = vadd.f32 %v7882_v3, %v12391_v20  ;;  %v7071_v10 = vpop.f32.mrf.mxu3  ;;  %v7133_v3 = vadd.f32 %v7059_v1, %v12242_v25 }
 0x765   : > { %v8000_v62 = vadd.f32 %v12469_v0, %v7964_v40  ;;  %v7350_v40 = vpop.f32.mrf.mxu0  ;;  %v7412_v57 = vadd.f32 %v7338_v46, %v7133_v3 }
 0x767   : > { %v8032_v27 = vmax.f32 %v8000_v62, 0.0  ;;  %9071 = vmatmul.msk.f32.gmra.mxu2 %vm388_vm3, %v7735_v53  ;;  %v7738_v62 = vld [vmem:[#allocation4 + $0x172] sm:$0xff]  ;;  %v7628_v53 = vpop.f32.mrf.mxu1  ;;  %v7690_v25 = vadd.f32 %v12506_v47, %v7412_v57 }
 0x769   : > { %8064 = vst.msk [vmem:[%s12477_s21 + $0x38] sm:$0xff] %vm388_vm3, %v8032_v27 }
 0x76a   : > { %v7885_v56 = vpop.f32.mrf.mxu2 }
 0x76b   : > { %v7965_v13 = vadd.f32 %v7885_v56, %v7687_v45  ;;  %v7074_v24 = vpop.f32.mrf.mxu3  ;;  %v7134_v45 = vadd.f32 %v7062_v29, %v12255_v4 }
 0x76d   : > { %v8001_v20 = vadd.f32 %v12469_v0, %v7965_v13  ;;  %v7413_v56 = vadd.f32 %v7341_v18, %v7134_v45  ;;  %v7353_v13 = vpop.f32.mrf.mxu0 }
 0x76f   : > { %v8033_v7 = vmax.f32 %v8001_v20, 0.0  ;;  %9072 = vmatmul.msk.f32.gmra.mxu2 %vm388_vm3, %v7736_v33  ;;  %v7135_v20 = vadd.f32 %v7065_v2, %v12268_v16  ;;  %v7631_v33 = vpop.f32.mrf.mxu1  ;;  %v7691_v4 = vadd.f32 %v7619_v60, %v7413_v56 }
 0x771   : > { %8065 = vst.msk [vmem:[%s12477_s21 + $0x40] sm:$0xff] %vm388_vm3, %v8033_v7  ;;  %v7414_v44 = vadd.f32 %v7344_v8, %v7135_v20 }
 0x772   : > { %v7888_v23 = vpop.f32.mrf.mxu2 }
 0x773   : > { %v7966_v6 = vadd.f32 %v7888_v23, %v7688_v34  ;;  %v7077_v29 = vpop.f32.mrf.mxu3  ;;  %v7692_v16 = vadd.f32 %v7622_v15, %v7414_v44 }
 0x774   : > { %v7139_v56 = vadd.f32 %v7077_v29, %v12322_v41 }
 0x775   : > { %v8002_v51 = vadd.f32 %v12469_v0, %v7966_v6  ;;  %v7356_v23 = vpop.f32.mrf.mxu0 }
 0x777   : > { %v8034_v43 = vmax.f32 %v8002_v51, 0.0  ;;  %9073 = vmatmul.msk.f32.gmra.mxu2 %vm388_vm3, %v7737_v63  ;;  %v7634_v6 = vpop.f32.mrf.mxu1  ;;  %v7741_v51 = vld [vmem:[#allocation4 + $0x19a] sm:$0xff] }
 0x779   : > { %8066 = vst.msk [vmem:[%s12477_s21 + $0x48] sm:$0xff] %vm388_vm3, %v8034_v43 }
 0x77a   : > { %v7891_v31 = vpop.f32.mrf.mxu2 }
 0x77b   : > { %v7967_v28 = vadd.f32 %v7891_v31, %v7689_v54  ;;  %v7080_v17 = vpop.f32.mrf.mxu3  ;;  %v7742_v54 = vld [vmem:[#allocation4 + $0x1a2] sm:$0xff] }
 0x77d   : > { %v8003_v59 = vadd.f32 %v12469_v0, %v7967_v28 }
 0x77f   : > { %v8035_v27 = vmax.f32 %v8003_v59, 0.0  ;;  %9074 = vmatmul.msk.f32.gmra.mxu2 %vm388_vm3, %v7738_v62  ;;  %v7637_v28 = vpop.f32.mrf.mxu1  ;;  %v7138_v62 = vadd.f32 %v7074_v24, %v12310_v14  ;;  %v7418_v24 = vadd.f32 %v7356_v23, %v7139_v56 }
 0x781   : > { %8067 = vst.msk [vmem:[%s12477_s21 + $0x50] sm:$0xff] %vm388_vm3, %v8035_v27  ;;  %v7417_v45 = vadd.f32 %v7353_v13, %v7138_v62  ;;  %v7140_v13 = vadd.f32 %v7080_v17, %v12334_v49 }
 0x782   : > { %v7894_v30 = vpop.f32.mrf.mxu2 }
 0x783   : > { %v7968_v1 = vadd.f32 %v7894_v30, %v7690_v25 }
 0x785   : > { %v8004_v46 = vadd.f32 %v12469_v0, %v7968_v1 }
 0x787   : > { %v8036_v11 = vmax.f32 %v8004_v46, 0.0  ;;  %9075 = vmatmul.msk.f32.gmra.mxu2 %vm388_vm3, %v12445_v32  ;;  %v7136_v32 = vadd.f32 %v7068_v9, %v12283_v26  ;;  %v7359_v9 = vpop.f32.mrf.mxu0  ;;  %v7640_v25 = vpop.f32.mrf.mxu1  ;;  %v7695_v46 = vadd.f32 %v7631_v33, %v7417_v45 }
 0x788   : > { %v7419_v29 = vadd.f32 %v7359_v9, %v7140_v13 }
 0x789   : > { %8068 = vst.msk [vmem:[%s12477_s21 + $0x58] sm:$0xff] %vm388_vm3, %v8036_v11  ;;  %v7415_v63 = vadd.f32 %v7347_v22, %v7136_v32  ;;  %v7083_v22 = vpop.f32.mrf.mxu3 }
 0x78a   : > { %v7897_v7 = vpop.f32.mrf.mxu2  ;;  %v7141_v32 = vadd.f32 %v7083_v22, %v12346_v35 }
 0x78b   : > { %v7969_v47 = vadd.f32 %v7897_v7, %v7691_v4  ;;  %v7693_v26 = vadd.f32 %v7625_v39, %v7415_v63 }
 0x78d   : > { %v8005_v18 = vadd.f32 %v12469_v0, %v7969_v47  ;;  %v7696_v47 = vadd.f32 %v7634_v6, %v7418_v24 }
 0x78f   : > { %v8037_v34 = vmax.f32 %v8005_v18, 0.0  ;;  %9076 = vmatmul.msk.f32.gmra.mxu2 %vm388_vm3, %v12454_v48  ;;  %v7137_v48 = vadd.f32 %v7071_v10, %v12298_v37  ;;  %v7362_v27 = vpop.f32.mrf.mxu0  ;;  %v7643_v7 = vpop.f32.mrf.mxu1 }
 0x790   : > { %v7420_v6 = vadd.f32 %v7362_v27, %v7141_v32 }
 0x791   : > { %8069 = vst.msk [vmem:[%s12477_s21 + $0x60] sm:$0xff] %vm388_vm3, %v8037_v34  ;;  %v7416_v31 = vadd.f32 %v7350_v40, %v7137_v48  ;;  %v7086_v1 = vpop.f32.mrf.mxu3 }
 0x792   : > { %v7900_v2 = vpop.f32.mrf.mxu2 }
 0x793   : > { %v7970_v60 = vadd.f32 %v7900_v2, %v7692_v16  ;;  %v7694_v37 = vadd.f32 %v7628_v53, %v7416_v31  ;;  %v7697_v16 = vadd.f32 %v7637_v28, %v7419_v29 }
 0x795   : > { %v8006_v8 = vadd.f32 %v12469_v0, %v7970_v60 }
 0x797   : > { %v8038_v43 = vmax.f32 %v8006_v8, 0.0  ;;  %9077 = vmatmul.msk.f32.gmra.mxu2 %vm388_vm3, %v7741_v51  ;;  %v7365_v20 = vpop.f32.mrf.mxu0  ;;  %v7646_v49 = vpop.f32.mrf.mxu1  ;;  %v7142_v8 = vadd.f32 %v7086_v1, %v12358_v42 }
 0x799   : > { %8070 = vst.msk [vmem:[%s12477_s21 + $0x68] sm:$0xff] %vm388_vm3, %v8038_v43  ;;  %v7089_v44 = vpop.f32.mrf.mxu3  ;;  %v7698_v43 = vadd.f32 %v7640_v25, %v7420_v6  ;;  %v7421_v9 = vadd.f32 %v7365_v20, %v7142_v8 }
 0x79a   : > { %v7903_v3 = vpop.f32.mrf.mxu2  ;;  %v7143_v28 = vadd.f32 %v7089_v44, %v12370_v58 }
 0x79b   : > { %v7971_v15 = vadd.f32 %v7903_v3, %v7693_v26 }
 0x79d   : > { %v8007_v57 = vadd.f32 %v12469_v0, %v7971_v15 }
 0x79f   : > { %v8039_v59 = vmax.f32 %v8007_v57, 0.0  ;;  %9078 = vmatmul.msk.f32.gmra.mxu2 %vm388_vm3, %v7742_v54  ;;  %v7368_v23 = vpop.f32.mrf.mxu0  ;;  %v7649_v3 = vpop.f32.mrf.mxu1  ;;  %v7699_v57 = vadd.f32 %v7643_v7, %v7421_v9 }
 0x7a0   : > { %v7422_v62 = vadd.f32 %v7368_v23, %v7143_v28 }
 0x7a1   : > { %8071 = vst.msk [vmem:[%s12477_s21 + $0x70] sm:$0xff] %vm388_vm3, %v8039_v59  ;;  %v7092_v17 = vpop.f32.mrf.mxu3 }
 0x7a2   : > { %v7906_v10 = vpop.f32.mrf.mxu2  ;;  %v7144_v45 = vadd.f32 %v7092_v17, %v12382_v5 }
 0x7a3   : > { %v7972_v39 = vadd.f32 %v7906_v10, %v7694_v37 }
 0x7a5   : > { %v8008_v40 = vadd.f32 %v12469_v0, %v7972_v39 }
 0x7a7   : > { %v8040_v30 = vmax.f32 %v8008_v40, 0.0  ;;  %v7371_v48 = vpop.f32.mrf.mxu0  ;;  %v7652_v10 = vpop.f32.mrf.mxu1  ;;  %v7700_v40 = vadd.f32 %v7646_v49, %v7422_v62 }
 0x7a9   : > { %8072 = vst.msk [vmem:[%s12477_s21 + $0x78] sm:$0xff] %vm388_vm3, %v8040_v30  ;;  %v7095_v54 = vpop.f32.mrf.mxu3  ;;  %v7423_v30 = vadd.f32 %v7371_v48, %v7144_v45 }
 0x7aa   : > { %v7909_v11 = vpop.f32.mrf.mxu2 }
 0x7ab   : > { %v7973_v14 = vadd.f32 %v7909_v11, %v7695_v46  ;;  %v7701_v24 = vadd.f32 %v7649_v3, %v7423_v30 }
 0x7ad   : > { %v8009_v53 = vadd.f32 %v12469_v0, %v7973_v14  ;;  %v7145_v14 = vadd.f32 %v7095_v54, %v12394_v12 }
 0x7af   : > { %v8041_v4 = vmax.f32 %v8009_v53, 0.0  ;;  %v7374_v59 = vpop.f32.mrf.mxu0  ;;  %v7655_v11 = vpop.f32.mrf.mxu1 }
 0x7b1   : > { %8073 = vst.msk [vmem:[%s12477_s21 + $0x80] sm:$0xff] %vm388_vm3, %v8041_v4  ;;  %v7098_v27 = vpop.f32.mrf.mxu3  ;;  %v7424_v4 = vadd.f32 %v7374_v59, %v7145_v14 }
 0x7b2   : > { %v7912_v18 = vpop.f32.mrf.mxu2  ;;  %v7146_v44 = vadd.f32 %v7098_v27, %v12403_v61 }
 0x7b3   : > { %v7974_v41 = vadd.f32 %v7912_v18, %v7696_v47  ;;  %v7702_v18 = vadd.f32 %v7652_v10, %v7424_v4 }
 0x7b5   : > { %v8010_v33 = vadd.f32 %v12469_v0, %v7974_v41 }
 0x7b7   : > { %v8042_v34 = vmax.f32 %v8010_v33, 0.0  ;;  %v7377_v56 = vpop.f32.mrf.mxu0  ;;  %v7658_v29 = vpop.f32.mrf.mxu1 }
 0x7b9   : > { %8074 = vst.msk [vmem:[%s12477_s21 + $0x88] sm:$0xff] %vm388_vm3, %v8042_v34  ;;  %v7101_v53 = vpop.f32.mrf.mxu3  ;;  %v7425_v34 = vadd.f32 %v7377_v56, %v7146_v44 }
 0x7ba   : > { %v7915_v2 = vpop.f32.mrf.mxu2 }
 0x7bb   : > { %v7975_v60 = vadd.f32 %v7915_v2, %v7697_v16  ;;  %v7147_v16 = vadd.f32 %v7101_v53, %v12412_v21  ;;  %v7703_v2 = vadd.f32 %v7655_v11, %v7425_v34 }
 0x7bd   : > { %v8011_v51 = vadd.f32 %v12469_v0, %v7975_v60 }
 0x7bf   : > { %v8043_v63 = vmax.f32 %v8011_v51, 0.0  ;;  %v7380_v47 = vpop.f32.mrf.mxu0  ;;  %v7661_v17 = vpop.f32.mrf.mxu1 }
 0x7c0   : > { %v7426_v6 = vadd.f32 %v7380_v47, %v7147_v16 }
 0x7c1   : > { %8075 = vst.msk [vmem:[%s12477_s21 + $0x90] sm:$0xff] %vm388_vm3, %v8043_v63  ;;  %v7104_v33 = vpop.f32.mrf.mxu3 }
 0x7c2   : > { %v7918_v26 = vpop.f32.mrf.mxu2  ;;  %v7704_v48 = vadd.f32 %v7658_v29, %v7426_v6 }
 0x7c3   : > { %v7976_v35 = vadd.f32 %v7918_v26, %v7698_v43  ;;  %v7148_v43 = vadd.f32 %v7104_v33, %v12421_v50 }
 0x7c5   : > { %v8012_v15 = vadd.f32 %v12469_v0, %v7976_v35 }
 0x7c7   : > { %v8044_v31 = vmax.f32 %v8012_v15, 0.0  ;;  %v7383_v49 = vpop.f32.mrf.mxu0  ;;  %v7664_v15 = vpop.f32.mrf.mxu1 }
 0x7c8   : > { %v7427_v9 = vadd.f32 %v7383_v49, %v7148_v43 }
 0x7c9   : > { %8076 = vst.msk [vmem:[%s12477_s21 + $0x98] sm:$0xff] %vm388_vm3, %v8044_v31  ;;  %v7107_v63 = vpop.f32.mrf.mxu3 }
 0x7ca   : > { %v7921_v22 = vpop.f32.mrf.mxu2  ;;  %v7149_v28 = vadd.f32 %v7107_v63, %v12431_v38 }
 0x7cb   : > { %v7977_v42 = vadd.f32 %v7921_v22, %v7699_v57  ;;  %v7705_v57 = vadd.f32 %v7661_v17, %v7427_v9 }
 0x7cd   : > { %v8013_v37 = vadd.f32 %v12469_v0, %v7977_v42 }
 0x7cf   : > { %v8045_v39 = vmax.f32 %v8013_v37, 0.0  ;;  %v7386_v35 = vpop.f32.mrf.mxu0  ;;  %v7667_v10 = vpop.f32.mrf.mxu1 }
 0x7d0   : > { %v7428_v42 = vadd.f32 %v7386_v35, %v7149_v28 }
 0x7d1   : > { %8077 = vst.msk [vmem:[%s12477_s21 + $0xa0] sm:$0xff] %vm388_vm3, %v8045_v39  ;;  %v7110_v31 = vpop.f32.mrf.mxu3 }
 0x7d2   : > { %v7924_v25 = vpop.f32.mrf.mxu2  ;;  %v7150_v39 = vadd.f32 %v7110_v31, %v12440_v19  ;;  %v7706_v27 = vadd.f32 %v7664_v15, %v7428_v42 }
 0x7d3   : > { %v7978_v58 = vadd.f32 %v7924_v25, %v7700_v40 }
 0x7d5   : > { %v8014_v1 = vadd.f32 %v12469_v0, %v7978_v58 }
 0x7d7   : > { %v8046_v46 = vmax.f32 %v8014_v1, 0.0  ;;  %v7389_v62 = vpop.f32.mrf.mxu0  ;;  %v7670_v19 = vpop.f32.mrf.mxu1 }
 0x7d8   : > { %v7429_v25 = vadd.f32 %v7389_v62, %v7150_v39 }
 0x7d9   : > { %8078 = vst.msk [vmem:[%s12477_s21 + $0xa8] sm:$0xff] %vm388_vm3, %v8046_v46  ;;  %v7113_v45 = vpop.f32.mrf.mxu3 }
 0x7da   : > { %v7927_v20 = vpop.f32.mrf.mxu2  ;;  %v7151_v56 = vadd.f32 %v7113_v45, %v12450_v52  ;;  %v7707_v46 = vadd.f32 %v7667_v10, %v7429_v25 }
 0x7db   : > { %v7979_v5 = vadd.f32 %v7927_v20, %v7701_v24 }
 0x7dd   : > { %v8015_v13 = vadd.f32 %v12469_v0, %v7979_v5 }
 0x7df   : > { %v8047_v7 = vmax.f32 %v8015_v13, 0.0  ;;  %v7392_v1 = vpop.f32.mrf.mxu0  ;;  %v7673_v44 = vpop.f32.mrf.mxu1 }
 0x7e0   : > { %v7430_v53 = vadd.f32 %v7392_v1, %v7151_v56 }
 0x7e1   : > { %8079 = vst.msk [vmem:[%s12477_s21 + $0xb0] sm:$0xff] %vm388_vm3, %v8047_v7  ;;  %v7116_v24 = vpop.f32.mrf.mxu3 }
 0x7e2   : > { %v7930_v41 = vpop.f32.mrf.mxu2  ;;  %v7152_v13 = vadd.f32 %v7116_v24, %v12459_v55  ;;  %v7708_v7 = vadd.f32 %v7670_v19, %v7430_v53 }
 0x7e3   : > { %v7980_v12 = vadd.f32 %v7930_v41, %v7702_v18 }
 0x7e5   : > { %v8016_v23 = vadd.f32 %v12469_v0, %v7980_v12 }
 0x7e7   : > { %v8048_v32 = vmax.f32 %v8016_v23, 0.0  ;;  %v7395_v4 = vpop.f32.mrf.mxu0  ;;  %v7676_v49 = vpop.f32.mrf.mxu1 }
 0x7e8   : > { %v7431_v18 = vadd.f32 %v7395_v4, %v7152_v13 }
 0x7e9   : > { %8080 = vst.msk [vmem:[%s12477_s21 + $0xb8] sm:$0xff] %vm388_vm3, %v8048_v32  ;;  %v7119_v29 = vpop.f32.mrf.mxu3 }
 0x7ea   : > { %v7933_v60 = vpop.f32.mrf.mxu2  ;;  %v7709_v33 = vadd.f32 %v7673_v44, %v7431_v18  ;;  %v7153_v34 = vadd.f32 %v7119_v29, %v12463_v36 }
 0x7eb   : > { %v7981_v61 = vadd.f32 %v7933_v60, %v7703_v2 }
 0x7ed   : > { %v8017_v51 = vadd.f32 %v12469_v0, %v7981_v61 }
 0x7ef   : > { %v8049_v8 = vmax.f32 %v8017_v51, 0.0  ;;  %v7398_v23 = vpop.f32.mrf.mxu0 }
 0x7f0   : > { %v7432_v16 = vadd.f32 %v7398_v23, %v7153_v34 }
 0x7f1   : > { %8081 = vst.msk [vmem:[%s12477_s21 + $0xc0] sm:$0xff] %vm388_vm3, %v8049_v8 }
 0x7f2   : > { %v7936_v26 = vpop.f32.mrf.mxu2  ;;  %v7710_v61 = vadd.f32 %v7676_v49, %v7432_v16 }
 0x7f3   : > { %v7982_v21 = vadd.f32 %v7936_v26, %v7704_v48 }
 0x7f5   : > { %v8018_v3 = vadd.f32 %v12469_v0, %v7982_v21 }
 0x7f7   : > { %v8050_v54 = vmax.f32 %v8018_v3, 0.0 }
 0x7f9   : > { %8082 = vst.msk [vmem:[%s12477_s21 + $0xc8] sm:$0xff] %vm388_vm3, %v8050_v54 }
 0x7fa   : > { %v7939_v22 = vpop.f32.mrf.mxu2 }
 0x7fb   : > { %v7983_v50 = vadd.f32 %v7939_v22, %v7705_v57 }
 0x7fd   : > { %v8019_v59 = vadd.f32 %v12469_v0, %v7983_v50 }
 0x7ff   : > { %v8051_v37 = vmax.f32 %v8019_v59, 0.0 }
 0x801   : > { %8083 = vst.msk [vmem:[%s12477_s21 + $0xd0] sm:$0xff] %vm388_vm3, %v8051_v37 }
 0x802   : > { %v7942_v40 = vpop.f32.mrf.mxu2 }
 0x803   : > { %v7984_v38 = vadd.f32 %v7942_v40, %v7706_v27 }
 0x805   : > { %v8020_v58 = vadd.f32 %v12469_v0, %v7984_v38 }
 0x807   : > { %v8052_v30 = vmax.f32 %v8020_v58, 0.0 }
 0x809   : > { %8084 = vst.msk [vmem:[%s12477_s21 + $0xd8] sm:$0xff] %vm388_vm3, %v8052_v30 }
 0x80a   : > { %v7945_v11 = vpop.f32.mrf.mxu2 }
 0x80b   : > { %v7985_v14 = vadd.f32 %v7945_v11, %v7707_v46 }
 0x80d   : > { %v8021_v20 = vadd.f32 %v12469_v0, %v7985_v14 }
 0x80f   : > { %v8053_v5 = vmax.f32 %v8021_v20, 0.0 }
 0x811   : > { %8085 = vst.msk [vmem:[%s12477_s21 + $0xe0] sm:$0xff] %vm388_vm3, %v8053_v5 }
 0x812   : > { %v7948_v47 = vpop.f32.mrf.mxu2 }
 0x813   : > { %v7986_v52 = vadd.f32 %v7948_v47, %v7708_v7 }
 0x815   : > { %v8022_v41 = vadd.f32 %v12469_v0, %v7986_v52 }
 0x817   : > { %v8054_v12 = vmax.f32 %v8022_v41, 0.0 }
 0x819   : > { %8086 = vst.msk [vmem:[%s12477_s21 + $0xe8] sm:$0xff] %vm388_vm3, %v8054_v12 }
 0x81a   : > { %v7951_v55 = vpop.f32.mrf.mxu2 }
 0x81b   : > { %v7987_v32 = vadd.f32 %v7951_v55, %v7709_v33 }
 0x81d   : > { %v8023_v2 = vadd.f32 %v12469_v0, %v7987_v32 }
 0x81f   : > { %v8055_v60 = vmax.f32 %v8023_v2, 0.0 }
 0x821   : > { %8087 = vst.msk [vmem:[%s12477_s21 + $0xf0] sm:$0xff] %vm388_vm3, %v8055_v60 }
 0x822   : > { %v7954_v17 = vpop.f32.mrf.mxu2 }
 0x823   : > { %v7988_v6 = vadd.f32 %v7954_v17, %v7710_v61 }
 0x825   : > { %v8024_v51 = vadd.f32 %v12469_v0, %v7988_v6 }
 0x827   : > { %v8056_v63 = vmax.f32 %v8024_v51, 0.0 }
 0x829   : > { %8088 = vst.msk [vmem:[%s12477_s21 + $0xf8] sm:$0xff] %vm388_vm3, %v8056_v63 }
 0x82a PF: > { %s17_s24 = sadd.s32 1, %s9110_s24  }
 0x82b   : > { %p14_p4 = scmp.ge.s32.totalorder %s17_s24, 4  }
 0x82d   :  { %16 = sbr.rel (!%p14_p4) target bundleno = 1 (0x1), region = 114 }

</bundles_post_ra>
